<compile_context>
chip_gen: v5e
topology: v5e:2x2
jax: 0.10.0
libtpu: 0.0.40
codegen_flags: <defaults>
</compile_context>

<pallas_src>
import functools

import jax
import jax.numpy as jnp
from jax import lax
from jax.experimental import pallas as pl
from jax.experimental.pallas import tpu as pltpu


# --------------------------------------------------------------------------- #
# Kernel 1: flash-style multi-head GAT per metapath + semantic-score epilogue  #
# --------------------------------------------------------------------------- #
def _gat_semantic_kernel(hq_ref, hk_ref, w_ref, asrc_ref, adst_ref, adj_ref,
                         w1_ref, b1_ref, w2_ref,
                         z_ref, score_ref,
                         whq_sc, src_sc, m_sc, l_sc, acc_sc,
                         *, num_heads, hid_size, alpha):
    k = pl.program_id(2)
    nk = pl.num_programs(2)

    # ---- init for a new (m, q) tile: transform query rows once, reset state ---- #
    @pl.when(k == 0)
    def _():
        wh_q = jnp.dot(hq_ref[...], w_ref[0], preferred_element_type=jnp.float32)
        whq_sc[...] = wh_q                                         # (tq, D)
        # all-head source scores in one MXU contraction: (tq, D) x (H, D)^T -> (tq, H)
        src_sc[...] = lax.dot_general(
            wh_q, asrc_ref[0], (((1,), (1,)), ((), ())),
            preferred_element_type=jnp.float32)
        m_sc[...] = jnp.full(m_sc.shape, -jnp.inf, jnp.float32)
        l_sc[...] = jnp.zeros(l_sc.shape, jnp.float32)
        acc_sc[...] = jnp.zeros(acc_sc.shape, jnp.float32)

    # ---- per key tile ---- #
    wh_k = jnp.dot(hk_ref[...], w_ref[0], preferred_element_type=jnp.float32)   # (tk, D)
    # destination scores produced directly in (H, tk) lane layout -> no XLU transpose
    dst = lax.dot_general(adst_ref[0], wh_k, (((1,), (1,)), ((), ())),
                          preferred_element_type=jnp.float32)                   # (H, tk)
    not_edge = adj_ref[0].astype(jnp.float32) == 0.0                            # (tq, tk)

    for hd in range(num_heads):
        lo = hd * hid_size
        e = src_sc[:, hd:hd + 1] + dst[hd:hd + 1, :]             # (tq, tk)
        e = jnp.where(e > 0, e, alpha * e)                       # LeakyReLU(alpha)
        e = jnp.where(not_edge, -1e9, e)                         # mask non-edges
        m_prev = m_sc[:, hd:hd + 1]
        m_new = jnp.maximum(m_prev, jnp.max(e, axis=-1, keepdims=True))
        corr = jnp.exp(m_prev - m_new)
        p = jnp.exp(e - m_new)                                   # (tq, tk)
        l_sc[:, hd:hd + 1] = (corr * l_sc[:, hd:hd + 1]
                              + jnp.sum(p, axis=-1, keepdims=True))
        acc_sc[:, lo:lo + hid_size] = (
            corr * acc_sc[:, lo:lo + hid_size]
            + jnp.dot(p, wh_k[:, lo:lo + hid_size], preferred_element_type=jnp.float32))
        m_sc[:, hd:hd + 1] = m_new

    # ---- finalize: normalize, ELU, write z; semantic-score epilogue ---- #
    @pl.when(k == nk - 1)
    def _():
        for hd in range(num_heads):
            lo = hd * hid_size
            inv_l = pl.reciprocal(l_sc[:, hd:hd + 1], approx=True)     # EUP slot
            o = acc_sc[:, lo:lo + hid_size] * inv_l
            o = jnp.where(o > 0, o, jnp.exp(jnp.minimum(o, 0.0)) - 1.0)  # ELU (clamped exp)
            z_ref[0, :, lo:lo + hid_size] = o                    # direct lane-slice store
        z = z_ref[0]                                             # (tq, D), still in VMEM
        t = jnp.tanh(jnp.dot(z, w1_ref[...], preferred_element_type=jnp.float32)
                     + b1_ref[...])
        score_ref[0] = jnp.sum(t * w2_ref[...], axis=-1, keepdims=True)   # (tq, 1)


def gat_semantic_embeddings(h, W, A_src, A_dst, adj_i8, W1, b1, w2_row,
                            *, num_heads, hid_size, alpha, tq=128, tk=128):
    M, Fin, D = W.shape
    N = h.shape[0]
    Hs = W1.shape[1]
    H = num_heads
    assert N % tq == 0 and N % tk == 0, "N must be a multiple of the node tile sizes"
    kernel = functools.partial(_gat_semantic_kernel,
                               num_heads=num_heads, hid_size=hid_size, alpha=alpha)
    return pl.pallas_call(
        kernel,
        out_shape=(jax.ShapeDtypeStruct((M, N, D), jnp.float32),
                   jax.ShapeDtypeStruct((M, N, 1), jnp.float32)),
        grid_spec=pltpu.PrefetchScalarGridSpec(
            num_scalar_prefetch=0,
            grid=(M, N // tq, N // tk),
            in_specs=[
                pl.BlockSpec((tq, Fin), lambda m, q, k: (q, 0)),       # h (query rows)
                pl.BlockSpec((tk, Fin), lambda m, q, k: (k, 0)),       # h (key rows)
                pl.BlockSpec((1, Fin, D), lambda m, q, k: (m, 0, 0)),  # W[m]
                pl.BlockSpec((1, H, D), lambda m, q, k: (m, 0, 0)),    # A_src[m]
                pl.BlockSpec((1, H, D), lambda m, q, k: (m, 0, 0)),    # A_dst[m]
                pl.BlockSpec((1, tq, tk), lambda m, q, k: (m, q, k)),  # int8 adjacency tile
                pl.BlockSpec((D, Hs), lambda m, q, k: (0, 0)),         # W1 (resident)
                pl.BlockSpec((1, Hs), lambda m, q, k: (0, 0)),         # b1 (resident)
                pl.BlockSpec((1, Hs), lambda m, q, k: (0, 0)),         # w2 row (resident)
            ],
            out_specs=[
                pl.BlockSpec((1, tq, D), lambda m, q, k: (m, q, 0)),   # z (lane-dense D)
                pl.BlockSpec((1, tq, 1), lambda m, q, k: (m, q, 0)),   # per-node score
            ],
            scratch_shapes=[
                pltpu.VMEM((tq, D), jnp.float32),   # Wh for the query tile
                pltpu.VMEM((tq, H), jnp.float32),   # per-head source scores
                pltpu.VMEM((tq, H), jnp.float32),   # running max
                pltpu.VMEM((tq, H), jnp.float32),   # running sum
                pltpu.VMEM((tq, D), jnp.float32),   # output accumulator
            ],
        ),
        compiler_params=pltpu.CompilerParams(
            dimension_semantics=("parallel", "parallel", "arbitrary"),
            vmem_limit_bytes=32 * 1024 * 1024),
    )(h, h, W, A_src, A_dst, adj_i8, W1, b1, w2_row)


# --------------------------------------------------------------------------- #
# Kernel 2: beta-weighted sum over metapaths, tiled over nodes                 #
# --------------------------------------------------------------------------- #
def _semantic_fuse_kernel(beta_ref, z_ref, out_ref, *, num_meta_paths):
    acc = z_ref[0] * beta_ref[0:1, :]
    for m in range(1, num_meta_paths):
        acc = acc + z_ref[m] * beta_ref[m:m + 1, :]
    out_ref[...] = acc


def semantic_fuse(beta, z, *, tn=128):
    M, N, D = z.shape
    assert N % tn == 0
    kernel = functools.partial(_semantic_fuse_kernel, num_meta_paths=M)
    return pl.pallas_call(
        kernel,
        out_shape=jax.ShapeDtypeStruct((N, D), jnp.float32),
        grid_spec=pltpu.PrefetchScalarGridSpec(
            num_scalar_prefetch=0,
            grid=(N // tn,),
            in_specs=[
                pl.BlockSpec((M, 1), lambda n: (0, 0)),        # beta (tiny, resident)
                pl.BlockSpec((M, tn, D), lambda n: (0, n, 0)),
            ],
            out_specs=pl.BlockSpec((tn, D), lambda n: (n, 0)),
        ),
        compiler_params=pltpu.CompilerParams(
            dimension_semantics=("parallel",)),
    )(beta, z)


# --------------------------------------------------------------------------- #
# HANLayer forward (glue)                                                      #
# --------------------------------------------------------------------------- #
def han_layer_forward(h, adj, params, *, num_heads, hid_size, alpha):
    M = adj.shape[0]
    D = num_heads * hid_size

    # Adjacency is only ever compared against zero -> ship a compact int8 mask.
    adj_i8 = (adj > 0).astype(jnp.int8)

    # Fold the per-head attention vectors into block-diagonal (H, H*hid) matrices
    # so the per-head (Wh * a).sum(-1) reductions become single MXU contractions.
    eye = jnp.eye(num_heads, dtype=jnp.float32)
    A_src = (params["a_src"][:, :, None, :] * eye[None, :, :, None]
             ).reshape(M, num_heads, D)
    A_dst = (params["a_dst"][:, :, None, :] * eye[None, :, :, None]
             ).reshape(M, num_heads, D)
    w2_row = params["w2"].T                                         # (1, Hs)

    z, score = gat_semantic_embeddings(
        h, params["W"], A_src, A_dst, adj_i8, params["W1"], params["b1"], w2_row,
        num_heads=num_heads, hid_size=hid_size, alpha=alpha)

    # Tiny (M,)-sized reduction + softmax -> plain JAX.
    w = jnp.mean(score[..., 0], axis=1)                             # (M,)
    beta = jax.nn.softmax(w)                                        # (M,)

    return semantic_fuse(beta.reshape(M, 1), z)


# --------------------------------------------------------------------------- #
# Pure-JAX reference (for correctness check)                                   #
# --------------------------------------------------------------------------- #
def reference(h, adj, params, *, num_heads, hid_size, alpha):
    M = adj.shape[0]
    embs = []
    for m in range(M):
        Wh = h @ params["W"][m]
        heads = []
        for hd in range(num_heads):
            Wh_h = Wh[:, hd * hid_size:(hd + 1) * hid_size]
            ss = (Wh_h * params["a_src"][m, hd][None]).sum(-1, keepdims=True)
            sd = (Wh_h * params["a_dst"][m, hd][None]).sum(-1, keepdims=True)
            e = ss + sd.T
            e = jnp.where(e > 0, e, alpha * e)
            e = jnp.where(adj[m] <= 0, -1e9, e)
            a = jax.nn.softmax(e, axis=-1)
            o = a @ Wh_h
            heads.append(jnp.where(o > 0, o, jnp.exp(jnp.minimum(o, 0.0)) - 1.0))
        embs.append(jnp.concatenate(heads, axis=-1))
    z = jnp.stack(embs, axis=0)                                    # (M, N, D)
    p = jnp.tanh(z @ params["W1"] + params["b1"]) @ params["w2"]   # (M, N, 1)
    wsc = p.mean(axis=1)                                           # (M, 1)
    beta = jax.nn.softmax(wsc, axis=0)                             # (M, 1)
    return (beta[:, None, :] * z).sum(0)                           # (N, D)


# --------------------------------------------------------------------------- #
# Main                                                                         #
# --------------------------------------------------------------------------- #
if __name__ == "__main__":
    M, N, Fin = 3, 256, 32          # metapaths, nodes, in_ent_size
    hid, H = 32, 4                  # hid_size, num_heads -> D = 128 (lane-dense output)
    Hs = 128                        # semantic-attention hidden size (default)
    alpha = 0.2

    key = jax.random.PRNGKey(0)
    ks = jax.random.split(key, 8)

    h = jax.random.normal(ks[0], (N, Fin), jnp.float32)
    adj = (jax.random.uniform(ks[1], (M, N, N)) < 0.05).astype(jnp.float32)
    adj = jnp.maximum(adj, jnp.eye(N, dtype=jnp.float32)[None])    # add self-loops

    params = {
        "W":     jax.random.normal(ks[2], (M, Fin, H * hid), jnp.float32) * 0.2,
        "a_src": jax.random.normal(ks[3], (M, H, hid), jnp.float32) * 0.2,
        "a_dst": jax.random.normal(ks[4], (M, H, hid), jnp.float32) * 0.2,
        "W1":    jax.random.normal(ks[5], (H * hid, Hs), jnp.float32) * 0.1,
        "b1":    jnp.zeros((1, Hs), jnp.float32),
        "w2":    jax.random.normal(ks[6], (Hs, 1), jnp.float32) * 0.1,
    }

    out = han_layer_forward(h, adj, params, num_heads=H, hid_size=hid, alpha=alpha)
    out = jax.block_until_ready(out)

    ref = reference(h, adj, params, num_heads=H, hid_size=hid, alpha=alpha)
    assert out.shape == (N, H * hid), out.shape
    # Tolerance accounts for the EUP approx reciprocal in the softmax
    # normalization plus flash-style accumulation reordering.
    err = float(jnp.max(jnp.abs(out - ref)))
    assert jnp.allclose(out, ref, atol=1e-2, rtol=1e-2), f"max abs err {err}"
    print("KERNEL_OK")
</pallas_src>

<mosaic_0001>
module attributes {stable_mosaic.version = 11 : i64} {
  func.func @_gat_semantic_kernel(%arg0: i32, %arg1: i32, %arg2: i32, %arg3: memref<128x32xf32, #tpu.memory_space<vmem>>, %arg4: memref<128x32xf32, #tpu.memory_space<vmem>>, %arg5: memref<1x32x128xf32, #tpu.memory_space<vmem>>, %arg6: memref<1x4x128xf32, #tpu.memory_space<vmem>>, %arg7: memref<1x4x128xf32, #tpu.memory_space<vmem>>, %arg8: memref<1x128x128xi8, #tpu.memory_space<vmem>>, %arg9: memref<128x128xf32, #tpu.memory_space<vmem>>, %arg10: memref<1x128xf32, #tpu.memory_space<vmem>>, %arg11: memref<1x128xf32, #tpu.memory_space<vmem>>, %arg12: memref<1x128x128xf32, #tpu.memory_space<vmem>>, %arg13: memref<1x128x1xf32, #tpu.memory_space<vmem>>, %arg14: memref<128x128xf32, #tpu.memory_space<vmem>>, %arg15: memref<128x4xf32, #tpu.memory_space<vmem>>, %arg16: memref<128x4xf32, #tpu.memory_space<vmem>>, %arg17: memref<128x4xf32, #tpu.memory_space<vmem>>, %arg18: memref<128x128xf32, #tpu.memory_space<vmem>>) attributes {dimension_semantics = [#tpu.dimension_semantics<parallel>, #tpu.dimension_semantics<parallel>, #tpu.dimension_semantics<arbitrary>], iteration_bounds = array<i64: 3, 2, 2>, scalar_prefetch = 0 : i64, scratch_operands = 5 : i64, tpu.core_type = #tpu.core_type<tc>, window_params = [{transform_indices = @transform_0, window_bounds = array<i64: 128, 32>}, {transform_indices = @transform_1, window_bounds = array<i64: 128, 32>}, {transform_indices = @transform_2, window_bounds = array<i64: 1, 32, 128>}, {transform_indices = @transform_3, window_bounds = array<i64: 1, 4, 128>}, {transform_indices = @transform_4, window_bounds = array<i64: 1, 4, 128>}, {transform_indices = @transform_5, window_bounds = array<i64: 1, 128, 128>}, {pipeline_mode = #tpu.pipeline_mode<synchronous>, transform_indices = @transform_6, window_bounds = array<i64: 128, 128>}, {pipeline_mode = #tpu.pipeline_mode<synchronous>, transform_indices = @transform_7, window_bounds = array<i64: 1, 128>}, {pipeline_mode = #tpu.pipeline_mode<synchronous>, transform_indices = @transform_8, window_bounds = array<i64: 1, 128>}, {transform_indices = @transform_9, window_bounds = array<i64: 1, 128, 128>}, {transform_indices = @transform_10, window_bounds = array<i64: 1, 128, 1>}]} {
    %c0_i32 = arith.constant 0 : i32
    %0 = arith.cmpi eq, %arg2, %c0_i32 : i32
    %1 = arith.extui %0 : i1 to i32
    %c0_i32_0 = arith.constant 0 : i32
    %2 = arith.cmpi ne, %1, %c0_i32_0 : i32
    scf.if %2 {
      %c0_88 = arith.constant 0 : index
      %c0_89 = arith.constant 0 : index
      %158 = vector.load %arg3[%c0_88, %c0_89] : memref<128x32xf32, #tpu.memory_space<vmem>>, vector<128x32xf32>
      %c0_90 = arith.constant 0 : index
      %c0_91 = arith.constant 0 : index
      %c0_92 = arith.constant 0 : index
      %159 = vector.load %arg5[%c0_90, %c0_91, %c0_92] : memref<1x32x128xf32, #tpu.memory_space<vmem>>, vector<1x32x128xf32>
      %160 = vector.shape_cast %159 : vector<1x32x128xf32> to vector<32x128xf32>
      %cst_93 = arith.constant dense<0.000000e+00> : vector<128x128xf32>
      %161 = tpu.matmul %158, %160, %cst_93 {dimension_numbers = #tpu.dot_dimension_numbers<[1], [0], [0], [1], [0, 0, 1, 1], [], []>} : vector<128x32xf32>, vector<32x128xf32>, vector<128x128xf32> -> vector<128x128xf32>
      %c0_94 = arith.constant 0 : index
      %c0_95 = arith.constant 0 : index
      %162 = vector.load %arg14[%c0_94, %c0_95] : memref<128x128xf32, #tpu.memory_space<vmem>>, vector<128x128xf32>
      tpu.vector_store %arg14[%c0_94, %c0_95], %161 {strides = array<i32>} : memref<128x128xf32, #tpu.memory_space<vmem>>, vector<128x128xf32>,
      %c0_96 = arith.constant 0 : index
      %c0_97 = arith.constant 0 : index
      %c0_98 = arith.constant 0 : index
      %163 = vector.load %arg6[%c0_96, %c0_97, %c0_98] : memref<1x4x128xf32, #tpu.memory_space<vmem>>, vector<1x4x128xf32>
      %164 = vector.shape_cast %163 : vector<1x4x128xf32> to vector<4x128xf32>
      %cst_99 = arith.constant dense<0.000000e+00> : vector<128x4xf32>
      %165 = tpu.matmul %161, %164, %cst_99 {dimension_numbers = #tpu.dot_dimension_numbers<[1], [1], [0], [0], [0, 0, 1, 0], [], []>} : vector<128x128xf32>, vector<4x128xf32>, vector<128x4xf32> -> vector<128x4xf32>
      %c0_100 = arith.constant 0 : index
      %c0_101 = arith.constant 0 : index
      %166 = vector.load %arg15[%c0_100, %c0_101] : memref<128x4xf32, #tpu.memory_space<vmem>>, vector<128x4xf32>
      tpu.vector_store %arg15[%c0_100, %c0_101], %165 {strides = array<i32>} : memref<128x4xf32, #tpu.memory_space<vmem>>, vector<128x4xf32>,
      %cst_102 = arith.constant 0xFF800000 : f32
      %167 = vector.broadcast %cst_102 : f32 to vector<128x4xf32>
      %c0_103 = arith.constant 0 : index
      %c0_104 = arith.constant 0 : index
      %168 = vector.load %arg16[%c0_103, %c0_104] : memref<128x4xf32, #tpu.memory_space<vmem>>, vector<128x4xf32>
      tpu.vector_store %arg16[%c0_103, %c0_104], %167 {strides = array<i32>} : memref<128x4xf32, #tpu.memory_space<vmem>>, vector<128x4xf32>,
      %cst_105 = arith.constant 0.000000e+00 : f32
      %169 = vector.broadcast %cst_105 : f32 to vector<128x4xf32>
      %c0_106 = arith.constant 0 : index
      %c0_107 = arith.constant 0 : index
      %170 = vector.load %arg17[%c0_106, %c0_107] : memref<128x4xf32, #tpu.memory_space<vmem>>, vector<128x4xf32>
      tpu.vector_store %arg17[%c0_106, %c0_107], %169 {strides = array<i32>} : memref<128x4xf32, #tpu.memory_space<vmem>>, vector<128x4xf32>,
      %cst_108 = arith.constant 0.000000e+00 : f32
      %171 = vector.broadcast %cst_108 : f32 to vector<128x128xf32>
      %c0_109 = arith.constant 0 : index
      %c0_110 = arith.constant 0 : index
      %172 = vector.load %arg18[%c0_109, %c0_110] : memref<128x128xf32, #tpu.memory_space<vmem>>, vector<128x128xf32>
      tpu.vector_store %arg18[%c0_109, %c0_110], %171 {strides = array<i32>} : memref<128x128xf32, #tpu.memory_space<vmem>>, vector<128x128xf32>,
    } else {
    }
    %c0 = arith.constant 0 : index
    %c0_1 = arith.constant 0 : index
    %3 = vector.load %arg4[%c0, %c0_1] : memref<128x32xf32, #tpu.memory_space<vmem>>, vector<128x32xf32>
    %c0_2 = arith.constant 0 : index
    %c0_3 = arith.constant 0 : index
    %c0_4 = arith.constant 0 : index
    %4 = vector.load %arg5[%c0_2, %c0_3, %c0_4] : memref<1x32x128xf32, #tpu.memory_space<vmem>>, vector<1x32x128xf32>
    %5 = vector.shape_cast %4 : vector<1x32x128xf32> to vector<32x128xf32>
    %cst = arith.constant dense<0.000000e+00> : vector<128x128xf32>
    %6 = tpu.matmul %3, %5, %cst {dimension_numbers = #tpu.dot_dimension_numbers<[1], [0], [0], [1], [0, 0, 1, 1], [], []>} : vector<128x32xf32>, vector<32x128xf32>, vector<128x128xf32> -> vector<128x128xf32>
    %c0_5 = arith.constant 0 : index
    %c0_6 = arith.constant 0 : index
    %c0_7 = arith.constant 0 : index
    %7 = vector.load %arg7[%c0_5, %c0_6, %c0_7] : memref<1x4x128xf32, #tpu.memory_space<vmem>>, vector<1x4x128xf32>
    %8 = vector.shape_cast %7 : vector<1x4x128xf32> to vector<4x128xf32>
    %cst_8 = arith.constant dense<0.000000e+00> : vector<4x128xf32>
    %9 = tpu.matmul %8, %6, %cst_8 {dimension_numbers = #tpu.dot_dimension_numbers<[1], [1], [0], [0], [0, 0, 1, 0], [], []>} : vector<4x128xf32>, vector<128x128xf32>, vector<4x128xf32> -> vector<4x128xf32>
    %c0_9 = arith.constant 0 : index
    %c0_10 = arith.constant 0 : index
    %c0_11 = arith.constant 0 : index
    %10 = vector.load %arg8[%c0_9, %c0_10, %c0_11] : memref<1x128x128xi8, #tpu.memory_space<vmem>>, vector<1x128x128xi8>
    %11 = vector.shape_cast %10 : vector<1x128x128xi8> to vector<128x128xi8>
    %12 = arith.sitofp %11 : vector<128x128xi8> to vector<128x128xf32>
    %cst_12 = arith.constant 0.000000e+00 : f32
    %13 = vector.broadcast %cst_12 : f32 to vector<128x128xf32>
    %14 = arith.cmpf oeq, %12, %13 : vector<128x128xf32>
    %c0_13 = arith.constant 0 : index
    %c0_14 = arith.constant 0 : index
    %15 = vector.load %arg15[%c0_13, %c0_14] : memref<128x4xf32, #tpu.memory_space<vmem>>, vector<128x1xf32>
    %16 = vector.extract_strided_slice %9 {offsets = [0, 0], sizes = [1, 128], strides = [1, 1]} : vector<4x128xf32> to vector<1x128xf32>
    %17 = vector.broadcast %15 : vector<128x1xf32> to vector<128x128xf32>
    %18 = vector.broadcast %16 : vector<1x128xf32> to vector<128x128xf32>
    %19 = arith.addf %17, %18 : vector<128x128xf32>
    %cst_15 = arith.constant 0.000000e+00 : f32
    %20 = vector.broadcast %cst_15 : f32 to vector<128x128xf32>
    %21 = arith.cmpf ogt, %19, %20 : vector<128x128xf32>
    %cst_16 = arith.constant 2.000000e-01 : f32
    %22 = vector.broadcast %cst_16 : f32 to vector<128x128xf32>
    %23 = arith.mulf %22, %19 : vector<128x128xf32>
    %24 = arith.select %21, %19, %23 : vector<128x128xi1>, vector<128x128xf32>
    %cst_17 = arith.constant -1.000000e+09 : f32
    %25 = vector.broadcast %cst_17 : f32 to vector<128x128xf32>
    %26 = arith.select %14, %25, %24 : vector<128x128xi1>, vector<128x128xf32>
    %c0_18 = arith.constant 0 : index
    %c0_19 = arith.constant 0 : index
    %27 = vector.load %arg16[%c0_18, %c0_19] : memref<128x4xf32, #tpu.memory_space<vmem>>, vector<128x1xf32>
    %cst_20 = arith.constant dense<0xFF800000> : vector<128xf32>
    %28 = vector.multi_reduction <maximumf>, %26, %cst_20 [1] : vector<128x128xf32> to vector<128xf32>
    %29 = vector.shape_cast %28 : vector<128xf32> to vector<128x1xf32>
    %30 = arith.maximumf %27, %29 : vector<128x1xf32>
    %31 = arith.subf %27, %30 : vector<128x1xf32>
    %32 = math.exp %31 : vector<128x1xf32>
    %33 = vector.broadcast %30 : vector<128x1xf32> to vector<128x128xf32>
    %34 = arith.subf %26, %33 : vector<128x128xf32>
    %35 = math.exp %34 : vector<128x128xf32>
    %c0_21 = arith.constant 0 : index
    %c0_22 = arith.constant 0 : index
    %36 = vector.load %arg17[%c0_21, %c0_22] : memref<128x4xf32, #tpu.memory_space<vmem>>, vector<128x1xf32>
    %37 = arith.mulf %32, %36 : vector<128x1xf32>
    %cst_23 = arith.constant dense<0.000000e+00> : vector<128xf32>
    %38 = vector.multi_reduction <add>, %35, %cst_23 [1] : vector<128x128xf32> to vector<128xf32>
    %39 = vector.shape_cast %38 : vector<128xf32> to vector<128x1xf32>
    %40 = arith.addf %37, %39 : vector<128x1xf32>
    %c0_24 = arith.constant 0 : index
    %c0_25 = arith.constant 0 : index
    %41 = vector.load %arg17[%c0_24, %c0_25] : memref<128x4xf32, #tpu.memory_space<vmem>>, vector<128x1xf32>
    tpu.vector_store %arg17[%c0_24, %c0_25], %40 {strides = array<i32>} : memref<128x4xf32, #tpu.memory_space<vmem>>, vector<128x1xf32>,
    %c0_26 = arith.constant 0 : index
    %c0_27 = arith.constant 0 : index
    %42 = vector.load %arg18[%c0_26, %c0_27] : memref<128x128xf32, #tpu.memory_space<vmem>>, vector<128x32xf32>
    %43 = vector.broadcast %32 : vector<128x1xf32> to vector<128x32xf32>
    %44 = arith.mulf %43, %42 : vector<128x32xf32>
    %45 = vector.extract_strided_slice %6 {offsets = [0, 0], sizes = [128, 32], strides = [1, 1]} : vector<128x128xf32> to vector<128x32xf32>
    %cst_28 = arith.constant dense<0.000000e+00> : vector<128x32xf32>
    %46 = tpu.matmul %35, %45, %cst_28 {dimension_numbers = #tpu.dot_dimension_numbers<[1], [0], [0], [1], [0, 0, 1, 1], [], []>} : vector<128x128xf32>, vector<128x32xf32>, vector<128x32xf32> -> vector<128x32xf32>
    %47 = arith.addf %44, %46 : vector<128x32xf32>
    %c0_29 = arith.constant 0 : index
    %c0_30 = arith.constant 0 : index
    %48 = vector.load %arg18[%c0_29, %c0_30] : memref<128x128xf32, #tpu.memory_space<vmem>>, vector<128x32xf32>
    tpu.vector_store %arg18[%c0_29, %c0_30], %47 {strides = array<i32>} : memref<128x128xf32, #tpu.memory_space<vmem>>, vector<128x32xf32>,
    %c0_31 = arith.constant 0 : index
    %c0_32 = arith.constant 0 : index
    %49 = vector.load %arg16[%c0_31, %c0_32] : memref<128x4xf32, #tpu.memory_space<vmem>>, vector<128x1xf32>
    tpu.vector_store %arg16[%c0_31, %c0_32], %30 {strides = array<i32>} : memref<128x4xf32, #tpu.memory_space<vmem>>, vector<128x1xf32>,
    %c0_33 = arith.constant 0 : index
    %c1 = arith.constant 1 : index
    %50 = vector.load %arg15[%c0_33, %c1] : memref<128x4xf32, #tpu.memory_space<vmem>>, vector<128x1xf32>
    %51 = vector.extract_strided_slice %9 {offsets = [1, 0], sizes = [1, 128], strides = [1, 1]} : vector<4x128xf32> to vector<1x128xf32>
    %52 = vector.broadcast %50 : vector<128x1xf32> to vector<128x128xf32>
    %53 = vector.broadcast %51 : vector<1x128xf32> to vector<128x128xf32>
    %54 = arith.addf %52, %53 : vector<128x128xf32>
    %cst_34 = arith.constant 0.000000e+00 : f32
    %55 = vector.broadcast %cst_34 : f32 to vector<128x128xf32>
    %56 = arith.cmpf ogt, %54, %55 : vector<128x128xf32>
    %cst_35 = arith.constant 2.000000e-01 : f32
    %57 = vector.broadcast %cst_35 : f32 to vector<128x128xf32>
    %58 = arith.mulf %57, %54 : vector<128x128xf32>
    %59 = arith.select %56, %54, %58 : vector<128x128xi1>, vector<128x128xf32>
    %cst_36 = arith.constant -1.000000e+09 : f32
    %60 = vector.broadcast %cst_36 : f32 to vector<128x128xf32>
    %61 = arith.select %14, %60, %59 : vector<128x128xi1>, vector<128x128xf32>
    %c0_37 = arith.constant 0 : index
    %c1_38 = arith.constant 1 : index
    %62 = vector.load %arg16[%c0_37, %c1_38] : memref<128x4xf32, #tpu.memory_space<vmem>>, vector<128x1xf32>
    %cst_39 = arith.constant dense<0xFF800000> : vector<128xf32>
    %63 = vector.multi_reduction <maximumf>, %61, %cst_39 [1] : vector<128x128xf32> to vector<128xf32>
    %64 = vector.shape_cast %63 : vector<128xf32> to vector<128x1xf32>
    %65 = arith.maximumf %62, %64 : vector<128x1xf32>
    %66 = arith.subf %62, %65 : vector<128x1xf32>
    %67 = math.exp %66 : vector<128x1xf32>
    %68 = vector.broadcast %65 : vector<128x1xf32> to vector<128x128xf32>
    %69 = arith.subf %61, %68 : vector<128x128xf32>
    %70 = math.exp %69 : vector<128x128xf32>
    %c0_40 = arith.constant 0 : index
    %c1_41 = arith.constant 1 : index
    %71 = vector.load %arg17[%c0_40, %c1_41] : memref<128x4xf32, #tpu.memory_space<vmem>>, vector<128x1xf32>
    %72 = arith.mulf %67, %71 : vector<128x1xf32>
    %cst_42 = arith.constant dense<0.000000e+00> : vector<128xf32>
    %73 = vector.multi_reduction <add>, %70, %cst_42 [1] : vector<128x128xf32> to vector<128xf32>
    %74 = vector.shape_cast %73 : vector<128xf32> to vector<128x1xf32>
    %75 = arith.addf %72, %74 : vector<128x1xf32>
    %c0_43 = arith.constant 0 : index
    %c1_44 = arith.constant 1 : index
    %76 = vector.load %arg17[%c0_43, %c1_44] : memref<128x4xf32, #tpu.memory_space<vmem>>, vector<128x1xf32>
    tpu.vector_store %arg17[%c0_43, %c1_44], %75 {strides = array<i32>} : memref<128x4xf32, #tpu.memory_space<vmem>>, vector<128x1xf32>,
    %c0_45 = arith.constant 0 : index
    %c32 = arith.constant 32 : index
    %77 = vector.load %arg18[%c0_45, %c32] : memref<128x128xf32, #tpu.memory_space<vmem>>, vector<128x32xf32>
    %78 = vector.broadcast %67 : vector<128x1xf32> to vector<128x32xf32>
    %79 = arith.mulf %78, %77 : vector<128x32xf32>
    %80 = vector.extract_strided_slice %6 {offsets = [0, 32], sizes = [128, 32], strides = [1, 1]} : vector<128x128xf32> to vector<128x32xf32>
    %cst_46 = arith.constant dense<0.000000e+00> : vector<128x32xf32>
    %81 = tpu.matmul %70, %80, %cst_46 {dimension_numbers = #tpu.dot_dimension_numbers<[1], [0], [0], [1], [0, 0, 1, 1], [], []>} : vector<128x128xf32>, vector<128x32xf32>, vector<128x32xf32> -> vector<128x32xf32>
    %82 = arith.addf %79, %81 : vector<128x32xf32>
    %c0_47 = arith.constant 0 : index
    %c32_48 = arith.constant 32 : index
    %83 = vector.load %arg18[%c0_47, %c32_48] : memref<128x128xf32, #tpu.memory_space<vmem>>, vector<128x32xf32>
    tpu.vector_store %arg18[%c0_47, %c32_48], %82 {strides = array<i32>} : memref<128x128xf32, #tpu.memory_space<vmem>>, vector<128x32xf32>,
    %c0_49 = arith.constant 0 : index
    %c1_50 = arith.constant 1 : index
    %84 = vector.load %arg16[%c0_49, %c1_50] : memref<128x4xf32, #tpu.memory_space<vmem>>, vector<128x1xf32>
    tpu.vector_store %arg16[%c0_49, %c1_50], %65 {strides = array<i32>} : memref<128x4xf32, #tpu.memory_space<vmem>>, vector<128x1xf32>,
    %c0_51 = arith.constant 0 : index
    %c2 = arith.constant 2 : index
    %85 = vector.load %arg15[%c0_51, %c2] : memref<128x4xf32, #tpu.memory_space<vmem>>, vector<128x1xf32>
    %86 = vector.extract_strided_slice %9 {offsets = [2, 0], sizes = [1, 128], strides = [1, 1]} : vector<4x128xf32> to vector<1x128xf32>
    %87 = vector.broadcast %85 : vector<128x1xf32> to vector<128x128xf32>
    %88 = vector.broadcast %86 : vector<1x128xf32> to vector<128x128xf32>
    %89 = arith.addf %87, %88 : vector<128x128xf32>
    %cst_52 = arith.constant 0.000000e+00 : f32
    %90 = vector.broadcast %cst_52 : f32 to vector<128x128xf32>
    %91 = arith.cmpf ogt, %89, %90 : vector<128x128xf32>
    %cst_53 = arith.constant 2.000000e-01 : f32
    %92 = vector.broadcast %cst_53 : f32 to vector<128x128xf32>
    %93 = arith.mulf %92, %89 : vector<128x128xf32>
    %94 = arith.select %91, %89, %93 : vector<128x128xi1>, vector<128x128xf32>
    %cst_54 = arith.constant -1.000000e+09 : f32
    %95 = vector.broadcast %cst_54 : f32 to vector<128x128xf32>
    %96 = arith.select %14, %95, %94 : vector<128x128xi1>, vector<128x128xf32>
    %c0_55 = arith.constant 0 : index
    %c2_56 = arith.constant 2 : index
    %97 = vector.load %arg16[%c0_55, %c2_56] : memref<128x4xf32, #tpu.memory_space<vmem>>, vector<128x1xf32>
    %cst_57 = arith.constant dense<0xFF800000> : vector<128xf32>
    %98 = vector.multi_reduction <maximumf>, %96, %cst_57 [1] : vector<128x128xf32> to vector<128xf32>
    %99 = vector.shape_cast %98 : vector<128xf32> to vector<128x1xf32>
    %100 = arith.maximumf %97, %99 : vector<128x1xf32>
    %101 = arith.subf %97, %100 : vector<128x1xf32>
    %102 = math.exp %101 : vector<128x1xf32>
    %103 = vector.broadcast %100 : vector<128x1xf32> to vector<128x128xf32>
    %104 = arith.subf %96, %103 : vector<128x128xf32>
    %105 = math.exp %104 : vector<128x128xf32>
    %c0_58 = arith.constant 0 : index
    %c2_59 = arith.constant 2 : index
    %106 = vector.load %arg17[%c0_58, %c2_59] : memref<128x4xf32, #tpu.memory_space<vmem>>, vector<128x1xf32>
    %107 = arith.mulf %102, %106 : vector<128x1xf32>
    %cst_60 = arith.constant dense<0.000000e+00> : vector<128xf32>
    %108 = vector.multi_reduction <add>, %105, %cst_60 [1] : vector<128x128xf32> to vector<128xf32>
    %109 = vector.shape_cast %108 : vector<128xf32> to vector<128x1xf32>
    %110 = arith.addf %107, %109 : vector<128x1xf32>
    %c0_61 = arith.constant 0 : index
    %c2_62 = arith.constant 2 : index
    %111 = vector.load %arg17[%c0_61, %c2_62] : memref<128x4xf32, #tpu.memory_space<vmem>>, vector<128x1xf32>
    tpu.vector_store %arg17[%c0_61, %c2_62], %110 {strides = array<i32>} : memref<128x4xf32, #tpu.memory_space<vmem>>, vector<128x1xf32>,
    %c0_63 = arith.constant 0 : index
    %c64 = arith.constant 64 : index
    %112 = vector.load %arg18[%c0_63, %c64] : memref<128x128xf32, #tpu.memory_space<vmem>>, vector<128x32xf32>
    %113 = vector.broadcast %102 : vector<128x1xf32> to vector<128x32xf32>
    %114 = arith.mulf %113, %112 : vector<128x32xf32>
    %115 = vector.extract_strided_slice %6 {offsets = [0, 64], sizes = [128, 32], strides = [1, 1]} : vector<128x128xf32> to vector<128x32xf32>
    %cst_64 = arith.constant dense<0.000000e+00> : vector<128x32xf32>
    %116 = tpu.matmul %105, %115, %cst_64 {dimension_numbers = #tpu.dot_dimension_numbers<[1], [0], [0], [1], [0, 0, 1, 1], [], []>} : vector<128x128xf32>, vector<128x32xf32>, vector<128x32xf32> -> vector<128x32xf32>
    %117 = arith.addf %114, %116 : vector<128x32xf32>
    %c0_65 = arith.constant 0 : index
    %c64_66 = arith.constant 64 : index
    %118 = vector.load %arg18[%c0_65, %c64_66] : memref<128x128xf32, #tpu.memory_space<vmem>>, vector<128x32xf32>
    tpu.vector_store %arg18[%c0_65, %c64_66], %117 {strides = array<i32>} : memref<128x128xf32, #tpu.memory_space<vmem>>, vector<128x32xf32>,
    %c0_67 = arith.constant 0 : index
    %c2_68 = arith.constant 2 : index
    %119 = vector.load %arg16[%c0_67, %c2_68] : memref<128x4xf32, #tpu.memory_space<vmem>>, vector<128x1xf32>
    tpu.vector_store %arg16[%c0_67, %c2_68], %100 {strides = array<i32>} : memref<128x4xf32, #tpu.memory_space<vmem>>, vector<128x1xf32>,
    %c0_69 = arith.constant 0 : index
    %c3 = arith.constant 3 : index
    %120 = vector.load %arg15[%c0_69, %c3] : memref<128x4xf32, #tpu.memory_space<vmem>>, vector<128x1xf32>
    %121 = vector.extract_strided_slice %9 {offsets = [3, 0], sizes = [1, 128], strides = [1, 1]} : vector<4x128xf32> to vector<1x128xf32>
    %122 = vector.broadcast %120 : vector<128x1xf32> to vector<128x128xf32>
    %123 = vector.broadcast %121 : vector<1x128xf32> to vector<128x128xf32>
    %124 = arith.addf %122, %123 : vector<128x128xf32>
    %cst_70 = arith.constant 0.000000e+00 : f32
    %125 = vector.broadcast %cst_70 : f32 to vector<128x128xf32>
    %126 = arith.cmpf ogt, %124, %125 : vector<128x128xf32>
    %cst_71 = arith.constant 2.000000e-01 : f32
    %127 = vector.broadcast %cst_71 : f32 to vector<128x128xf32>
    %128 = arith.mulf %127, %124 : vector<128x128xf32>
    %129 = arith.select %126, %124, %128 : vector<128x128xi1>, vector<128x128xf32>
    %cst_72 = arith.constant -1.000000e+09 : f32
    %130 = vector.broadcast %cst_72 : f32 to vector<128x128xf32>
    %131 = arith.select %14, %130, %129 : vector<128x128xi1>, vector<128x128xf32>
    %c0_73 = arith.constant 0 : index
    %c3_74 = arith.constant 3 : index
    %132 = vector.load %arg16[%c0_73, %c3_74] : memref<128x4xf32, #tpu.memory_space<vmem>>, vector<128x1xf32>
    %cst_75 = arith.constant dense<0xFF800000> : vector<128xf32>
    %133 = vector.multi_reduction <maximumf>, %131, %cst_75 [1] : vector<128x128xf32> to vector<128xf32>
    %134 = vector.shape_cast %133 : vector<128xf32> to vector<128x1xf32>
    %135 = arith.maximumf %132, %134 : vector<128x1xf32>
    %136 = arith.subf %132, %135 : vector<128x1xf32>
    %137 = math.exp %136 : vector<128x1xf32>
    %138 = vector.broadcast %135 : vector<128x1xf32> to vector<128x128xf32>
    %139 = arith.subf %131, %138 : vector<128x128xf32>
    %140 = math.exp %139 : vector<128x128xf32>
    %c0_76 = arith.constant 0 : index
    %c3_77 = arith.constant 3 : index
    %141 = vector.load %arg17[%c0_76, %c3_77] : memref<128x4xf32, #tpu.memory_space<vmem>>, vector<128x1xf32>
    %142 = arith.mulf %137, %141 : vector<128x1xf32>
    %cst_78 = arith.constant dense<0.000000e+00> : vector<128xf32>
    %143 = vector.multi_reduction <add>, %140, %cst_78 [1] : vector<128x128xf32> to vector<128xf32>
    %144 = vector.shape_cast %143 : vector<128xf32> to vector<128x1xf32>
    %145 = arith.addf %142, %144 : vector<128x1xf32>
    %c0_79 = arith.constant 0 : index
    %c3_80 = arith.constant 3 : index
    %146 = vector.load %arg17[%c0_79, %c3_80] : memref<128x4xf32, #tpu.memory_space<vmem>>, vector<128x1xf32>
    tpu.vector_store %arg17[%c0_79, %c3_80], %145 {strides = array<i32>} : memref<128x4xf32, #tpu.memory_space<vmem>>, vector<128x1xf32>,
    %c0_81 = arith.constant 0 : index
    %c96 = arith.constant 96 : index
    %147 = vector.load %arg18[%c0_81, %c96] : memref<128x128xf32, #tpu.memory_space<vmem>>, vector<128x32xf32>
    %148 = vector.broadcast %137 : vector<128x1xf32> to vector<128x32xf32>
    %149 = arith.mulf %148, %147 : vector<128x32xf32>
    %150 = vector.extract_strided_slice %6 {offsets = [0, 96], sizes = [128, 32], strides = [1, 1]} : vector<128x128xf32> to vector<128x32xf32>
    %cst_82 = arith.constant dense<0.000000e+00> : vector<128x32xf32>
    %151 = tpu.matmul %140, %150, %cst_82 {dimension_numbers = #tpu.dot_dimension_numbers<[1], [0], [0], [1], [0, 0, 1, 1], [], []>} : vector<128x128xf32>, vector<128x32xf32>, vector<128x32xf32> -> vector<128x32xf32>
    %152 = arith.addf %149, %151 : vector<128x32xf32>
    %c0_83 = arith.constant 0 : index
    %c96_84 = arith.constant 96 : index
    %153 = vector.load %arg18[%c0_83, %c96_84] : memref<128x128xf32, #tpu.memory_space<vmem>>, vector<128x32xf32>
    tpu.vector_store %arg18[%c0_83, %c96_84], %152 {strides = array<i32>} : memref<128x128xf32, #tpu.memory_space<vmem>>, vector<128x32xf32>,
    %c0_85 = arith.constant 0 : index
    %c3_86 = arith.constant 3 : index
    %154 = vector.load %arg16[%c0_85, %c3_86] : memref<128x4xf32, #tpu.memory_space<vmem>>, vector<128x1xf32>
    tpu.vector_store %arg16[%c0_85, %c3_86], %135 {strides = array<i32>} : memref<128x4xf32, #tpu.memory_space<vmem>>, vector<128x1xf32>,
    %c1_i32 = arith.constant 1 : i32
    %155 = arith.cmpi eq, %arg2, %c1_i32 : i32
    %156 = arith.extui %155 : i1 to i32
    %c0_i32_87 = arith.constant 0 : i32
    %157 = arith.cmpi ne, %156, %c0_i32_87 : i32
    scf.if %157 {
      %c0_88 = arith.constant 0 : index
      %c0_89 = arith.constant 0 : index
      %158 = vector.load %arg17[%c0_88, %c0_89] : memref<128x4xf32, #tpu.memory_space<vmem>>, vector<128x1xf32>
      %159 = tpu.reciprocal %158 {approx = true} : vector<128x1xf32> -> vector<128x1xf32>
      %c0_90 = arith.constant 0 : index
      %c0_91 = arith.constant 0 : index
      %160 = vector.load %arg18[%c0_90, %c0_91] : memref<128x128xf32, #tpu.memory_space<vmem>>, vector<128x32xf32>
      %161 = vector.broadcast %159 : vector<128x1xf32> to vector<128x32xf32>
      %162 = arith.mulf %160, %161 : vector<128x32xf32>
      %cst_92 = arith.constant 0.000000e+00 : f32
      %163 = vector.broadcast %cst_92 : f32 to vector<128x32xf32>
      %164 = arith.cmpf ogt, %162, %163 : vector<128x32xf32>
      %cst_93 = arith.constant 0.000000e+00 : f32
      %165 = vector.broadcast %cst_93 : f32 to vector<128x32xf32>
      %166 = arith.minimumf %162, %165 : vector<128x32xf32>
      %167 = math.exp %166 : vector<128x32xf32>
      %cst_94 = arith.constant 1.000000e+00 : f32
      %168 = vector.broadcast %cst_94 : f32 to vector<128x32xf32>
      %169 = arith.subf %167, %168 : vector<128x32xf32>
      %170 = arith.select %164, %162, %169 : vector<128x32xi1>, vector<128x32xf32>
      %c0_95 = arith.constant 0 : index
      %c0_96 = arith.constant 0 : index
      %c0_97 = arith.constant 0 : index
      %171 = vector.load %arg12[%c0_95, %c0_96, %c0_97] : memref<1x128x128xf32, #tpu.memory_space<vmem>>, vector<1x128x32xf32>
      %172 = vector.shape_cast %171 : vector<1x128x32xf32> to vector<128x32xf32>
      %173 = vector.shape_cast %170 : vector<128x32xf32> to vector<1x128x32xf32>
      tpu.vector_store %arg12[%c0_95, %c0_96, %c0_97], %173 {strides = array<i32>} : memref<1x128x128xf32, #tpu.memory_space<vmem>>, vector<1x128x32xf32>,
      %c0_98 = arith.constant 0 : index
      %c1_99 = arith.constant 1 : index
      %174 = vector.load %arg17[%c0_98, %c1_99] : memref<128x4xf32, #tpu.memory_space<vmem>>, vector<128x1xf32>
      %175 = tpu.reciprocal %174 {approx = true} : vector<128x1xf32> -> vector<128x1xf32>
      %c0_100 = arith.constant 0 : index
      %c32_101 = arith.constant 32 : index
      %176 = vector.load %arg18[%c0_100, %c32_101] : memref<128x128xf32, #tpu.memory_space<vmem>>, vector<128x32xf32>
      %177 = vector.broadcast %175 : vector<128x1xf32> to vector<128x32xf32>
      %178 = arith.mulf %176, %177 : vector<128x32xf32>
      %cst_102 = arith.constant 0.000000e+00 : f32
      %179 = vector.broadcast %cst_102 : f32 to vector<128x32xf32>
      %180 = arith.cmpf ogt, %178, %179 : vector<128x32xf32>
      %cst_103 = arith.constant 0.000000e+00 : f32
      %181 = vector.broadcast %cst_103 : f32 to vector<128x32xf32>
      %182 = arith.minimumf %178, %181 : vector<128x32xf32>
      %183 = math.exp %182 : vector<128x32xf32>
      %cst_104 = arith.constant 1.000000e+00 : f32
      %184 = vector.broadcast %cst_104 : f32 to vector<128x32xf32>
      %185 = arith.subf %183, %184 : vector<128x32xf32>
      %186 = arith.select %180, %178, %185 : vector<128x32xi1>, vector<128x32xf32>
      %c0_105 = arith.constant 0 : index
      %c0_106 = arith.constant 0 : index
      %c32_107 = arith.constant 32 : index
      %187 = vector.load %arg12[%c0_105, %c0_106, %c32_107] : memref<1x128x128xf32, #tpu.memory_space<vmem>>, vector<1x128x32xf32>
      %188 = vector.shape_cast %187 : vector<1x128x32xf32> to vector<128x32xf32>
      %189 = vector.shape_cast %186 : vector<128x32xf32> to vector<1x128x32xf32>
      tpu.vector_store %arg12[%c0_105, %c0_106, %c32_107], %189 {strides = array<i32>} : memref<1x128x128xf32, #tpu.memory_space<vmem>>, vector<1x128x32xf32>,
      %c0_108 = arith.constant 0 : index
      %c2_109 = arith.constant 2 : index
      %190 = vector.load %arg17[%c0_108, %c2_109] : memref<128x4xf32, #tpu.memory_space<vmem>>, vector<128x1xf32>
      %191 = tpu.reciprocal %190 {approx = true} : vector<128x1xf32> -> vector<128x1xf32>
      %c0_110 = arith.constant 0 : index
      %c64_111 = arith.constant 64 : index
      %192 = vector.load %arg18[%c0_110, %c64_111] : memref<128x128xf32, #tpu.memory_space<vmem>>, vector<128x32xf32>
      %193 = vector.broadcast %191 : vector<128x1xf32> to vector<128x32xf32>
      %194 = arith.mulf %192, %193 : vector<128x32xf32>
      %cst_112 = arith.constant 0.000000e+00 : f32
      %195 = vector.broadcast %cst_112 : f32 to vector<128x32xf32>
      %196 = arith.cmpf ogt, %194, %195 : vector<128x32xf32>
      %cst_113 = arith.constant 0.000000e+00 : f32
      %197 = vector.broadcast %cst_113 : f32 to vector<128x32xf32>
      %198 = arith.minimumf %194, %197 : vector<128x32xf32>
      %199 = math.exp %198 : vector<128x32xf32>
      %cst_114 = arith.constant 1.000000e+00 : f32
      %200 = vector.broadcast %cst_114 : f32 to vector<128x32xf32>
      %201 = arith.subf %199, %200 : vector<128x32xf32>
      %202 = arith.select %196, %194, %201 : vector<128x32xi1>, vector<128x32xf32>
      %c0_115 = arith.constant 0 : index
      %c0_116 = arith.constant 0 : index
      %c64_117 = arith.constant 64 : index
      %203 = vector.load %arg12[%c0_115, %c0_116, %c64_117] : memref<1x128x128xf32, #tpu.memory_space<vmem>>, vector<1x128x32xf32>
      %204 = vector.shape_cast %203 : vector<1x128x32xf32> to vector<128x32xf32>
      %205 = vector.shape_cast %202 : vector<128x32xf32> to vector<1x128x32xf32>
      tpu.vector_store %arg12[%c0_115, %c0_116, %c64_117], %205 {strides = array<i32>} : memref<1x128x128xf32, #tpu.memory_space<vmem>>, vector<1x128x32xf32>,
      %c0_118 = arith.constant 0 : index
      %c3_119 = arith.constant 3 : index
      %206 = vector.load %arg17[%c0_118, %c3_119] : memref<128x4xf32, #tpu.memory_space<vmem>>, vector<128x1xf32>
      %207 = tpu.reciprocal %206 {approx = true} : vector<128x1xf32> -> vector<128x1xf32>
      %c0_120 = arith.constant 0 : index
      %c96_121 = arith.constant 96 : index
      %208 = vector.load %arg18[%c0_120, %c96_121] : memref<128x128xf32, #tpu.memory_space<vmem>>, vector<128x32xf32>
      %209 = vector.broadcast %207 : vector<128x1xf32> to vector<128x32xf32>
      %210 = arith.mulf %208, %209 : vector<128x32xf32>
      %cst_122 = arith.constant 0.000000e+00 : f32
      %211 = vector.broadcast %cst_122 : f32 to vector<128x32xf32>
      %212 = arith.cmpf ogt, %210, %211 : vector<128x32xf32>
      %cst_123 = arith.constant 0.000000e+00 : f32
      %213 = vector.broadcast %cst_123 : f32 to vector<128x32xf32>
      %214 = arith.minimumf %210, %213 : vector<128x32xf32>
      %215 = math.exp %214 : vector<128x32xf32>
      %cst_124 = arith.constant 1.000000e+00 : f32
      %216 = vector.broadcast %cst_124 : f32 to vector<128x32xf32>
      %217 = arith.subf %215, %216 : vector<128x32xf32>
      %218 = arith.select %212, %210, %217 : vector<128x32xi1>, vector<128x32xf32>
      %c0_125 = arith.constant 0 : index
      %c0_126 = arith.constant 0 : index
      %c96_127 = arith.constant 96 : index
      %219 = vector.load %arg12[%c0_125, %c0_126, %c96_127] : memref<1x128x128xf32, #tpu.memory_space<vmem>>, vector<1x128x32xf32>
      %220 = vector.shape_cast %219 : vector<1x128x32xf32> to vector<128x32xf32>
      %221 = vector.shape_cast %218 : vector<128x32xf32> to vector<1x128x32xf32>
      tpu.vector_store %arg12[%c0_125, %c0_126, %c96_127], %221 {strides = array<i32>} : memref<1x128x128xf32, #tpu.memory_space<vmem>>, vector<1x128x32xf32>,
      %c0_128 = arith.constant 0 : index
      %c0_129 = arith.constant 0 : index
      %c0_130 = arith.constant 0 : index
      %222 = vector.load %arg12[%c0_128, %c0_129, %c0_130] : memref<1x128x128xf32, #tpu.memory_space<vmem>>, vector<1x128x128xf32>
      %223 = vector.shape_cast %222 : vector<1x128x128xf32> to vector<128x128xf32>
      %c0_131 = arith.constant 0 : index
      %c0_132 = arith.constant 0 : index
      %224 = vector.load %arg9[%c0_131, %c0_132] : memref<128x128xf32, #tpu.memory_space<vmem>>, vector<128x128xf32>
      %cst_133 = arith.constant dense<0.000000e+00> : vector<128x128xf32>
      %225 = tpu.matmul %223, %224, %cst_133 {dimension_numbers = #tpu.dot_dimension_numbers<[1], [0], [0], [1], [0, 0, 1, 1], [], []>} : vector<128x128xf32>, vector<128x128xf32>, vector<128x128xf32> -> vector<128x128xf32>
      %c0_134 = arith.constant 0 : index
      %c0_135 = arith.constant 0 : index
      %226 = vector.load %arg10[%c0_134, %c0_135] : memref<1x128xf32, #tpu.memory_space<vmem>>, vector<1x128xf32>
      %227 = vector.broadcast %226 : vector<1x128xf32> to vector<128x128xf32>
      %228 = arith.addf %225, %227 : vector<128x128xf32>
      %229 = math.tanh %228 : vector<128x128xf32>
      %c0_136 = arith.constant 0 : index
      %c0_137 = arith.constant 0 : index
      %230 = vector.load %arg11[%c0_136, %c0_137] : memref<1x128xf32, #tpu.memory_space<vmem>>, vector<1x128xf32>
      %231 = vector.broadcast %230 : vector<1x128xf32> to vector<128x128xf32>
      %232 = arith.mulf %229, %231 : vector<128x128xf32>
      %cst_138 = arith.constant dense<0.000000e+00> : vector<128xf32>
      %233 = vector.multi_reduction <add>, %232, %cst_138 [1] : vector<128x128xf32> to vector<128xf32>
      %234 = vector.shape_cast %233 : vector<128xf32> to vector<128x1xf32>
      %c0_139 = arith.constant 0 : index
      %c0_140 = arith.constant 0 : index
      %c0_141 = arith.constant 0 : index
      %235 = vector.load %arg13[%c0_139, %c0_140, %c0_141] : memref<1x128x1xf32, #tpu.memory_space<vmem>>, vector<1x128x1xf32>
      %236 = vector.shape_cast %235 : vector<1x128x1xf32> to vector<128x1xf32>
      %237 = vector.shape_cast %234 : vector<128x1xf32> to vector<1x128x1xf32>
      tpu.vector_store %arg13[%c0_139, %c0_140, %c0_141], %237 {strides = array<i32>} : memref<1x128x1xf32, #tpu.memory_space<vmem>>, vector<1x128x1xf32>,
    } else {
    }
    return
  }
  func.func @transform_0(%arg0: i32, %arg1: i32, %arg2: i32) -> (i32, i32) {
    %c0_i32 = arith.constant 0 : i32
    %c0_i32_0 = arith.constant 0 : i32
    return %arg1, %c0_i32 : i32, i32
  }
  func.func @transform_1(%arg0: i32, %arg1: i32, %arg2: i32) -> (i32, i32) {
    %c0_i32 = arith.constant 0 : i32
    %c0_i32_0 = arith.constant 0 : i32
    return %arg2, %c0_i32 : i32, i32
  }
  func.func @transform_2(%arg0: i32, %arg1: i32, %arg2: i32) -> (i32, i32, i32) {
    %c0_i32 = arith.constant 0 : i32
    %c0_i32_0 = arith.constant 0 : i32
    %c0_i32_1 = arith.constant 0 : i32
    return %arg0, %c0_i32, %c0_i32_0 : i32, i32, i32
  }
  func.func @transform_3(%arg0: i32, %arg1: i32, %arg2: i32) -> (i32, i32, i32) {
    %c0_i32 = arith.constant 0 : i32
    %c0_i32_0 = arith.constant 0 : i32
    %c0_i32_1 = arith.constant 0 : i32
    return %arg0, %c0_i32, %c0_i32_0 : i32, i32, i32
  }
  func.func @transform_4(%arg0: i32, %arg1: i32, %arg2: i32) -> (i32, i32, i32) {
    %c0_i32 = arith.constant 0 : i32
    %c0_i32_0 = arith.constant 0 : i32
    %c0_i32_1 = arith.constant 0 : i32
    return %arg0, %c0_i32, %c0_i32_0 : i32, i32, i32
  }
  func.func @transform_5(%arg0: i32, %arg1: i32, %arg2: i32) -> (i32, i32, i32) {
    %c0_i32 = arith.constant 0 : i32
    return %arg0, %arg1, %arg2 : i32, i32, i32
  }
  func.func @transform_6(%arg0: i32, %arg1: i32, %arg2: i32) -> (i32, i32) {
    %c0_i32 = arith.constant 0 : i32
    %c0_i32_0 = arith.constant 0 : i32
    %c0_i32_1 = arith.constant 0 : i32
    return %c0_i32, %c0_i32_0 : i32, i32
  }
  func.func @transform_7(%arg0: i32, %arg1: i32, %arg2: i32) -> (i32, i32) {
    %c0_i32 = arith.constant 0 : i32
    %c0_i32_0 = arith.constant 0 : i32
    %c0_i32_1 = arith.constant 0 : i32
    return %c0_i32, %c0_i32_0 : i32, i32
  }
  func.func @transform_8(%arg0: i32, %arg1: i32, %arg2: i32) -> (i32, i32) {
    %c0_i32 = arith.constant 0 : i32
    %c0_i32_0 = arith.constant 0 : i32
    %c0_i32_1 = arith.constant 0 : i32
    return %c0_i32, %c0_i32_0 : i32, i32
  }
  func.func @transform_9(%arg0: i32, %arg1: i32, %arg2: i32) -> (i32, i32, i32) {
    %c0_i32 = arith.constant 0 : i32
    %c0_i32_0 = arith.constant 0 : i32
    return %arg0, %arg1, %c0_i32 : i32, i32, i32
  }
  func.func @transform_10(%arg0: i32, %arg1: i32, %arg2: i32) -> (i32, i32, i32) {
    %c0_i32 = arith.constant 0 : i32
    %c0_i32_0 = arith.constant 0 : i32
    return %arg0, %arg1, %c0_i32 : i32, i32, i32
  }
}

</mosaic_0001>

<bundles_post_ra>
// kernel: tpu_custom_call.1
= control target key start
LH: loop header
LB: loop body
LE: loop exit
PB: predicated region body
PF: predicated region fallthrough
CT: control target
= control target key end

     0   :  { %s10522_s0 = inlined_call_operand.vmem [shape: f32[256,32], index: 0, kind: input, shape index: {}]   ;;  %s10523_s1 = inlined_call_operand.vmem [shape: f32[256,32], index: 1, kind: input, shape index: {}]   ;;  %s10524_s2 = inlined_call_operand.hbm [shape: f32[3,32,128], index: 2, kind: input, shape index: {}]   ;;  %s10525_s3 = inlined_call_operand.vmem [shape: f32[3,4,128], index: 3, kind: input, shape index: {}]   ;;  %s10526_s4 = inlined_call_operand.vmem [shape: f32[3,4,128], index: 4, kind: input, shape index: {}]   ;;  %s10527_s5 = inlined_call_operand.vmem [shape: s8[3,256,256], index: 5, kind: input, shape index: {}]   ;;  %s10528_s6 = inlined_call_operand.vmem [shape: f32[128,128], index: 6, kind: input, shape index: {}]   ;;  %s10529_s7 = inlined_call_operand.vmem [shape: f32[1,128], index: 7, kind: input, shape index: {}]   ;;  %s10530_s8 = inlined_call_operand.vmem [shape: f32[1,128], index: 8, kind: input, shape index: {}]   ;;  %s10531_s9 = inlined_call_operand.hbm [shape: f32[3,256,128], index: 9, kind: output, shape index: {0}]   ;;  %s10532_s10 = inlined_call_operand.vmem [shape: f32[3,256,1], index: 10, kind: output, shape index: {1}]  }
   0x1   :  { %10678 = sst [smem:[#allocation113_spill]] %s10522_s0 }
   0x2   :  { %10679 = sst [smem:[#allocation114_spill]] %s10523_s1 }
   0x3   :  { %10680 = sst [smem:[#allocation115_spill]] %s10524_s2 }
   0x4   :  { %10681 = sst [smem:[#allocation116_spill]] %s10525_s3 }
   0x5   :  { %10682 = sst [smem:[#allocation117_spill]] %s10526_s4 }
   0x6   :  { %10683 = sst [smem:[#allocation118_spill]] %s10527_s5 }
   0x7   :  { %10684 = sst [smem:[#allocation119_spill]] %s10528_s6 }
   0x8   :  { %10685 = sst [smem:[#allocation120_spill]] %s10529_s7 }
   0x9   :  { %10686 = sst [smem:[#allocation121_spill]] %s10530_s8 }
   0xa   :  { %10687 = sst [smem:[#allocation122_spill]] %s10531_s9 }
   0xb   :  { %10688 = sst [smem:[#allocation123_spill]] %s10532_s10 }
   0xc   :  { %16 = vsyncpa [#allocation8], 0 }
   0xd   :  { %18 = vsyncpa [#allocation8 + $0x1], 0 }
   0xe   :  { %19 = vsyncpa [#allocation9], 0 }
   0xf   :  { %21 = vsyncpa [#allocation9 + $0x1], 0  ;;  %s7064_s13 = smov 0   ;;  %s7066_s14 = smov 0  }
  0x10   :  { %s7068_s15 = smov 0   ;;  %s7070_s16 = smov 0  }
  0x11   :  { %s7072_s17 = smov 0   ;;  %s7074_s18 = smov 0  }
  0x12   :  { %s7076_s19 = smov 0   ;;  %s7078_s20 = smov 0  }
  0x13   :  { %s7080_s21 = smov 0   ;;  %s7082_s22 = smov 0  }
  0x14   :  { %s7084_s23 = smov 0   ;;  %s7086_s24 = smov 0  }
  0x15   :  { %s7088_s25 = smov 0   ;;  %s7090_s26 = smov 0  }
  0x16   :  { %s7092_s27 = smov 0  }
  0x17 LB: > { %10689 = sst [smem:[#allocation14_spill]] %s6942_s15  ;;  %s5828_s28 = sadd.s32 4294967295, %s6990_s27   ;;  %s6990_s27 = sphi %s7092_s27, %s27_s27   ;;  %s6986_s26 = sphi %s7090_s26, %s11086_s26   ;;  %s6982_s25 = sphi %s7088_s25, %s11085_s25   ;;  %s6978_s24 = sphi %s7086_s24, %s11084_s24   ;;  %s6974_s23 = sphi %s7084_s23, %s11083_s23   ;;  %s6970_s22 = sphi %s7082_s22, %s11082_s22   ;;  %s6966_s21 = sphi %s7080_s21, %s11081_s21   ;;  %s6962_s20 = sphi %s7078_s20, %s11080_s20   ;;  %s6958_s19 = sphi %s7076_s19, %s11079_s19   ;;  %s6954_s18 = sphi %s7074_s18, %s11078_s18   ;;  %s6950_s17 = sphi %s7072_s17, %s11077_s17   ;;  %s6946_s16 = sphi %s7070_s16, %s11076_s16   ;;  %s6942_s15 = sphi %s7068_s15, %s11075_s15   ;;  %s6938_s14 = sphi %s7066_s14, %s11088_s14   ;;  %s6934_s13 = sphi %s7064_s13, %s11087_s13  }
  0x18   : > { %10690 = sst [smem:[#allocation15_spill]] %s6950_s17  ;;  %s39_s30 = sadd.s32 1, %s6978_s24 }
  0x19   : > { %10691 = sst [smem:[#allocation16_spill]] %s6958_s19  ;;  %s42_s11 = sadd.s32 1, %s6982_s25 }
  0x1a   : > { %10692 = sst [smem:[#allocation17_spill]] %s6962_s20  ;;  %p40_p0 = scmp.ge.s32.totalorder %s39_s30, 2 }
  0x1b   : > { %10693 = sst [smem:[#allocation18_spill]] %s6966_s21  ;;  %s46_s12 = sadd.s32 1, %s6986_s26 }
  0x1c   : > { %10694 = sst [smem:[#allocation19_spill]] %s6970_s22  ;;  %s105_s9 = sadd.s32 1, %s6962_s20 }
  0x1d   : > { %10695 = sst [smem:[#allocation20_spill]] %s6974_s23  ;;  %p112_p1 = scmp.ne.s32.totalorder %s6962_s20, %s6958_s19 }
  0x1e   : > { %10696 = sst [smem:[#allocation21_spill]] %s6978_s24  ;;  %s11090_s30 = smov (%p40_p0, %s39_s30), 0 }
  0x1f   : > { %10697 = sst [smem:[#allocation22_spill]] %s6982_s25  ;;  %s11092_s11 = smov (!%p40_p0, %s42_s11), %s6982_s25 }
  0x20   : > { %10698 = sst [smem:[#allocation23_spill]] %s6986_s26  ;;  %p113_p2 = scmp.eq.s32.totalorder %s6990_s27, 0 }
  0x21   : > { %10699 = sst [smem:[#allocation24_spill]] %s11090_s30  ;;  %p118_p3 = scmp.ne.s32.totalorder %s6958_s19, %s6954_s18 }
  0x22   : > { %p44_p4 = scmp.ge.s32.totalorder %s11092_s11, 2  ;;  %p119_p5 = scmp.eq.s32.totalorder %s5828_s28, 0 }
  0x23   : > { %p7152_p6 = por %p113_p2, %p112_p1  ;;  %s183_s8 = ssub.s32 %s6978_s24, %s11090_s30 }
  0x24   : > { %s11094_s11 = smov (%p44_p4, %s11092_s11), 0  ;;  %s11096_s12 = smov (!%p44_p4, %s46_s12), %s6986_s26 }
  0x25   : > { %10701 = sst [smem:[#allocation25_spill]] %s11094_s11  ;;  %p7161_p7 = por %p119_p5, %p118_p3 }
  0x26   : > { %s181_s6 = ssub.s32 %s6982_s25, %s11094_s11  ;;  %p48_p8 = scmp.ge.s32.totalorder %s11096_s12, 3 }
  0x27   : > { %s187_s18 = sadd.s32 1, %s6950_s17  ;;  %p194_p9 = scmp.ne.s32.totalorder %s6950_s17, %s6946_s16 }
  0x28   : > { %s278_s10 = sadd.s32 1, %s6942_s15  ;;  %s11098_s12 = smov (%p48_p8, %s11096_s12), 0 }
  0x29   : > { %10703 = sst [smem:[#allocation26_spill]] %s11098_s12  ;;  %p7175_p10 = por %p194_p9, %p113_p2 }
  0x2a   : > { %p288_p11 = scmp.ne.s32.totalorder %s6942_s15, %s6938_s14  ;;  %s102_s4 = ssub.s32 %s6986_s26, %s11098_s12 }
  0x2b   : > { %p289_p12 = scmp.eq.s32.totalorder %s5828_s28, 11  ;;  %p103_p13 = scmp.eq.s32.totalorder %s102_s4, 0 }
  0x2c   : > { %s182_s11 = sor.u32 %s181_s6, %s102_s4  ;;  %p294_p2 = scmp.ne.s32.totalorder %s6938_s14, %s6934_s13 }
  0x2d   : > { %s184_s3 = sor.u32 %s183_s8, %s182_s11  ;;  %p276_p0 = scmp.eq.s32.totalorder %s182_s11, 0 }
  0x2e   : > { %s7184_s1 = scalar_select %p103_p13, %s6962_s20, %s105_s9  }
  0x2f   : > { %p185_p1 = scmp.eq.s32.totalorder %s184_s3, 0  ;;  %p7186_p3 = por %p289_p12, %p288_p11 }
  0x30   : > { %10705 = sst [smem:[#allocation27_spill]] %s7184_s1  ;;  %s10709_s22 = sadd.s32 4294967294, %s6990_s27  }
  0x31   : > { %s7191_s23 = scalar_select %p276_p0, %s6942_s15, %s278_s10  }
  0x32   : > { %s7194_s21 = scalar_select %p185_p1, %s6950_s17, %s187_s18  }
  0x33   : > { %10707 = sst [smem:[#allocation28_spill]] %s7191_s23  ;;  %p295_p4 = scmp.eq.s32.totalorder %s10709_s22, 11 }
  0x34   : > { %10708 = sst [smem:[#allocation29_spill]] %s7194_s21  ;;  %p5831_p8 = scmp.ge.s32.totalorder %s6990_s27, 12 }
  0x35   : > { %p7200_p5 = por %p295_p4, %p294_p2  ;;  %s370_s3 = sand.u32 (!%p5831_p8), 1, %s6962_s20  }
  0x36   : > { %348 = sbr.rel (%p5831_p8) target bundleno = 77 (0x4d), region = 28  ;;  %s5957_s4 = sshll.u32 (!%p5831_p8), %s6986_s26, 5 }
  0x37   : > { %s10710_s28 = scalar_select %p7200_p5, 1, 0 }
  0x38   : > { %s5832_s6 = sshll.u32 (!%p5831_p8), %s370_s3, 5  ;;  %s10712_s2 = sld [smem:[#allocation115_spill]] (!%p5831_p8) }
  0x39   : > { %10711 = sst [smem:[#allocation30_spill]] %s10710_s28  ;;  %s374_s18 = scalar_lea.vmem (!%p5831_p8), [#allocation7], %s5832_s6 }
  0x3a   : > { %s382_s22 = sshll.u32 (!%p5831_p8), %s374_s18, 4  ;;  %s371_s12 = scalar_lea.sflag (!%p5831_p8), [#allocation8], %s370_s3  ;;  %s383_s22 = int_to_ptr.vmem [resolvable:$true] %s382_s22 }
  0x3b   : > { %s6992_s1 = smov 128   ;;  %s6993_s21 = smov 8  }
  0x3c   : > { %405 = sbr.rel (!%p7175_p10) target bundleno = 77 (0x4d), region = 52  ;;  %s407_s20 = sand.u32 (%p7175_p10), 1, %s6950_s17  }
  0x3d   : > { %s5958_s8 = sshll.u32 (%p7175_p10), %s6982_s25, 3  ;;  %s5838_s6 = sshll.u32 (%p7175_p10), %s6986_s26, 4 }
  0x3e   : > { %s379_s10 = scalar_lea.hbm %s10712_s2, %s5957_s4  ;;  %s5835_s4 = sshll.u32 (%p7175_p10), %s407_s20, 5 }
  0x3f   : > { %s380_s11 = sshll.u32 %s379_s10, 4  ;;  %s412_s9 = sadd.s32 (%p7175_p10), %s6978_s24, %s5958_s8  ;;  %s381_s11 = int_to_ptr.hbm [resolvable:$true] %s380_s11 }
  0x40   : > { %6036 = dma.hbm_to_vmem [thread:$0]  (%p7152_p6), %s381_s11, 512, %s383_s22, %s371_s12, %s6992_s1, %s6992_s1, %s6993_s21  }
  0x41   : > { %s414_s10 = sadd.s32 %s5838_s6, %s412_s9  ;;  %s10713_s5 = sld [smem:[#allocation118_spill]] }
  0x42   : > { %s5839_s18 = sshll.u32 %s414_s10, 3  ;;  %s409_s1 = scalar_lea.vmem [#allocation10], %s5835_s4 }
  0x47   : > { %s416_s23 = scalar_lea.vmem %s10713_s5, %s5839_s18 }
  0x48   : > { %v451_v0 = vld [vmem:[%s416_s23] sm:$0xff]  ;;  %v453_v1 = vld [vmem:[%s416_s23 + $0x10] sm:$0xff] }
  0x49   : > { %v455_v2 = vld [vmem:[%s416_s23 + $0x20] sm:$0xff]  ;;  %452 = vst [vmem:[%s409_s1] sm:$0xff] %v451_v0  ;;  %v457_v3 = vld [vmem:[%s416_s23 + $0x30] sm:$0xff] }
  0x4a   : > { %454 = vst [vmem:[%s409_s1 + $0x8] sm:$0xff] %v453_v1 }
  0x4b   : > { %456 = vst [vmem:[%s409_s1 + $0x10] sm:$0xff] %v455_v2 }
  0x4c   : > { %458 = vst [vmem:[%s409_s1 + $0x18] sm:$0xff] %v457_v3 }
  0x4d PF: > { %p5840_p6 = scmp.ge.s32.totalorder %s6990_s27, 1  ;;  %p463_p9 = scmp.lt.s32.totalorder %s6990_s27, 13 }
  0x4f   : > { %p464_p10 = pnand %p5840_p6, %p463_p9 }
  0x51   : > { %467 = sbr.rel (%p464_p10) target bundleno = 4179 (0x1053), region = 90 }
  0x56   : > { %s469_s2 = sand.u32 1, %s6958_s19  }
  0x57   : > { %s5841_s20 = sshll.u32 %s469_s2, 5  ;;  %s470_s21 = scalar_lea.sflag [#allocation8], %s469_s2 }
  0x58   : > { %s7224_s29 = scalar_lea.vmem [#allocation7], %s5841_s20 }
  0x59   : > { %6925 = dma.done.wait (%p7161_p7), %s470_s21, 512  }
  0x5a   : > { %6927 = vsyncadd (%p7161_p7), %s470_s21, 4294966784  ;;  %s10714_s23 = sld [smem:[#allocation19_spill]]  ;;  %s480_s11 = sand.u32 1, %s6946_s16  }
  0x5b   : > { %s10715_s30 = sld [smem:[#allocation18_spill]]  ;;  %s10541_s22 = sand.u32 1, %s6938_s14  }
  0x5c   : > { %s10716_s12 = sld [smem:[#allocation20_spill]]  ;;  %s5842_s8 = sshll.u32 %s480_s11, 5 }
  0x5d   : > { %s5843_s4 = sshll.u32 %s10541_s22, 7  ;;  %s10717_s1 = sld [smem:[#allocation113_spill]] }
  0x5e   : > { %s10718_s11 = sld [smem:[#allocation114_spill]]  ;;  %s7267_s21 = scalar_lea.vmem [#allocation10], %s5842_s8 }
  0x5f   : > { %s10719_s24 = sld [smem:[#allocation116_spill]] }
  0x60   : > { %s7235_s9 = sshll.u32 %s10714_s23, 4  ;;  %s10720_s28 = sld [smem:[#allocation117_spill]] }
  0x61   : > { %s5846_s6 = sshll.u32 %s10715_s30, 4  ;;  %p550_p11 = scmp.lt.s32.totalorder %s7235_s9, 31 }
  0x62   : > { %p556_p12 = scmp.lt.s32.totalorder %s5846_s6, 31  ;;  %p561_p7 = scmp.lt.s32.totalorder %s10716_s12, 2 }
  0x63   : > { %s551_s7 = scalar_select %p550_p11, %s7235_s9, 31 }
  0x64   : > { %s11100_s6 = smov (!%p556_p12, %s5846_s6), 31  ;;  %s11102_s12 = smov (!%p561_p7, %s10716_s12), 2 }
  0x65   : > { %s5845_s10 = sshll.u32 %s551_s7, 3  ;;  %s5847_s16 = sshll.u32 %s11100_s6, 3 }
  0x66   : > { %s7244_s2 = scalar_lea.vmem %s10717_s1, %s5845_s10  ;;  %s7249_s23 = scalar_lea.vmem %s10718_s11, %s5847_s16 }
  0x67   : > { %s5848_s22 = sshll.u32 %s11102_s12, 2  ;;  %s5851_s5 = sshll.u32 %s11102_s12, 5 }
  0x68   : > { %s7255_s19 = scalar_lea.vmem %s10719_s24, %s5848_s22  ;;  %s7260_s18 = scalar_lea.vmem %s10720_s28, %s5848_s22 }
  0x69   : > { %s577_s10 = sadd.s32 %s5851_s5, %s551_s7  ;;  %s10721_s20 = sld [smem:[#allocation123_spill]] }
  0x6a   : > { %s5852_s6 = sshll.u32 %s577_s10, 3  ;;  %s7269_s12 = scalar_lea.vmem [#allocation11], %s5843_s4 }
  0x6b   : > { %p5853_p13 = scmp.ne.s32.totalorder %s10715_s30, 0 }
  0x6d   : > { %584 = sbr.rel (%p5853_p13) target bundleno = 443 (0x1bb), region = 102 }
  0x6f   : > { %s7265_s16 = scalar_lea.vmem %s10721_s20, %s5852_s6 }
  0x72   : > { %v604_v4 = vld [vmem:[%s7224_s29 + $0x18] sm:$0xff]  ;;  %v603_v5 = vld [vmem:[%s7224_s29 + $0x10] sm:$0xff]  ;;  %v602_v6 = vld [vmem:[%s7224_s29 + $0x8] sm:$0xff]  ;;  %vm605_vm0 = vcmask 261120   ;;  %vm801_vm1 = vcmask 31744   ;;  %v6994_v41 = vmov -inf  }
  0x73   : > { %666 = vmatpush.msra.mxu0 %v604_v4  ;;  %5959 = vmatpush.msra.mxu2 %v604_v4  ;;  %v601_v7 = vld [vmem:[%s7224_s29] sm:$0xff]  ;;  %v586_v10 = vld [vmem:[%s7244_s2 + $0x8] sm:$0xff]  ;;  %v587_v12 = vld [vmem:[%s7244_s2 + $0x10] sm:$0xff]  ;;  %818 = vst.msk [vmem:[#allocation4] sm:$0xff] %vm801_vm1, %v6994_v41  ;;  %v6995_v42 = vmov 0.0  }
  0x74   : > { %v585_v8 = vld [vmem:[%s7244_s2] sm:$0xff]  ;;  %v594_v11 = vld [vmem:[%s7244_s2 + $0x48] sm:$0xff]  ;;  %v595_v13 = vld [vmem:[%s7244_s2 + $0x50] sm:$0xff]  ;;  %819 = vst.msk [vmem:[#allocation4 + $0x8] sm:$0xff] %vm801_vm1, %v6994_v41 }
  0x75   : > { %667 = vmatpush.msra.mxu0 %v603_v5  ;;  %5960 = vmatpush.msra.mxu2 %v603_v5  ;;  %v593_v9 = vld [vmem:[%s7244_s2 + $0x40] sm:$0xff]  ;;  %v588_v14 = vld [vmem:[%s7244_s2 + $0x18] sm:$0xff]  ;;  %v590_v19 = vld [vmem:[%s7244_s2 + $0x28] sm:$0xff]  ;;  %820 = vst.msk [vmem:[#allocation4 + $0x10] sm:$0xff] %vm801_vm1, %v6994_v41 }
  0x76   : > { %v596_v15 = vld [vmem:[%s7244_s2 + $0x58] sm:$0xff]  ;;  %v735_v16 = vld [vmem:[%s7255_s19] sm:$0xf]  ;;  %v598_v20 = vld [vmem:[%s7244_s2 + $0x68] sm:$0xff]  ;;  %821 = vst.msk [vmem:[#allocation4 + $0x18] sm:$0xff] %vm801_vm1, %v6994_v41 }
  0x77   : > { %668 = vmatpush.msra.mxu0 %v602_v6  ;;  %5961 = vmatpush.msra.mxu2 %v602_v6  ;;  %v589_v17 = vld [vmem:[%s7244_s2 + $0x20] sm:$0xff]  ;;  %v591_v21 = vld [vmem:[%s7244_s2 + $0x30] sm:$0xff]  ;;  %v592_v23 = vld [vmem:[%s7244_s2 + $0x38] sm:$0xff]  ;;  %822 = vst.msk [vmem:[#allocation4 + $0x20] sm:$0xff] %vm801_vm1, %v6994_v41 }
  0x78   : > { %751 = vmatpush.xpose.msra.mxu1 %v735_v16  ;;  %5963 = vmatpush.xpose.msra.mxu3 %v735_v16  ;;  %v597_v18 = vld [vmem:[%s7244_s2 + $0x60] sm:$0xff]  ;;  %v599_v22 = vld [vmem:[%s7244_s2 + $0x70] sm:$0xff]  ;;  %v600_v24 = vld [vmem:[%s7244_s2 + $0x78] sm:$0xff]  ;;  %823 = vst.msk [vmem:[#allocation4 + $0x28] sm:$0xff] %vm801_vm1, %v6994_v41 }
  0x79   : > { %669 = vmatpush.msra.mxu0 %v601_v7  ;;  %5962 = vmatpush.msra.mxu2 %v601_v7  ;;  %824 = vst.msk [vmem:[#allocation4 + $0x30] sm:$0xff] %vm801_vm1, %v6994_v41 }
  0x7a   : > { %5854 = vmatmul.msk.f32.vlgmr.msra.gmra.mxu0 %vm605_vm0, %v585_v8  ;;  %5862 = vmatmul.msk.f32.vlgmr.msra.gmra.mxu2 %vm605_vm0, %v593_v9  ;;  %825 = vst.msk [vmem:[#allocation4 + $0x38] sm:$0xff] %vm801_vm1, %v6994_v41 }
  0x7b   : > { %826 = vst.msk [vmem:[#allocation4 + $0x40] sm:$0xff] %vm801_vm1, %v6994_v41 }
  0x7c   : > { %827 = vst.msk [vmem:[#allocation4 + $0x48] sm:$0xff] %vm801_vm1, %v6994_v41 }
  0x7d   : > { %828 = vst.msk [vmem:[#allocation4 + $0x50] sm:$0xff] %vm801_vm1, %v6994_v41 }
  0x7e   : > { %829 = vst.msk [vmem:[#allocation4 + $0x58] sm:$0xff] %vm801_vm1, %v6994_v41 }
  0x7f   : > { %830 = vst.msk [vmem:[#allocation4 + $0x60] sm:$0xff] %vm801_vm1, %v6994_v41 }
  0x80   : > { %831 = vst.msk [vmem:[#allocation4 + $0x68] sm:$0xff] %vm801_vm1, %v6994_v41 }
  0x81   : > { %832 = vst.msk [vmem:[#allocation4 + $0x70] sm:$0xff] %vm801_vm1, %v6994_v41 }
  0x82   : > { %5855 = vmatmul.msk.f32.gmra.mxu0 %vm605_vm0, %v586_v10  ;;  %5863 = vmatmul.msk.f32.gmra.mxu2 %vm605_vm0, %v594_v11  ;;  %833 = vst.msk [vmem:[#allocation4 + $0x78] sm:$0xff] %vm801_vm1, %v6994_v41 }
  0x83   : > { %834 = vst.msk [vmem:[#allocation5] sm:$0xff] %vm801_vm1, %v6995_v42 }
  0x84   : > { %835 = vst.msk [vmem:[#allocation5 + $0x8] sm:$0xff] %vm801_vm1, %v6995_v42 }
  0x85   : > { %836 = vst.msk [vmem:[#allocation5 + $0x10] sm:$0xff] %vm801_vm1, %v6995_v42 }
  0x86   : > { %837 = vst.msk [vmem:[#allocation5 + $0x18] sm:$0xff] %vm801_vm1, %v6995_v42 }
  0x87   : > { %838 = vst.msk [vmem:[#allocation5 + $0x20] sm:$0xff] %vm801_vm1, %v6995_v42 }
  0x88   : > { %839 = vst.msk [vmem:[#allocation5 + $0x28] sm:$0xff] %vm801_vm1, %v6995_v42 }
  0x89   : > { %840 = vst.msk [vmem:[#allocation5 + $0x30] sm:$0xff] %vm801_vm1, %v6995_v42 }
  0x8a   : > { %5856 = vmatmul.msk.f32.gmra.mxu0 %vm605_vm0, %v587_v12  ;;  %5864 = vmatmul.msk.f32.gmra.mxu2 %vm605_vm0, %v595_v13  ;;  %841 = vst.msk [vmem:[#allocation5 + $0x38] sm:$0xff] %vm801_vm1, %v6995_v42 }
  0x8b   : > { %842 = vst.msk [vmem:[#allocation5 + $0x40] sm:$0xff] %vm801_vm1, %v6995_v42 }
  0x8c   : > { %843 = vst.msk [vmem:[#allocation5 + $0x48] sm:$0xff] %vm801_vm1, %v6995_v42 }
  0x8d   : > { %844 = vst.msk [vmem:[#allocation5 + $0x50] sm:$0xff] %vm801_vm1, %v6995_v42 }
  0x8e   : > { %845 = vst.msk [vmem:[#allocation5 + $0x58] sm:$0xff] %vm801_vm1, %v6995_v42 }
  0x8f   : > { %846 = vst.msk [vmem:[#allocation5 + $0x60] sm:$0xff] %vm801_vm1, %v6995_v42 }
  0x90   : > { %847 = vst.msk [vmem:[#allocation5 + $0x68] sm:$0xff] %vm801_vm1, %v6995_v42 }
  0x91   : > { %848 = vst.msk [vmem:[#allocation5 + $0x70] sm:$0xff] %vm801_vm1, %v6995_v42 }
  0x92   : > { %5857 = vmatmul.msk.f32.gmra.mxu0 %vm605_vm0, %v588_v14  ;;  %5865 = vmatmul.msk.f32.gmra.mxu2 %vm605_vm0, %v596_v15  ;;  %849 = vst.msk [vmem:[#allocation5 + $0x78] sm:$0xff] %vm801_vm1, %v6995_v42 }
  0x93   : > { %850 = vst [vmem:[#allocation6] sm:$0xff] %v6995_v42 }
  0x94   : > { %851 = vst [vmem:[#allocation6 + $0x8] sm:$0xff] %v6995_v42 }
  0x95   : > { %852 = vst [vmem:[#allocation6 + $0x10] sm:$0xff] %v6995_v42 }
  0x96   : > { %853 = vst [vmem:[#allocation6 + $0x18] sm:$0xff] %v6995_v42 }
  0x97   : > { %854 = vst [vmem:[#allocation6 + $0x20] sm:$0xff] %v6995_v42 }
  0x98   : > { %855 = vst [vmem:[#allocation6 + $0x28] sm:$0xff] %v6995_v42 }
  0x99   : > { %856 = vst [vmem:[#allocation6 + $0x30] sm:$0xff] %v6995_v42 }
  0x9a   : > { %5858 = vmatmul.msk.f32.gmra.mxu0 %vm605_vm0, %v589_v17  ;;  %5866 = vmatmul.msk.f32.gmra.mxu2 %vm605_vm0, %v597_v18  ;;  %857 = vst [vmem:[#allocation6 + $0x38] sm:$0xff] %v6995_v42 }
  0x9b   : > { %858 = vst [vmem:[#allocation6 + $0x40] sm:$0xff] %v6995_v42 }
  0x9c   : > { %859 = vst [vmem:[#allocation6 + $0x48] sm:$0xff] %v6995_v42 }
  0x9d   : > { %860 = vst [vmem:[#allocation6 + $0x50] sm:$0xff] %v6995_v42 }
  0x9e   : > { %861 = vst [vmem:[#allocation6 + $0x58] sm:$0xff] %v6995_v42 }
  0x9f   : > { %862 = vst [vmem:[#allocation6 + $0x60] sm:$0xff] %v6995_v42 }
  0xa0   : > { %863 = vst [vmem:[#allocation6 + $0x68] sm:$0xff] %v6995_v42 }
  0xa1   : > { %864 = vst [vmem:[#allocation6 + $0x70] sm:$0xff] %v6995_v42 }
  0xa2   : > { %5859 = vmatmul.msk.f32.gmra.mxu0 %vm605_vm0, %v590_v19  ;;  %5867 = vmatmul.msk.f32.gmra.mxu2 %vm605_vm0, %v598_v20  ;;  %865 = vst [vmem:[#allocation6 + $0x78] sm:$0xff] %v6995_v42 }
  0xaa   : > { %5860 = vmatmul.msk.f32.gmra.mxu0 %vm605_vm0, %v591_v21  ;;  %5868 = vmatmul.msk.f32.gmra.mxu2 %vm605_vm0, %v599_v22 }
  0xb2   : > { %5861 = vmatmul.msk.f32.gmra.mxu0 %vm605_vm0, %v592_v23  ;;  %5869 = vmatmul.msk.f32.gmra.mxu2 %vm605_vm0, %v600_v24 }
  0xf7   : > { %v671_v25 = vpop.f32.mrf.mxu0 }
  0xf8   : > { %752 = vmatmul.f32.vlgmr.msra.gmra.mxu1 %v671_v25 }
  0xfd   : > { %v695_v26 = vpop.f32.mrf.mxu2 }
  0xff   : > { %v674_v27 = vpop.f32.mrf.mxu0 }
 0x100   : > { %755 = vmatmul.f32.gmra.mxu1 %v674_v27 }
 0x105   : > { %v698_v28 = vpop.f32.mrf.mxu2 }
 0x106   : > { %779 = vmatmul.f32.vlgmr.msra.gmra.mxu3 %v698_v28 }
 0x107   : > { %v677_v29 = vpop.f32.mrf.mxu0 }
 0x108   : > { %758 = vmatmul.f32.gmra.mxu1 %v677_v29 }
 0x10d   : > { %v701_v30 = vpop.f32.mrf.mxu2 }
 0x10e   : > { %782 = vmatmul.f32.gmra.mxu3 %v701_v30 }
 0x10f   : > { %v680_v31 = vpop.f32.mrf.mxu0 }
 0x110   : > { %761 = vmatmul.f32.gmra.mxu1 %v680_v31 }
 0x115   : > { %v704_v32 = vpop.f32.mrf.mxu2 }
 0x116   : > { %785 = vmatmul.f32.gmra.mxu3 %v704_v32 }
 0x117   : > { %v683_v33 = vpop.f32.mrf.mxu0 }
 0x118   : > { %764 = vmatmul.f32.gmra.mxu1 %v683_v33 }
 0x11d   : > { %v707_v34 = vpop.f32.mrf.mxu2 }
 0x11e   : > { %788 = vmatmul.f32.gmra.mxu3 %v707_v34 }
 0x11f   : > { %v686_v35 = vpop.f32.mrf.mxu0 }
 0x120   : > { %767 = vmatmul.f32.gmra.mxu1 %v686_v35 }
 0x125   : > { %v710_v36 = vpop.f32.mrf.mxu2 }
 0x126   : > { %791 = vmatmul.f32.gmra.mxu3 %v710_v36 }
 0x127   : > { %v689_v37 = vpop.f32.mrf.mxu0 }
 0x128   : > { %770 = vmatmul.f32.gmra.mxu1 %v689_v37 }
 0x12d   : > { %v713_v38 = vpop.f32.mrf.mxu2 }
 0x12e   : > { %794 = vmatmul.f32.gmra.mxu3 %v713_v38 }
 0x12f   : > { %v692_v39 = vpop.f32.mrf.mxu0 }
 0x130   : > { %773 = vmatmul.f32.gmra.mxu1 %v692_v39 }
 0x135   : > { %v716_v40 = vpop.f32.mrf.mxu2 }
 0x136   : > { %797 = vmatmul.f32.gmra.mxu3 %v716_v40 }
 0x138   : > { %776 = vmatmul.f32.gmra.mxu1 %v695_v26 }
 0x175   : > { %v753_v43 = vpop.f32.mrf.mxu1 }
 0x176   : > { %802 = vst.msk [vmem:[#allocation3] sm:$0xff] %vm801_vm1, %v753_v43 }
 0x17d   : > { %v756_v44 = vpop.f32.mrf.mxu1 }
 0x17e   : > { %803 = vst.msk [vmem:[#allocation3 + $0x8] sm:$0xff] %vm801_vm1, %v756_v44 }
 0x185   : > { %v759_v45 = vpop.f32.mrf.mxu1 }
 0x186   : > { %804 = vst.msk [vmem:[#allocation3 + $0x10] sm:$0xff] %vm801_vm1, %v759_v45 }
 0x189   : > { %v780_v46 = vpop.f32.mrf.mxu3 }
 0x18a   : > { %811 = vst.msk [vmem:[#allocation3 + $0x48] sm:$0xff] %vm801_vm1, %v780_v46 }
 0x18d   : > { %v762_v47 = vpop.f32.mrf.mxu1 }
 0x18e   : > { %805 = vst.msk [vmem:[#allocation3 + $0x18] sm:$0xff] %vm801_vm1, %v762_v47 }
 0x191   : > { %v783_v48 = vpop.f32.mrf.mxu3 }
 0x192   : > { %812 = vst.msk [vmem:[#allocation3 + $0x50] sm:$0xff] %vm801_vm1, %v783_v48 }
 0x195   : > { %v765_v49 = vpop.f32.mrf.mxu1 }
 0x196   : > { %806 = vst.msk [vmem:[#allocation3 + $0x20] sm:$0xff] %vm801_vm1, %v765_v49 }
 0x199   : > { %v786_v50 = vpop.f32.mrf.mxu3 }
 0x19a   : > { %813 = vst.msk [vmem:[#allocation3 + $0x58] sm:$0xff] %vm801_vm1, %v786_v50 }
 0x19d   : > { %v768_v51 = vpop.f32.mrf.mxu1 }
 0x19e   : > { %807 = vst.msk [vmem:[#allocation3 + $0x28] sm:$0xff] %vm801_vm1, %v768_v51 }
 0x1a1   : > { %v789_v52 = vpop.f32.mrf.mxu3 }
 0x1a2   : > { %814 = vst.msk [vmem:[#allocation3 + $0x60] sm:$0xff] %vm801_vm1, %v789_v52 }
 0x1a5   : > { %v771_v53 = vpop.f32.mrf.mxu1 }
 0x1a6   : > { %808 = vst.msk [vmem:[#allocation3 + $0x30] sm:$0xff] %vm801_vm1, %v771_v53 }
 0x1a9   : > { %v792_v54 = vpop.f32.mrf.mxu3 }
 0x1aa   : > { %815 = vst.msk [vmem:[#allocation3 + $0x68] sm:$0xff] %vm801_vm1, %v792_v54 }
 0x1ad   : > { %v774_v55 = vpop.f32.mrf.mxu1 }
 0x1ae   : > { %809 = vst.msk [vmem:[#allocation3 + $0x38] sm:$0xff] %vm801_vm1, %v774_v55 }
 0x1b1   : > { %v795_v56 = vpop.f32.mrf.mxu3 }
 0x1b2   : > { %816 = vst.msk [vmem:[#allocation3 + $0x70] sm:$0xff] %vm801_vm1, %v795_v56 }
 0x1b5   : > { %v777_v57 = vpop.f32.mrf.mxu1 }
 0x1b6   : > { %810 = vst.msk [vmem:[#allocation3 + $0x40] sm:$0xff] %vm801_vm1, %v777_v57 }
 0x1b9   : > { %v798_v58 = vpop.f32.mrf.mxu3 }
 0x1ba   : > { %817 = vst.msk [vmem:[#allocation3 + $0x78] sm:$0xff] %vm801_vm1, %v798_v58 }
 0x1bb PF: > { %v885_v59 = vld [vmem:[%s7224_s29 + $0x18] sm:$0xff]  ;;  %v884_v60 = vld [vmem:[%s7224_s29 + $0x10] sm:$0xff]  ;;  %v883_v61 = vld [vmem:[%s7224_s29 + $0x8] sm:$0xff]  ;;  %vm10563_vm2 = vcmask 261120   ;;  %v10549_v8 = vmov 0   ;;  %v10551_v14 = vmov 1  }
 0x1bc   : > { %5964 = vmatpush.msra.mxu2 %v885_v59  ;;  %5965 = vmatpush.msra.mxu3 %v885_v59  ;;  %v882_v62 = vld [vmem:[%s7224_s29] sm:$0xff]  ;;  %v871_v2 = vld [vmem:[%s7249_s23 + $0x28] sm:$0xff]  ;;  %v872_v5 = vld [vmem:[%s7249_s23 + $0x30] sm:$0xff]  ;;  %s6998_s5 = smov 96   ;;  %s7000_s15 = smov 32  }
 0x1bd   : > { %947 = vmatpush.msra.mxu0 %v885_v59  ;;  %v870_v63 = vld [vmem:[%s7249_s23 + $0x20] sm:$0xff]  ;;  %v879_v3 = vld [vmem:[%s7249_s23 + $0x68] sm:$0xff]  ;;  %v880_v6 = vld [vmem:[%s7249_s23 + $0x70] sm:$0xff]  ;;  %6182 = vset.pattern.permute.xlu1 %v10549_v8  ;;  %s7001_s17 = smov 64   ;;  %s11031_s19 = sld [smem:[#allocation18_spill]] }
 0x1be   : > { %5966 = vmatpush.msra.mxu2 %v884_v60  ;;  %5967 = vmatpush.msra.mxu3 %v884_v60  ;;  %v878_v0 = vld [vmem:[%s7249_s23 + $0x60] sm:$0xff]  ;;  %v867_v4 = vld [vmem:[%s7249_s23 + $0x8] sm:$0xff]  ;;  %v1075_v7 = vld [vmem:[#allocation3 + $0x10] sm:$0xff] }
 0x1bf   : > { %948 = vmatpush.msra.mxu0 %v884_v60  ;;  %v866_v1 = vld [vmem:[%s7249_s23] sm:$0xff]  ;;  %6183 = vset.pattern.permute.xlu2 %v10549_v8  ;;  %v873_v9 = vld [vmem:[%s7249_s23 + $0x38] sm:$0xff]  ;;  %v868_v13 = vld [vmem:[%s7249_s23 + $0x10] sm:$0xff] }
 0x1c0   : > { %5968 = vmatpush.msra.mxu2 %v883_v61  ;;  %5969 = vmatpush.msra.mxu3 %v883_v61  ;;  %v881_v10 = vld [vmem:[%s7249_s23 + $0x78] sm:$0xff]  ;;  %v1077_v12 = vld [vmem:[#allocation3 + $0x20] sm:$0xff]  ;;  %v1078_v16 = vld [vmem:[#allocation3 + $0x28] sm:$0xff] }
 0x1c1   : > { %949 = vmatpush.msra.mxu0 %v883_v61  ;;  %1101 = vperm.xlu1 %6182, %v1075_v7   ;;  %v1076_v11 = vld [vmem:[#allocation3 + $0x18] sm:$0xff]  ;;  %v874_v15 = vld [vmem:[%s7249_s23 + $0x40] sm:$0xff]  ;;  %v875_v19 = vld [vmem:[%s7249_s23 + $0x48] sm:$0xff] }
 0x1c2   : > { %5970 = vmatpush.msra.mxu2 %v882_v62  ;;  %5971 = vmatpush.msra.mxu3 %v882_v62  ;;  %v1080_v17 = vld [vmem:[#allocation3 + $0x38] sm:$0xff]  ;;  %v1081_v20 = vld [vmem:[#allocation3 + $0x40] sm:$0xff]  ;;  %v1083_v21 = vld [vmem:[#allocation3 + $0x50] sm:$0xff] }
 0x1c3   : > { %5874 = vmatmul.msk.f32.vlgmr.msra.gmra.mxu2 %vm10563_vm2, %v870_v63  ;;  %5882 = vmatmul.msk.f32.vlgmr.msra.gmra.mxu3 %vm10563_vm2, %v878_v0  ;;  %v869_v18 = vld [vmem:[%s7249_s23 + $0x18] sm:$0xff]  ;;  %v876_v22 = vld [vmem:[%s7249_s23 + $0x50] sm:$0xff]  ;;  %v1086_v24 = vld [vmem:[#allocation3 + $0x68] sm:$0xff]  ;;  %p5886_p0 = scmp.ne.s32.totalorder %s11031_s19, 1 }
 0x1c4   : > { %950 = vmatpush.msra.mxu0 %v882_v62  ;;  %1111 = vperm.xlu2 %6183, %v1077_v12   ;;  %v1084_v23 = vld [vmem:[#allocation3 + $0x58] sm:$0xff]  ;;  %v1812_v25 = vld [vmem:[#allocation3] sm:$0xff]  ;;  %v1087_v27 = vld [vmem:[#allocation3 + $0x70] sm:$0xff]  ;;  %s11043_s26 = sld [smem:[#allocation119_spill]] (!%p5886_p0) }
 0x1c5   : > { %5870 = vmatmul.msk.f32.vlgmr.msra.gmra.mxu0 %vm10563_vm2, %v866_v1  ;;  %6184 = vset.pattern.permute.xlu0 %v10551_v14  ;;  %v877_v26 = vld [vmem:[%s7249_s23 + $0x58] sm:$0xff]  ;;  %v1813_v28 = vld [vmem:[#allocation3 + $0x8] sm:$0xff]  ;;  %v1818_v29 = vld [vmem:[#allocation3 + $0x30] sm:$0xff]  ;;  %s11051_s3 = sld [smem:[#allocation121_spill]] (!%p5886_p0) }
 0x1c6   : > { %1830 = vperm.xlu0 %6184, %v1812_v25   ;;  %v1821_v30 = vld [vmem:[#allocation3 + $0x48] sm:$0xff]  ;;  %v1824_v31 = vld [vmem:[#allocation3 + $0x60] sm:$0xff]  ;;  %v1827_v32 = vld [vmem:[#allocation3 + $0x78] sm:$0xff] }
 0x1c7   : > { %v1000_v58 = vld [vmem:[%s7260_s18] sm:$0xf]  ;;  %s11050_s18 = sld [smem:[#allocation120_spill]] (!%p5886_p0) }
 0x1c9   : > { %1106 = vperm.xlu1 %6182, %v1076_v11  }
 0x1ca   : > { %s11044_s28 = smov (!%p5886_p0), %s11043_s26 }
 0x1cb   : > { %5875 = vmatmul.msk.f32.gmra.mxu2 %vm10563_vm2, %v871_v2  ;;  %5883 = vmatmul.msk.f32.gmra.mxu3 %vm10563_vm2, %v879_v3 }
 0x1cc   : > { %1116 = vperm.xlu2 %6183, %v1078_v16  }
 0x1cd   : > { %5871 = vmatmul.msk.f32.gmra.mxu0 %vm10563_vm2, %v867_v4 }
 0x1ce   : > { %1855 = vperm.xlu0 %6184, %v1078_v16  }
 0x1d1   : > { %1126 = vperm.xlu1 %6182, %v1080_v17  }
 0x1d3   : > { %5876 = vmatmul.msk.f32.gmra.mxu2 %vm10563_vm2, %v872_v5  ;;  %5884 = vmatmul.msk.f32.gmra.mxu3 %vm10563_vm2, %v880_v6  ;;  %v1021_v5 = vld [vmem:[%s7267_s21] sm:$0xff] }
 0x1d4   : > { %1131 = vperm.xlu2 %6183, %v1081_v20  }
 0x1d5   : > { %5872 = vmatmul.msk.f32.gmra.mxu0 %vm10563_vm2, %v868_v13  ;;  %v7518_v13 = vld [vmem:[%s7267_s21 + $0x8] sm:$0xff] }
 0x1d6   : > { %1870 = vperm.xlu0 %6184, %v1081_v20   ;;  %v1031_v20 = vunpack.c.2.s8 %v7518_v13  ;;  %v1032_v53 = vunpack.c.3.s8 %v7518_v13 }
 0x1d9   : > { %1141 = vperm.xlu1 %6182, %v1083_v21  }
 0x1db   : > { %5877 = vmatmul.msk.f32.gmra.mxu2 %vm10563_vm2, %v873_v9  ;;  %5885 = vmatmul.msk.f32.gmra.mxu3 %vm10563_vm2, %v881_v10  ;;  %v1026_v9 = vunpack.c.1.s8 %v1021_v5 }
 0x1dc   : > { %1146 = vperm.xlu2 %6183, %v1084_v23  }
 0x1dd   : > { %5873 = vmatmul.msk.f32.gmra.mxu0 %vm10563_vm2, %v869_v18 }
 0x1de   : > { %1885 = vperm.xlu0 %6184, %v1084_v23  }
 0x1e1   : > { %1156 = vperm.xlu1 %6182, %v1086_v24  }
 0x1e3   : > { %5878 = vmatmul.msk.f32.gmra.mxu2 %vm10563_vm2, %v874_v15 }
 0x1e4   : > { %1161 = vperm.xlu2 %6183, %v1087_v27  }
 0x1e6   : > { %1900 = vperm.xlu0 %6184, %v1087_v27  }
 0x1e9   : > { %6185 = vset.pattern.permute.xlu1 %v10551_v14 }
 0x1ea   : > { %1835 = vperm.xlu1 %6185, %v1813_v28  }
 0x1eb   : > { %5879 = vmatmul.msk.f32.gmra.mxu2 %vm10563_vm2, %v875_v19 }
 0x1ec   : > { %6186 = vset.pattern.permute.xlu2 %v10551_v14 }
 0x1ed   : > { %1840 = vperm.xlu2 %6186, %v1075_v7   ;;  %v1027_v7 = vunpack.c.2.s8 %v1021_v5 }
 0x1ee   : > { %6187 = vset.pattern.permute.xlu0 %v10549_v8 }
 0x1ef   : > { %1091 = vperm.xlu0 %6187, %v1812_v25   ;;  %v7522_v16 = vcvt.s32.f32 %v1027_v7  ;;  %v1029_v25 = vunpack.c.0.s8 %v7518_v13 }
 0x1f1   : > { %10745 = vst [vmem:[#allocation54_spill] sm:$0xff] %v7522_v16  ;;  %vm1059_vm3 = vcmp.eq.f32.partialorder %v7522_v16, 0.0 }
 0x1f2   : > { %1845 = vperm.xlu1 %6185, %v1076_v11  }
 0x1f3   : > { %5880 = vmatmul.msk.f32.gmra.mxu2 %vm10563_vm2, %v876_v22 }
 0x1f5   : > { %1850 = vperm.xlu2 %6186, %v1077_v12   ;;  %v1025_v12 = vunpack.c.0.s8 %v1021_v5 }
 0x1f7   : > { %1096 = vperm.xlu0 %6187, %v1813_v28   ;;  %v7529_v19 = vcvt.s32.f32 %v1025_v12  ;;  %v7557_v12 = vld [vmem:[%s7267_s21 + $0x10] sm:$0xff] }
 0x1f9   : > { %10747 = vst [vmem:[#allocation56_spill] sm:$0xff] %v7529_v19  ;;  %vm1057_vm7 = vcmp.eq.f32.partialorder %v7529_v19, 0.0 }
 0x1fa   : > { %1860 = vperm.xlu1 %6185, %v1818_v29  }
 0x1fb   : > { %5881 = vmatmul.msk.f32.gmra.mxu2 %vm10563_vm2, %v877_v26 }
 0x1fd   : > { %1865 = vperm.xlu2 %6186, %v1080_v17   ;;  %v7524_v17 = vcvt.s32.f32 %v1026_v9 }
 0x1ff   : > { %1121 = vperm.xlu0 %6187, %v1818_v29   ;;  %10746 = vst [vmem:[#allocation55_spill] sm:$0xff] %v7524_v17  ;;  %vm1058_vm4 = vcmp.eq.f32.partialorder %v7524_v17, 0.0 }
 0x202   : > { %1875 = vperm.xlu1 %6185, %v1821_v30  }
 0x205   : > { %1880 = vperm.xlu2 %6186, %v1083_v21   ;;  %v1028_v21 = vunpack.c.3.s8 %v1021_v5 }
 0x207   : > { %1136 = vperm.xlu0 %6187, %v1821_v30  }
 0x20a   : > { %1890 = vperm.xlu1 %6185, %v1824_v31  }
 0x20d   : > { %1895 = vperm.xlu2 %6186, %v1086_v24  }
 0x20f   : > { %1151 = vperm.xlu0 %6187, %v1824_v31  }
 0x212   : > { %1905 = vperm.xlu1 %6185, %v1827_v32  }
 0x215   : > { %6209 = vset.pattern.permute.xlu2 %v10549_v8 }
 0x217   : > { %1166 = vperm.xlu0 %6187, %v1827_v32  }
 0x21a   : > { %6208 = vset.pattern.permute.xlu1 %v10549_v8 }
 0x21e   : > { %v1112_v0 = vpop.permute.xlu2 %1111 }
 0x226   : > { %v1117_v3 = vpop.permute.xlu2 %1116 }
 0x22e   : > { %v7515_v10 = vpop.permute.xlu2 %1131 }
 0x233   : > { %v1102_v2 = vpop.permute.xlu1 %1101 }
 0x238   : > { %v7504_v59 = vpop.permute.xlu0 %1830 }
 0x23b   : > { %v1107_v6 = vpop.permute.xlu1 %1106 }
 0x240   : > { %v7506_v60 = vpop.permute.xlu0 %1855 }
 0x242   : > { %v7401_v33 = vpop.f32.mrf.mxu0 }
 0x243   : > { %10722 = vst [vmem:[#allocation31_spill] sm:$0xff] %v7401_v33  ;;  %v1127_v26 = vpop.permute.xlu1 %1126 }
 0x246   : > { %v7403_v34 = vpop.f32.mrf.mxu2  ;;  %v7405_v35 = vpop.f32.mrf.mxu3 }
 0x247   : > { %10723 = vst [vmem:[#allocation32_spill] sm:$0xff] %v7403_v34 }
 0x248   : > { %10724 = vst [vmem:[#allocation33_spill] sm:$0xff] %v7405_v35  ;;  %v7508_v61 = vpop.permute.xlu0 %1870 }
 0x24a   : > { %v7407_v36 = vpop.f32.mrf.mxu0 }
 0x24b   : > { %10725 = vst [vmem:[#allocation34_spill] sm:$0xff] %v7407_v36  ;;  %v7411_v37 = vpack.i.bf16 %v7407_v36, %v7401_v33 }
 0x24d   : > { %10726 = vst [vmem:[#allocation35_spill] sm:$0xff] %v7411_v37  ;;  %6189 = vrot.lane.b32.xlu2 %v7411_v37, %s6998_s5 }
 0x24e   : > { %v7415_v38 = vpop.f32.mrf.mxu2  ;;  %v7417_v39 = vpop.f32.mrf.mxu3 }
 0x24f   : > { %10727 = vst [vmem:[#allocation36_spill] sm:$0xff] %v7415_v38  ;;  %v7421_v40 = vpack.i.bf16 %v7415_v38, %v7403_v34  ;;  %v7431_v43 = vpack.i.bf16 %v7417_v39, %v7405_v35 }
 0x250   : > { %10728 = vst [vmem:[#allocation37_spill] sm:$0xff] %v7417_v39  ;;  %v7510_v62 = vpop.permute.xlu0 %1885 }
 0x251   : > { %10729 = vst [vmem:[#allocation38_spill] sm:$0xff] %v7421_v40  ;;  %6194 = vrot.lane.b32.xlu1 %v7421_v40, %s6998_s5 }
 0x252   : > { %10732 = vst [vmem:[#allocation41_spill] sm:$0xff] %v7431_v43  ;;  %v7457_v50 = vpop.f32.mrf.mxu0 }
 0x253   : > { %10737 = vst [vmem:[#allocation46_spill] sm:$0xff] %v7457_v50 }
 0x256   : > { %v7425_v41 = vpop.f32.mrf.mxu2  ;;  %v7427_v42 = vpop.f32.mrf.mxu3 }
 0x257   : > { %10730 = vst [vmem:[#allocation39_spill] sm:$0xff] %v7425_v41 }
 0x258   : > { %10731 = vst [vmem:[#allocation40_spill] sm:$0xff] %v7427_v42  ;;  %v7512_v63 = vpop.permute.xlu0 %1900 }
 0x25a   : > { %v7469_v55 = vpop.f32.mrf.mxu0 }
 0x25b   : > { %10741 = vst [vmem:[#allocation50_spill] sm:$0xff] %v7469_v55  ;;  %v7473_v56 = vpack.i.bf16 %v7469_v55, %v7457_v50 }
 0x25d   : > { %10742 = vst [vmem:[#allocation51_spill] sm:$0xff] %v7473_v56  ;;  %6199 = vrot.lane.b32.xlu0 %v7473_v56, %s6998_s5 }
 0x25e   : > { %v7435_v45 = vpop.f32.mrf.mxu2  ;;  %v7437_v46 = vpop.f32.mrf.mxu3 }
 0x25f   : > { %10733 = vst [vmem:[#allocation42_spill] sm:$0xff] %v7435_v45  ;;  %1001 = vmatpush.xpose.msra.mxu1 %v7437_v46  ;;  %1699 = vmatpush.msrb.mxu2 %v7437_v46  ;;  %v7443_v47 = vpack.i.bf16 %v7435_v45, %v7425_v41 }
 0x260   : > { %10734 = vst [vmem:[#allocation43_spill] sm:$0xff] %v7437_v46 }
 0x261   : > { %10735 = vst [vmem:[#allocation44_spill] sm:$0xff] %v7443_v47  ;;  %1700 = vmatpush.msrb.mxu2 %v7427_v42  ;;  %6204 = vrot.lane.b32.xlu2 %v7443_v47, %s6998_s5  ;;  %v1092_v1 = vpop.permute.xlu0 %1091 }
 0x263   : > { %1002 = vmatpush.xpose.msra.mxu1 %v7427_v42  ;;  %1701 = vmatpush.msrb.mxu2 %v7417_v39  ;;  %v7929_v42 = vld [vmem:[#allocation4 + $0x68] sm:$0xff] }
 0x265   : > { %1702 = vmatpush.msrb.mxu2 %v7405_v35 }
 0x266   : > { %v7453_v49 = vpop.f32.mrf.mxu2 }
 0x267   : > { %10736 = vst [vmem:[#allocation45_spill] sm:$0xff] %v7453_v49  ;;  %1003 = vmatpush.xpose.msra.mxu1 %v7417_v39 }
 0x269   : > { %v1097_v4 = vpop.permute.xlu0 %1096 }
 0x26b   : > { %1004 = vmatpush.xpose.msra.mxu1 %v7405_v35 }
 0x26e   : > { %v7459_v51 = vpop.f32.mrf.mxu2 }
 0x26f   : > { %10738 = vst [vmem:[#allocation47_spill] sm:$0xff] %v7459_v51  ;;  %v7463_v52 = vpack.i.bf16 %v7459_v51, %v7453_v49 }
 0x271   : > { %10739 = vst [vmem:[#allocation48_spill] sm:$0xff] %v7463_v52  ;;  %v1122_v11 = vpop.permute.xlu0 %1121 }
 0x276   : > { %v7467_v54 = vpop.f32.mrf.mxu2 }
 0x277   : > { %10740 = vst [vmem:[#allocation49_spill] sm:$0xff] %v7467_v54 }
 0x279   : > { %v1137_v5 = vpop.permute.xlu0 %1136 }
 0x27e   : > { %v7477_v57 = vpop.f32.mrf.mxu2 }
 0x27f   : > { %10743 = vst [vmem:[#allocation52_spill] sm:$0xff] %v7477_v57  ;;  %1005 = vmatpush.xpose.msra.mxu1 %v7477_v57  ;;  %1703 = vmatpush.msrb.mxu2 %v7477_v57 }
 0x281   : > { %1704 = vmatpush.msrb.mxu2 %v7467_v54 }
 0x283   : > { %1006 = vmatpush.xpose.msra.mxu1 %v7467_v54  ;;  %1705 = vmatpush.msrb.mxu2 %v7459_v51 }
 0x285   : > { %1706 = vmatpush.msrb.mxu2 %v7453_v49 }
 0x287   : > { %1007 = vmatpush.xpose.msra.mxu1 %v7459_v51  ;;  %1707 = vmatpush.msrb.mxu2 %v7435_v45 }
 0x289   : > { %1708 = vmatpush.msrb.mxu2 %v7425_v41 }
 0x28b   : > { %1008 = vmatpush.xpose.msra.mxu1 %v7453_v49  ;;  %1709 = vmatpush.msrb.mxu2 %v7415_v38 }
 0x28d   : > { %1710 = vmatpush.msrb.mxu2 %v7403_v34 }
 0x28f   : > { %1009 = vmatpush.xpose.msra.mxu1 %v7435_v45  ;;  %1711 = vmatpush.msrb.mxu2 %v7469_v55 }
 0x291   : > { %1712 = vmatpush.msrb.mxu2 %v7457_v50 }
 0x293   : > { %1010 = vmatpush.xpose.msra.mxu1 %v7425_v41  ;;  %1713 = vmatpush.msrb.mxu2 %v7407_v36 }
 0x295   : > { %1714 = vmatpush.msrb.mxu2 %v7401_v33 }
 0x297   : > { %1011 = vmatpush.xpose.msra.mxu1 %v7415_v38 }
 0x29b   : > { %1012 = vmatpush.xpose.msra.mxu1 %v7403_v34 }
 0x29f   : > { %1013 = vmatpush.xpose.msra.mxu1 %v7469_v55 }
 0x2a3   : > { %1014 = vmatpush.xpose.msra.mxu1 %v7457_v50  ;;  %v1035_v50 = vunpack.c.2.s8 %v7557_v12 }
 0x2a7   : > { %1015 = vmatpush.xpose.msra.mxu1 %v7407_v36 }
 0x2ab   : > { %1016 = vmatpush.xpose.msra.mxu1 %v7401_v33 }
 0x2ae   : > { %1017 = vmatmul.f32.vlgmr.msra.gmra.mxu1 %v1000_v58 }
 0x32b   : > { %v7520_v15 = vpop.f32.mrf.mxu1 }
 0x32c   : > { %10744 = vst [vmem:[#allocation53_spill] sm:$0xff] %v7520_v15  ;;  %v7527_v18 = vperm.slane %v7520_v15, 0  ;;  %v7647_v36 = vperm.slane %v7520_v15, 1 }
 0x32e   : > { %v1172_v22 = vadd.f32 %v7527_v18, %v1102_v2  ;;  %v1171_v23 = vadd.f32 %v7527_v18, %v1097_v4  ;;  %v1170_v24 = vadd.f32 %v7527_v18, %v1092_v1  ;;  %v1176_v27 = vadd.f32 %v7527_v18, %v1122_v11  ;;  %v7544_v4 = vpop.permute.xlu2 %1146 }
 0x32f   : > { %v1173_v28 = vadd.f32 %v7527_v18, %v1107_v6  ;;  %v1174_v32 = vadd.f32 %v7527_v18, %v1112_v0  ;;  %v7542_v2 = vcvt.s32.f32 %v1031_v20  ;;  %v7554_v11 = vcvt.s32.f32 %v1028_v21 }
 0x330   : > { %vm1188_vm5 = vcmp.gt.f32.partialorder %v1172_v22, 0.0  ;;  %v1204_v29 = vmul.f32 0.2, %v1172_v22  ;;  %vm1187_vm6 = vcmp.gt.f32.partialorder %v1171_v23, 0.0  ;;  %v1203_v30 = vmul.f32 0.2, %v1171_v23 }
 0x331   : > { %vm1186_vm8 = vcmp.gt.f32.partialorder %v1170_v24, 0.0  ;;  %v1202_v31 = vmul.f32 0.2, %v1170_v24  ;;  %10748 = vst [vmem:[#allocation57_spill] sm:$0xff] %v7542_v2  ;;  %v1208_v20 = vmul.f32 0.2, %v1176_v27  ;;  %v1177_v44 = vadd.f32 %v7527_v18, %v1127_v26 }
 0x332   : > { %v1220_v58 = vsel %vm1188_vm5, %v1172_v22, %v1204_v29  ;;  %v1219_v1 = vsel %vm1187_vm6, %v1171_v23, %v1203_v30  ;;  %10749 = vst [vmem:[#allocation58_spill] sm:$0xff] %v7554_v11  ;;  %v1205_v22 = vmul.f32 0.2, %v1173_v28  ;;  %vm1192_vm9 = vcmp.gt.f32.partialorder %v1176_v27, 0.0 }
 0x333   : > { %v7548_v6 = vsel %vm1059_vm3, -1e+09, %v1220_v58  ;;  %v7552_v7 = vsel %vm1058_vm4, -1e+09, %v1219_v1  ;;  %v1218_v9 = vsel %vm1186_vm8, %v1170_v24, %v1202_v31  ;;  %vm1189_vm10 = vcmp.gt.f32.partialorder %v1173_v28, 0.0 }
 0x334   : > { %1270 = vmax.xlane.f32.xlu0 %v7548_v6  ;;  %1268 = vmax.xlane.f32.xlu2 %v7552_v7  ;;  %v7563_v0 = vsel %vm1057_vm7, -1e+09, %v1218_v9  ;;  %v7566_v23 = vcvt.s32.f32 %v1029_v25  ;;  %v1206_v21 = vmul.f32 0.2, %v1174_v32  ;;  %vm1190_vm11 = vcmp.gt.f32.partialorder %v1174_v32, 0.0  ;;  %v1142_v9 = vpop.permute.xlu1 %1141 }
 0x335   : > { %1266 = vmax.xlane.f32.xlu1 %v7563_v0  ;;  %vm10575_vm12 = vcmp.eq.f32.partialorder %v7542_v2, 0.0  ;;  %vm1060_vm13 = vcmp.eq.f32.partialorder %v7554_v11, 0.0  ;;  %v1034_v24 = vunpack.c.1.s8 %v7557_v12  ;;  %v1030_v29 = vunpack.c.1.s8 %v7518_v13 }
 0x336   : > { %10750 = vst [vmem:[#allocation59_spill] sm:$0xff] %v7566_v23  ;;  %v1224_v30 = vsel %vm1192_vm9, %v1176_v27, %v1208_v20  ;;  %v1221_v31 = vsel %vm1189_vm10, %v1173_v28, %v1205_v22  ;;  %v1179_v58 = vadd.f32 %v7527_v18, %v1137_v5  ;;  %v1175_v1 = vadd.f32 %v7527_v18, %v1117_v3  ;;  %v7590_v3 = vld [vmem:[%s7267_s21 + $0x18] sm:$0xff]  ;;  %v7598_v20 = vpop.permute.xlu2 %1161  ;;  %v1152_v22 = vpop.permute.xlu0 %1151 }
 0x337   : > { %vm1061_vm14 = vcmp.eq.f32.partialorder %v7566_v23, 0.0  ;;  %v1222_v25 = vsel %vm1190_vm11, %v1174_v32, %v1206_v21  ;;  %v7579_v48 = vsel %vm10575_vm12, -1e+09, %v1224_v30  ;;  %v7583_v27 = vsel %vm1060_vm13, -1e+09, %v1221_v31  ;;  %v7899_v23 = vld [vmem:[#allocation4 + $0x50] sm:$0xff] }
 0x338   : > { %10751 = vst [vmem:[#allocation60_spill] sm:$0xff] %v7579_v48  ;;  %v7585_v28 = vcvt.s32.f32 %v1034_v24  ;;  %v7587_v5 = vcvt.s32.f32 %v1030_v29  ;;  %v7596_v13 = vsel %vm1061_vm14, -1e+09, %v1222_v25  ;;  %v1211_v26 = vmul.f32 0.2, %v1179_v58 }
 0x339   : > { %10754 = vst [vmem:[#allocation63_spill] sm:$0xff] %v7596_v13  ;;  %v1207_v32 = vmul.f32 0.2, %v1175_v1  ;;  %vm1195_vm15 = vcmp.gt.f32.partialorder %v1179_v58, 0.0  ;;  %vm1191_vm0 = vcmp.gt.f32.partialorder %v1175_v1, 0.0  ;;  %v7601_v21 = vcvt.s32.f32 %v1032_v53 }
 0x33a   : > { %10752 = vst [vmem:[#allocation61_spill] sm:$0xff] %v7585_v28  ;;  %v1209_v24 = vmul.f32 0.2, %v1177_v44  ;;  %vm1193_vm1 = vcmp.gt.f32.partialorder %v1177_v44, 0.0  ;;  %vm10565_vm5 = vcmp.eq.f32.partialorder %v7585_v28, 0.0  ;;  %vm1062_vm6 = vcmp.eq.f32.partialorder %v7587_v5, 0.0 }
 0x33b   : > { %10753 = vst [vmem:[#allocation62_spill] sm:$0xff] %v7587_v5  ;;  %v1037_v29 = vunpack.c.0.s8 %v7590_v3  ;;  %v1033_v30 = vunpack.c.0.s8 %v7557_v12  ;;  %v1227_v31 = vsel %vm1195_vm15, %v1179_v58, %v1211_v26  ;;  %v1223_v25 = vsel %vm1191_vm0, %v1175_v1, %v1207_v32 }
 0x33c   : > { %1278 = vmax.xlane.f32.xlu0 %v7579_v48  ;;  %1272 = vmax.xlane.f32.xlu2 %v7583_v27  ;;  %10755 = vst [vmem:[#allocation64_spill] sm:$0xff] %v7601_v21  ;;  %v1182_v8 = vadd.f32 %v7527_v18, %v1152_v22  ;;  %v1178_v14 = vadd.f32 %v7527_v18, %v7515_v10  ;;  %vm1064_vm8 = vcmp.eq.f32.partialorder %v7601_v21, 0.0  ;;  %v1157_v51 = vpop.permute.xlu1 %1156  ;;  %v7615_v49 = vsel %vm10565_vm5, -1e+09, %v1227_v31 }
 0x33d   : > { %1274 = vmax.xlane.f32.xlu1 %v7596_v13  ;;  %v1225_v53 = vsel %vm1193_vm1, %v1177_v44, %v1209_v24  ;;  %v1180_v55 = vadd.f32 %v7527_v18, %v1142_v9  ;;  %10756 = vst [vmem:[#allocation65_spill] sm:$0xff] %v7615_v49  ;;  %v7619_v58 = vsel %vm1062_vm6, -1e+09, %v1223_v25  ;;  %v7621_v1 = vcvt.s32.f32 %v1037_v29 }
 0x33e   : > { %10757 = vst [vmem:[#allocation66_spill] sm:$0xff] %v7619_v58  ;;  %v7623_v26 = vcvt.s32.f32 %v1033_v30  ;;  %v7629_v44 = vsel %vm1064_vm8, -1e+09, %v1225_v53  ;;  %v1214_v10 = vmul.f32 0.2, %v1182_v8  ;;  %vm1198_vm9 = vcmp.gt.f32.partialorder %v1182_v8, 0.0  ;;  %v1841_v29 = vpop.permute.xlu2 %1840  ;;  %v1167_v30 = vpop.permute.xlu0 %1166 }
 0x33f   : > { %10758 = vst [vmem:[#allocation67_spill] sm:$0xff] %v7621_v1  ;;  %v1210_v9 = vmul.f32 0.2, %v1178_v14  ;;  %vm1194_vm10 = vcmp.gt.f32.partialorder %v1178_v14, 0.0  ;;  %v7632_v32 = vcvt.s32.f32 %v1035_v50  ;;  %v1212_v22 = vmul.f32 0.2, %v1180_v55 }
 0x340   : > { %10759 = vst [vmem:[#allocation68_spill] sm:$0xff] %v7623_v26  ;;  %vm1196_vm11 = vcmp.gt.f32.partialorder %v1180_v55, 0.0  ;;  %v1040_v24 = vunpack.c.3.s8 %v7590_v3  ;;  %vm10564_vm15 = vcmp.eq.f32.partialorder %v7621_v1, 0.0  ;;  %vm1065_vm0 = vcmp.eq.f32.partialorder %v7623_v26, 0.0 }
 0x341   : > { %10760 = vst [vmem:[#allocation69_spill] sm:$0xff] %v7629_v44  ;;  %v1036_v31 = vunpack.c.3.s8 %v7557_v12  ;;  %v1230_v25 = vsel %vm1198_vm9, %v1182_v8, %v1214_v10  ;;  %v1226_v53 = vsel %vm1194_vm10, %v1178_v14, %v1210_v9  ;;  %v1185_v39 = vadd.f32 %v7527_v18, %v1167_v30 }
 0x342   : > { %10761 = vst [vmem:[#allocation70_spill] sm:$0xff] %v7632_v32  ;;  %v1181_v50 = vadd.f32 %v7527_v18, %v7544_v4  ;;  %vm1067_vm1 = vcmp.eq.f32.partialorder %v7632_v32, 0.0  ;;  %v1228_v35 = vsel %vm1196_vm11, %v1180_v55, %v1212_v22  ;;  %v1038_v45 = vunpack.c.1.s8 %v7590_v3  ;;  %v7869_v32 = vld [vmem:[#allocation4 + $0x38] sm:$0xff] }
 0x343   : > { %v1183_v41 = vadd.f32 %v7527_v18, %v1157_v51  ;;  %v7644_v33 = vcvt.s32.f32 %v1040_v24  ;;  %v7651_v8 = vsel %vm10564_vm15, -1e+09, %v1230_v25  ;;  %v7655_v14 = vsel %vm1065_vm0, -1e+09, %v1226_v53 }
 0x344   : > { %1284 = vmax.xlane.f32.xlu0 %v7615_v49  ;;  %1276 = vmax.xlane.f32.xlu2 %v7619_v58  ;;  %10763 = vst [vmem:[#allocation72_spill] sm:$0xff] %v7651_v8  ;;  %v7657_v4 = vcvt.s32.f32 %v1036_v31  ;;  %v7663_v51 = vsel %vm1067_vm1, -1e+09, %v1228_v35  ;;  %v1217_v55 = vmul.f32 0.2, %v1185_v39  ;;  %v1836_v10 = vpop.permute.xlu1 %1835  ;;  %vm1201_vm9 = vcmp.gt.f32.partialorder %v1185_v39, 0.0 }
 0x345   : > { %1280 = vmax.xlane.f32.xlu1 %v7629_v44  ;;  %10762 = vst [vmem:[#allocation71_spill] sm:$0xff] %v7644_v33  ;;  %v1213_v12 = vmul.f32 0.2, %v1181_v50  ;;  %vm1197_vm10 = vcmp.gt.f32.partialorder %v1181_v50, 0.0  ;;  %v7666_v9 = vcvt.s32.f32 %v1038_v45  ;;  %v1215_v22 = vmul.f32 0.2, %v1183_v41 }
 0x346   : > { %10764 = vst [vmem:[#allocation73_spill] sm:$0xff] %v7655_v14  ;;  %vm1199_vm11 = vcmp.gt.f32.partialorder %v1183_v41, 0.0  ;;  %vm10568_vm2 = vcmp.eq.f32.partialorder %v7644_v33, 0.0  ;;  %vm1068_vm15 = vcmp.eq.f32.partialorder %v7657_v4, 0.0  ;;  %v1039_v24 = vunpack.c.2.s8 %v7590_v3  ;;  %v1851_v53 = vpop.permute.xlu2 %1850 }
 0x347   : > { %10765 = vst [vmem:[#allocation74_spill] sm:$0xff] %v7657_v4  ;;  %v1233_v30 = vsel %vm1201_vm9, %v1185_v39, %v1217_v55  ;;  %v1229_v35 = vsel %vm1197_vm10, %v1181_v50, %v1213_v12  ;;  %v1910_v31 = vadd.f32 %v7647_v36, %v1836_v10  ;;  %v1184_v25 = vadd.f32 %v7527_v18, %v7598_v20 }
 0x348   : > { %10766 = vst [vmem:[#allocation75_spill] sm:$0xff] %v7663_v51  ;;  %vm1070_vm5 = vcmp.eq.f32.partialorder %v7666_v9, 0.0  ;;  %v1231_v45 = vsel %vm1199_vm11, %v1183_v41, %v1215_v22  ;;  %v1911_v34 = vadd.f32 %v7647_v36, %v1841_v29  ;;  %v7678_v38 = vsel %vm10568_vm2, -1e+09, %v1233_v30 }
 0x349   : > { %10767 = vst [vmem:[#allocation76_spill] sm:$0xff] %v7666_v9  ;;  %v7682_v3 = vsel %vm1068_vm15, -1e+09, %v1229_v35  ;;  %v7684_v39 = vcvt.s32.f32 %v1039_v24  ;;  %v7690_v18 = vsel %vm1070_vm5, -1e+09, %v1231_v45  ;;  %vm1926_vm9 = vcmp.gt.f32.partialorder %v1910_v31, 0.0 }
 0x34a   : > { %10768 = vst [vmem:[#allocation77_spill] sm:$0xff] %v7678_v38  ;;  %v1942_v41 = vmul.f32 0.2, %v1910_v31  ;;  %v1216_v20 = vmul.f32 0.2, %v1184_v25  ;;  %vm1200_vm10 = vcmp.gt.f32.partialorder %v1184_v25, 0.0  ;;  %v1913_v10 = vadd.f32 %v7647_v36, %v1851_v53 }
 0x34b   : > { %10769 = vst [vmem:[#allocation78_spill] sm:$0xff] %v7682_v3  ;;  %v1943_v29 = vmul.f32 0.2, %v1911_v34  ;;  %vm1927_vm11 = vcmp.gt.f32.partialorder %v1911_v34, 0.0  ;;  %vm1071_vm2 = vcmp.eq.f32.partialorder %v7684_v39, 0.0  ;;  %v1909_v22 = vadd.f32 %v7647_v36, %v7504_v59 }
 0x34c   : > { %1290 = vmax.xlane.f32.xlu0 %v7651_v8  ;;  %1282 = vmax.xlane.f32.xlu2 %v7655_v14  ;;  %10770 = vst [vmem:[#allocation79_spill] sm:$0xff] %v7684_v39  ;;  %v1846_v50 = vpop.permute.xlu1 %1845  ;;  %v1958_v55 = vsel %vm1926_vm9, %v1910_v31, %v1942_v41  ;;  %v1232_v12 = vsel %vm1200_vm10, %v1184_v25, %v1216_v20  ;;  %vm1929_vm9 = vcmp.gt.f32.partialorder %v1913_v10, 0.0 }
 0x34d   : > { %1286 = vmax.xlane.f32.xlu1 %v7663_v51  ;;  %10771 = vst [vmem:[#allocation80_spill] sm:$0xff] %v7690_v18  ;;  %v1959_v24 = vsel %vm1927_vm11, %v1911_v34, %v1943_v29  ;;  %v1914_v30 = vadd.f32 %v7647_v36, %v7506_v60  ;;  %v7701_v45 = vsel %vm1058_vm4, -1e+09, %v1958_v55  ;;  %v7705_v56 = vsel %vm1071_vm2, -1e+09, %v1232_v12 }
 0x34e   : > { %v1866_v35 = vpop.permute.xlu2 %1865  ;;  %10772 = vst [vmem:[#allocation81_spill] sm:$0xff] %v7701_v45  ;;  %v7711_v59 = vsel %vm1059_vm3, -1e+09, %v1959_v24  ;;  %v1945_v34 = vmul.f32 0.2, %v1913_v10  ;;  %vm1925_vm10 = vcmp.gt.f32.partialorder %v1909_v22, 0.0  ;;  %v1912_v20 = vadd.f32 %v7647_v36, %v1846_v50 }
 0x34f   : > { %10773 = vst [vmem:[#allocation82_spill] sm:$0xff] %v7705_v56  ;;  %v1941_v31 = vmul.f32 0.2, %v1909_v22  ;;  %v1946_v60 = vmul.f32 0.2, %v1914_v30  ;;  %vm1930_vm11 = vcmp.gt.f32.partialorder %v1914_v30, 0.0  ;;  %v1916_v41 = vadd.f32 %v7647_v36, %v1866_v35 }
 0x350   : > { %10774 = vst [vmem:[#allocation83_spill] sm:$0xff] %v7711_v59  ;;  %v1961_v25 = vsel %vm1929_vm9, %v1913_v10, %v1945_v34  ;;  %v1917_v12 = vadd.f32 %v7647_v36, %v7508_v61 }
 0x351   : > { %v1957_v53 = vsel %vm1925_vm10, %v1909_v22, %v1941_v31  ;;  %v1962_v55 = vsel %vm1930_vm11, %v1914_v30, %v1946_v60  ;;  %v7720_v24 = vsel %vm1061_vm14, -1e+09, %v1961_v25  ;;  %v1948_v10 = vmul.f32 0.2, %v1916_v41 }
 0x352   : > { %10775 = vst [vmem:[#allocation84_spill] sm:$0xff] %v7720_v24  ;;  %v7724_v40 = vsel %vm1057_vm7, -1e+09, %v1957_v53  ;;  %v7730_v50 = vsel %vm1062_vm6, -1e+09, %v1962_v55  ;;  %vm1932_vm9 = vcmp.gt.f32.partialorder %v1916_v41, 0.0  ;;  %v1920_v53 = vadd.f32 %v7647_v36, %v7510_v62 }
 0x353   : > { %10776 = vst [vmem:[#allocation85_spill] sm:$0xff] %v7724_v40  ;;  %v1944_v22 = vmul.f32 0.2, %v1912_v20  ;;  %vm1928_vm10 = vcmp.gt.f32.partialorder %v1912_v20, 0.0  ;;  %v1949_v61 = vmul.f32 0.2, %v1917_v12  ;;  %v1964_v35 = vsel %vm1932_vm9, %v1916_v41, %v1948_v10 }
 0x354   : > { %1296 = vmax.xlane.f32.xlu0 %v7678_v38  ;;  %1288 = vmax.xlane.f32.xlu2 %v7682_v3  ;;  %v1861_v29 = vpop.permute.xlu1 %1860  ;;  %10777 = vst [vmem:[#allocation86_spill] sm:$0xff] %v7730_v50  ;;  %vm1933_vm11 = vcmp.gt.f32.partialorder %v1917_v12, 0.0  ;;  %v7739_v47 = vsel %vm1064_vm8, -1e+09, %v1964_v35  ;;  %v1952_v62 = vmul.f32 0.2, %v1920_v53 }
 0x355   : > { %1292 = vmax.xlane.f32.xlu1 %v7690_v18  ;;  %v1960_v34 = vsel %vm1928_vm10, %v1912_v20, %v1944_v22  ;;  %v1915_v60 = vadd.f32 %v7647_v36, %v1861_v29  ;;  %v1965_v25 = vsel %vm1933_vm11, %v1917_v12, %v1949_v61  ;;  %10778 = vst [vmem:[#allocation87_spill] sm:$0xff] %v7739_v47  ;;  %vm1936_vm11 = vcmp.gt.f32.partialorder %v1920_v53, 0.0 }
 0x356   : > { %v1881_v30 = vpop.permute.xlu2 %1880  ;;  %v7743_v37 = vsel %vm1060_vm13, -1e+09, %v1960_v34  ;;  %v7749_v41 = vsel %vm1065_vm0, -1e+09, %v1965_v25  ;;  %v1968_v35 = vsel %vm1936_vm11, %v1920_v53, %v1952_v62  ;;  %v1923_v34 = vadd.f32 %v7647_v36, %v7512_v63 }
 0x357   : > { %v1919_v31 = vadd.f32 %v7647_v36, %v1881_v30  ;;  %10779 = vst [vmem:[#allocation88_spill] sm:$0xff] %v7743_v37  ;;  %v1947_v29 = vmul.f32 0.2, %v1915_v60  ;;  %vm1931_vm10 = vcmp.gt.f32.partialorder %v1915_v60, 0.0 }
 0x358   : > { %10780 = vst [vmem:[#allocation89_spill] sm:$0xff] %v7749_v41  ;;  %v1955_v63 = vmul.f32 0.2, %v1923_v34  ;;  %vm1939_vm11 = vcmp.gt.f32.partialorder %v1923_v34, 0.0 }
 0x359   : > { %v1951_v20 = vmul.f32 0.2, %v1919_v31  ;;  %vm1935_vm9 = vcmp.gt.f32.partialorder %v1919_v31, 0.0  ;;  %v1963_v22 = vsel %vm1931_vm10, %v1915_v60, %v1947_v29 }
 0x35a   : > { %v7762_v11 = vsel %vm10575_vm12, -1e+09, %v1963_v22  ;;  %vm10785_vm12 = vcmp.eq.f32.partialorder %v7585_v28, 0.0  ;;  %v7840_v28 = vld [vmem:[#allocation4 + $0x20] sm:$0xff] }
 0x35b   : > { %v1967_v10 = vsel %vm1935_vm9, %v1919_v31, %v1951_v20  ;;  %10782 = vst [vmem:[#allocation91_spill] sm:$0xff] %v7762_v11  ;;  %v7768_v31 = vsel %vm1068_vm15, -1e+09, %v1968_v35 }
 0x35c   : > { %2007 = vmax.xlane.f32.xlu0 %v7701_v45  ;;  %1294 = vmax.xlane.f32.xlu2 %v7705_v56  ;;  %v1876_v55 = vpop.permute.xlu1 %1875  ;;  %v7758_v25 = vsel %vm1067_vm1, -1e+09, %v1967_v10  ;;  %10783 = vst [vmem:[#allocation92_spill] sm:$0xff] %v7768_v31 }
 0x35d   : > { %2009 = vmax.xlane.f32.xlu1 %v7711_v59  ;;  %v1918_v61 = vadd.f32 %v7647_v36, %v1876_v55  ;;  %10781 = vst [vmem:[#allocation90_spill] sm:$0xff] %v7758_v25 }
 0x35e   : > { %v1896_v12 = vpop.permute.xlu2 %1895 }
 0x35f   : > { %v1922_v30 = vadd.f32 %v7647_v36, %v1896_v12  ;;  %v1950_v53 = vmul.f32 0.2, %v1918_v61  ;;  %vm1934_vm10 = vcmp.gt.f32.partialorder %v1918_v61, 0.0  ;;  %v1971_v12 = vsel %vm1939_vm11, %v1923_v34, %v1955_v63 }
 0x360   : > { %v7784_v35 = vsel %vm1071_vm2, -1e+09, %v1971_v12  ;;  %vm10790_vm11 = vcmp.eq.f32.partialorder %v7644_v33, 0.0 }
 0x361   : > { %v1954_v60 = vmul.f32 0.2, %v1922_v30  ;;  %vm1938_vm9 = vcmp.gt.f32.partialorder %v1922_v30, 0.0  ;;  %v1966_v29 = vsel %vm1934_vm10, %v1918_v61, %v1950_v53  ;;  %10787 = vst [vmem:[#allocation95_spill] sm:$0xff] %v7784_v35  ;;  %vm10788_vm10 = vcmp.eq.f32.partialorder %v7621_v1, 0.0 }
 0x362   : > { %v7778_v22 = vsel %vm10785_vm12, -1e+09, %v1966_v29 }
 0x363   : > { %v1970_v20 = vsel %vm1938_vm9, %v1922_v30, %v1954_v60  ;;  %10786 = vst [vmem:[#allocation94_spill] sm:$0xff] %v7778_v22 }
 0x364   : > { %2013 = vmax.xlane.f32.xlu0 %v7720_v24  ;;  %2005 = vmax.xlane.f32.xlu2 %v7724_v40  ;;  %v1891_v55 = vpop.permute.xlu1 %1890  ;;  %v7774_v10 = vsel %vm1070_vm5, -1e+09, %v1970_v20 }
 0x365   : > { %2015 = vmax.xlane.f32.xlu1 %v7730_v50  ;;  %v1921_v62 = vadd.f32 %v7647_v36, %v1891_v55  ;;  %10784 = vst [vmem:[#allocation93_spill] sm:$0xff] %v7774_v10 }
 0x366   : > { %v7798_v29 = vpop.permute.xlu2 %6189 }
 0x367   : > { %v1953_v30 = vmul.f32 0.2, %v1921_v62  ;;  %vm1937_vm9 = vcmp.gt.f32.partialorder %v1921_v62, 0.0  ;;  %10792 = vst [vmem:[#allocation98_spill] sm:$0xff] %v7798_v29 }
 0x369   : > { %v1969_v34 = vsel %vm1937_vm9, %v1921_v62, %v1953_v30  ;;  %v7806_v30 = vld [vmem:[#allocation4 + $0x10] sm:$0xff]  ;;  %vm10670_vm9 = vcmask 7168  }
 0x36a   : > { %v7790_v53 = vsel %vm10788_vm10, -1e+09, %v1969_v34  ;;  %v7810_v34 = vld [vmem:[#allocation4] sm:$0xff]  ;;  %vm2309_vm10 = vcmask 15368  }
 0x36b   : > { %10789 = vst [vmem:[#allocation96_spill] sm:$0xff] %v7790_v53 }
 0x36c   : > { %2019 = vmax.xlane.f32.xlu0 %v7739_v47  ;;  %2011 = vmax.xlane.f32.xlu2 %v7743_v37  ;;  %v1906_v61 = vpop.permute.xlu1 %1905 }
 0x36d   : > { %2021 = vmax.xlane.f32.xlu1 %v7749_v41  ;;  %v1924_v60 = vadd.f32 %v7647_v36, %v1906_v61  ;;  %v7802_v36 = vpop.permute.xlu0 %6199  ;;  %v7808_v61 = vld [vmem:[#allocation4 + $0x8] sm:$0xff] }
 0x36e   : > { %v7800_v62 = vpop.permute.xlu2 %6204  ;;  %10794 = vst [vmem:[#allocation100_spill] sm:$0xff] %v7802_v36 }
 0x36f   : > { %v1956_v55 = vmul.f32 0.2, %v1924_v60  ;;  %vm1940_vm12 = vcmp.gt.f32.partialorder %v1924_v60, 0.0  ;;  %10793 = vst [vmem:[#allocation99_spill] sm:$0xff] %v7800_v62 }
 0x371   : > { %v1972_v63 = vsel %vm1940_vm12, %v1924_v60, %v1956_v55  ;;  %vm10879_vm12 = vcmask 261120  }
 0x372   : > { %v7795_v20 = vsel %vm10790_vm11, -1e+09, %v1972_v63  ;;  %vm10883_vm11 = vmmov %vm10879_vm12 }
 0x373   : > { %10791 = vst [vmem:[#allocation97_spill] sm:$0xff] %v7795_v20 }
 0x374   : > { %2025 = vmax.xlane.f32.xlu0 %v7758_v25  ;;  %2017 = vmax.xlane.f32.xlu2 %v7762_v11  ;;  %v7804_v12 = vpop.permute.xlu1 %6194 }
 0x375   : > { %2027 = vmax.xlane.f32.xlu1 %v7768_v31  ;;  %10795 = vst [vmem:[#allocation101_spill] sm:$0xff] %v7804_v12 }
 0x37c   : > { %2031 = vmax.xlane.f32.xlu0 %v7774_v10  ;;  %2023 = vmax.xlane.f32.xlu2 %v7778_v22 }
 0x37d   : > { %2033 = vmax.xlane.f32.xlu1 %v7784_v35 }
 0x384   : > { %2029 = vmax.xlane.f32.xlu2 %v7790_v53 }
 0x38c   : > { %2035 = vmax.xlane.f32.xlu2 %v7795_v20 }
 0x3a7   : > { %v1271_v60 = vpop.xlane.xlu0 %1270  ;;  %v1269_v55 = vpop.xlane.xlu2 %1268 }
 0x3a8   : > { %v7813_v63 = vmax.f32 %v7806_v30, %v1271_v60  ;;  %v7816_v33 = vmax.f32 %v7808_v61, %v1269_v55  ;;  %v1267_v39 = vpop.xlane.xlu1 %1266  ;;  %v7836_v60 = vld [vmem:[#allocation4 + $0x30] sm:$0xff]  ;;  %v7838_v55 = vld [vmem:[#allocation4 + $0x18] sm:$0xff] }
 0x3a9   : > { %v7819_v1 = vmax.f32 %v7810_v34, %v1267_v39 }
 0x3aa   : > { %1798 = vst.msk [vmem:[#allocation4 + $0x10] sm:$0xff] %vm10670_vm9, %v7813_v63  ;;  %1374 = vperm.xlu0 %6187, %v7813_v63   ;;  %1369 = vperm.xlu2 %6209, %v7816_v33  }
 0x3ab   : > { %1797 = vst.msk [vmem:[#allocation4 + $0x8] sm:$0xff] %vm10670_vm9, %v7816_v33  ;;  %1364 = vperm.xlu1 %6208, %v7819_v1  }
 0x3ac   : > { %1796 = vst.msk [vmem:[#allocation4] sm:$0xff] %vm10670_vm9, %v7819_v1 }
 0x3af   : > { %v1279_v2 = vpop.xlane.xlu0 %1278  ;;  %v1273_v29 = vpop.xlane.xlu2 %1272 }
 0x3b0   : > { %v7843_v9 = vmax.f32 %v7836_v60, %v1279_v2  ;;  %v7846_v36 = vmax.f32 %v7838_v55, %v1273_v29  ;;  %v1275_v39 = vpop.xlane.xlu1 %1274  ;;  %v7865_v29 = vld [vmem:[#allocation4 + $0x48] sm:$0xff] }
 0x3b1   : > { %v7849_v12 = vmax.f32 %v7840_v28, %v1275_v39  ;;  %v7867_v39 = vld [vmem:[#allocation4 + $0x28] sm:$0xff] }
 0x3b2   : > { %1802 = vst.msk [vmem:[#allocation4 + $0x30] sm:$0xff] %vm10670_vm9, %v7843_v9  ;;  %v7957_v25 = vld [vmem:[#allocation4 + $0x8] sm:$0xff] }
 0x3b3   : > { %1799 = vst.msk [vmem:[#allocation4 + $0x18] sm:$0xff] %vm10670_vm9, %v7846_v36  ;;  %1379 = vperm.xlu1 %6208, %v7846_v36   ;;  %1384 = vperm.xlu0 %6187, %v7849_v12   ;;  %v7987_v41 = vld [vmem:[#allocation4] sm:$0xff] }
 0x3b4   : > { %1800 = vst.msk [vmem:[#allocation4 + $0x20] sm:$0xff] %vm10670_vm9, %v7849_v12 }
 0x3b7   : > { %v1285_v4 = vpop.xlane.xlu0 %1284  ;;  %v1277_v62 = vpop.xlane.xlu2 %1276 }
 0x3b8   : > { %v7872_v17 = vmax.f32 %v7865_v29, %v1285_v4  ;;  %v7875_v2 = vmax.f32 %v7867_v39, %v1277_v62  ;;  %v1281_v21 = vpop.xlane.xlu1 %1280  ;;  %v7897_v62 = vld [vmem:[#allocation4 + $0x40] sm:$0xff] }
 0x3b9   : > { %v7878_v26 = vmax.f32 %v7869_v32, %v1281_v21  ;;  %v7895_v21 = vld [vmem:[#allocation4 + $0x60] sm:$0xff]  ;;  %v8048_v3 = vld [vmem:[#allocation4 + $0x30] sm:$0xff] }
 0x3ba   : > { %1805 = vst.msk [vmem:[#allocation4 + $0x48] sm:$0xff] %vm10670_vm9, %v7872_v17  ;;  %1389 = vperm.xlu2 %6209, %v7875_v2   ;;  %v8019_v37 = vld [vmem:[#allocation4 + $0x18] sm:$0xff] }
 0x3bb   : > { %1801 = vst.msk [vmem:[#allocation4 + $0x28] sm:$0xff] %vm10670_vm9, %v7875_v2  ;;  %1394 = vperm.xlu1 %6208, %v7843_v9   ;;  %1399 = vperm.xlu0 %6187, %v7878_v26   ;;  %v7985_v24 = vld [vmem:[#allocation4 + $0x20] sm:$0xff] }
 0x3bc   : > { %1803 = vst.msk [vmem:[#allocation4 + $0x38] sm:$0xff] %vm10670_vm9, %v7878_v26 }
 0x3bf   : > { %v1291_v5 = vpop.xlane.xlu0 %1290  ;;  %v1283_v16 = vpop.xlane.xlu2 %1282 }
 0x3c0   : > { %v7902_v19 = vmax.f32 %v7895_v21, %v1291_v5  ;;  %v7905_v4 = vmax.f32 %v7897_v62, %v1283_v16  ;;  %v1287_v15 = vpop.xlane.xlu1 %1286  ;;  %v7927_v5 = vld [vmem:[#allocation4 + $0x58] sm:$0xff] }
 0x3c1   : > { %v7908_v46 = vmax.f32 %v7899_v23, %v1287_v15  ;;  %v7925_v15 = vld [vmem:[#allocation4 + $0x78] sm:$0xff]  ;;  %v8078_v58 = vld [vmem:[#allocation4 + $0x48] sm:$0xff] }
 0x3c2   : > { %1808 = vst.msk [vmem:[#allocation4 + $0x60] sm:$0xff] %vm10670_vm9, %v7902_v19  ;;  %1404 = vperm.xlu2 %6209, %v7905_v4  }
 0x3c3   : > { %1804 = vst.msk [vmem:[#allocation4 + $0x40] sm:$0xff] %vm10670_vm9, %v7905_v4  ;;  %1409 = vperm.xlu1 %6208, %v7872_v17   ;;  %1414 = vperm.xlu0 %6187, %v7908_v46  }
 0x3c4   : > { %1806 = vst.msk [vmem:[#allocation4 + $0x50] sm:$0xff] %vm10670_vm9, %v7908_v46 }
 0x3c7   : > { %v1297_v52 = vpop.xlane.xlu0 %1296  ;;  %v1289_v43 = vpop.xlane.xlu2 %1288 }
 0x3c8   : > { %v7932_v57 = vmax.f32 %v7925_v15, %v1297_v52  ;;  %v7935_v16 = vmax.f32 %v7927_v5, %v1289_v43  ;;  %v1293_v54 = vpop.xlane.xlu1 %1292  ;;  %v7955_v52 = vld [vmem:[#allocation4 + $0x70] sm:$0xff] }
 0x3c9   : > { %v7938_v10 = vmax.f32 %v7929_v42, %v1293_v54  ;;  %v7965_v43 = vld [vmem:[#allocation4 + $0x10] sm:$0xff] }
 0x3ca   : > { %1811 = vst.msk [vmem:[#allocation4 + $0x78] sm:$0xff] %vm10670_vm9, %v7932_v57  ;;  %1419 = vperm.xlu2 %6209, %v7935_v16   ;;  %v8027_v56 = vld [vmem:[#allocation4 + $0x40] sm:$0xff] }
 0x3cb   : > { %1807 = vst.msk [vmem:[#allocation4 + $0x58] sm:$0xff] %vm10670_vm9, %v7935_v16  ;;  %1424 = vperm.xlu1 %6208, %v7902_v19   ;;  %1429 = vperm.xlu0 %6187, %v7938_v10  }
 0x3cc   : > { %1809 = vst.msk [vmem:[#allocation4 + $0x68] sm:$0xff] %vm10670_vm9, %v7938_v10 }
 0x3cd   : > { %10800 = vst [vmem:[#allocation105_spill] sm:$0xff] %v8027_v56 }
 0x3cf   : > { %v2008_v54 = vpop.xlane.xlu0 %2007  ;;  %v1295_v35 = vpop.xlane.xlu2 %1294 }
 0x3d0   : > { %v7960_v20 = vmax.f32 %v7957_v25, %v2008_v54  ;;  %v7963_v47 = vmax.f32 %v7955_v52, %v1295_v35  ;;  %v2010_v31 = vpop.xlane.xlu1 %2009  ;;  %v7995_v35 = vld [vmem:[#allocation4 + $0x28] sm:$0xff] }
 0x3d1   : > { %v7968_v53 = vmax.f32 %v7965_v43, %v2010_v31  ;;  %v10796_v31 = vmov 1  }
 0x3d2   : > { %2665 = vst.msk [vmem:[#allocation4 + $0x8] sm:$0xff] %vm2309_vm10, %v7960_v20  ;;  %1434 = vperm.xlu2 %6209, %v7963_v47   ;;  %v8056_v44 = vld [vmem:[#allocation4 + $0x58] sm:$0xff] }
 0x3d3   : > { %1810 = vst.msk [vmem:[#allocation4 + $0x70] sm:$0xff] %vm10670_vm9, %v7963_v47  ;;  %1439 = vperm.xlu1 %6208, %v7932_v57   ;;  %6210 = vset.pattern.permute.xlu0 %v10796_v31 }
 0x3d4   : > { %2666 = vst.msk [vmem:[#allocation4 + $0x10] sm:$0xff] %vm2309_vm10, %v7968_v53 }
 0x3d5   : > { %10804 = vst [vmem:[#allocation109_spill] sm:$0xff] %v8056_v44 }
 0x3d7   : > { %v2014_v54 = vpop.xlane.xlu0 %2013  ;;  %v2006_v22 = vpop.xlane.xlu2 %2005 }
 0x3d8   : > { %v7990_v45 = vmax.f32 %v7985_v24, %v2014_v54  ;;  %v7993_v50 = vmax.f32 %v7987_v41, %v2006_v22  ;;  %v2016_v11 = vpop.xlane.xlu1 %2015  ;;  %v8017_v54 = vld [vmem:[#allocation4 + $0x38] sm:$0xff] }
 0x3d9   : > { %v7998_v59 = vmax.f32 %v7995_v35, %v2016_v11  ;;  %10798 = vst [vmem:[#allocation103_spill] sm:$0xff] %v8017_v54 }
 0x3da   : > { %2668 = vst.msk [vmem:[#allocation4 + $0x20] sm:$0xff] %vm2309_vm10, %v7990_v45  ;;  %6212 = vset.pattern.permute.xlu2 %v10796_v31  ;;  %2103 = vperm.xlu0 %6210, %v7993_v50   ;;  %v8086_v13 = vld [vmem:[#allocation4 + $0x70] sm:$0xff] }
 0x3db   : > { %10797 = vst [vmem:[#allocation102_spill] sm:$0xff] %v7998_v59  ;;  %6211 = vset.pattern.permute.xlu1 %v10796_v31  ;;  %2113 = vperm.xlu2 %6212, %v7968_v53  }
 0x3dc   : > { %2664 = vst.msk [vmem:[#allocation4] sm:$0xff] %vm2309_vm10, %v7993_v50  ;;  %2108 = vperm.xlu1 %6211, %v7960_v20  }
 0x3dd   : > { %2669 = vst.msk [vmem:[#allocation4 + $0x28] sm:$0xff] %vm2309_vm10, %v7998_v59 }
 0x3de   : > { %10807 = vst [vmem:[#allocation112_spill] sm:$0xff] %v8086_v13 }
 0x3df   : > { %v2020_v22 = vpop.xlane.xlu0 %2019  ;;  %v2012_v38 = vpop.xlane.xlu2 %2011 }
 0x3e0   : > { %v8022_v40 = vmax.f32 %v8017_v54, %v2020_v22  ;;  %v8025_v11 = vmax.f32 %v8019_v37, %v2012_v38  ;;  %v2022_v18 = vpop.xlane.xlu1 %2021  ;;  %v8046_v22 = vld [vmem:[#allocation4 + $0x50] sm:$0xff] }
 0x3e1   : > { %v8030_v8 = vmax.f32 %v8027_v56, %v2022_v18  ;;  %10802 = vst [vmem:[#allocation107_spill] sm:$0xff] %v8046_v22 }
 0x3e2   : > { %10799 = vst [vmem:[#allocation104_spill] sm:$0xff] %v8022_v40  ;;  %2118 = vperm.xlu0 %6210, %v8025_v11  }
 0x3e3   : > { %10801 = vst [vmem:[#allocation106_spill] sm:$0xff] %v8030_v8 }
 0x3e4   : > { %2671 = vst.msk [vmem:[#allocation4 + $0x38] sm:$0xff] %vm2309_vm10, %v8022_v40  ;;  %2123 = vperm.xlu1 %6211, %v7990_v45  }
 0x3e5   : > { %2667 = vst.msk [vmem:[#allocation4 + $0x18] sm:$0xff] %vm2309_vm10, %v8025_v11 }
 0x3e6   : > { %2672 = vst.msk [vmem:[#allocation4 + $0x40] sm:$0xff] %vm2309_vm10, %v8030_v8 }
 0x3e7   : > { %v2026_v18 = vpop.xlane.xlu0 %2025  ;;  %v2018_v49 = vpop.xlane.xlu2 %2017 }
 0x3e8   : > { %v8051_v51 = vmax.f32 %v8046_v22, %v2026_v18  ;;  %v8054_v14 = vmax.f32 %v8048_v3, %v2018_v49  ;;  %v2028_v38 = vpop.xlane.xlu1 %2027  ;;  %v8076_v18 = vld [vmem:[#allocation4 + $0x68] sm:$0xff] }
 0x3e9   : > { %v8059_v48 = vmax.f32 %v8056_v44, %v2028_v38  ;;  %10806 = vst [vmem:[#allocation111_spill] sm:$0xff] %v8076_v18 }
 0x3ea   : > { %10803 = vst [vmem:[#allocation108_spill] sm:$0xff] %v8051_v51  ;;  %2133 = vperm.xlu2 %6212, %v8054_v14   ;;  %2128 = vperm.xlu0 %6210, %v7998_v59   ;;  %v10808_v59 = vsub.f32 %v7808_v61, %v7816_v33 }
 0x3eb   : > { %10805 = vst [vmem:[#allocation110_spill] sm:$0xff] %v8059_v48 }
 0x3ec   : > { %2674 = vst.msk [vmem:[#allocation4 + $0x50] sm:$0xff] %vm2309_vm10, %v8051_v51  ;;  %2138 = vperm.xlu1 %6211, %v8022_v40  }
 0x3ed   : > { %2670 = vst.msk [vmem:[#allocation4 + $0x30] sm:$0xff] %vm2309_vm10, %v8054_v14 }
 0x3ee   : > { %2675 = vst.msk [vmem:[#allocation4 + $0x58] sm:$0xff] %vm2309_vm10, %v8059_v48 }
 0x3ef   : > { %v2032_v38 = vpop.xlane.xlu0 %2031  ;;  %v2024_v56 = vpop.xlane.xlu2 %2023 }
 0x3f0   : > { %v8081_v22 = vmax.f32 %v8076_v18, %v2032_v38  ;;  %v8084_v54 = vmax.f32 %v8078_v58, %v2024_v56  ;;  %v2034_v49 = vpop.xlane.xlu1 %2033  ;;  %v1332_v18 = vmul.f32 1.442695, %v10808_v59  ;;  %v10810_v59 = vsub.f32 %v7810_v34, %v7819_v1 }
 0x3f1   : > { %v8089_v44 = vmax.f32 %v8086_v13, %v2034_v49  ;;  %v8106_v49 = vld [vmem:[#allocation4 + $0x60] sm:$0xff]  ;;  %v8124_v13 = vld [vmem:[#allocation4 + $0x78] sm:$0xff] }
 0x3f2   : > { %2677 = vst.msk [vmem:[#allocation4 + $0x68] sm:$0xff] %vm2309_vm10, %v8081_v22  ;;  %2148 = vperm.xlu2 %6212, %v8084_v54   ;;  %2143 = vperm.xlu0 %6210, %v8030_v8   ;;  %6325 = vpow2.f32 %v1332_v18  ;;  %v1330_v61 = vmul.f32 1.442695, %v10810_v59  ;;  %v10818_v59 = vsub.f32 %v7927_v5, %v7935_v16 }
 0x3f3   : > { %2673 = vst.msk [vmem:[#allocation4 + $0x48] sm:$0xff] %vm2309_vm10, %v8084_v54 }
 0x3f4   : > { %2678 = vst.msk [vmem:[#allocation4 + $0x70] sm:$0xff] %vm2309_vm10, %v8089_v44  ;;  %2153 = vperm.xlu1 %6211, %v8051_v51  }
 0x3f7   : > { %v2030_v38 = vpop.xlane.xlu2 %2029 }
 0x3f8   : > { %v8109_v40 = vmax.f32 %v8106_v49, %v2030_v38  ;;  %v10809_v38 = vsub.f32 %v7806_v30, %v7813_v63  ;;  %v8141_v1 = vpop.eup %6325  ;;  %v10812_v30 = vmov 0   ;;  %v10814_v63 = vsub.f32 %v7840_v28, %v7849_v12 }
 0x3f9   : > { %v10816_v28 = vsub.f32 %v7836_v60, %v7843_v9  ;;  %v10817_v12 = vsub.f32 %v7869_v32, %v7878_v26  ;;  %v10819_v26 = vsub.f32 %v7865_v29, %v7872_v17  ;;  %v10820_v9 = vsub.f32 %v7899_v23, %v7908_v46 }
 0x3fa   : > { %2676 = vst.msk [vmem:[#allocation4 + $0x60] sm:$0xff] %vm2309_vm10, %v8109_v40  ;;  %2163 = vperm.xlu2 %6212, %v8109_v40   ;;  %2158 = vperm.xlu0 %6210, %v8059_v48   ;;  %v1334_v56 = vmul.f32 1.442695, %v10809_v38  ;;  %v10811_v48 = vsub.f32 %v7867_v39, %v7875_v2  ;;  %v1338_v2 = vmul.f32 1.442695, %v10814_v63  ;;  %v10822_v17 = vsub.f32 %v7895_v21, %v7902_v19 }
 0x3fb   : > { %v1348_v32 = vmul.f32 1.442695, %v10819_v26  ;;  %v1350_v60 = vmul.f32 1.442695, %v10820_v9 }
 0x3fc   : > { %2168 = vperm.xlu1 %6211, %v8081_v22   ;;  %v1340_v51 = vmul.f32 1.442695, %v10811_v48  ;;  %6327 = vpow2.f32 %v1334_v56  ;;  %v10813_v48 = vsub.f32 %v7838_v55, %v7846_v36  ;;  %v10815_v56 = vsub.f32 %v7897_v62, %v7905_v4 }
 0x3fd   : > { %6329 = vpow2.f32 %v1330_v61  ;;  %v1342_v36 = vmul.f32 1.442695, %v10816_v28  ;;  %v1344_v55 = vmul.f32 1.442695, %v10817_v12  ;;  %v1352_v61 = vmul.f32 1.442695, %v10818_v59 }
 0x3fe   : > { %6331 = vpow2.f32 %v1340_v51  ;;  %v1336_v34 = vmul.f32 1.442695, %v10813_v48  ;;  %v10821_v48 = vsub.f32 %v7955_v52, %v7963_v47  ;;  %v1354_v23 = vmul.f32 1.442695, %v10822_v17 }
 0x3ff   : > { %v2036_v33 = vpop.xlane.xlu2 %2035  ;;  %v10823_v47 = vsub.f32 %v7929_v42, %v7938_v10  ;;  %v10824_v12 = vsub.f32 %v7965_v43, %v7968_v53  ;;  %v10825_v53 = vsub.f32 %v7925_v15, %v7932_v57  ;;  %v10826_v59 = vsub.f32 %v7987_v41, %v7993_v50 }
 0x400   : > { %v8130_v8 = vmax.f32 %v8124_v13, %v2036_v33  ;;  %v1346_v33 = vmul.f32 1.442695, %v10815_v56  ;;  %6333 = vpow2.f32 %v1336_v34  ;;  %v1358_v34 = vmul.f32 1.442695, %v10821_v48 }
 0x401   : > { %6335 = vpow2.f32 %v1338_v2  ;;  %v1356_v52 = vmul.f32 1.442695, %v10823_v47  ;;  %v2073_v19 = vmul.f32 1.442695, %v10824_v12  ;;  %v1360_v43 = vmul.f32 1.442695, %v10825_v53 }
 0x402   : > { %v2068_v18 = vsub.f32 %v8124_v13, %v8130_v8  ;;  %2679 = vst.msk [vmem:[#allocation4 + $0x78] sm:$0xff] %vm2309_vm10, %v8130_v8  ;;  %2178 = vperm.xlu2 %6212, %v8130_v8   ;;  %2173 = vperm.xlu0 %6210, %v8089_v44   ;;  %v8151_v39 = vpop.eup %6327  ;;  %6337 = vpow2.f32 %v1346_v33  ;;  %v10829_v15 = vsub.f32 %v8019_v37, %v8025_v11  ;;  %v10836_v53 = vld [vmem:[#allocation103_spill] sm:$0xff]  ;;  %v10845_v13 = vld [vmem:[#allocation108_spill] sm:$0xff] }
 0x403   : > { %v8153_v38 = vpop.eup %6329  ;;  %6339 = vpow2.f32 %v1342_v36 }
 0x404   : > { %6214 = vset.pattern.permute.xlu1 %v10812_v30  ;;  %v8162_v51 = vpop.eup %6331  ;;  %6341 = vpow2.f32 %v1344_v55 }
 0x405   : > { %1610 = vperm.xlu1 %6214, %v8141_v1   ;;  %6343 = vpow2.f32 %v1352_v61  ;;  %v2069_v61 = vmul.f32 1.442695, %v10826_v59 }
 0x406   : > { %v8171_v4 = vpop.eup %6333  ;;  %6345 = vpow2.f32 %v1348_v32  ;;  %v10827_v32 = vsub.f32 %v8048_v3, %v8054_v14 }
 0x407   : > { %v8173_v62 = vpop.eup %6335  ;;  %6347 = vpow2.f32 %v1350_v60  ;;  %v1370_v2 = vpop.permute.xlu2 %1369 }
 0x408   : > { %6349 = vpow2.f32 %v1358_v34  ;;  %v1443_v21 = vsub.f32 %v7552_v7, %v1370_v2  ;;  %v2081_v9 = vmul.f32 1.442695, %v10827_v32  ;;  %v2075_v34 = vmul.f32 1.442695, %v10829_v15  ;;  %v10839_v32 = vld [vmem:[#allocation105_spill] sm:$0xff]  ;;  %v10842_v15 = vld [vmem:[#allocation66_spill] sm:$0xff] }
 0x409   : > { %6351 = vpow2.f32 %v1354_v23  ;;  %v10830_v23 = vsub.f32 %v8078_v58, %v8084_v54 }
 0x40a   : > { %6213 = vset.pattern.permute.xlu2 %v10812_v30  ;;  %6215 = vset.pattern.permute.xlu0 %v10812_v30  ;;  %v8180_v30 = vpop.eup %6337  ;;  %v1460_v10 = vmul.f32 1.442695, %v1443_v21  ;;  %v10834_v21 = vsub.f32 %v8106_v49, %v8109_v40 }
 0x40b   : > { %1605 = vperm.xlu2 %6213, %v8153_v38   ;;  %1615 = vperm.xlu0 %6215, %v8151_v39   ;;  %v8189_v16 = vpop.eup %6339 }
 0x40c   : > { %v8191_v5 = vpop.eup %6341 }
 0x40d   : > { %1630 = vperm.xlu1 %6214, %v8162_v51   ;;  %v8198_v63 = vpop.eup %6343 }
 0x40e   : > { %v8208_v33 = vpop.eup %6345 }
 0x40f   : > { %v8210_v36 = vpop.eup %6347 }
 0x410   : > { %v8218_v42 = vpop.eup %6349 }
 0x411   : > { %v8221_v55 = vpop.eup %6351 }
 0x413   : > { %1620 = vperm.xlu2 %6213, %v8171_v4   ;;  %1625 = vperm.xlu0 %6215, %v8173_v62  }
 0x414   : > { %v1390_v37 = vpop.permute.xlu2 %1389 }
 0x415   : > { %1645 = vperm.xlu1 %6214, %v8180_v30  }
 0x41b   : > { %1635 = vperm.xlu2 %6213, %v8189_v16   ;;  %1640 = vperm.xlu0 %6215, %v8191_v5  }
 0x41c   : > { %v1375_v28 = vpop.permute.xlu0 %1374 }
 0x41d   : > { %1660 = vperm.xlu1 %6214, %v8198_v63   ;;  %v1365_v46 = vpop.permute.xlu1 %1364  ;;  %v1444_v60 = vsub.f32 %v7548_v6, %v1375_v28  ;;  %v10828_v6 = vsub.f32 %v7957_v25, %v7960_v20 }
 0x41e   : > { %v1442_v29 = vsub.f32 %v7563_v0, %v1365_v46 }
 0x41f   : > { %v1462_v50 = vmul.f32 1.442695, %v1444_v60  ;;  %v2071_v3 = vmul.f32 1.442695, %v10828_v6 }
 0x420   : > { %v1458_v56 = vmul.f32 1.442695, %v1442_v29  ;;  %v2087_v29 = vmul.f32 1.442695, %v10830_v23 }
 0x422   : > { %6353 = vpow2.f32 %v1458_v56 }
 0x423   : > { %1650 = vperm.xlu2 %6213, %v8208_v33   ;;  %1655 = vperm.xlu0 %6215, %v8210_v36   ;;  %6355 = vpow2.f32 %v1356_v52  ;;  %v10832_v52 = vld [vmem:[#allocation102_spill] sm:$0xff] }
 0x424   : > { %6357 = vpow2.f32 %v2073_v19  ;;  %v10833_v2 = vsub.f32 %v7995_v35, %v10832_v52  ;;  %v10848_v52 = vld [vmem:[#allocation110_spill] sm:$0xff] }
 0x425   : > { %1675 = vperm.xlu1 %6214, %v8218_v42   ;;  %v1380_v0 = vpop.permute.xlu1 %1379  ;;  %6359 = vpow2.f32 %v1460_v10  ;;  %v1385_v48 = vpop.permute.xlu0 %1384 }
 0x426   : > { %6361 = vpow2.f32 %v1360_v43  ;;  %v1445_v25 = vsub.f32 %v7583_v27, %v1380_v0  ;;  %v10831_v27 = vsub.f32 %v7985_v24, %v7990_v45  ;;  %v2079_v56 = vmul.f32 1.442695, %v10833_v2  ;;  %v10835_v45 = vld [vmem:[#allocation63_spill] sm:$0xff]  ;;  %v8295_v10 = vpop.permute.xlu2 %1404  ;;  %v10837_v43 = vld [vmem:[#allocation104_spill] sm:$0xff] }
 0x427   : > { %6363 = vpow2.f32 %v2069_v61  ;;  %v2093_v0 = vmul.f32 1.442695, %v10834_v21  ;;  %v1446_v24 = vsub.f32 %v10835_v45, %v1385_v48  ;;  %v10838_v59 = vsub.f32 %v10836_v53, %v10837_v43 }
 0x428   : > { %v8226_v7 = vpop.eup %6353  ;;  %6365 = vpow2.f32 %v2081_v9  ;;  %v1464_v58 = vmul.f32 1.442695, %v1445_v25  ;;  %v2077_v54 = vmul.f32 1.442695, %v10831_v27  ;;  %v10840_v9 = vld [vmem:[#allocation106_spill] sm:$0xff] }
 0x429   : > { %v8231_v26 = vpop.eup %6355  ;;  %1715 = vmatmul.f32.vlgmr.msrb.gmra.mxu2 %v8226_v7  ;;  %6367 = vpow2.f32 %v1462_v50  ;;  %v1466_v40 = vmul.f32 1.442695, %v1446_v24  ;;  %v10841_v60 = vsub.f32 %v10839_v32, %v10840_v9  ;;  %v10851_v24 = vld [vmem:[#allocation60_spill] sm:$0xff] }
 0x42a   : > { %v8240_v57 = vpop.eup %6357  ;;  %6369 = vpow2.f32 %v2071_v3  ;;  %v2099_v3 = vmul.f32 1.442695, %v2068_v18 }
 0x42b   : > { %1665 = vperm.xlu2 %6213, %v8221_v55   ;;  %1670 = vperm.xlu0 %6215, %v8231_v26   ;;  %v8249_v41 = vpop.eup %6359  ;;  %6371 = vpow2.f32 %v2075_v34  ;;  %v2085_v48 = vmul.f32 1.442695, %v10841_v60  ;;  %v1447_v34 = vsub.f32 %v10842_v15, %v1390_v37 }
 0x42c   : > { %v8254_v46 = vpop.eup %6361  ;;  %6373 = vpow2.f32 %v2087_v29 }
 0x42d   : > { %6218 = vset.pattern.permute.xlu1 %v10796_v31  ;;  %v8244_v14 = vpop.permute.xlu1 %1394  ;;  %v8257_v17 = vpop.eup %6363  ;;  %6375 = vpow2.f32 %v1464_v58  ;;  %v1468_v25 = vmul.f32 1.442695, %v1447_v34  ;;  %v10844_v58 = vld [vmem:[#allocation107_spill] sm:$0xff] }
 0x42e   : > { %2354 = vperm.xlu1 %6218, %v8240_v57   ;;  %v8266_v20 = vpop.eup %6365  ;;  %v8268_v11 = vpop.permute.xlu0 %1399  ;;  %6377 = vpow2.f32 %v2077_v54  ;;  %v10846_v8 = vsub.f32 %v10844_v58, %v10845_v13  ;;  %v10847_v54 = vld [vmem:[#allocation109_spill] sm:$0xff] }
 0x42f   : > { %v8274_v47 = vpop.eup %6367  ;;  %6379 = vpow2.f32 %v2079_v56  ;;  %v8327_v37 = vpop.permute.xlu2 %1419  ;;  %v10849_v2 = vsub.f32 %v10847_v54, %v10848_v52  ;;  %v10859_v13 = vld [vmem:[#allocation69_spill] sm:$0xff] }
 0x430   : > { %v8281_v12 = vpop.eup %6369  ;;  %6381 = vpow2.f32 %v2093_v0  ;;  %v2089_v18 = vmul.f32 1.442695, %v10846_v8  ;;  %v1449_v8 = vsub.f32 %v10859_v13, %v8268_v11  ;;  %v10862_v11 = vld [vmem:[#allocation73_spill] sm:$0xff]  ;;  %v10864_v13 = vld [vmem:[#allocation75_spill] sm:$0xff] }
 0x431   : > { %1718 = vmatmul.f32.gmra.mxu2 %v8249_v41  ;;  %v8284_v19 = vpop.eup %6371  ;;  %6383 = vpow2.f32 %v1466_v40  ;;  %v2091_v56 = vmul.f32 1.442695, %v10849_v2  ;;  %v1448_v40 = vsub.f32 %v10851_v24, %v8244_v14  ;;  %v1450_v2 = vsub.f32 %v10862_v11, %v8295_v10 }
 0x432   : > { %v8293_v35 = vpop.eup %6373 }
 0x433   : > { %1680 = vperm.xlu2 %6213, %v8254_v46   ;;  %6216 = vset.pattern.permute.xlu0 %v10796_v31  ;;  %v8303_v61 = vpop.eup %6375 }
 0x434   : > { %2344 = vperm.xlu0 %6216, %v8257_v17   ;;  %v8308_v50 = vpop.eup %6377 }
 0x435   : > { %v8279_v28 = vpop.permute.xlu1 %1409  ;;  %v8311_v6 = vpop.eup %6379 }
 0x436   : > { %2374 = vperm.xlu1 %6218, %v8266_v20   ;;  %v8298_v49 = vpop.permute.xlu0 %1414  ;;  %v8321_v29 = vpop.eup %6381 }
 0x437   : > { %10843 = vst [vmem:[#allocation102_spill] sm:$0xff] %v8321_v29  ;;  %v8329_v27 = vpop.eup %6383 }
 0x439   : > { %1721 = vmatmul.f32.gmra.mxu2 %v8274_v47 }
 0x43b   : > { %6217 = vset.pattern.permute.xlu2 %v10796_v31  ;;  %v2083_v31 = vmul.f32 1.442695, %v10838_v59  ;;  %v1470_v59 = vmul.f32 1.442695, %v1448_v40  ;;  %v1474_v40 = vmul.f32 1.442695, %v1450_v2 }
 0x43c   : > { %2349 = vperm.xlu2 %6217, %v8281_v12   ;;  %2359 = vperm.xlu0 %6216, %v8284_v19  }
 0x43d   : > { %v8317_v23 = vpop.permute.xlu1 %1424  ;;  %6385 = vpow2.f32 %v2083_v31  ;;  %v10853_v31 = vld [vmem:[#allocation111_spill] sm:$0xff] }
 0x43e   : > { %2389 = vperm.xlu1 %6218, %v8293_v35   ;;  %6387 = vpow2.f32 %v2085_v48  ;;  %v8334_v21 = vpop.permute.xlu0 %1429  ;;  %v10854_v32 = vsub.f32 %v10853_v31, %v8081_v22  ;;  %v10855_v48 = vld [vmem:[#allocation112_spill] sm:$0xff] }
 0x43f   : > { %6389 = vpow2.f32 %v2099_v3  ;;  %v10856_v14 = vsub.f32 %v10855_v48, %v8089_v44  ;;  %v1472_v44 = vmul.f32 1.442695, %v1449_v8  ;;  %v1452_v8 = vsub.f32 %v10864_v13, %v8298_v49  ;;  %v10866_v13 = vld [vmem:[#allocation72_spill] sm:$0xff] }
 0x440   : > { %6391 = vpow2.f32 %v1468_v25  ;;  %v2095_v9 = vmul.f32 1.442695, %v10854_v32  ;;  %v8360_v25 = vpop.permute.xlu2 %1434  ;;  %v10863_v32 = vld [vmem:[#allocation65_spill] sm:$0xff] }
 0x441   : > { %1724 = vmatmul.f32.gmra.mxu2 %v8303_v61  ;;  %6393 = vpow2.f32 %v2089_v18  ;;  %v2097_v3 = vmul.f32 1.442695, %v10856_v14  ;;  %v1478_v2 = vmul.f32 1.442695, %v1452_v8  ;;  %v1454_v8 = vsub.f32 %v10866_v13, %v8317_v23  ;;  %v10868_v13 = vld [vmem:[#allocation82_spill] sm:$0xff] }
 0x442   : > { %6395 = vpow2.f32 %v2091_v56 }
 0x443   : > { %v8336_v0 = vpop.eup %6385  ;;  %6397 = vpow2.f32 %v1470_v59 }
 0x444   : > { %2364 = vperm.xlu2 %6217, %v8308_v50   ;;  %2369 = vperm.xlu0 %6216, %v8311_v6   ;;  %10850 = vst [vmem:[#allocation63_spill] sm:$0xff] %v8336_v0  ;;  %v8339_v45 = vpop.eup %6387  ;;  %6399 = vpow2.f32 %v2095_v9  ;;  %v1451_v9 = vsub.f32 %v10863_v32, %v8279_v28  ;;  %v10865_v28 = vld [vmem:[#allocation78_spill] sm:$0xff] }
 0x445   : > { %v8345_v53 = vpop.eup %6389  ;;  %v8347_v43 = vpop.permute.xlu1 %1439  ;;  %6401 = vpow2.f32 %v2097_v3  ;;  %v1453_v32 = vsub.f32 %v10865_v28, %v8327_v37  ;;  %v10867_v28 = vld [vmem:[#allocation80_spill] sm:$0xff] }
 0x446   : > { %2404 = vperm.xlu1 %6218, %v8321_v29   ;;  %10852 = vst [vmem:[#allocation103_spill] sm:$0xff] %v8345_v53  ;;  %v6392_v60 = vpop.eup %6391  ;;  %6403 = vpow2.f32 %v1472_v44  ;;  %v1476_v14 = vmul.f32 1.442695, %v1451_v9 }
 0x447   : > { %v8358_v34 = vpop.eup %6393  ;;  %6405 = vpow2.f32 %v1474_v40 }
 0x448   : > { %10857 = vst [vmem:[#allocation104_spill] sm:$0xff] %v8358_v34  ;;  %v8362_v58 = vpop.eup %6395  ;;  %v8381_v24 = vpop.permute.xlu2 %2113  ;;  %6407 = vpow2.f32 %v1476_v14 }
 0x449   : > { %1727 = vmatmul.f32.gmra.mxu2 %v8329_v27  ;;  %10858 = vst [vmem:[#allocation105_spill] sm:$0xff] %v8362_v58  ;;  %v8370_v18 = vpop.eup %6397  ;;  %6409 = vpow2.f32 %v1478_v2 }
 0x44a   : > { %v8372_v54 = vpop.eup %6399 }
 0x44b   : > { %10860 = vst [vmem:[#allocation106_spill] sm:$0xff] %v8372_v54  ;;  %v8375_v52 = vpop.eup %6401 }
 0x44c   : > { %2379 = vperm.xlu2 %6217, %v8336_v0   ;;  %2384 = vperm.xlu0 %6216, %v8339_v45   ;;  %v8356_v15 = vpop.permute.xlu0 %2103  ;;  %10861 = vst [vmem:[#allocation66_spill] sm:$0xff] %v8375_v52  ;;  %v6404_v59 = vpop.eup %6403 }
 0x44d   : > { %v6406_v3 = vpop.eup %6405 }
 0x44e   : > { %2419 = vperm.xlu1 %6218, %v8345_v53   ;;  %v8368_v22 = vpop.permute.xlu1 %2108  ;;  %v1482_v53 = vmul.f32 1.442695, %v1454_v8 }
 0x450   : > { %v8389_v48 = vpop.permute.xlu2 %2133 }
 0x451   : > { %1730 = vmatmul.f32.gmra.mxu2 %v6392_v60 }
 0x454   : > { %2394 = vperm.xlu2 %6217, %v8358_v34   ;;  %2399 = vperm.xlu0 %6216, %v8362_v58   ;;  %v8379_v56 = vpop.permute.xlu0 %2118  ;;  %v1480_v34 = vmul.f32 1.442695, %v1453_v32  ;;  %v1455_v32 = vsub.f32 %v10867_v28, %v8334_v21 }
 0x456   : > { %v8385_v31 = vpop.permute.xlu1 %2123  ;;  %6411 = vpow2.f32 %v1480_v34  ;;  %v1484_v34 = vmul.f32 1.442695, %v1455_v32 }
 0x457   : > { %6413 = vpow2.f32 %v1482_v53 }
 0x458   : > { %v8397_v11 = vpop.permute.xlu2 %2148  ;;  %6415 = vpow2.f32 %v1484_v34 }
 0x459   : > { %1733 = vmatmul.f32.gmra.mxu2 %v8370_v18 }
 0x45c   : > { %2409 = vperm.xlu2 %6217, %v8372_v54   ;;  %2414 = vperm.xlu0 %6216, %v8375_v52   ;;  %v8391_v10 = vpop.permute.xlu0 %2128  ;;  %v6408_v54 = vpop.eup %6407 }
 0x45d   : > { %v6410_v49 = vpop.eup %6409 }
 0x45e   : > { %v8395_v44 = vpop.permute.xlu1 %2138  ;;  %v6412_v37 = vpop.eup %6411 }
 0x45f   : > { %v6414_v23 = vpop.eup %6413 }
 0x460   : > { %v8405_v52 = vpop.permute.xlu2 %2163 }
 0x461   : > { %1736 = vmatmul.f32.gmra.mxu2 %v6404_v59 }
 0x464   : > { %v8399_v40 = vpop.permute.xlu0 %2143 }
 0x466   : > { %v8403_v9 = vpop.permute.xlu1 %2153 }
 0x468   : > { %v8414_v2 = vpop.permute.xlu2 %2178 }
 0x469   : > { %1739 = vmatmul.f32.gmra.mxu2 %v6406_v3 }
 0x46c   : > { %v8408_v14 = vpop.permute.xlu0 %2158 }
 0x46e   : > { %v8412_v0 = vpop.permute.xlu1 %2168 }
 0x470   : > { %v1606_v58 = vpop.permute.xlu2 %1605 }
 0x471   : > { %1742 = vmatmul.f32.gmra.mxu2 %v6408_v54 }
 0x477   : > { %v8424_v8 = vpop.permute.xlu1 %1610 }
 0x478   : > { %1526 = vadd.xlane.f32.xlu1 %v8274_v47  ;;  %v8418_v47 = vpop.permute.xlu0 %2173  ;;  %v8436_v34 = vpop.permute.xlu2 %1620 }
 0x479   : > { %1745 = vmatmul.f32.gmra.mxu2 %v6410_v49 }
 0x47f   : > { %v8434_v28 = vpop.permute.xlu1 %1630 }
 0x480   : > { %1532 = vadd.xlane.f32.xlu1 %v6392_v60  ;;  %v1456_v60 = vsub.f32 %v10868_v13, %v8360_v25  ;;  %v8426_v21 = vpop.permute.xlu0 %1615  ;;  %v10870_v25 = vld [vmem:[#allocation77_spill] sm:$0xff] }
 0x481   : > { %1748 = vmatmul.f32.gmra.mxu2 %v6412_v37 }
 0x482   : > { %v1486_v29 = vmul.f32 1.442695, %v1456_v60 }
 0x484   : > { %6417 = vpow2.f32 %v1486_v29  ;;  %v10871_v29 = vld [vmem:[#allocation88_spill] sm:$0xff] }
 0x485   : > { %1524 = vadd.xlane.f32.xlu2 %v8249_v41  ;;  %v10869_v41 = vld [vmem:[#allocation85_spill] sm:$0xff] }
 0x486   : > { %1522 = vadd.xlane.f32.xlu0 %v8226_v7  ;;  %v6416_v7 = vpop.eup %6415  ;;  %v2181_v53 = vsub.f32 %v10869_v41, %v8356_v15  ;;  %v2184_v15 = vsub.f32 %v10871_v29, %v8379_v56  ;;  %v8449_v41 = vpop.permute.xlu2 %1635 }
 0x487   : > { %v8443_v13 = vpop.permute.xlu1 %1645 }
 0x488   : > { %1538 = vadd.xlane.f32.xlu1 %v6406_v3  ;;  %v1457_v3 = vsub.f32 %v10870_v25, %v8347_v43  ;;  %v2197_v32 = vmul.f32 1.442695, %v2181_v53  ;;  %v2203_v43 = vmul.f32 1.442695, %v2184_v15  ;;  %v10873_v25 = vld [vmem:[#allocation91_spill] sm:$0xff] }
 0x489   : > { %1751 = vmatmul.f32.gmra.mxu2 %v6414_v23  ;;  %v2187_v56 = vsub.f32 %v10873_v25, %v8389_v48  ;;  %v10876_v48 = vld [vmem:[#allocation94_spill] sm:$0xff] }
 0x48a   : > { %6419 = vpow2.f32 %v2197_v32 }
 0x48d   : > { %1530 = vadd.xlane.f32.xlu2 %v8329_v27  ;;  %v6418_v27 = vpop.eup %6417 }
 0x48e   : > { %1528 = vadd.xlane.f32.xlu0 %v8303_v61  ;;  %v1488_v61 = vmul.f32 1.442695, %v1457_v3 }
 0x48f   : > { %v8462_v15 = vpop.permute.xlu1 %1660 }
 0x490   : > { %1544 = vadd.xlane.f32.xlu1 %v6412_v37  ;;  %v8439_v37 = vpop.permute.xlu0 %1625  ;;  %6421 = vpow2.f32 %v1488_v61  ;;  %v10875_v61 = vld [vmem:[#allocation81_spill] sm:$0xff] }
 0x491   : > { %1754 = vmatmul.f32.gmra.mxu2 %v6416_v7  ;;  %6423 = vpow2.f32 %v2203_v43  ;;  %v2182_v29 = vsub.f32 %v10875_v61, %v8368_v22  ;;  %v2190_v43 = vsub.f32 %v10876_v48, %v8397_v11 }
 0x493   : > { %v2199_v25 = vmul.f32 1.442695, %v2182_v29 }
 0x495   : > { %1536 = vadd.xlane.f32.xlu2 %v6404_v59  ;;  %v10872_v59 = vld [vmem:[#allocation83_spill] sm:$0xff] }
 0x496   : > { %1534 = vadd.xlane.f32.xlu0 %v8370_v18  ;;  %v2183_v60 = vsub.f32 %v10872_v59, %v8381_v24  ;;  %v8447_v18 = vpop.eup %6419  ;;  %v1587_v59 = vld [vmem:[#allocation6] sm:$0xff] }
 0x497   : > { %v6422_v53 = vpop.eup %6421 }
 0x498   : > { %1550 = vadd.xlane.f32.xlu1 %v6418_v27  ;;  %v8454_v3 = vpop.permute.xlu0 %1640  ;;  %v2201_v32 = vmul.f32 1.442695, %v2183_v60  ;;  %v8467_v60 = vpop.permute.xlu2 %1650 }
 0x499   : > { %1757 = vmatmul.f32.gmra.mxu2 %v6418_v27  ;;  %v8458_v27 = vpop.eup %6423 }
 0x49a   : > { %6425 = vpow2.f32 %v2201_v32  ;;  %v2215_v32 = vmul.f32 1.442695, %v2190_v43  ;;  %v1588_v43 = vld [vmem:[#allocation6 + $0x8] sm:$0xff] }
 0x49d   : > { %1542 = vadd.xlane.f32.xlu2 %v6410_v49  ;;  %v2209_v49 = vmul.f32 1.442695, %v2187_v56  ;;  %v1683_v56 = vmul.f32 %v1606_v58, %v1587_v59  ;;  %v10880_v58 = vld [vmem:[#allocation96_spill] sm:$0xff]  ;;  %v8484_v59 = vpop.permute.xlu1 %1675 }
 0x49e   : > { %1540 = vadd.xlane.f32.xlu0 %v6408_v54  ;;  %v10874_v54 = vld [vmem:[#allocation86_spill] sm:$0xff]  ;;  %v2193_v48 = vsub.f32 %v10880_v58, %v8405_v52  ;;  %v10881_v52 = vld [vmem:[#allocation92_spill] sm:$0xff]  ;;  %v10884_v58 = vld [vmem:[#allocation97_spill] sm:$0xff] }
 0x49f   : > { %v2186_v24 = vsub.f32 %v10874_v54, %v8391_v10  ;;  %6427 = vpow2.f32 %v2209_v49  ;;  %v10877_v49 = vld [vmem:[#allocation89_spill] sm:$0xff] }
 0x4a0   : > { %2261 = vadd.xlane.f32.xlu1 %v8447_v18  ;;  %v8469_v10 = vpop.permute.xlu0 %1655  ;;  %v2189_v54 = vsub.f32 %v10877_v49, %v8399_v40 }
 0x4a1   : > { %1760 = vmatmul.f32.gmra.mxu2 %v6422_v53 }
 0x4a2   : > { %v2213_v40 = vmul.f32 1.442695, %v2189_v54 }
 0x4a5   : > { %1548 = vadd.xlane.f32.xlu2 %v6416_v7  ;;  %v2207_v7 = vmul.f32 1.442695, %v2186_v24  ;;  %v10878_v24 = vld [vmem:[#allocation84_spill] sm:$0xff] }
 0x4a6   : > { %1546 = vadd.xlane.f32.xlu0 %v6414_v23  ;;  %v8471_v23 = vpop.eup %6425  ;;  %v2185_v29 = vsub.f32 %v10878_v24, %v8385_v31 }
 0x4a7   : > { %6429 = vpow2.f32 %v2207_v7  ;;  %v8476_v11 = vpop.eup %6427 }
 0x4a8   : > { %2267 = vadd.xlane.f32.xlu1 %v8458_v27  ;;  %6431 = vpow2.f32 %v2199_v25  ;;  %v2205_v7 = vmul.f32 1.442695, %v2185_v29  ;;  %v1684_v25 = vmul.f32 %v8424_v8, %v1588_v43  ;;  %v8493_v49 = vpop.permute.xlu0 %1670  ;;  %v10882_v8 = vld [vmem:[#allocation87_spill] sm:$0xff]  ;;  %v1589_v43 = vld [vmem:[#allocation6 + $0x10] sm:$0xff] }
 0x4a9   : > { %6433 = vpow2.f32 %v2215_v32  ;;  %v2188_v29 = vsub.f32 %v10882_v8, %v8395_v44 }
 0x4aa   : > { %6435 = vpow2.f32 %v2213_v40 }
 0x4ab   : > { %6437 = vpow2.f32 %v2205_v7  ;;  %v1685_v7 = vmul.f32 %v8426_v21, %v1589_v43  ;;  %v10887_v21 = vld [vmem:[#allocation90_spill] sm:$0xff] }
 0x4ac   : > { %v1716_v22 = vpop.f32.mrf.mxu2 }
 0x4ad   : > { %2265 = vadd.xlane.f32.xlu2 %v8471_v23  ;;  %v1764_v61 = vadd.f32 %v1716_v22, %v1683_v56  ;;  %v8489_v56 = vpop.permute.xlu2 %1665  ;;  %v2221_v22 = vmul.f32 1.442695, %v2193_v48  ;;  %v2196_v48 = vsub.f32 %v10884_v58, %v8414_v2  ;;  %v2191_v58 = vsub.f32 %v10887_v21, %v8403_v9 }
 0x4ae   : > { %1552 = vadd.xlane.f32.xlu0 %v6422_v53  ;;  %v8486_v53 = vpop.eup %6429 }
 0x4af   : > { %1780 = vst.msk [vmem:[#allocation6] sm:$0xff] %vm10879_vm12, %v1764_v61  ;;  %v8491_v31 = vpop.eup %6431  ;;  %v2192_v61 = vsub.f32 %v10881_v52, %v8408_v14  ;;  %6439 = vpow2.f32 %v2221_v22  ;;  %v2211_v14 = vmul.f32 1.442695, %v2188_v29  ;;  %v2227_v44 = vmul.f32 1.442695, %v2196_v48  ;;  %v10886_v22 = vld [vmem:[#allocation95_spill] sm:$0xff]  ;;  %vm10889_vm12 = vmmov %vm10883_vm11 }
 0x4b0   : > { %2273 = vadd.xlane.f32.xlu1 %v8476_v11  ;;  %v8499_v24 = vpop.eup %6433  ;;  %v8524_v43 = vpop.permute.xlu0 %2344  ;;  %v1590_v48 = vld [vmem:[#allocation6 + $0x18] sm:$0xff] }
 0x4b1   : > { %v2219_v40 = vmul.f32 1.442695, %v2192_v61  ;;  %10888 = vst [vmem:[#allocation108_spill] sm:$0xff] %v8524_v43 }
 0x4b3   : > { %6441 = vpow2.f32 %v2219_v40  ;;  %v2217_v40 = vmul.f32 1.442695, %v2191_v58 }
 0x4b4   : > { %v1719_v32 = vpop.f32.mrf.mxu2  ;;  %6443 = vpow2.f32 %v2211_v14 }
 0x4b5   : > { %2271 = vadd.xlane.f32.xlu2 %v8486_v53  ;;  %v1765_v54 = vadd.f32 %v1719_v32, %v1684_v25  ;;  %v8507_v25 = vpop.permute.xlu1 %2354  ;;  %v8509_v32 = vpop.eup %6435  ;;  %6445 = vpow2.f32 %v2227_v44  ;;  %v10891_v44 = vld [vmem:[#allocation93_spill] sm:$0xff] }
 0x4b6   : > { %2263 = vadd.xlane.f32.xlu0 %v8491_v31  ;;  %10885 = vst [vmem:[#allocation107_spill] sm:$0xff] %v8507_v25  ;;  %v8512_v52 = vpop.eup %6437  ;;  %v8517_v2 = vpop.permute.xlu2 %1680 }
 0x4b7   : > { %1781 = vst.msk [vmem:[#allocation6 + $0x8] sm:$0xff] %vm10883_vm11, %v1765_v54  ;;  %v2195_v54 = vsub.f32 %v10886_v22, %v8418_v47  ;;  %v8520_v29 = vpop.eup %6439 }
 0x4b8   : > { %2279 = vadd.xlane.f32.xlu1 %v8499_v24  ;;  %v8545_v58 = vpop.permute.xlu0 %2359 }
 0x4b9   : > { %v2225_v47 = vmul.f32 1.442695, %v2195_v54  ;;  %v8528_v22 = vpop.eup %6441  ;;  %v2194_v54 = vsub.f32 %v10891_v44, %v8412_v0  ;;  %10893 = vst [vmem:[#allocation60_spill] sm:$0xff] %v8545_v58 }
 0x4bb   : > { %6447 = vpow2.f32 %v2225_v47 }
 0x4bc   : > { %v1722_v8 = vpop.f32.mrf.mxu2  ;;  %6449 = vpow2.f32 %v2217_v40 }
 0x4bd   : > { %2277 = vadd.xlane.f32.xlu2 %v8509_v32  ;;  %v1766_v61 = vadd.f32 %v1722_v8, %v1685_v7  ;;  %v1686_v7 = vmul.f32 %v8436_v34, %v1590_v48  ;;  %v8531_v8 = vpop.eup %6443  ;;  %v8533_v14 = vpop.permute.xlu1 %2374  ;;  %v1591_v34 = vld [vmem:[#allocation6 + $0x20] sm:$0xff]  ;;  %v6999_v48 = vmov 2  }
 0x4be   : > { %2269 = vadd.xlane.f32.xlu0 %v8512_v52  ;;  %10890 = vst [vmem:[#allocation109_spill] sm:$0xff] %v8533_v14  ;;  %v8541_v21 = vpop.permute.xlu2 %2349  ;;  %6241 = vset.pattern.permute.xlu1 %v6999_v48  ;;  %v1687_v40 = vmul.f32 %v8439_v37, %v1591_v34  ;;  %v1592_v14 = vld [vmem:[#allocation6 + $0x28] sm:$0xff] }
 0x4bf   : > { %1782 = vst.msk [vmem:[#allocation6 + $0x10] sm:$0xff] %vm10889_vm12, %v1766_v61  ;;  %v8537_v61 = vpop.eup %6445  ;;  %6239 = vset.pattern.permute.xlu2 %v6999_v48  ;;  %6240 = vset.pattern.permute.xlu0 %v6999_v48  ;;  %vm10895_vm12 = vmmov %vm10883_vm11  ;;  %v1688_v37 = vmul.f32 %v8434_v28, %v1592_v14  ;;  %v10901_v28 = vld [vmem:[#allocation49_spill] sm:$0xff]  ;;  %v10902_v14 = vld [vmem:[#allocation52_spill] sm:$0xff] }
 0x4c0   : > { %2285 = vadd.xlane.f32.xlu1 %v8520_v29  ;;  %10892 = vst [vmem:[#allocation110_spill] sm:$0xff] %v8541_v21  ;;  %v8575_v21 = vpack.i.bf16 %v10902_v14, %v10901_v28  ;;  %v1492_v14 = vld [vmem:[#allocation5 + $0x10] sm:$0xff] }
 0x4c1   : > { %v8547_v47 = vpop.eup %6447 }
 0x4c2   : > { %10903 = vst [vmem:[#allocation78_spill] sm:$0xff] %v8575_v21 }
 0x4c4   : > { %v1725_v25 = vpop.f32.mrf.mxu2 }
 0x4c5   : > { %2283 = vadd.xlane.f32.xlu2 %v8528_v22  ;;  %v1767_v9 = vadd.f32 %v1725_v25, %v1686_v7  ;;  %v2223_v25 = vmul.f32 1.442695, %v2194_v54  ;;  %v8550_v7 = vpop.eup %6449  ;;  %v8554_v44 = vpop.permute.xlu1 %2389 }
 0x4c6   : > { %2275 = vadd.xlane.f32.xlu0 %v8531_v8  ;;  %10894 = vst [vmem:[#allocation111_spill] sm:$0xff] %v8554_v44  ;;  %v8557_v48 = vpop.permute.xlu2 %2364  ;;  %v8559_v54 = vpop.permute.xlu0 %2369 }
 0x4c7   : > { %1783 = vst.msk [vmem:[#allocation6 + $0x18] sm:$0xff] %vm10883_vm11, %v1767_v9  ;;  %6451 = vpow2.f32 %v2223_v25  ;;  %v1593_v25 = vld [vmem:[#allocation6 + $0x30] sm:$0xff] }
 0x4c8   : > { %2291 = vadd.xlane.f32.xlu1 %v8537_v61  ;;  %10896 = vst [vmem:[#allocation112_spill] sm:$0xff] %v8557_v48 }
 0x4c9   : > { %10897 = vst [vmem:[#allocation69_spill] sm:$0xff] %v8559_v54 }
 0x4cc   : > { %v1728_v0 = vpop.f32.mrf.mxu2 }
 0x4cd   : > { %2289 = vadd.xlane.f32.xlu2 %v8547_v47  ;;  %v1768_v9 = vadd.f32 %v1728_v0, %v1687_v40  ;;  %v8562_v34 = vpop.eup %6451  ;;  %v8566_v40 = vpop.permute.xlu1 %2404  ;;  %v1689_v0 = vmul.f32 %v8449_v41, %v1593_v25  ;;  %v10906_v25 = vld [vmem:[#allocation41_spill] sm:$0xff] }
 0x4ce   : > { %2281 = vadd.xlane.f32.xlu0 %v8550_v7  ;;  %10898 = vst [vmem:[#allocation73_spill] sm:$0xff] %v8566_v40  ;;  %v8571_v48 = vpop.permute.xlu0 %2384 }
 0x4cf   : > { %1784 = vst.msk [vmem:[#allocation6 + $0x20] sm:$0xff] %vm10895_vm12, %v1768_v9  ;;  %v8569_v9 = vpop.permute.xlu2 %2379  ;;  %vm10904_vm12 = vmmov %vm10883_vm11 }
 0x4d0   : > { %10899 = vst [vmem:[#allocation65_spill] sm:$0xff] %v8569_v9 }
 0x4d1   : > { %10900 = vst [vmem:[#allocation75_spill] sm:$0xff] %v8571_v48 }
 0x4d4   : > { %v1731_v58 = vpop.f32.mrf.mxu2 }
 0x4d5   : > { %v1769_v43 = vadd.f32 %v1731_v58, %v1688_v37  ;;  %v1594_v58 = vld [vmem:[#allocation6 + $0x38] sm:$0xff] }
 0x4d6   : > { %2287 = vadd.xlane.f32.xlu0 %v8562_v34  ;;  %v1690_v41 = vmul.f32 %v8454_v3, %v1594_v58  ;;  %v8587_v28 = vpop.permute.xlu0 %2399  ;;  %v1508_v3 = vmul.f32 %v8151_v39, %v1492_v14  ;;  %v2680_v58 = vld [vmem:[#allocation3] sm:$0xff]  ;;  %v1596_v39 = vld [vmem:[#allocation6 + $0x48] sm:$0xff] }
 0x4d7   : > { %1785 = vst.msk [vmem:[#allocation6 + $0x28] sm:$0xff] %vm10883_vm11, %v1769_v43  ;;  %v8580_v43 = vpop.permute.xlu1 %2419  ;;  %v8585_v9 = vpop.permute.xlu2 %2394 }
 0x4d8   : > { %10905 = vst [vmem:[#allocation72_spill] sm:$0xff] %v8580_v43 }
 0x4d9   : > { %10907 = vst [vmem:[#allocation80_spill] sm:$0xff] %v8585_v9 }
 0x4da   : > { %10908 = vst [vmem:[#allocation82_spill] sm:$0xff] %v8587_v28  ;;  %v1495_v28 = vld [vmem:[#allocation5 + $0x28] sm:$0xff] }
 0x4dc   : > { %v1734_v44 = vpop.f32.mrf.mxu2 }
 0x4dd   : > { %v1770_v54 = vadd.f32 %v1734_v44, %v1689_v0  ;;  %v2682_v0 = vld [vmem:[#allocation3 + $0x10] sm:$0xff] }
 0x4de   : > { %v8602_v14 = vpop.permute.xlu0 %2414 }
 0x4df   : > { %1786 = vst.msk [vmem:[#allocation6 + $0x30] sm:$0xff] %vm10904_vm12, %v1770_v54  ;;  %v1595_v54 = vld [vmem:[#allocation6 + $0x40] sm:$0xff]  ;;  %vm10911_vm12 = vmmov %vm10883_vm11 }
 0x4e1   : > { %6225 = vrot.lane.b32.xlu1 %v8575_v21, %s6998_s5  ;;  %v10909_v21 = vld [vmem:[#allocation48_spill] sm:$0xff] }
 0x4e4   : > { %v1737_v37 = vpop.f32.mrf.mxu2 }
 0x4e5   : > { %6230 = vrot.lane.b32.xlu2 %v10906_v25, %s6998_s5  ;;  %v1771_v44 = vadd.f32 %v1737_v37, %v1690_v41  ;;  %v1691_v25 = vmul.f32 %v8443_v13, %v1595_v54  ;;  %v2684_v37 = vld [vmem:[#allocation3 + $0x20] sm:$0xff]  ;;  %v1511_v13 = vmul.f32 %v8162_v51, %v1495_v28  ;;  %v1491_v54 = vld [vmem:[#allocation5 + $0x8] sm:$0xff] }
 0x4e7   : > { %1787 = vst.msk [vmem:[#allocation6 + $0x38] sm:$0xff] %vm10883_vm11, %v1771_v44  ;;  %v8595_v44 = vpop.permute.xlu2 %2409 }
 0x4e8   : > { %10910 = vst [vmem:[#allocation85_spill] sm:$0xff] %v8595_v44  ;;  %v1498_v44 = vld [vmem:[#allocation5 + $0x40] sm:$0xff] }
 0x4e9   : > { %2708 = vperm.xlu1 %6241, %v2682_v0   ;;  %v10912_v0 = vld [vmem:[#allocation40_spill] sm:$0xff] }
 0x4ea   : > { %6220 = vrot.lane.b32.xlu0 %v10909_v21, %s6998_s5  ;;  %v10913_v21 = vld [vmem:[#allocation43_spill] sm:$0xff] }
 0x4eb   : > { %v1527_v43 = vpop.xlane.xlu1 %1526  ;;  %v8600_v48 = vpack.i.bf16 %v10913_v21, %v10912_v0  ;;  %v2687_v0 = vld [vmem:[#allocation3 + $0x38] sm:$0xff]  ;;  %v2681_v21 = vld [vmem:[#allocation3 + $0x8] sm:$0xff] }
 0x4ec   : > { %v1556_v40 = vadd.f32 %v1527_v43, %v1508_v3  ;;  %v1740_v9 = vpop.f32.mrf.mxu2  ;;  %v1692_v43 = vmul.f32 %v8467_v60, %v1596_v39 }
 0x4ed   : > { %2698 = vperm.xlu2 %6239, %v2680_v58   ;;  %v1772_v41 = vadd.f32 %v1740_v9, %v1691_v25  ;;  %10914 = vst [vmem:[#allocation77_spill] sm:$0xff] %v8600_v48  ;;  %v1490_v58 = vld [vmem:[#allocation5] sm:$0xff] }
 0x4ee   : > { %1573 = vst.msk [vmem:[#allocation5 + $0x10] sm:$0xff] %vm10670_vm9, %v1556_v40  ;;  %v2683_v40 = vld [vmem:[#allocation3 + $0x18] sm:$0xff]  ;;  %v1506_v28 = vmul.f32 %v8153_v38, %v1490_v58  ;;  %v2690_v58 = vld [vmem:[#allocation3 + $0x50] sm:$0xff] }
 0x4ef   : > { %1788 = vst.msk [vmem:[#allocation6 + $0x40] sm:$0xff] %vm10911_vm12, %v1772_v41  ;;  %v1493_v38 = vld [vmem:[#allocation5 + $0x18] sm:$0xff]  ;;  %vm10915_vm12 = vmmov %vm10883_vm11 }
 0x4f1   : > { %2718 = vperm.xlu1 %6241, %v2684_v37   ;;  %v1507_v37 = vmul.f32 %v8141_v1, %v1491_v54  ;;  %v1494_v54 = vld [vmem:[#allocation5 + $0x20] sm:$0xff] }
 0x4f2   : > { %6235 = vrot.lane.b32.xlu0 %v8600_v48, %s6998_s5  ;;  %v1597_v48 = vld [vmem:[#allocation6 + $0x50] sm:$0xff] }
 0x4f3   : > { %v1533_v9 = vpop.xlane.xlu1 %1532  ;;  %v1693_v1 = vmul.f32 %v8469_v10, %v1597_v48  ;;  %v1509_v10 = vmul.f32 %v8171_v4, %v1493_v38  ;;  %v1598_v48 = vld [vmem:[#allocation6 + $0x58] sm:$0xff]  ;;  %v1496_v4 = vld [vmem:[#allocation5 + $0x30] sm:$0xff] }
 0x4f4   : > { %v1559_v25 = vadd.f32 %v1533_v9, %v1511_v13  ;;  %v1743_v3 = vpop.f32.mrf.mxu2  ;;  %v2685_v9 = vld [vmem:[#allocation3 + $0x28] sm:$0xff] }
 0x4f5   : > { %2713 = vperm.xlu2 %6239, %v2683_v40   ;;  %v1773_v41 = vadd.f32 %v1743_v3, %v1692_v43  ;;  %v1514_v40 = vmul.f32 %v8180_v30, %v1498_v44  ;;  %v2686_v30 = vld [vmem:[#allocation3 + $0x30] sm:$0xff]  ;;  %v1501_v44 = vld [vmem:[#allocation5 + $0x58] sm:$0xff] }
 0x4f6   : > { %1576 = vst.msk [vmem:[#allocation5 + $0x28] sm:$0xff] %vm10670_vm9, %v1559_v25 }
 0x4f7   : > { %1789 = vst.msk [vmem:[#allocation6 + $0x48] sm:$0xff] %vm10883_vm11, %v1773_v41 }
 0x4f8   : > { %v1525_v51 = vpop.xlane.xlu2 %1524 }
 0x4f9   : > { %v1555_v60 = vadd.f32 %v1525_v51, %v1507_v37  ;;  %2733 = vperm.xlu1 %6241, %v2687_v0   ;;  %v1523_v39 = vpop.xlane.xlu0 %1522 }
 0x4fa   : > { %v1554_v13 = vadd.f32 %v1523_v39, %v1506_v28  ;;  %2703 = vperm.xlu0 %6240, %v2681_v21   ;;  %v1510_v21 = vmul.f32 %v8173_v62, %v1494_v54  ;;  %v2688_v39 = vld [vmem:[#allocation3 + $0x40] sm:$0xff]  ;;  %v1694_v62 = vmul.f32 %v8462_v15, %v1598_v48  ;;  %v1512_v15 = vmul.f32 %v8189_v16, %v1496_v4  ;;  %v1499_v16 = vld [vmem:[#allocation5 + $0x48] sm:$0xff] }
 0x4fb   : > { %1572 = vst.msk [vmem:[#allocation5 + $0x8] sm:$0xff] %vm10670_vm9, %v1555_v60  ;;  %v1539_v43 = vpop.xlane.xlu1 %1538  ;;  %v1517_v60 = vmul.f32 %v8198_v63, %v1501_v44  ;;  %v2689_v63 = vld [vmem:[#allocation3 + $0x48] sm:$0xff] }
 0x4fc   : > { %1571 = vst.msk [vmem:[#allocation5] sm:$0xff] %vm10670_vm9, %v1554_v13  ;;  %v1562_v25 = vadd.f32 %v1539_v43, %v1514_v40  ;;  %v1746_v3 = vpop.f32.mrf.mxu2 }
 0x4fd   : > { %2723 = vperm.xlu2 %6239, %v2685_v9   ;;  %v1774_v0 = vadd.f32 %v1746_v3, %v1693_v1  ;;  %v1497_v9 = vld [vmem:[#allocation5 + $0x38] sm:$0xff]  ;;  %v1504_v3 = vld [vmem:[#allocation5 + $0x70] sm:$0xff] }
 0x4fe   : > { %1579 = vst.msk [vmem:[#allocation5 + $0x40] sm:$0xff] %vm10670_vm9, %v1562_v25  ;;  %v2693_v25 = vld [vmem:[#allocation3 + $0x68] sm:$0xff]  ;;  %v1513_v54 = vmul.f32 %v8191_v5, %v1497_v9  ;;  %v1520_v44 = vmul.f32 %v8218_v42, %v1504_v3  ;;  %v1502_v3 = vld [vmem:[#allocation5 + $0x60] sm:$0xff] }
 0x4ff   : > { %1790 = vst.msk [vmem:[#allocation6 + $0x50] sm:$0xff] %vm10915_vm12, %v1774_v0  ;;  %v1599_v0 = vld [vmem:[#allocation6 + $0x60] sm:$0xff]  ;;  %vm10916_vm12 = vmmov %vm10883_vm11 }
 0x500   : > { %v1531_v41 = vpop.xlane.xlu2 %1530  ;;  %v1695_v5 = vmul.f32 %v8489_v56, %v1599_v0  ;;  %v1600_v56 = vld [vmem:[#allocation6 + $0x68] sm:$0xff]  ;;  %v1518_v0 = vmul.f32 %v8221_v55, %v1502_v3 }
 0x501   : > { %v1558_v37 = vadd.f32 %v1531_v41, %v1510_v21  ;;  %2748 = vperm.xlu1 %6241, %v2690_v58   ;;  %v1529_v51 = vpop.xlane.xlu0 %1528  ;;  %v2691_v41 = vld [vmem:[#allocation3 + $0x58] sm:$0xff] }
 0x502   : > { %v1557_v28 = vadd.f32 %v1529_v51, %v1509_v10  ;;  %2728 = vperm.xlu0 %6240, %v2686_v30  }
 0x503   : > { %1575 = vst.msk [vmem:[#allocation5 + $0x20] sm:$0xff] %vm10670_vm9, %v1558_v37  ;;  %v1545_v13 = vpop.xlane.xlu1 %1544  ;;  %v1500_v37 = vld [vmem:[#allocation5 + $0x50] sm:$0xff]  ;;  %v2229_v42 = vld [vmem:[#allocation5] sm:$0xff] }
 0x504   : > { %1574 = vst.msk [vmem:[#allocation5 + $0x18] sm:$0xff] %vm10670_vm9, %v1557_v28  ;;  %v1565_v40 = vadd.f32 %v1545_v13, %v1517_v60  ;;  %v1749_v43 = vpop.f32.mrf.mxu2  ;;  %v1516_v60 = vmul.f32 %v8210_v36, %v1500_v37  ;;  %v2245_v4 = vmul.f32 %v8257_v17, %v2229_v42  ;;  %v1505_v37 = vld [vmem:[#allocation5 + $0x78] sm:$0xff] }
 0x505   : > { %2738 = vperm.xlu2 %6239, %v2688_v39   ;;  %v1775_v1 = vadd.f32 %v1749_v43, %v1694_v62  ;;  %v2692_v39 = vld [vmem:[#allocation3 + $0x60] sm:$0xff]  ;;  %v1515_v62 = vmul.f32 %v8208_v33, %v1499_v16 }
 0x506   : > { %1582 = vst.msk [vmem:[#allocation5 + $0x58] sm:$0xff] %vm10670_vm9, %v1565_v40 }
 0x507   : > { %1791 = vst.msk [vmem:[#allocation6 + $0x58] sm:$0xff] %vm10883_vm11, %v1775_v1 }
 0x508   : > { %v1537_v38 = vpop.xlane.xlu2 %1536 }
 0x509   : > { %v1561_v58 = vadd.f32 %v1537_v38, %v1513_v54  ;;  %2763 = vperm.xlu1 %6241, %v2693_v25   ;;  %v1535_v21 = vpop.xlane.xlu0 %1534  ;;  %v1696_v25 = vmul.f32 %v8493_v49, %v1600_v56  ;;  %v1503_v54 = vld [vmem:[#allocation5 + $0x68] sm:$0xff] }
 0x50a   : > { %v1560_v30 = vadd.f32 %v1535_v21, %v1512_v15  ;;  %2743 = vperm.xlu0 %6240, %v2689_v63   ;;  %v1519_v38 = vmul.f32 %v8231_v26, %v1503_v54 }
 0x50b   : > { %1578 = vst.msk [vmem:[#allocation5 + $0x38] sm:$0xff] %vm10670_vm9, %v1561_v58  ;;  %v1551_v10 = vpop.xlane.xlu1 %1550  ;;  %v2232_v15 = vld [vmem:[#allocation5 + $0x18] sm:$0xff]  ;;  %v1601_v58 = vld [vmem:[#allocation6 + $0x70] sm:$0xff] }
 0x50c   : > { %1577 = vst.msk [vmem:[#allocation5 + $0x30] sm:$0xff] %vm10670_vm9, %v1560_v30  ;;  %v1568_v48 = vadd.f32 %v1551_v10, %v1520_v44  ;;  %v1752_v51 = vpop.f32.mrf.mxu2  ;;  %v2248_v44 = vmul.f32 %v8284_v19, %v2232_v15  ;;  %v1697_v10 = vmul.f32 %v8484_v59, %v1601_v58  ;;  %v2233_v15 = vld [vmem:[#allocation5 + $0x20] sm:$0xff] }
 0x50d   : > { %2753 = vperm.xlu2 %6239, %v2691_v41   ;;  %v1776_v28 = vadd.f32 %v1752_v51, %v1695_v5  ;;  %v2231_v5 = vld [vmem:[#allocation5 + $0x10] sm:$0xff] }
 0x50e   : > { %1585 = vst.msk [vmem:[#allocation5 + $0x70] sm:$0xff] %vm10670_vm9, %v1568_v48  ;;  %v2247_v51 = vmul.f32 %v8240_v57, %v2231_v5 }
 0x50f   : > { %1792 = vst.msk [vmem:[#allocation6 + $0x60] sm:$0xff] %vm10916_vm12, %v1776_v28  ;;  %vm10917_vm12 = vmmov %vm10883_vm11  ;;  %v1521_v28 = vmul.f32 %v8254_v46, %v1505_v37 }
 0x510   : > { %v1543_v13 = vpop.xlane.xlu2 %1542 }
 0x511   : > { %v1564_v40 = vadd.f32 %v1543_v13, %v1516_v60  ;;  %v1541_v9 = vpop.xlane.xlu0 %1540  ;;  %v1602_v60 = vld [vmem:[#allocation6 + $0x78] sm:$0xff] }
 0x512   : > { %v1563_v43 = vadd.f32 %v1541_v9, %v1515_v62  ;;  %2758 = vperm.xlu0 %6240, %v2692_v39   ;;  %v1698_v56 = vmul.f32 %v8517_v2, %v1602_v60 }
 0x513   : > { %1581 = vst.msk [vmem:[#allocation5 + $0x50] sm:$0xff] %vm10670_vm9, %v1564_v40  ;;  %v2262_v1 = vpop.xlane.xlu1 %2261  ;;  %v2235_v16 = vld [vmem:[#allocation5 + $0x30] sm:$0xff]  ;;  %v2234_v40 = vld [vmem:[#allocation5 + $0x28] sm:$0xff] }
 0x514   : > { %1580 = vst.msk [vmem:[#allocation5 + $0x48] sm:$0xff] %vm10670_vm9, %v1563_v43  ;;  %v2293_v36 = vadd.f32 %v2262_v1, %v2245_v4  ;;  %v1755_v63 = vpop.f32.mrf.mxu2  ;;  %v2251_v13 = vmul.f32 %v8266_v20, %v2235_v16  ;;  %v2230_v43 = vld [vmem:[#allocation5 + $0x8] sm:$0xff]  ;;  %v2250_v4 = vmul.f32 %v8311_v6, %v2234_v40 }
 0x515   : > { %v1777_v33 = vadd.f32 %v1755_v63, %v1696_v25  ;;  %v2246_v25 = vmul.f32 %v8281_v12, %v2230_v43  ;;  %v2249_v12 = vmul.f32 %v8308_v50, %v2233_v15  ;;  %v10920_v50 = vld [vmem:[#allocation63_spill] sm:$0xff]  ;;  %v10923_v40 = vld [vmem:[#allocation104_spill] sm:$0xff] }
 0x516   : > { %2310 = vst.msk [vmem:[#allocation5] sm:$0xff] %vm2309_vm10, %v2293_v36 }
 0x517   : > { %1793 = vst.msk [vmem:[#allocation6 + $0x68] sm:$0xff] %vm10883_vm11, %v1777_v33 }
 0x518   : > { %v1549_v17 = vpop.xlane.xlu2 %1548 }
 0x519   : > { %v1567_v21 = vadd.f32 %v1549_v17, %v1519_v38  ;;  %v1547_v49 = vpop.xlane.xlu0 %1546  ;;  %v2237_v38 = vld [vmem:[#allocation5 + $0x40] sm:$0xff] }
 0x51a   : > { %v1566_v30 = vadd.f32 %v1547_v49, %v1518_v0  ;;  %v2253_v6 = vmul.f32 %v8339_v45, %v2237_v38  ;;  %v10919_v45 = vld [vmem:[#allocation105_spill] sm:$0xff] }
 0x51b   : > { %1584 = vst.msk [vmem:[#allocation5 + $0x68] sm:$0xff] %vm10670_vm9, %v1567_v21  ;;  %v2268_v41 = vpop.xlane.xlu1 %2267  ;;  %v2238_v1 = vld [vmem:[#allocation5 + $0x48] sm:$0xff] }
 0x51c   : > { %1583 = vst.msk [vmem:[#allocation5 + $0x60] sm:$0xff] %vm10670_vm9, %v1566_v30  ;;  %v2296_v26 = vadd.f32 %v2268_v41, %v2248_v44  ;;  %v1758_v48 = vpop.f32.mrf.mxu2  ;;  %v2254_v63 = vmul.f32 %v8293_v35, %v2238_v1  ;;  %v10918_v35 = vld [vmem:[#allocation102_spill] sm:$0xff] }
 0x51d   : > { %v1778_v55 = vadd.f32 %v1758_v48, %v1697_v10  ;;  %v2240_v10 = vld [vmem:[#allocation5 + $0x58] sm:$0xff] }
 0x51e   : > { %2313 = vst.msk [vmem:[#allocation5 + $0x18] sm:$0xff] %vm2309_vm10, %v2296_v26  ;;  %v2236_v26 = vld [vmem:[#allocation5 + $0x38] sm:$0xff]  ;;  %v2256_v5 = vmul.f32 %v10919_v45, %v2240_v10 }
 0x51f   : > { %1794 = vst.msk [vmem:[#allocation6 + $0x70] sm:$0xff] %vm10917_vm12, %v1778_v55  ;;  %v2252_v55 = vmul.f32 %v10920_v50, %v2236_v26  ;;  %v10950_v26 = vld [vmem:[#allocation108_spill] sm:$0xff] }
 0x520   : > { %v2266_v19 = vpop.xlane.xlu2 %2265 }
 0x521   : > { %v2295_v39 = vadd.f32 %v2266_v19, %v2247_v51  ;;  %v1553_v59 = vpop.xlane.xlu0 %1552 }
 0x522   : > { %v1569_v42 = vadd.f32 %v1553_v59, %v1521_v28  ;;  %v10921_v28 = vld [vmem:[#allocation103_spill] sm:$0xff]  ;;  %v2242_v1 = vld [vmem:[#allocation5 + $0x68] sm:$0xff] }
 0x523   : > { %2312 = vst.msk [vmem:[#allocation5 + $0x10] sm:$0xff] %vm2309_vm10, %v2295_v39  ;;  %v2274_v62 = vpop.xlane.xlu1 %2273  ;;  %v2241_v17 = vld [vmem:[#allocation5 + $0x60] sm:$0xff] }
 0x524   : > { %1586 = vst.msk [vmem:[#allocation5 + $0x78] sm:$0xff] %vm10670_vm9, %v1569_v42  ;;  %v2299_v57 = vadd.f32 %v2274_v62, %v2251_v13  ;;  %v1761_v9 = vpop.f32.mrf.mxu2  ;;  %v2257_v30 = vmul.f32 %v10918_v35, %v2241_v17  ;;  %v2243_v42 = vld [vmem:[#allocation5 + $0x70] sm:$0xff]  ;;  %v10922_v62 = vld [vmem:[#allocation66_spill] sm:$0xff] }
 0x525   : > { %v1779_v46 = vadd.f32 %v1761_v9, %v1698_v56  ;;  %v2239_v13 = vld [vmem:[#allocation5 + $0x50] sm:$0xff]  ;;  %v2259_v56 = vmul.f32 %v10922_v62, %v2243_v42 }
 0x526   : > { %2316 = vst.msk [vmem:[#allocation5 + $0x30] sm:$0xff] %vm2309_vm10, %v2299_v57  ;;  %v2255_v9 = vmul.f32 %v10923_v40, %v2239_v13 }
 0x527   : > { %1795 = vst.msk [vmem:[#allocation6 + $0x78] sm:$0xff] %vm10883_vm11, %v1779_v46 }
 0x528   : > { %v2272_v20 = vpop.xlane.xlu2 %2271 }
 0x529   : > { %v2298_v36 = vadd.f32 %v2272_v20, %v2250_v4  ;;  %v2264_v54 = vpop.xlane.xlu0 %2263 }
 0x52a   : > { %v2294_v2 = vadd.f32 %v2264_v54, %v2246_v25  ;;  %v10924_v25 = vld [vmem:[#allocation106_spill] sm:$0xff] }
 0x52b   : > { %2315 = vst.msk [vmem:[#allocation5 + $0x28] sm:$0xff] %vm2309_vm10, %v2298_v36  ;;  %v2280_v3 = vpop.xlane.xlu1 %2279  ;;  %v2244_v48 = vld [vmem:[#allocation5 + $0x78] sm:$0xff]  ;;  %v2258_v36 = vmul.f32 %v10924_v25, %v2242_v1 }
 0x52c   : > { %2311 = vst.msk [vmem:[#allocation5 + $0x8] sm:$0xff] %vm2309_vm10, %v2294_v2  ;;  %v2302_v33 = vadd.f32 %v2280_v3, %v2254_v63  ;;  %v2260_v60 = vmul.f32 %v10921_v28, %v2244_v48  ;;  %v10925_v63 = vld [vmem:[#allocation53_spill] sm:$0xff] }
 0x52d   : > { %v8683_v3 = vperm.slane %v10925_v63, 2 }
 0x52e   : > { %2319 = vst.msk [vmem:[#allocation5 + $0x48] sm:$0xff] %vm2309_vm10, %v2302_v33 }
 0x530   : > { %v2278_v0 = vpop.xlane.xlu2 %2277 }
 0x531   : > { %v2301_v58 = vadd.f32 %v2278_v0, %v2253_v6  ;;  %v2270_v21 = vpop.xlane.xlu0 %2269 }
 0x532   : > { %v2297_v49 = vadd.f32 %v2270_v21, %v2249_v12 }
 0x533   : > { %2318 = vst.msk [vmem:[#allocation5 + $0x40] sm:$0xff] %vm2309_vm10, %v2301_v58  ;;  %v2286_v44 = vpop.xlane.xlu1 %2285 }
 0x534   : > { %2314 = vst.msk [vmem:[#allocation5 + $0x20] sm:$0xff] %vm2309_vm10, %v2297_v49  ;;  %v2305_v41 = vadd.f32 %v2286_v44, %v2257_v30 }
 0x536   : > { %2322 = vst.msk [vmem:[#allocation5 + $0x60] sm:$0xff] %vm2309_vm10, %v2305_v41 }
 0x538   : > { %v2284_v37 = vpop.xlane.xlu2 %2283 }
 0x539   : > { %v2304_v51 = vadd.f32 %v2284_v37, %v2256_v5  ;;  %v2276_v16 = vpop.xlane.xlu0 %2275 }
 0x53a   : > { %v2300_v19 = vadd.f32 %v2276_v16, %v2252_v55 }
 0x53b   : > { %2321 = vst.msk [vmem:[#allocation5 + $0x58] sm:$0xff] %vm2309_vm10, %v2304_v51  ;;  %v2292_v39 = vpop.xlane.xlu1 %2291 }
 0x53c   : > { %2317 = vst.msk [vmem:[#allocation5 + $0x38] sm:$0xff] %vm2309_vm10, %v2300_v19  ;;  %v2308_v59 = vadd.f32 %v2292_v39, %v2260_v60 }
 0x53e   : > { %2325 = vst.msk [vmem:[#allocation5 + $0x78] sm:$0xff] %vm2309_vm10, %v2308_v59  ;;  %v2326_v59 = vld [vmem:[#allocation6] sm:$0xff] }
 0x53f   : > { %v2422_v13 = vmul.f32 %v10950_v26, %v2326_v59 }
 0x540   : > { %v2290_v57 = vpop.xlane.xlu2 %2289 }
 0x541   : > { %v2307_v43 = vadd.f32 %v2290_v57, %v2259_v56  ;;  %v2282_v46 = vpop.xlane.xlu0 %2281 }
 0x542   : > { %v2303_v4 = vadd.f32 %v2282_v46, %v2255_v9 }
 0x543   : > { %2324 = vst.msk [vmem:[#allocation5 + $0x70] sm:$0xff] %vm2309_vm10, %v2307_v43 }
 0x544   : > { %2320 = vst.msk [vmem:[#allocation5 + $0x50] sm:$0xff] %vm2309_vm10, %v2303_v4 }
 0x548   : > { %v6231_v20 = vpop.permute.xlu2 %6230 }
 0x549   : > { %v2288_v54 = vpop.xlane.xlu0 %2287  ;;  %v6233_v56 = vunpack.i.h.bf16 %v6231_v20  ;;  %v6232_v9 = vunpack.i.l.bf16 %v6231_v20 }
 0x54a   : > { %v2306_v2 = vadd.f32 %v2288_v54, %v2258_v36 }
 0x54c   : > { %2323 = vst.msk [vmem:[#allocation5 + $0x68] sm:$0xff] %vm2309_vm10, %v2306_v2 }
 0x550   : > { %v2699_v33 = vpop.permute.xlu2 %2698 }
 0x551   : > { %v2777_v38 = vadd.f32 %v8683_v3, %v2699_v33 }
 0x553   : > { %v2809_v15 = vmul.f32 0.2, %v2777_v38  ;;  %v6226_v6 = vpop.permute.xlu1 %6225  ;;  %vm2793_vm12 = vcmp.gt.f32.partialorder %v2777_v38, 0.0 }
 0x554   : > { %v6228_v1 = vunpack.i.h.bf16 %v6226_v6  ;;  %v6227_v33 = vunpack.i.l.bf16 %v6226_v6 }
 0x555   : > { %v2825_v17 = vsel %vm2793_vm12, %v2777_v38, %v2809_v15 }
 0x556   : > { %v8688_v12 = vsel %vm1057_vm7, -1e+09, %v2825_v17 }
 0x557   : > { %2873 = vmax.xlane.f32.xlu1 %v8688_v12 }
 0x558   : > { %v2714_v58 = vpop.permute.xlu2 %2713 }
 0x559   : > { %v2780_v54 = vadd.f32 %v8683_v3, %v2714_v58 }
 0x55b   : > { %v2709_v21 = vpop.permute.xlu1 %2708 }
 0x55c   : > { %v2779_v49 = vadd.f32 %v8683_v3, %v2709_v21  ;;  %v8692_v35 = vpop.permute.xlu0 %6220 }
 0x55d   : > { %v6223_v20 = vunpack.i.h.bf16 %v8692_v35 }
 0x55e   : > { %v2811_v30 = vmul.f32 0.2, %v2779_v49  ;;  %vm2795_vm10 = vcmp.gt.f32.partialorder %v2779_v49, 0.0 }
 0x560   : > { %v2724_v44 = vpop.permute.xlu2 %2723  ;;  %v2827_v41 = vsel %vm2795_vm10, %v2779_v49, %v2811_v30 }
 0x561   : > { %v2782_v10 = vadd.f32 %v8683_v3, %v2724_v44  ;;  %v8697_v45 = vsel %vm1059_vm3, -1e+09, %v2827_v41 }
 0x562   : > { %2877 = vmax.xlane.f32.xlu0 %v8697_v45 }
 0x563   : > { %v2814_v5 = vmul.f32 0.2, %v2782_v10  ;;  %v2719_v48 = vpop.permute.xlu1 %2718  ;;  %vm2798_vm11 = vcmp.gt.f32.partialorder %v2782_v10, 0.0 }
 0x564   : > { %v2781_v37 = vadd.f32 %v8683_v3, %v2719_v48  ;;  %v6236_v50 = vpop.permute.xlu0 %6235 }
 0x565   : > { %v6238_v55 = vunpack.i.h.bf16 %v6236_v50  ;;  %v2830_v16 = vsel %vm2798_vm11, %v2782_v10, %v2814_v5  ;;  %v6237_v19 = vunpack.i.l.bf16 %v6236_v50  ;;  %v2812_v10 = vmul.f32 0.2, %v2780_v54 }
 0x566   : > { %v2813_v51 = vmul.f32 0.2, %v2781_v37  ;;  %vm2797_vm12 = vcmp.gt.f32.partialorder %v2781_v37, 0.0  ;;  %v8704_v42 = vsel %vm1062_vm6, -1e+09, %v2830_v16 }
 0x567   : > { %2502 = vmatpush.msrb.mxu3 %v6238_v55 }
 0x568   : > { %v2739_v28 = vpop.permute.xlu2 %2738  ;;  %v2829_v60 = vsel %vm2797_vm12, %v2781_v37, %v2813_v51  ;;  %v6222_v37 = vunpack.i.l.bf16 %v8692_v35  ;;  %v10933_v51 = vld [vmem:[#allocation99_spill] sm:$0xff] }
 0x569   : > { %v2785_v39 = vadd.f32 %v8683_v3, %v2739_v28  ;;  %2503 = vmatpush.msrb.mxu3 %v6237_v19  ;;  %v8708_v62 = vsel %vm1061_vm14, -1e+09, %v2829_v60  ;;  %v6207_v16 = vunpack.i.h.bf16 %v10933_v51 }
 0x56a   : > { %2883 = vmax.xlane.f32.xlu0 %v8704_v42  ;;  %2881 = vmax.xlane.f32.xlu1 %v8708_v62 }
 0x56b   : > { %v2817_v57 = vmul.f32 0.2, %v2785_v39  ;;  %v2734_v40 = vpop.permute.xlu1 %2733  ;;  %2504 = vmatpush.msrb.mxu3 %v6233_v56  ;;  %vm2801_vm10 = vcmp.gt.f32.partialorder %v2785_v39, 0.0 }
 0x56c   : > { %v2784_v43 = vadd.f32 %v8683_v3, %v2734_v40  ;;  %v2704_v46 = vpop.permute.xlu0 %2703 }
 0x56d   : > { %v2778_v4 = vadd.f32 %v8683_v3, %v2704_v46  ;;  %2505 = vmatpush.msrb.mxu3 %v6232_v9  ;;  %v2833_v36 = vsel %vm2801_vm10, %v2785_v39, %v2817_v57  ;;  %v6206_v39 = vunpack.i.l.bf16 %v10933_v51  ;;  %v10936_v46 = vld [vmem:[#allocation101_spill] sm:$0xff] }
 0x56e   : > { %v2816_v25 = vmul.f32 0.2, %v2784_v43  ;;  %vm2800_vm11 = vcmp.gt.f32.partialorder %v2784_v43, 0.0  ;;  %v8719_v49 = vsel %vm1065_vm0, -1e+09, %v2833_v36 }
 0x56f   : > { %v2810_v2 = vmul.f32 0.2, %v2778_v4  ;;  %2506 = vmatpush.msrb.mxu3 %v6228_v1  ;;  %vm2794_vm12 = vcmp.gt.f32.partialorder %v2778_v4, 0.0 }
 0x570   : > { %v2754_v38 = vpop.permute.xlu2 %2753  ;;  %v2832_v15 = vsel %vm2800_vm11, %v2784_v43, %v2816_v25  ;;  %vm2796_vm11 = vcmp.gt.f32.partialorder %v2780_v54, 0.0 }
 0x571   : > { %v2788_v17 = vadd.f32 %v8683_v3, %v2754_v38  ;;  %v8723_v44 = vsel %vm1064_vm8, -1e+09, %v2832_v15  ;;  %2507 = vmatpush.msrb.mxu3 %v6227_v33  ;;  %v2826_v58 = vsel %vm2794_vm12, %v2778_v4, %v2810_v2  ;;  %v2828_v56 = vsel %vm2796_vm11, %v2780_v54, %v2812_v10  ;;  %v10938_v15 = vld [vmem:[#allocation100_spill] sm:$0xff] }
 0x572   : > { %2889 = vmax.xlane.f32.xlu0 %v8719_v49  ;;  %2887 = vmax.xlane.f32.xlu1 %v8723_v44  ;;  %v8729_v41 = vsel %vm1058_vm4, -1e+09, %v2826_v58  ;;  %v6197_v4 = vunpack.i.h.bf16 %v10936_v46  ;;  %v8750_v25 = vsel %vm1060_vm13, -1e+09, %v2828_v56  ;;  %v6196_v2 = vunpack.i.l.bf16 %v10936_v46  ;;  %v10943_v46 = vld [vmem:[#allocation61_spill] sm:$0xff] }
 0x573   : > { %v2820_v5 = vmul.f32 0.2, %v2788_v17  ;;  %v2749_v48 = vpop.permute.xlu1 %2748  ;;  %2875 = vmax.xlane.f32.xlu2 %v8729_v41  ;;  %2508 = vmatpush.msrb.mxu3 %v6223_v20  ;;  %vm2804_vm10 = vcmp.gt.f32.partialorder %v2788_v17, 0.0  ;;  %v6202_v20 = vunpack.i.h.bf16 %v10938_v15  ;;  %v6201_v10 = vunpack.i.l.bf16 %v10938_v15 }
 0x574   : > { %v2787_v50 = vadd.f32 %v8683_v3, %v2749_v48  ;;  %v2729_v55 = vpop.permute.xlu0 %2728 }
 0x575   : > { %2509 = vmatpush.msrb.mxu3 %v6222_v37  ;;  %v2836_v28 = vsel %vm2804_vm10, %v2788_v17, %v2820_v5  ;;  %v2783_v60 = vadd.f32 %v8683_v3, %v2729_v55  ;;  %v10940_v55 = vld [vmem:[#allocation98_spill] sm:$0xff] }
 0x576   : > { %v2819_v19 = vmul.f32 0.2, %v2787_v50  ;;  %vm2803_vm12 = vcmp.gt.f32.partialorder %v2787_v50, 0.0  ;;  %v8739_v35 = vsel %vm1068_vm15, -1e+09, %v2836_v28  ;;  %v6192_v51 = vunpack.i.h.bf16 %v10940_v55 }
 0x577   : > { %2510 = vmatpush.msrb.mxu3 %v6207_v16  ;;  %v2815_v36 = vmul.f32 0.2, %v2783_v60  ;;  %vm2799_vm10 = vcmp.gt.f32.partialorder %v2783_v60, 0.0  ;;  %v10941_v16 = vld [vmem:[#allocation57_spill] sm:$0xff] }
 0x578   : > { %v2835_v57 = vsel %vm2803_vm12, %v2787_v50, %v2819_v19  ;;  %vm10942_vm12 = vcmp.eq.f32.partialorder %v10941_v16, 0.0 }
 0x579   : > { %v8743_v43 = vsel %vm1067_vm1, -1e+09, %v2835_v57  ;;  %2511 = vmatpush.msrb.mxu3 %v6206_v39  ;;  %v2831_v5 = vsel %vm2799_vm10, %v2783_v60, %v2815_v36  ;;  %v6191_v60 = vunpack.i.l.bf16 %v10940_v55  ;;  %v8831_v55 = vld [vmem:[#allocation4 + $0x8] sm:$0xff] }
 0x57a   : > { %2895 = vmax.xlane.f32.xlu0 %v8739_v35  ;;  %2893 = vmax.xlane.f32.xlu1 %v8743_v43  ;;  %v8766_v19 = vsel %vm10942_vm12, -1e+09, %v2831_v5 }
 0x57b   : > { %v2764_v54 = vpop.permute.xlu1 %2763  ;;  %2879 = vmax.xlane.f32.xlu2 %v8750_v25  ;;  %2512 = vmatpush.msrb.mxu3 %v6197_v4 }
 0x57c   : > { %v2790_v33 = vadd.f32 %v8683_v3, %v2764_v54  ;;  %v2744_v38 = vpop.permute.xlu0 %2743 }
 0x57d   : > { %2513 = vmatpush.msrb.mxu3 %v6196_v2  ;;  %v2786_v58 = vadd.f32 %v8683_v3, %v2744_v38  ;;  %v10945_v2 = vld [vmem:[#allocation67_spill] sm:$0xff] }
 0x57e   : > { %v2822_v17 = vmul.f32 0.2, %v2790_v33  ;;  %vm2806_vm11 = vcmp.gt.f32.partialorder %v2790_v33, 0.0  ;;  %vm10946_vm9 = vcmp.eq.f32.partialorder %v10945_v2, 0.0 }
 0x57f   : > { %2514 = vmatpush.msrb.mxu3 %v6202_v20  ;;  %v2818_v28 = vmul.f32 0.2, %v2786_v58  ;;  %vm2802_vm10 = vcmp.gt.f32.partialorder %v2786_v58, 0.0 }
 0x580   : > { %v2838_v48 = vsel %vm2806_vm11, %v2790_v33, %v2822_v17  ;;  %vm10944_vm11 = vcmp.eq.f32.partialorder %v10943_v46, 0.0 }
 0x581   : > { %v8760_v50 = vsel %vm1070_vm5, -1e+09, %v2838_v48  ;;  %2515 = vmatpush.msrb.mxu3 %v6201_v10  ;;  %v2834_v57 = vsel %vm2802_vm10, %v2786_v58, %v2818_v28  ;;  %v8823_v58 = vld [vmem:[#allocation4 + $0x38] sm:$0xff] }
 0x582   : > { %2899 = vmax.xlane.f32.xlu1 %v8760_v50  ;;  %v8774_v4 = vsel %vm10944_vm11, -1e+09, %v2834_v57  ;;  %v8843_v28 = vld [vmem:[#allocation4 + $0x58] sm:$0xff]  ;;  %vm2647_vm11 = vcmask 523520  }
 0x583   : > { %2885 = vmax.xlane.f32.xlu2 %v8766_v19  ;;  %2516 = vmatpush.msrb.mxu3 %v6192_v51  ;;  %10947 = vst [vmem:[#allocation88_spill] sm:$0xff] %v8843_v28 }
 0x584   : > { %v2759_v39 = vpop.permute.xlu0 %2758 }
 0x585   : > { %2517 = vmatpush.msrb.mxu3 %v6191_v60  ;;  %v2789_v56 = vadd.f32 %v8683_v3, %v2759_v39  ;;  %v8845_v39 = vld [vmem:[#allocation4 + $0x50] sm:$0xff] }
 0x586   : > { %2518 = vmatmul.f32.vlgmr.msrb.gmra.mxu3 %v8447_v18  ;;  %v2694_v18 = vld [vmem:[#allocation3 + $0x70] sm:$0xff] }
 0x587   : > { %v2821_v36 = vmul.f32 0.2, %v2789_v56  ;;  %vm2805_vm12 = vcmp.gt.f32.partialorder %v2789_v56, 0.0 }
 0x589   : > { %v2837_v54 = vsel %vm2805_vm12, %v2789_v56, %v2821_v36  ;;  %v8853_v36 = vld [vmem:[#allocation4 + $0x18] sm:$0xff] }
 0x58a   : > { %v8780_v33 = vsel %vm10946_vm9, -1e+09, %v2837_v54  ;;  %vm3177_vm9 = vcmask 23568  }
 0x58b   : > { %2891 = vmax.xlane.f32.xlu2 %v8774_v4 }
 0x58e   : > { %2521 = vmatmul.f32.gmra.mxu3 %v8491_v31  ;;  %v8790_v31 = vld [vmem:[#allocation4] sm:$0xff] }
 0x593   : > { %2897 = vmax.xlane.f32.xlu2 %v8780_v33 }
 0x596   : > { %2524 = vmatmul.f32.gmra.mxu3 %v8471_v23 }
 0x59e   : > { %2527 = vmatmul.f32.gmra.mxu3 %v8458_v27  ;;  %v8798_v27 = vld [vmem:[#allocation4 + $0x10] sm:$0xff] }
 0x5a6   : > { %2530 = vmatmul.f32.gmra.mxu3 %v8512_v52 }
 0x5ab   : > { %2768 = vperm.xlu2 %6239, %v2694_v18  }
 0x5ae   : > { %2533 = vmatmul.f32.gmra.mxu3 %v8486_v53 }
 0x5b6   : > { %2536 = vmatmul.f32.gmra.mxu3 %v8476_v11 }
 0x5be   : > { %2539 = vmatmul.f32.gmra.mxu3 %v8531_v8  ;;  %v8808_v8 = vld [vmem:[#allocation4 + $0x20] sm:$0xff] }
 0x5c6   : > { %2542 = vmatmul.f32.gmra.mxu3 %v8509_v32  ;;  %v8806_v32 = vld [vmem:[#allocation4 + $0x28] sm:$0xff] }
 0x5ca   : > { %v2874_v38 = vpop.xlane.xlu1 %2873 }
 0x5cb   : > { %v8793_v23 = vmax.f32 %v8790_v31, %v2874_v38  ;;  %v8865_v38 = vld [vmem:[#allocation4 + $0x68] sm:$0xff] }
 0x5cd   : > { %3516 = vst.msk [vmem:[#allocation4] sm:$0xff] %vm3177_vm9, %v8793_v23 }
 0x5ce   : > { %2545 = vmatmul.f32.gmra.mxu3 %v8499_v24 }
 0x5d5   : > { %v2878_v53 = vpop.xlane.xlu0 %2877 }
 0x5d6   : > { %v8801_v11 = vmax.f32 %v8798_v27, %v2878_v53  ;;  %2548 = vmatmul.f32.gmra.mxu3 %v8550_v7  ;;  %v8821_v7 = vld [vmem:[#allocation4 + $0x40] sm:$0xff] }
 0x5d8   : > { %3518 = vst.msk [vmem:[#allocation4 + $0x10] sm:$0xff] %vm3177_vm9, %v8801_v11 }
 0x5dd   : > { %v2884_v52 = vpop.xlane.xlu0 %2883  ;;  %v2882_v15 = vpop.xlane.xlu1 %2881 }
 0x5de   : > { %v8811_v20 = vmax.f32 %v8806_v32, %v2884_v52  ;;  %v8814_v24 = vmax.f32 %v8808_v8, %v2882_v15  ;;  %2551 = vmatmul.f32.gmra.mxu3 %v8528_v22  ;;  %v8870_v15 = vld [vmem:[#allocation4 + $0x30] sm:$0xff] }
 0x5e0   : > { %3521 = vst.msk [vmem:[#allocation4 + $0x28] sm:$0xff] %vm3177_vm9, %v8811_v20 }
 0x5e1   : > { %3520 = vst.msk [vmem:[#allocation4 + $0x20] sm:$0xff] %vm3177_vm9, %v8814_v24 }
 0x5e5   : > { %v2890_v17 = vpop.xlane.xlu0 %2889  ;;  %v2888_v10 = vpop.xlane.xlu1 %2887 }
 0x5e6   : > { %v8826_v5 = vmax.f32 %v8821_v7, %v2890_v17  ;;  %v8829_v48 = vmax.f32 %v8823_v58, %v2888_v10  ;;  %v2876_v22 = vpop.xlane.xlu2 %2875  ;;  %2554 = vmatmul.f32.gmra.mxu3 %v8520_v29  ;;  %v8880_v10 = vld [vmem:[#allocation4 + $0x48] sm:$0xff] }
 0x5e7   : > { %v8835_v51 = vmax.f32 %v8831_v55, %v2876_v22 }
 0x5e8   : > { %3524 = vst.msk [vmem:[#allocation4 + $0x40] sm:$0xff] %vm3177_vm9, %v8826_v5 }
 0x5e9   : > { %3523 = vst.msk [vmem:[#allocation4 + $0x38] sm:$0xff] %vm3177_vm9, %v8829_v48 }
 0x5ea   : > { %3517 = vst.msk [vmem:[#allocation4 + $0x8] sm:$0xff] %vm3177_vm9, %v8835_v51 }
 0x5ed   : > { %v2896_v60 = vpop.xlane.xlu0 %2895  ;;  %v2894_v56 = vpop.xlane.xlu1 %2893 }
 0x5ee   : > { %v8848_v29 = vmax.f32 %v8843_v28, %v2896_v60  ;;  %v8851_v57 = vmax.f32 %v8845_v39, %v2894_v56  ;;  %v2880_v54 = vpop.xlane.xlu2 %2879  ;;  %2557 = vmatmul.f32.gmra.mxu3 %v8562_v34 }
 0x5ef   : > { %v8857_v18 = vmax.f32 %v8853_v36, %v2880_v54 }
 0x5f0   : > { %3527 = vst.msk [vmem:[#allocation4 + $0x58] sm:$0xff] %vm3177_vm9, %v8848_v29 }
 0x5f1   : > { %3526 = vst.msk [vmem:[#allocation4 + $0x50] sm:$0xff] %vm3177_vm9, %v8851_v57 }
 0x5f2   : > { %3519 = vst.msk [vmem:[#allocation4 + $0x18] sm:$0xff] %vm3177_vm9, %v8857_v18 }
 0x5f5   : > { %v2900_v53 = vpop.xlane.xlu1 %2899 }
 0x5f6   : > { %v8868_v52 = vmax.f32 %v8865_v38, %v2900_v53  ;;  %v2886_v34 = vpop.xlane.xlu2 %2885  ;;  %2560 = vmatmul.f32.gmra.mxu3 %v8547_v47  ;;  %v8888_v47 = vld [vmem:[#allocation4 + $0x60] sm:$0xff] }
 0x5f7   : > { %v8874_v17 = vmax.f32 %v8870_v15, %v2886_v34 }
 0x5f8   : > { %3529 = vst.msk [vmem:[#allocation4 + $0x68] sm:$0xff] %vm3177_vm9, %v8868_v52 }
 0x5f9   : > { %3522 = vst.msk [vmem:[#allocation4 + $0x30] sm:$0xff] %vm3177_vm9, %v8874_v17 }
 0x5fe   : > { %v2892_v22 = vpop.xlane.xlu2 %2891  ;;  %2563 = vmatmul.f32.gmra.mxu3 %v8537_v61 }
 0x5ff   : > { %v8884_v60 = vmax.f32 %v8880_v10, %v2892_v22 }
 0x601   : > { %3525 = vst.msk [vmem:[#allocation4 + $0x48] sm:$0xff] %vm3177_vm9, %v8884_v60 }
 0x606   : > { %v2898_v56 = vpop.xlane.xlu2 %2897 }
 0x607   : > { %v8891_v54 = vmax.f32 %v8888_v47, %v2898_v56 }
 0x609   : > { %3528 = vst.msk [vmem:[#allocation4 + $0x60] sm:$0xff] %vm3177_vm9, %v8891_v54  ;;  %v2519_v53 = vpop.f32.mrf.mxu3 }
 0x60a   : > { %2583 = vrot.lane.b32.xlu1 %v2519_v53, %s7000_s15  ;;  %v2695_v53 = vld [vmem:[#allocation3 + $0x78] sm:$0xff] }
 0x60e   : > { %v2769_v61 = vpop.permute.xlu2 %2768 }
 0x60f   : > { %v2791_v34 = vadd.f32 %v8683_v3, %v2769_v61 }
 0x611   : > { %v2823_v22 = vmul.f32 0.2, %v2791_v34  ;;  %v2522_v37 = vpop.f32.mrf.mxu3  ;;  %vm2807_vm10 = vcmp.gt.f32.partialorder %v2791_v34, 0.0 }
 0x612   : > { %2585 = vrot.lane.b32.xlu2 %v2522_v37, %s7000_s15 }
 0x613   : > { %v2839_v40 = vsel %vm2807_vm10, %v2791_v34, %v2823_v22 }
 0x614   : > { %v8900_v56 = vsel %vm1071_vm2, -1e+09, %v2839_v40 }
 0x615   : > { %2901 = vmax.xlane.f32.xlu0 %v8900_v56 }
 0x619   : > { %v2525_v9 = vpop.f32.mrf.mxu3 }
 0x621   : > { %v2528_v21 = vpop.f32.mrf.mxu3 }
 0x622   : > { %2589 = vrot.lane.b32.xlu1 %v2528_v21, %s7000_s15 }
 0x629   : > { %2773 = vperm.xlu0 %6240, %v2695_v53   ;;  %v8904_v46 = vpop.f32.mrf.mxu3  ;;  %v2327_v53 = vld [vmem:[#allocation6 + $0x8] sm:$0xff] }
 0x62a   : > { %2971 = vperm.xlu1 %6241, %v8793_v23  }
 0x631   : > { %2587 = vrot.lane.b32.xlu0 %v2525_v9, %s7000_s15  ;;  %v2534_v37 = vpop.f32.mrf.mxu3 }
 0x632   : > { %2991 = vperm.xlu1 %6241, %v8814_v24  }
 0x639   : > { %2976 = vperm.xlu0 %6240, %v8835_v51   ;;  %v2537_v40 = vpop.f32.mrf.mxu3 }
 0x63a   : > { %2595 = vrot.lane.b32.xlu1 %v2537_v40, %s7000_s15  ;;  %v10949_v40 = vld [vmem:[#allocation110_spill] sm:$0xff] }
 0x63b   : > { %v2423_v2 = vmul.f32 %v10949_v40, %v2327_v53 }
 0x641   : > { %2593 = vrot.lane.b32.xlu0 %v2534_v37, %s7000_s15  ;;  %v8912_v61 = vpop.f32.mrf.mxu3 }
 0x642   : > { %3006 = vperm.xlu1 %6241, %v8829_v48  }
 0x649   : > { %2986 = vperm.xlu0 %6240, %v8857_v18   ;;  %v2543_v21 = vpop.f32.mrf.mxu3 }
 0x64a   : > { %3021 = vperm.xlu1 %6241, %v8851_v57  }
 0x651   : > { %3001 = vperm.xlu0 %6240, %v8874_v17   ;;  %v2546_v9 = vpop.f32.mrf.mxu3 }
 0x652   : > { %2601 = vrot.lane.b32.xlu1 %v2546_v9, %s7000_s15 }
 0x659   : > { %2599 = vrot.lane.b32.xlu0 %v2543_v21, %s7000_s15  ;;  %v8920_v34 = vpop.f32.mrf.mxu3 }
 0x65a   : > { %3036 = vperm.xlu1 %6241, %v8868_v52  }
 0x661   : > { %3016 = vperm.xlu0 %6240, %v8884_v60   ;;  %v2552_v22 = vpop.f32.mrf.mxu3 }
 0x669   : > { %3031 = vperm.xlu0 %6240, %v8891_v54   ;;  %v2555_v37 = vpop.f32.mrf.mxu3 }
 0x66a   : > { %2607 = vrot.lane.b32.xlu1 %v2555_v37, %s7000_s15  ;;  %v2329_v37 = vld [vmem:[#allocation6 + $0x18] sm:$0xff] }
 0x66c   : > { %v2586_v30 = vpop.permute.xlu2 %2585 }
 0x66d   : > { %v2632_v9 = vadd.f32 %v2586_v30, %v2423_v2  ;;  %v8935_v30 = vld [vmem:[#allocation4 + $0x70] sm:$0xff] }
 0x66e   : > { %10951 = vst [vmem:[#allocation83_spill] sm:$0xff] %v8935_v30 }
 0x66f   : > { %2649 = vst.msk [vmem:[#allocation6 + $0x8] sm:$0xff] %vm2647_vm11, %v2632_v9 }
 0x671   : > { %2605 = vrot.lane.b32.xlu0 %v2552_v22, %s7000_s15  ;;  %v8929_v21 = vpop.f32.mrf.mxu3 }
 0x679   : > { %v2561_v16 = vpop.f32.mrf.mxu3 }
 0x67a   : > { %2611 = vrot.lane.b32.xlu0 %v2561_v16, %s7000_s15  ;;  %v10952_v16 = vld [vmem:[#allocation60_spill] sm:$0xff] }
 0x67b   : > { %v2425_v40 = vmul.f32 %v10952_v16, %v2329_v37  ;;  %v10955_v37 = vld [vmem:[#allocation107_spill] sm:$0xff] }
 0x67c   : > { %v2584_v6 = vpop.permute.xlu1 %2583 }
 0x67d   : > { %v2631_v1 = vadd.f32 %v2584_v6, %v2422_v13 }
 0x67f   : > { %2648 = vst.msk [vmem:[#allocation6] sm:$0xff] %vm2647_vm11, %v2631_v1 }
 0x681   : > { %v2564_v53 = vpop.f32.mrf.mxu3 }
 0x682   : > { %2613 = vrot.lane.b32.xlu1 %v2564_v53, %s7000_s15 }
 0x688   : > { %v2902_v2 = vpop.xlane.xlu0 %2901 }
 0x689   : > { %v8938_v22 = vmax.f32 %v8935_v30, %v2902_v2  ;;  %v2328_v2 = vld [vmem:[#allocation6 + $0x10] sm:$0xff]  ;;  %v10953_v30 = vld [vmem:[#allocation71_spill] sm:$0xff] }
 0x68a   : > { %vm10954_vm10 = vcmp.eq.f32.partialorder %v10953_v30, 0.0  ;;  %v2424_v16 = vmul.f32 %v10955_v37, %v2328_v2  ;;  %v10957_v2 = vld [vmem:[#allocation69_spill] sm:$0xff] }
 0x68b   : > { %3530 = vst.msk [vmem:[#allocation4 + $0x70] sm:$0xff] %vm3177_vm9, %v8938_v22 }
 0x694   : > { %v2590_v26 = vpop.permute.xlu1 %2589 }
 0x695   : > { %v2634_v59 = vadd.f32 %v2590_v26, %v2425_v40 }
 0x697   : > { %2651 = vst.msk [vmem:[#allocation6 + $0x18] sm:$0xff] %vm2647_vm11, %v2634_v59 }
 0x69b   : > { %v2774_v13 = vpop.permute.xlu0 %2773 }
 0x69c   : > { %v2792_v6 = vadd.f32 %v8683_v3, %v2774_v13  ;;  %v2972_v1 = vpop.permute.xlu1 %2971  ;;  %v2332_v3 = vld [vmem:[#allocation6 + $0x30] sm:$0xff] }
 0x69d   : > { %v3049_v9 = vsub.f32 %v8688_v12, %v2972_v1 }
 0x69e   : > { %v2824_v53 = vmul.f32 0.2, %v2792_v6  ;;  %vm2808_vm12 = vcmp.gt.f32.partialorder %v2792_v6, 0.0 }
 0x69f   : > { %v3065_v63 = vmul.f32 1.442695, %v3049_v9 }
 0x6a0   : > { %v2840_v0 = vsel %vm2808_vm12, %v2792_v6, %v2824_v53  ;;  %v10956_v6 = vld [vmem:[#allocation109_spill] sm:$0xff]  ;;  %v2331_v53 = vld [vmem:[#allocation6 + $0x28] sm:$0xff] }
 0x6a1   : > { %v8948_v28 = vsel %vm10954_vm10, -1e+09, %v2840_v0  ;;  %6453 = vpow2.f32 %v3065_v63  ;;  %v2428_v1 = vmul.f32 %v10956_v6, %v2332_v3  ;;  %v2427_v37 = vmul.f32 %v10957_v2, %v2331_v53  ;;  %v10958_v53 = vld [vmem:[#allocation111_spill] sm:$0xff] }
 0x6a2   : > { %2903 = vmax.xlane.f32.xlu2 %v8948_v28 }
 0x6a3   : > { %v2588_v40 = vpop.permute.xlu0 %2587 }
 0x6a4   : > { %v2633_v26 = vadd.f32 %v2588_v40, %v2424_v16  ;;  %v8952_v59 = vpop.permute.xlu1 %2991 }
 0x6a6   : > { %2650 = vst.msk [vmem:[#allocation6 + $0x10] sm:$0xff] %vm2647_vm11, %v2633_v26 }
 0x6a7   : > { %v8955_v12 = vpop.eup %6453 }
 0x6ab   : > { %v8957_v13 = vpop.permute.xlu0 %2976 }
 0x6ac   : > { %v2596_v0 = vpop.permute.xlu1 %2595  ;;  %3129 = vadd.xlane.f32.xlu1 %v8955_v12 }
 0x6ad   : > { %v2637_v9 = vadd.f32 %v2596_v0, %v2428_v1  ;;  %v2335_v0 = vld [vmem:[#allocation6 + $0x48] sm:$0xff] }
 0x6ae   : > { %v2431_v2 = vmul.f32 %v10958_v53, %v2335_v0 }
 0x6af   : > { %2654 = vst.msk [vmem:[#allocation6 + $0x30] sm:$0xff] %vm2647_vm11, %v2637_v9 }
 0x6b3   : > { %v2594_v16 = vpop.permute.xlu0 %2593 }
 0x6b4   : > { %v2636_v63 = vadd.f32 %v2594_v16, %v2427_v37  ;;  %v8963_v40 = vpop.permute.xlu1 %3006 }
 0x6b6   : > { %2653 = vst.msk [vmem:[#allocation6 + $0x28] sm:$0xff] %vm2647_vm11, %v2636_v63 }
 0x6ba   : > { %2591 = vrot.lane.b32.xlu2 %v8904_v46, %s7000_s15 }
 0x6bb   : > { %v2987_v26 = vpop.permute.xlu0 %2986 }
 0x6bc   : > { %v3052_v3 = vsub.f32 %v8750_v25, %v2987_v26  ;;  %v8969_v6 = vpop.permute.xlu1 %3021  ;;  %v2334_v25 = vld [vmem:[#allocation6 + $0x40] sm:$0xff] }
 0x6bd   : > { %v10959_v26 = vld [vmem:[#allocation75_spill] sm:$0xff] }
 0x6be   : > { %v3071_v1 = vmul.f32 1.442695, %v3052_v3  ;;  %v2430_v3 = vmul.f32 %v10959_v26, %v2334_v25 }
 0x6c0   : > { %6455 = vpow2.f32 %v3071_v1 }
 0x6c2   : > { %2981 = vperm.xlu2 %6239, %v8801_v11  }
 0x6c3   : > { %v3002_v9 = vpop.permute.xlu0 %3001 }
 0x6c4   : > { %v3055_v37 = vsub.f32 %v8766_v19, %v3002_v9  ;;  %v2602_v16 = vpop.permute.xlu1 %2601 }
 0x6c5   : > { %v2640_v63 = vadd.f32 %v2602_v16, %v2431_v2 }
 0x6c6   : > { %v8974_v30 = vpop.eup %6455  ;;  %v3077_v46 = vmul.f32 1.442695, %v3055_v37 }
 0x6c7   : > { %2657 = vst.msk [vmem:[#allocation6 + $0x48] sm:$0xff] %vm2647_vm11, %v2640_v63  ;;  %3135 = vadd.xlane.f32.xlu1 %v8974_v30  ;;  %v10960_v63 = vld [vmem:[#allocation73_spill] sm:$0xff] }
 0x6c8   : > { %6457 = vpow2.f32 %v3077_v46 }
 0x6ca   : > { %2597 = vrot.lane.b32.xlu2 %v8912_v61, %s7000_s15  ;;  %v2338_v61 = vld [vmem:[#allocation6 + $0x60] sm:$0xff] }
 0x6cb   : > { %v2600_v1 = vpop.permute.xlu0 %2599  ;;  %v2434_v46 = vmul.f32 %v10960_v63, %v2338_v61 }
 0x6cc   : > { %v2639_v0 = vadd.f32 %v2600_v1, %v2430_v3  ;;  %v8986_v9 = vpop.permute.xlu1 %3036 }
 0x6ce   : > { %v8981_v53 = vpop.eup %6457  ;;  %2656 = vst.msk [vmem:[#allocation6 + $0x40] sm:$0xff] %vm2647_vm11, %v2639_v0 }
 0x6cf   : > { %3141 = vadd.xlane.f32.xlu1 %v8981_v53 }
 0x6d2   : > { %2996 = vperm.xlu2 %6239, %v8811_v20  }
 0x6d3   : > { %v3017_v19 = vpop.permute.xlu0 %3016 }
 0x6d4   : > { %v3058_v2 = vsub.f32 %v8774_v4, %v3017_v19  ;;  %v2337_v4 = vld [vmem:[#allocation6 + $0x58] sm:$0xff] }
 0x6d5   : > { %v10961_v19 = vld [vmem:[#allocation82_spill] sm:$0xff] }
 0x6d6   : > { %v3083_v37 = vmul.f32 1.442695, %v3058_v2  ;;  %v2433_v2 = vmul.f32 %v10961_v19, %v2337_v4  ;;  %v3050_v19 = vsub.f32 %v8729_v41, %v8957_v13  ;;  %v2330_v41 = vld [vmem:[#allocation6 + $0x20] sm:$0xff] }
 0x6d8   : > { %6459 = vpow2.f32 %v3083_v37 }
 0x6da   : > { %3011 = vperm.xlu2 %6239, %v8826_v5  }
 0x6db   : > { %v3032_v16 = vpop.permute.xlu0 %3031 }
 0x6dc   : > { %v3061_v25 = vsub.f32 %v8780_v33, %v3032_v16  ;;  %v2608_v26 = vpop.permute.xlu1 %2607  ;;  %v2340_v33 = vld [vmem:[#allocation6 + $0x70] sm:$0xff] }
 0x6dd   : > { %v2643_v3 = vadd.f32 %v2608_v26, %v2434_v46  ;;  %v2436_v16 = vmul.f32 %v8602_v14, %v2340_v33  ;;  %v10962_v26 = vld [vmem:[#allocation72_spill] sm:$0xff]  ;;  %v2921_v14 = vsub.f32 %v8790_v31, %v8793_v23 }
 0x6de   : > { %v8992_v1 = vpop.eup %6459  ;;  %v3089_v0 = vmul.f32 1.442695, %v3061_v25  ;;  %v10963_v23 = vld [vmem:[#allocation112_spill] sm:$0xff] }
 0x6df   : > { %2660 = vst.msk [vmem:[#allocation6 + $0x60] sm:$0xff] %vm2647_vm11, %v2643_v3  ;;  %3147 = vadd.xlane.f32.xlu1 %v8992_v1 }
 0x6e0   : > { %6461 = vpow2.f32 %v3089_v0 }
 0x6e2   : > { %2603 = vrot.lane.b32.xlu2 %v8920_v34, %s7000_s15  ;;  %v2341_v34 = vld [vmem:[#allocation6 + $0x78] sm:$0xff] }
 0x6e3   : > { %v2606_v37 = vpop.permute.xlu0 %2605  ;;  %v2437_v3 = vmul.f32 %v10962_v26, %v2341_v34  ;;  %v3097_v34 = vld [vmem:[#allocation5] sm:$0xff] }
 0x6e4   : > { %v2642_v61 = vadd.f32 %v2606_v37, %v2433_v2  ;;  %v3067_v2 = vmul.f32 1.442695, %v3050_v19  ;;  %v2937_v37 = vmul.f32 1.442695, %v2921_v14 }
 0x6e6   : > { %v8999_v63 = vpop.eup %6461  ;;  %2659 = vst.msk [vmem:[#allocation6 + $0x58] sm:$0xff] %vm2647_vm11, %v2642_v61  ;;  %v3053_v61 = vsub.f32 %v8708_v62, %v8952_v59  ;;  %6463 = vpow2.f32 %v3067_v2  ;;  %v3056_v62 = vsub.f32 %v8723_v44, %v8963_v40  ;;  %v2426_v59 = vmul.f32 %v10963_v23, %v2330_v41 }
 0x6e7   : > { %3153 = vadd.xlane.f32.xlu1 %v8999_v63  ;;  %6465 = vpow2.f32 %v2937_v37  ;;  %v3059_v44 = vsub.f32 %v8743_v43, %v8969_v6  ;;  %v2924_v37 = vsub.f32 %v8853_v36, %v8857_v18  ;;  %v3062_v23 = vsub.f32 %v8760_v50, %v8986_v9  ;;  %v10964_v43 = vld [vmem:[#allocation65_spill] sm:$0xff] }
 0x6e8   : > { %v2927_v36 = vsub.f32 %v8870_v15, %v8874_v17 }
 0x6e9   : > { %v3091_v18 = vmul.f32 1.442695, %v3062_v23  ;;  %v2336_v23 = vld [vmem:[#allocation6 + $0x50] sm:$0xff] }
 0x6ea   : > { %3026 = vperm.xlu2 %6239, %v8848_v29   ;;  %v2949_v50 = vmul.f32 1.442695, %v2927_v36 }
 0x6ec   : > { %v2612_v46 = vpop.permute.xlu0 %2611  ;;  %v9023_v13 = vpop.eup %6463 }
 0x6ed   : > { %v2645_v25 = vadd.f32 %v2612_v46, %v2436_v16  ;;  %v3073_v46 = vmul.f32 1.442695, %v3053_v61  ;;  %v9025_v31 = vpop.eup %6465  ;;  %v3085_v61 = vmul.f32 1.442695, %v3059_v44 }
 0x6ef   : > { %2662 = vst.msk [vmem:[#allocation6 + $0x70] sm:$0xff] %vm2647_vm11, %v2645_v25  ;;  %6467 = vpow2.f32 %v3073_v46  ;;  %v2333_v46 = vld [vmem:[#allocation6 + $0x38] sm:$0xff] }
 0x6f0   : > { %v2429_v6 = vmul.f32 %v10964_v43, %v2333_v46  ;;  %v3103_v46 = vld [vmem:[#allocation5 + $0x30] sm:$0xff] }
 0x6f2   : > { %2609 = vrot.lane.b32.xlu2 %v8929_v21, %s7000_s15  ;;  %v9016_v21 = vld [vmem:[#allocation4 + $0x78] sm:$0xff] }
 0x6f4   : > { %v2614_v0 = vpop.permute.xlu1 %2613 }
 0x6f5   : > { %v2646_v4 = vadd.f32 %v2614_v0, %v2437_v3  ;;  %v3113_v3 = vmul.f32 %v9025_v31, %v3097_v34  ;;  %v9033_v14 = vpop.eup %6467 }
 0x6f7   : > { %2663 = vst.msk [vmem:[#allocation6 + $0x78] sm:$0xff] %vm2647_vm11, %v2646_v4  ;;  %v3079_v4 = vmul.f32 1.442695, %v3056_v62  ;;  %v2943_v62 = vmul.f32 1.442695, %v2924_v37 }
 0x6f9   : > { %6469 = vpow2.f32 %v3079_v4  ;;  %v3100_v4 = vld [vmem:[#allocation5 + $0x18] sm:$0xff] }
 0x6ff   : > { %v9042_v41 = vpop.eup %6469 }
 0x715   : > { %v2904_v33 = vpop.xlane.xlu2 %2903 }
 0x716   : > { %v9019_v16 = vmax.f32 %v9016_v21, %v2904_v33 }
 0x718   : > { %3531 = vst.msk [vmem:[#allocation4 + $0x78] sm:$0xff] %vm3177_vm9, %v9019_v16 }
 0x71b   : > { %3131 = vadd.xlane.f32.xlu2 %v9023_v13 }
 0x71d   : > { %v2592_v25 = vpop.permute.xlu2 %2591 }
 0x71e   : > { %v2635_v26 = vadd.f32 %v2592_v25, %v2426_v59 }
 0x71f   : > { %v3130_v0 = vpop.xlane.xlu1 %3129 }
 0x720   : > { %2652 = vst.msk [vmem:[#allocation6 + $0x20] sm:$0xff] %vm2647_vm11, %v2635_v26  ;;  %v3161_v19 = vadd.f32 %v3130_v0, %v3113_v3 }
 0x722   : > { %3178 = vst.msk [vmem:[#allocation5] sm:$0xff] %vm3177_vm9, %v3161_v19 }
 0x723   : > { %3137 = vadd.xlane.f32.xlu2 %v9033_v14 }
 0x725   : > { %v2982_v40 = vpop.permute.xlu2 %2981 }
 0x726   : > { %v3051_v2 = vsub.f32 %v8697_v45, %v2982_v40 }
 0x728   : > { %v3069_v33 = vmul.f32 1.442695, %v3051_v2 }
 0x72a   : > { %6471 = vpow2.f32 %v3069_v33 }
 0x72b   : > { %3143 = vadd.xlane.f32.xlu2 %v9042_v41  ;;  %6473 = vpow2.f32 %v3085_v61  ;;  %v2930_v61 = vsub.f32 %v8880_v10, %v8884_v60  ;;  %v2933_v10 = vsub.f32 %v8888_v47, %v8891_v54  ;;  %v2925_v47 = vsub.f32 %v8808_v8, %v8814_v24  ;;  %v10966_v54 = vld [vmem:[#allocation85_spill] sm:$0xff] }
 0x72c   : > { %6475 = vpow2.f32 %v2943_v62  ;;  %v2928_v24 = vsub.f32 %v8823_v58, %v8829_v48  ;;  %v2922_v48 = vsub.f32 %v8831_v55, %v8835_v51  ;;  %v2923_v55 = vsub.f32 %v8798_v27, %v8801_v11  ;;  %v10969_v51 = vld [vmem:[#allocation41_spill] sm:$0xff] }
 0x72d   : > { %v2598_v59 = vpop.permute.xlu2 %2597  ;;  %6477 = vpow2.f32 %v3091_v18  ;;  %v2961_v60 = vmul.f32 1.442695, %v2933_v10  ;;  %v2926_v27 = vsub.f32 %v8806_v32, %v8811_v20  ;;  %v3099_v11 = vld [vmem:[#allocation5 + $0x10] sm:$0xff] }
 0x72e   : > { %v2638_v45 = vadd.f32 %v2598_v59, %v2429_v6  ;;  %6479 = vpow2.f32 %v2949_v50  ;;  %v2955_v59 = vmul.f32 1.442695, %v2930_v61 }
 0x730   : > { %v9048_v25 = vpop.eup %6471  ;;  %2655 = vst.msk [vmem:[#allocation6 + $0x38] sm:$0xff] %vm2647_vm11, %v2638_v45  ;;  %v10965_v45 = vld [vmem:[#allocation80_spill] sm:$0xff] }
 0x731   : > { %3133 = vadd.xlane.f32.xlu0 %v9048_v25  ;;  %v9054_v34 = vpop.eup %6473  ;;  %v2432_v36 = vmul.f32 %v10965_v45, %v2336_v23  ;;  %v2945_v23 = vmul.f32 1.442695, %v2925_v47  ;;  %v2951_v45 = vmul.f32 1.442695, %v2928_v24 }
 0x732   : > { %v9057_v26 = vpop.eup %6475 }
 0x733   : > { %3149 = vadd.xlane.f32.xlu2 %v9054_v34  ;;  %v3116_v15 = vmul.f32 %v9057_v26, %v3100_v4  ;;  %v9061_v17 = vpop.eup %6477 }
 0x734   : > { %v9065_v2 = vpop.eup %6479 }
 0x735   : > { %v2997_v9 = vpop.permute.xlu2 %2996  ;;  %v3119_v62 = vmul.f32 %v9065_v2, %v3103_v46 }
 0x736   : > { %v3054_v3 = vsub.f32 %v8704_v42, %v2997_v9 }
 0x738   : > { %v3075_v0 = vmul.f32 1.442695, %v3054_v3 }
 0x73a   : > { %6481 = vpow2.f32 %v3075_v0  ;;  %v3136_v19 = vpop.xlane.xlu1 %3135 }
 0x73b   : > { %v3164_v44 = vadd.f32 %v3136_v19, %v3116_v15  ;;  %3155 = vadd.xlane.f32.xlu2 %v9061_v17  ;;  %v3106_v15 = vld [vmem:[#allocation5 + $0x48] sm:$0xff] }
 0x73d   : > { %3181 = vst.msk [vmem:[#allocation5 + $0x18] sm:$0xff] %vm3177_vm9, %v3164_v44  ;;  %v3012_v40 = vpop.permute.xlu2 %3011  ;;  %v2339_v44 = vld [vmem:[#allocation6 + $0x68] sm:$0xff] }
 0x73e   : > { %v3057_v37 = vsub.f32 %v8719_v49, %v3012_v40  ;;  %v2435_v61 = vmul.f32 %v10966_v54, %v2339_v44  ;;  %v3101_v44 = vld [vmem:[#allocation5 + $0x20] sm:$0xff] }
 0x740   : > { %v9068_v42 = vpop.eup %6481  ;;  %v3081_v33 = vmul.f32 1.442695, %v3057_v37 }
 0x741   : > { %3139 = vadd.xlane.f32.xlu0 %v9068_v42 }
 0x742   : > { %6483 = vpow2.f32 %v3081_v33  ;;  %v3142_v43 = vpop.xlane.xlu1 %3141 }
 0x743   : > { %v3167_v6 = vadd.f32 %v3142_v43, %v3119_v62  ;;  %6485 = vpow2.f32 %v2955_v59  ;;  %v3109_v43 = vld [vmem:[#allocation5 + $0x60] sm:$0xff] }
 0x744   : > { %6487 = vpow2.f32 %v2961_v60 }
 0x745   : > { %3184 = vst.msk [vmem:[#allocation5 + $0x30] sm:$0xff] %vm3177_vm9, %v3167_v6  ;;  %v2604_v49 = vpop.permute.xlu2 %2603 }
 0x746   : > { %v2641_v18 = vadd.f32 %v2604_v49, %v2432_v36  ;;  %v2931_v49 = vsub.f32 %v8845_v39, %v8851_v57  ;;  %v10967_v39 = vld [vmem:[#allocation35_spill] sm:$0xff] }
 0x748   : > { %v9076_v50 = vpop.eup %6483  ;;  %2658 = vst.msk [vmem:[#allocation6 + $0x50] sm:$0xff] %vm2647_vm11, %v2641_v18  ;;  %v2957_v18 = vmul.f32 1.442695, %v2931_v49 }
 0x749   : > { %3145 = vadd.xlane.f32.xlu0 %v9076_v50  ;;  %v9082_v3 = vpop.eup %6485 }
 0x74a   : > { %v3122_v19 = vmul.f32 %v9082_v3, %v3106_v15 }
 0x74d   : > { %v3027_v9 = vpop.permute.xlu2 %3026 }
 0x74e   : > { %v3060_v0 = vsub.f32 %v8739_v35, %v3027_v9  ;;  %v9091_v35 = vpop.eup %6487 }
 0x74f   : > { %v3125_v6 = vmul.f32 %v9091_v35, %v3109_v43 }
 0x750   : > { %v3087_v4 = vmul.f32 1.442695, %v3060_v0  ;;  %v2939_v0 = vmul.f32 1.442695, %v2922_v48 }
 0x752   : > { %6489 = vpow2.f32 %v3087_v4  ;;  %v3148_v40 = vpop.xlane.xlu1 %3147  ;;  %v10968_v4 = vld [vmem:[#allocation44_spill] sm:$0xff] }
 0x753   : > { %v3170_v37 = vadd.f32 %v3148_v40, %v3122_v19  ;;  %3041 = vperm.xlu2 %6239, %v8938_v22   ;;  %6491 = vpow2.f32 %v2945_v23 }
 0x754   : > { %6493 = vpow2.f32 %v2951_v45 }
 0x755   : > { %3187 = vst.msk [vmem:[#allocation5 + $0x48] sm:$0xff] %vm3177_vm9, %v3170_v37  ;;  %v2610_v33 = vpop.permute.xlu2 %2609  ;;  %6495 = vpow2.f32 %v2957_v18  ;;  %v2941_v37 = vmul.f32 1.442695, %v2923_v55  ;;  %v3105_v55 = vld [vmem:[#allocation5 + $0x40] sm:$0xff] }
 0x756   : > { %v2644_v46 = vadd.f32 %v2610_v33, %v2435_v61  ;;  %v3104_v61 = vld [vmem:[#allocation5 + $0x38] sm:$0xff] }
 0x758   : > { %v9093_v62 = vpop.eup %6489  ;;  %2661 = vst.msk [vmem:[#allocation6 + $0x68] sm:$0xff] %vm2647_vm11, %v2644_v46 }
 0x759   : > { %3151 = vadd.xlane.f32.xlu0 %v9093_v62  ;;  %v6492_v36 = vpop.eup %6491 }
 0x75a   : > { %v3154_v59 = vpop.xlane.xlu1 %3153  ;;  %v6494_v10 = vpop.eup %6493  ;;  %v3117_v40 = vmul.f32 %v6492_v36, %v3101_v44 }
 0x75b   : > { %v3173_v8 = vadd.f32 %v3154_v59, %v3125_v6  ;;  %3212 = vperm.xlu2 %6239, %v9025_v31   ;;  %v2934_v31 = vsub.f32 %v8865_v38, %v8868_v52  ;;  %v6496_v9 = vpop.eup %6495  ;;  %v3098_v38 = vld [vmem:[#allocation5 + $0x8] sm:$0xff]  ;;  %v3120_v33 = vmul.f32 %v6494_v10, %v3104_v61 }
 0x75d   : > { %3190 = vst.msk [vmem:[#allocation5 + $0x60] sm:$0xff] %vm3177_vm9, %v3173_v8  ;;  %v2963_v60 = vmul.f32 1.442695, %v2934_v31  ;;  %v3107_v8 = vld [vmem:[#allocation5 + $0x50] sm:$0xff]  ;;  %v3110_v31 = vld [vmem:[#allocation5 + $0x68] sm:$0xff] }
 0x75e   : > { %v3123_v45 = vmul.f32 %v6496_v9, %v3107_v8 }
 0x75f   : > { %6497 = vpow2.f32 %v2963_v60 }
 0x760   : > { %6499 = vpow2.f32 %v2939_v0 }
 0x761   : > { %6501 = vpow2.f32 %v2941_v37 }
 0x763   : > { %3232 = vperm.xlu2 %6239, %v6492_v36   ;;  %v2947_v36 = vmul.f32 1.442695, %v2926_v27 }
 0x765   : > { %v6498_v58 = vpop.eup %6497  ;;  %6503 = vpow2.f32 %v2947_v36 }
 0x766   : > { %v9110_v57 = vpop.eup %6499  ;;  %v3126_v32 = vmul.f32 %v6498_v58, %v3110_v31 }
 0x767   : > { %v3114_v52 = vmul.f32 %v9110_v57, %v3098_v38  ;;  %v9121_v43 = vpop.eup %6501 }
 0x768   : > { %v3115_v6 = vmul.f32 %v9121_v43, %v3099_v11  ;;  %v10971_v11 = vld [vmem:[#allocation38_spill] sm:$0xff] }
 0x76b   : > { %3247 = vperm.xlu2 %6239, %v6494_v10   ;;  %v2929_v10 = vsub.f32 %v8821_v7, %v8826_v5  ;;  %v6504_v0 = vpop.eup %6503  ;;  %v10970_v5 = vld [vmem:[#allocation88_spill] sm:$0xff] }
 0x76d   : > { %v2953_v20 = vmul.f32 1.442695, %v2929_v10 }
 0x76f   : > { %6505 = vpow2.f32 %v2953_v20 }
 0x773   : > { %3262 = vperm.xlu2 %6239, %v6496_v9   ;;  %v3102_v9 = vld [vmem:[#allocation5 + $0x28] sm:$0xff] }
 0x77b   : > { %3277 = vperm.xlu2 %6239, %v6498_v58   ;;  %v2932_v58 = vsub.f32 %v10970_v5, %v8848_v29  ;;  %v2936_v29 = vsub.f32 %v9016_v21, %v9019_v16 }
 0x77d   : > { %v2959_v37 = vmul.f32 1.442695, %v2932_v58 }
 0x783   : > { %6243 = vrot.lane.b32.xlu2 %v10967_v39, %s7001_s17  ;;  %v3118_v39 = vmul.f32 %v6504_v0, %v3102_v9 }
 0x78b   : > { %6258 = vrot.lane.b32.xlu2 %v10968_v4, %s7001_s17 }
 0x78e   : > { %v3132_v15 = vpop.xlane.xlu2 %3131 }
 0x78f   : > { %v3162_v19 = vadd.f32 %v3132_v15, %v3114_v52 }
 0x791   : > { %3179 = vst.msk [vmem:[#allocation5 + $0x8] sm:$0xff] %vm3177_vm9, %v3162_v19  ;;  %v6506_v19 = vpop.eup %6505 }
 0x793   : > { %6273 = vrot.lane.b32.xlu2 %v10969_v51, %s7001_s17  ;;  %v3121_v51 = vmul.f32 %v6506_v19, %v3105_v55 }
 0x796   : > { %v3138_v47 = vpop.xlane.xlu2 %3137 }
 0x797   : > { %v3165_v54 = vadd.f32 %v3138_v47, %v3117_v40 }
 0x799   : > { %3182 = vst.msk [vmem:[#allocation5 + $0x20] sm:$0xff] %vm3177_vm9, %v3165_v54 }
 0x79e   : > { %v3144_v46 = vpop.xlane.xlu2 %3143 }
 0x79f   : > { %v3168_v23 = vadd.f32 %v3144_v46, %v3120_v33 }
 0x7a1   : > { %3185 = vst.msk [vmem:[#allocation5 + $0x38] sm:$0xff] %vm3177_vm9, %v3168_v23  ;;  %v2967_v23 = vmul.f32 1.442695, %v2936_v29 }
 0x7a4   : > { %v3134_v59 = vpop.xlane.xlu0 %3133 }
 0x7a5   : > { %v3163_v24 = vadd.f32 %v3134_v59, %v3115_v6  ;;  %v3111_v59 = vld [vmem:[#allocation5 + $0x70] sm:$0xff] }
 0x7a6   : > { %v3150_v49 = vpop.xlane.xlu2 %3149 }
 0x7a7   : > { %3180 = vst.msk [vmem:[#allocation5 + $0x10] sm:$0xff] %vm3177_vm9, %v3163_v24  ;;  %v3171_v18 = vadd.f32 %v3150_v49, %v3123_v45  ;;  %v10975_v49 = vld [vmem:[#allocation48_spill] sm:$0xff] }
 0x7a9   : > { %3188 = vst.msk [vmem:[#allocation5 + $0x50] sm:$0xff] %vm3177_vm9, %v3171_v18  ;;  %v3112_v18 = vld [vmem:[#allocation5 + $0x78] sm:$0xff] }
 0x7ae   : > { %v3156_v60 = vpop.xlane.xlu2 %3155 }
 0x7af   : > { %v3174_v48 = vadd.f32 %v3156_v60, %v3126_v32 }
 0x7b1   : > { %3191 = vst.msk [vmem:[#allocation5 + $0x68] sm:$0xff] %vm3177_vm9, %v3174_v48 }
 0x7b4   : > { %v3140_v4 = vpop.xlane.xlu0 %3139 }
 0x7b5   : > { %v3166_v38 = vadd.f32 %v3140_v4, %v3118_v39 }
 0x7b6   : > { %v3042_v52 = vpop.permute.xlu2 %3041 }
 0x7b7   : > { %3183 = vst.msk [vmem:[#allocation5 + $0x28] sm:$0xff] %vm3177_vm9, %v3166_v38  ;;  %v3063_v15 = vsub.f32 %v8900_v56, %v3042_v52  ;;  %v3108_v56 = vld [vmem:[#allocation5 + $0x58] sm:$0xff] }
 0x7b9   : > { %v3093_v7 = vmul.f32 1.442695, %v3063_v15 }
 0x7bb   : > { %6507 = vpow2.f32 %v3093_v7 }
 0x7bc   : > { %v3146_v44 = vpop.xlane.xlu0 %3145  ;;  %6509 = vpow2.f32 %v2959_v37 }
 0x7bd   : > { %v3169_v40 = vadd.f32 %v3146_v44, %v3121_v51  ;;  %6511 = vpow2.f32 %v2967_v23 }
 0x7bf   : > { %3186 = vst.msk [vmem:[#allocation5 + $0x40] sm:$0xff] %vm3177_vm9, %v3169_v40 }
 0x7c1   : > { %v9137_v47 = vpop.eup %6507 }
 0x7c2   : > { %3157 = vadd.xlane.f32.xlu0 %v9137_v47  ;;  %v6510_v54 = vpop.eup %6509 }
 0x7c3   : > { %v3124_v61 = vmul.f32 %v6510_v54, %v3108_v56  ;;  %v6512_v27 = vpop.eup %6511 }
 0x7c4   : > { %v3128_v10 = vmul.f32 %v6512_v27, %v3112_v18 }
 0x7cc   : > { %v3152_v33 = vpop.xlane.xlu0 %3151 }
 0x7cd   : > { %v3172_v46 = vadd.f32 %v3152_v33, %v3124_v61 }
 0x7cf   : > { %3189 = vst.msk [vmem:[#allocation5 + $0x58] sm:$0xff] %vm3177_vm9, %v3172_v46 }
 0x7d6   : > { %3046 = vperm.xlu0 %6240, %v9019_v16  }
 0x7de   : > { %3217 = vperm.xlu0 %6240, %v9110_v57   ;;  %v10972_v57 = vld [vmem:[#allocation78_spill] sm:$0xff] }
 0x7e6   : > { %3227 = vperm.xlu0 %6240, %v9057_v26   ;;  %v10973_v26 = vld [vmem:[#allocation83_spill] sm:$0xff] }
 0x7ee   : > { %3242 = vperm.xlu0 %6240, %v9065_v2   ;;  %v2935_v2 = vsub.f32 %v10973_v26, %v8938_v22  ;;  %v10974_v22 = vld [vmem:[#allocation51_spill] sm:$0xff] }
 0x7f0   : > { %v2965_v6 = vmul.f32 1.442695, %v2935_v2 }
 0x7f2   : > { %6513 = vpow2.f32 %v2965_v6 }
 0x7f6   : > { %3257 = vperm.xlu0 %6240, %v9082_v3  }
 0x7f8   : > { %v6514_v3 = vpop.eup %6513 }
 0x7f9   : > { %v3127_v21 = vmul.f32 %v6514_v3, %v3111_v59 }
 0x7fe   : > { %3272 = vperm.xlu0 %6240, %v9091_v35  }
 0x806   : > { %3287 = vperm.xlu0 %6240, %v6512_v27  }
 0x80e   : > { %6253 = vrot.lane.b32.xlu0 %v10971_v11, %s7001_s17 }
 0x816   : > { %6268 = vrot.lane.b32.xlu0 %v10972_v57, %s7001_s17 }
 0x835   : > { %v3158_v16 = vpop.xlane.xlu0 %3157 }
 0x836   : > { %v3175_v8 = vadd.f32 %v3158_v16, %v3127_v21 }
 0x838   : > { %3192 = vst.msk [vmem:[#allocation5 + $0x70] sm:$0xff] %vm3177_vm9, %v3175_v8 }
 0x848   : > { %v3047_v35 = vpop.permute.xlu0 %3046 }
 0x849   : > { %v3064_v24 = vsub.f32 %v8948_v28, %v3047_v35  ;;  %v10976_v28 = vld [vmem:[#allocation77_spill] sm:$0xff] }
 0x84b   : > { %v3095_v45 = vmul.f32 1.442695, %v3064_v24 }
 0x84d   : > { %6515 = vpow2.f32 %v3095_v45 }
 0x850   : > { %v9170_v20 = vpop.permute.xlu0 %3217 }
 0x853   : > { %v9157_v36 = vpop.eup %6515 }
 0x854   : > { %3159 = vadd.xlane.f32.xlu1 %v9157_v36 }
 0x86d   : > { %3222 = vperm.xlu1 %6241, %v9121_v43   ;;  %v9168_v43 = vpop.permute.xlu2 %3212 }
 0x875   : > { %3237 = vperm.xlu1 %6241, %v6504_v0   ;;  %v9172_v60 = vpop.permute.xlu2 %3232  ;;  %v9176_v0 = vpop.permute.xlu0 %3227 }
 0x87d   : > { %3252 = vperm.xlu1 %6241, %v6506_v19   ;;  %v9178_v9 = vpop.permute.xlu2 %3247  ;;  %v9182_v4 = vpop.permute.xlu0 %3242 }
 0x885   : > { %3267 = vperm.xlu1 %6241, %v6510_v54   ;;  %v9186_v52 = vpop.permute.xlu2 %3262  ;;  %v9188_v15 = vpop.permute.xlu0 %3257 }
 0x88d   : > { %3282 = vperm.xlu1 %6241, %v6514_v3   ;;  %v9192_v7 = vpop.permute.xlu2 %3277  ;;  %v9194_v5 = vpop.permute.xlu0 %3272 }
 0x895   : > { %6248 = vrot.lane.b32.xlu1 %v10974_v22, %s7001_s17  ;;  %v6244_v55 = vpop.permute.xlu2 %6243  ;;  %v9198_v44 = vpop.permute.xlu0 %3287  ;;  %v3195_v22 = vld [vmem:[#allocation6 + $0x8] sm:$0xff] }
 0x896   : > { %v6246_v35 = vunpack.i.h.bf16 %v6244_v55  ;;  %v6245_v24 = vunpack.i.l.bf16 %v6244_v55  ;;  %v3537_v55 = vld [vmem:[#allocation3 + $0x28] sm:$0xff] }
 0x89d   : > { %6263 = vrot.lane.b32.xlu1 %v10975_v49, %s7001_s17  ;;  %v6259_v40 = vpop.permute.xlu2 %6258  ;;  %v6254_v54 = vpop.permute.xlu0 %6253  ;;  %v3291_v49 = vmul.f32 %v9170_v20, %v3195_v22 }
 0x89e   : > { %v6261_v6 = vunpack.i.h.bf16 %v6259_v40  ;;  %v6260_v3 = vunpack.i.l.bf16 %v6259_v40  ;;  %v6256_v59 = vunpack.i.h.bf16 %v6254_v54  ;;  %v6255_v21 = vunpack.i.l.bf16 %v6254_v54  ;;  %v3534_v40 = vld [vmem:[#allocation3 + $0x10] sm:$0xff] }
 0x8a5   : > { %6278 = vrot.lane.b32.xlu1 %v10976_v28, %s7001_s17  ;;  %v6274_v33 = vpop.permute.xlu2 %6273  ;;  %v6269_v23 = vpop.permute.xlu0 %6268 }
 0x8a6   : > { %v6276_v29 = vunpack.i.h.bf16 %v6274_v33  ;;  %v6275_v27 = vunpack.i.l.bf16 %v6274_v33  ;;  %v6271_v11 = vunpack.i.h.bf16 %v6269_v23  ;;  %v6270_v57 = vunpack.i.l.bf16 %v6269_v23  ;;  %v3538_v33 = vld [vmem:[#allocation3 + $0x30] sm:$0xff] }
 0x8c7   : > { %v3160_v31 = vpop.xlane.xlu1 %3159 }
 0x8c8   : > { %v3176_v32 = vadd.f32 %v3160_v31, %v3128_v10  ;;  %v3535_v10 = vld [vmem:[#allocation3 + $0x18] sm:$0xff]  ;;  %v3533_v31 = vld [vmem:[#allocation3 + $0x8] sm:$0xff] }
 0x8ca   : > { %3193 = vst.msk [vmem:[#allocation5 + $0x78] sm:$0xff] %vm3177_vm9, %v3176_v32  ;;  %vm3499_vm9 = vcmask 785920  }
 0x8df   : > { %v9174_v48 = vpop.permute.xlu1 %3222 }
 0x8e7   : > { %v9180_v39 = vpop.permute.xlu1 %3237 }
 0x8ef   : > { %v9184_v38 = vpop.permute.xlu1 %3252 }
 0x8f7   : > { %v9190_v19 = vpop.permute.xlu1 %3267 }
 0x8ff   : > { %v9196_v58 = vpop.permute.xlu1 %3282 }
 0x907   : > { %v6249_v51 = vpop.permute.xlu1 %6248 }
 0x908   : > { %v6251_v16 = vunpack.i.h.bf16 %v6249_v51  ;;  %v6250_v8 = vunpack.i.l.bf16 %v6249_v51  ;;  %v3536_v51 = vld [vmem:[#allocation3 + $0x20] sm:$0xff] }
 0x90f   : > { %v6264_v37 = vpop.permute.xlu1 %6263 }
 0x910   : > { %v6266_v26 = vunpack.i.h.bf16 %v6264_v37  ;;  %v6265_v2 = vunpack.i.l.bf16 %v6264_v37  ;;  %v3194_v37 = vld [vmem:[#allocation6] sm:$0xff] }
 0x911   : > { %v3290_v20 = vmul.f32 %v9168_v43, %v3194_v37  ;;  %v3541_v43 = vld [vmem:[#allocation3 + $0x48] sm:$0xff] }
 0x917   : > { %v6279_v56 = vpop.permute.xlu1 %6278 }
 0x918   : > { %v6281_v61 = vunpack.i.h.bf16 %v6279_v56  ;;  %v6280_v46 = vunpack.i.l.bf16 %v6279_v56 }
 0x91a   : > { %3354 = vmatpush.msrb.mxu1 %v6281_v61  ;;  %5972 = vmatpush.msra.mxu3 %v6281_v61  ;;  %v3540_v61 = vld [vmem:[#allocation3 + $0x40] sm:$0xff] }
 0x91c   : > { %3355 = vmatpush.msrb.mxu1 %v6280_v46  ;;  %5973 = vmatpush.msra.mxu3 %v6280_v46  ;;  %v3539_v46 = vld [vmem:[#allocation3 + $0x38] sm:$0xff] }
 0x91e   : > { %3356 = vmatpush.msrb.mxu1 %v6276_v29  ;;  %5974 = vmatpush.msra.mxu3 %v6276_v29  ;;  %v3198_v29 = vld [vmem:[#allocation6 + $0x20] sm:$0xff] }
 0x91f   : > { %v3294_v23 = vmul.f32 %v9172_v60, %v3198_v29  ;;  %v3545_v60 = vld [vmem:[#allocation3 + $0x68] sm:$0xff] }
 0x920   : > { %3357 = vmatpush.msrb.mxu1 %v6275_v27  ;;  %5975 = vmatpush.msra.mxu3 %v6275_v27 }
 0x922   : > { %3358 = vmatpush.msrb.mxu1 %v6271_v11  ;;  %5976 = vmatpush.msra.mxu3 %v6271_v11 }
 0x924   : > { %3359 = vmatpush.msrb.mxu1 %v6270_v57  ;;  %5977 = vmatpush.msra.mxu3 %v6270_v57  ;;  %v3543_v57 = vld [vmem:[#allocation3 + $0x58] sm:$0xff] }
 0x926   : > { %3360 = vmatpush.msrb.mxu1 %v6266_v26  ;;  %5978 = vmatpush.msra.mxu3 %v6266_v26  ;;  %v3542_v26 = vld [vmem:[#allocation3 + $0x50] sm:$0xff] }
 0x928   : > { %3361 = vmatpush.msrb.mxu1 %v6265_v2  ;;  %5979 = vmatpush.msra.mxu3 %v6265_v2  ;;  %v3196_v2 = vld [vmem:[#allocation6 + $0x10] sm:$0xff] }
 0x92a   : > { %3362 = vmatpush.msrb.mxu1 %v6261_v6  ;;  %5980 = vmatpush.msra.mxu3 %v6261_v6  ;;  %v3292_v6 = vmul.f32 %v9174_v48, %v3196_v2 }
 0x92c   : > { %3363 = vmatpush.msrb.mxu1 %v6260_v3  ;;  %5981 = vmatpush.msra.mxu3 %v6260_v3 }
 0x92e   : > { %3364 = vmatpush.msrb.mxu1 %v6256_v59  ;;  %5982 = vmatpush.msra.mxu3 %v6256_v59 }
 0x930   : > { %3365 = vmatpush.msrb.mxu1 %v6255_v21  ;;  %5983 = vmatpush.msra.mxu3 %v6255_v21  ;;  %v3544_v21 = vld [vmem:[#allocation3 + $0x60] sm:$0xff] }
 0x932   : > { %3366 = vmatpush.msrb.mxu1 %v6251_v16  ;;  %5984 = vmatpush.msra.mxu3 %v6251_v16  ;;  %v3197_v16 = vld [vmem:[#allocation6 + $0x18] sm:$0xff] }
 0x934   : > { %3367 = vmatpush.msrb.mxu1 %v6250_v8  ;;  %5985 = vmatpush.msra.mxu3 %v6250_v8  ;;  %v3293_v8 = vmul.f32 %v9176_v0, %v3197_v16  ;;  %v3200_v0 = vld [vmem:[#allocation6 + $0x30] sm:$0xff] }
 0x936   : > { %3368 = vmatpush.msrb.mxu1 %v6246_v35  ;;  %5986 = vmatpush.msra.mxu3 %v6246_v35 }
 0x938   : > { %3369 = vmatpush.msrb.mxu1 %v6245_v24  ;;  %5987 = vmatpush.msra.mxu3 %v6245_v24 }
 0x939   : > { %3370 = vmatmul.f32.vlgmr.msrb.gmra.mxu1 %v8955_v12  ;;  %3409 = vmatmul.f32.vlgmr.msra.gmra.mxu3 %v9061_v17 }
 0x941   : > { %3373 = vmatmul.f32.gmra.mxu1 %v9023_v13  ;;  %3412 = vmatmul.f32.gmra.mxu3 %v9137_v47  ;;  %v3532_v47 = vld [vmem:[#allocation3] sm:$0xff] }
 0x949   : > { %3376 = vmatmul.f32.gmra.mxu1 %v9048_v25  ;;  %3415 = vmatmul.f32.gmra.mxu3 %v9157_v36  ;;  %v7002_v25 = vmov 3  }
 0x94a   : > { %6282 = vset.pattern.permute.xlu2 %v7002_v25  ;;  %6283 = vset.pattern.permute.xlu1 %v7002_v25 }
 0x94b   : > { %6284 = vset.pattern.permute.xlu0 %v7002_v25 }
 0x951   : > { %3379 = vmatmul.f32.gmra.mxu1 %v8974_v30 }
 0x959   : > { %3382 = vmatmul.f32.gmra.mxu1 %v9033_v14 }
 0x961   : > { %3385 = vmatmul.f32.gmra.mxu1 %v9068_v42 }
 0x969   : > { %3388 = vmatmul.f32.gmra.mxu1 %v8981_v53 }
 0x971   : > { %3391 = vmatmul.f32.gmra.mxu1 %v9042_v41 }
 0x979   : > { %3394 = vmatmul.f32.gmra.mxu1 %v9076_v50 }
 0x981   : > { %3397 = vmatmul.f32.gmra.mxu1 %v8992_v1 }
 0x989   : > { %3400 = vmatmul.f32.gmra.mxu1 %v9054_v34 }
 0x991   : > { %3403 = vmatmul.f32.gmra.mxu1 %v9093_v62 }
 0x999   : > { %3406 = vmatmul.f32.gmra.mxu1 %v8999_v63 }
 0x9b6   : > { %v3371_v12 = vpop.f32.mrf.mxu1 }
 0x9b7   : > { %3435 = vrot.lane.b32.xlu0 %v3371_v12, %s7001_s17  ;;  %v3201_v12 = vld [vmem:[#allocation6 + $0x38] sm:$0xff] }
 0x9bc   : > { %v3410_v50 = vpop.f32.mrf.mxu3 }
 0x9be   : > { %v3374_v30 = vpop.f32.mrf.mxu1 }
 0x9bf   : > { %3437 = vrot.lane.b32.xlu2 %v3374_v30, %s7001_s17  ;;  %v3297_v30 = vmul.f32 %v9178_v9, %v3201_v12 }
 0x9c4   : > { %v3413_v45 = vpop.f32.mrf.mxu3 }
 0x9c6   : > { %v3377_v13 = vpop.f32.mrf.mxu1 }
 0x9c7   : > { %3439 = vrot.lane.b32.xlu1 %v3377_v13, %s7001_s17 }
 0x9cc   : > { %v3416_v32 = vpop.f32.mrf.mxu3 }
 0x9ce   : > { %v3380_v53 = vpop.f32.mrf.mxu1 }
 0x9cf   : > { %3441 = vrot.lane.b32.xlu0 %v3380_v53, %s7001_s17  ;;  %v3199_v53 = vld [vmem:[#allocation6 + $0x28] sm:$0xff] }
 0x9d6   : > { %v3383_v14 = vpop.f32.mrf.mxu1 }
 0x9d7   : > { %3443 = vrot.lane.b32.xlu2 %v3383_v14, %s7001_s17  ;;  %v3295_v14 = vmul.f32 %v9180_v39, %v3199_v53  ;;  %v3202_v39 = vld [vmem:[#allocation6 + $0x40] sm:$0xff] }
 0x9de   : > { %v3386_v1 = vpop.f32.mrf.mxu1 }
 0x9df   : > { %3445 = vrot.lane.b32.xlu1 %v3386_v1, %s7001_s17 }
 0x9e6   : > { %v3389_v41 = vpop.f32.mrf.mxu1 }
 0x9e7   : > { %3447 = vrot.lane.b32.xlu0 %v3389_v41, %s7001_s17 }
 0x9ee   : > { %v3392_v63 = vpop.f32.mrf.mxu1 }
 0x9ef   : > { %3449 = vrot.lane.b32.xlu2 %v3392_v63, %s7001_s17  ;;  %v3296_v63 = vmul.f32 %v9182_v4, %v3200_v0 }
 0x9f6   : > { %v3395_v34 = vpop.f32.mrf.mxu1 }
 0x9f7   : > { %3451 = vrot.lane.b32.xlu1 %v3395_v34, %s7001_s17 }
 0x9fe   : > { %v3398_v17 = vpop.f32.mrf.mxu1 }
 0x9ff   : > { %3453 = vrot.lane.b32.xlu0 %v3398_v17, %s7001_s17  ;;  %v3204_v17 = vld [vmem:[#allocation6 + $0x50] sm:$0xff] }
 0xa00   : > { %v3300_v9 = vmul.f32 %v9186_v52, %v3204_v17  ;;  %v10977_v52 = vld [vmem:[#allocation53_spill] sm:$0xff] }
 0xa06   : > { %v3401_v42 = vpop.f32.mrf.mxu1 }
 0xa07   : > { %3455 = vrot.lane.b32.xlu2 %v3401_v42, %s7001_s17 }
 0xa0e   : > { %v3404_v62 = vpop.f32.mrf.mxu1 }
 0xa0f   : > { %3461 = vrot.lane.b32.xlu2 %v3410_v50, %s7001_s17  ;;  %3457 = vrot.lane.b32.xlu1 %v3404_v62, %s7001_s17  ;;  %v3207_v62 = vld [vmem:[#allocation6 + $0x68] sm:$0xff] }
 0xa16   : > { %v3407_v36 = vpop.f32.mrf.mxu1 }
 0xa17   : > { %3550 = vperm.xlu2 %6282, %v3532_v47   ;;  %3463 = vrot.lane.b32.xlu1 %v3413_v45, %s7001_s17  ;;  %v3303_v47 = vmul.f32 %v9192_v7, %v3207_v62  ;;  %v3298_v45 = vmul.f32 %v9184_v38, %v3202_v39 }
 0xa18   : > { %3459 = vrot.lane.b32.xlu0 %v3407_v36, %s7001_s17 }
 0xa19   : > { %v3438_v28 = vpop.permute.xlu2 %3437 }
 0xa1a   : > { %v3484_v18 = vadd.f32 %v3438_v28, %v3291_v49  ;;  %v3203_v28 = vld [vmem:[#allocation6 + $0x48] sm:$0xff] }
 0xa1c   : > { %3501 = vst.msk [vmem:[#allocation6 + $0x8] sm:$0xff] %vm3499_vm9, %v3484_v18  ;;  %v9255_v18 = vperm.slane %v10977_v52, 3  ;;  %v10983_v52 = vld [vmem:[#allocation57_spill] sm:$0xff] }
 0xa1f   : > { %3565 = vperm.xlu2 %6282, %v3535_v10   ;;  %3555 = vperm.xlu1 %6283, %v3533_v31   ;;  %v3299_v10 = vmul.f32 %v9188_v15, %v3203_v28 }
 0xa20   : > { %3465 = vrot.lane.b32.xlu0 %v3416_v32, %s7001_s17 }
 0xa27   : > { %3575 = vperm.xlu2 %6282, %v3537_v55   ;;  %3570 = vperm.xlu1 %6283, %v3536_v51  }
 0xa28   : > { %3560 = vperm.xlu0 %6284, %v3534_v40  }
 0xa29   : > { %v3436_v54 = vpop.permute.xlu0 %3435 }
 0xa2a   : > { %v3483_v56 = vadd.f32 %v3436_v54, %v3290_v20 }
 0xa2c   : > { %3500 = vst.msk [vmem:[#allocation6] sm:$0xff] %vm3499_vm9, %v3483_v56 }
 0xa2f   : > { %3590 = vperm.xlu2 %6282, %v3540_v61   ;;  %3580 = vperm.xlu1 %6283, %v3538_v33   ;;  %v3205_v61 = vld [vmem:[#allocation6 + $0x58] sm:$0xff] }
 0xa30   : > { %3585 = vperm.xlu0 %6284, %v3539_v46   ;;  %v3301_v29 = vmul.f32 %v9190_v19, %v3205_v61  ;;  %v3209_v19 = vld [vmem:[#allocation6 + $0x78] sm:$0xff] }
 0xa31   : > { %v3444_v27 = vpop.permute.xlu2 %3443 }
 0xa32   : > { %v3487_v11 = vadd.f32 %v3444_v27, %v3294_v23 }
 0xa34   : > { %3504 = vst.msk [vmem:[#allocation6 + $0x20] sm:$0xff] %vm3499_vm9, %v3487_v11  ;;  %v3208_v11 = vld [vmem:[#allocation6 + $0x70] sm:$0xff] }
 0xa37   : > { %3605 = vperm.xlu2 %6282, %v3543_v57   ;;  %3595 = vperm.xlu1 %6283, %v3541_v43   ;;  %v3206_v57 = vld [vmem:[#allocation6 + $0x60] sm:$0xff]  ;;  %v3304_v43 = vmul.f32 %v9196_v58, %v3208_v11  ;;  %v10987_v11 = vld [vmem:[#allocation61_spill] sm:$0xff] }
 0xa38   : > { %3600 = vperm.xlu0 %6284, %v3542_v26   ;;  %v3302_v26 = vmul.f32 %v9194_v5, %v3206_v57 }
 0xa39   : > { %v3440_v3 = vpop.permute.xlu1 %3439 }
 0xa3a   : > { %v3485_v59 = vadd.f32 %v3440_v3, %v3292_v6 }
 0xa3c   : > { %3502 = vst.msk [vmem:[#allocation6 + $0x10] sm:$0xff] %vm3499_vm9, %v3485_v59 }
 0xa3f   : > { %3610 = vperm.xlu1 %6283, %v3544_v21   ;;  %v3305_v21 = vmul.f32 %v9198_v44, %v3209_v19 }
 0xa40   : > { %3615 = vperm.xlu0 %6284, %v3545_v60  }
 0xa41   : > { %v3442_v35 = vpop.permute.xlu0 %3441 }
 0xa42   : > { %v3486_v24 = vadd.f32 %v3442_v35, %v3293_v8 }
 0xa44   : > { %3503 = vst.msk [vmem:[#allocation6 + $0x18] sm:$0xff] %vm3499_vm9, %v3486_v24 }
 0xa49   : > { %v3450_v48 = vpop.permute.xlu2 %3449 }
 0xa4a   : > { %v3490_v13 = vadd.f32 %v3450_v48, %v3297_v30 }
 0xa4c   : > { %3507 = vst.msk [vmem:[#allocation6 + $0x38] sm:$0xff] %vm3499_vm9, %v3490_v13 }
 0xa51   : > { %v3446_v1 = vpop.permute.xlu1 %3445 }
 0xa52   : > { %v3488_v41 = vadd.f32 %v3446_v1, %v3295_v14 }
 0xa54   : > { %3505 = vst.msk [vmem:[#allocation6 + $0x28] sm:$0xff] %vm3499_vm9, %v3488_v41 }
 0xa59   : > { %v3448_v25 = vpop.permute.xlu0 %3447 }
 0xa5a   : > { %v3489_v34 = vadd.f32 %v3448_v25, %v3296_v63 }
 0xa5c   : > { %3506 = vst.msk [vmem:[#allocation6 + $0x30] sm:$0xff] %vm3499_vm9, %v3489_v34 }
 0xa61   : > { %v3456_v42 = vpop.permute.xlu2 %3455 }
 0xa62   : > { %v3493_v50 = vadd.f32 %v3456_v42, %v3300_v9 }
 0xa64   : > { %3510 = vst.msk [vmem:[#allocation6 + $0x50] sm:$0xff] %vm3499_vm9, %v3493_v50 }
 0xa69   : > { %v3452_v36 = vpop.permute.xlu1 %3451  ;;  %v3462_v22 = vpop.permute.xlu2 %3461 }
 0xa6a   : > { %v3491_v4 = vadd.f32 %v3452_v36, %v3298_v45  ;;  %v3496_v49 = vadd.f32 %v3462_v22, %v3303_v47 }
 0xa6c   : > { %3508 = vst.msk [vmem:[#allocation6 + $0x40] sm:$0xff] %vm3499_vm9, %v3491_v4 }
 0xa6d   : > { %3513 = vst.msk [vmem:[#allocation6 + $0x68] sm:$0xff] %vm3499_vm9, %v3496_v49 }
 0xa71   : > { %v3454_v31 = vpop.permute.xlu0 %3453  ;;  %v3551_v32 = vpop.permute.xlu2 %3550 }
 0xa72   : > { %v3492_v55 = vadd.f32 %v3454_v31, %v3299_v10  ;;  %v3629_v7 = vadd.f32 %v9255_v18, %v3551_v32 }
 0xa74   : > { %3509 = vst.msk [vmem:[#allocation6 + $0x48] sm:$0xff] %vm3499_vm9, %v3492_v55  ;;  %v3661_v38 = vmul.f32 0.2, %v3629_v7  ;;  %vm3645_vm12 = vcmp.gt.f32.partialorder %v3629_v7, 0.0 }
 0xa76   : > { %v3677_v51 = vsel %vm3645_vm12, %v3629_v7, %v3661_v38  ;;  %v9384_v7 = vld [vmem:[#allocation4 + $0x20] sm:$0xff] }
 0xa77   : > { %v9262_v37 = vsel %vm1057_vm7, -1e+09, %v3677_v51 }
 0xa78   : > { %3725 = vmax.xlane.f32.xlu0 %v9262_v37 }
 0xa79   : > { %v3566_v20 = vpop.permute.xlu2 %3565 }
 0xa7a   : > { %v3632_v54 = vadd.f32 %v9255_v18, %v3566_v20 }
 0xa7c   : > { %v3664_v15 = vmul.f32 0.2, %v3632_v54  ;;  %vm3648_vm10 = vcmp.gt.f32.partialorder %v3632_v54, 0.0 }
 0xa7e   : > { %v3680_v56 = vsel %vm3648_vm10, %v3632_v54, %v3664_v15 }
 0xa7f   : > { %v9268_v46 = vsel %vm1060_vm13, -1e+09, %v3680_v56 }
 0xa80   : > { %3731 = vmax.xlane.f32.xlu0 %v9268_v46 }
 0xa81   : > { %v3458_v23 = vpop.permute.xlu1 %3457  ;;  %v3576_v5 = vpop.permute.xlu2 %3575 }
 0xa82   : > { %v3494_v27 = vadd.f32 %v3458_v23, %v3301_v29  ;;  %v3634_v1 = vadd.f32 %v9255_v18, %v3576_v5 }
 0xa84   : > { %3511 = vst.msk [vmem:[#allocation6 + $0x58] sm:$0xff] %vm3499_vm9, %v3494_v27  ;;  %v3666_v50 = vmul.f32 0.2, %v3634_v1 }
 0xa89   : > { %v3464_v2 = vpop.permute.xlu1 %3463  ;;  %v3591_v17 = vpop.permute.xlu2 %3590 }
 0xa8a   : > { %v3497_v6 = vadd.f32 %v3464_v2, %v3304_v43  ;;  %v3460_v3 = vpop.permute.xlu0 %3459  ;;  %v3637_v22 = vadd.f32 %v9255_v18, %v3591_v17  ;;  %v9361_v17 = vld [vmem:[#allocation4 + $0x18] sm:$0xff] }
 0xa8b   : > { %v3495_v59 = vadd.f32 %v3460_v3, %v3302_v26 }
 0xa8c   : > { %3514 = vst.msk [vmem:[#allocation6 + $0x70] sm:$0xff] %vm3499_vm9, %v3497_v6  ;;  %v3669_v51 = vmul.f32 0.2, %v3637_v22 }
 0xa8d   : > { %3512 = vst.msk [vmem:[#allocation6 + $0x60] sm:$0xff] %vm3499_vm9, %v3495_v59 }
 0xa91   : > { %v3556_v60 = vpop.permute.xlu1 %3555  ;;  %v3606_v20 = vpop.permute.xlu2 %3605 }
 0xa92   : > { %v3630_v16 = vadd.f32 %v9255_v18, %v3556_v60  ;;  %v3466_v8 = vpop.permute.xlu0 %3465  ;;  %v3640_v33 = vadd.f32 %v9255_v18, %v3606_v20  ;;  %v9389_v20 = vld [vmem:[#allocation4 + $0x10] sm:$0xff] }
 0xa93   : > { %v3498_v35 = vadd.f32 %v3466_v8, %v3305_v21  ;;  %11001 = vst [vmem:[#allocation91_spill] sm:$0xff] %v9389_v20 }
 0xa94   : > { %v3662_v24 = vmul.f32 0.2, %v3630_v16  ;;  %vm3646_vm7 = vcmp.gt.f32.partialorder %v3630_v16, 0.0  ;;  %v3672_v59 = vmul.f32 0.2, %v3640_v33 }
 0xa95   : > { %3515 = vst.msk [vmem:[#allocation6 + $0x78] sm:$0xff] %vm3499_vm9, %v3498_v35 }
 0xa96   : > { %v3678_v58 = vsel %vm3646_vm7, %v3630_v16, %v3662_v24  ;;  %vm3653_vm7 = vcmp.gt.f32.partialorder %v3637_v22, 0.0 }
 0xa97   : > { %v9282_v30 = vsel %vm1058_vm4, -1e+09, %v3678_v58  ;;  %vm3650_vm4 = vcmp.gt.f32.partialorder %v3634_v1, 0.0  ;;  %v3685_v23 = vsel %vm3653_vm7, %v3637_v22, %v3669_v51  ;;  %v10991_v58 = vld [vmem:[#allocation67_spill] sm:$0xff] }
 0xa98   : > { %3727 = vmax.xlane.f32.xlu2 %v9282_v30  ;;  %v3682_v49 = vsel %vm3650_vm4, %v3634_v1, %v3666_v50  ;;  %v9326_v2 = vsel %vm1065_vm0, -1e+09, %v3685_v23  ;;  %v3546_v1 = vld [vmem:[#allocation3 + $0x70] sm:$0xff] }
 0xa99   : > { %v3571_v48 = vpop.permute.xlu1 %3570  ;;  %v9308_v55 = vsel %vm1062_vm6, -1e+09, %v3682_v49  ;;  %v11000_v49 = vld [vmem:[#allocation31_spill] sm:$0xff] }
 0xa9a   : > { %v3633_v44 = vadd.f32 %v9255_v18, %v3571_v48  ;;  %v3561_v13 = vpop.permute.xlu0 %3560 }
 0xa9b   : > { %v3631_v53 = vadd.f32 %v9255_v18, %v3561_v13 }
 0xa9c   : > { %v3665_v14 = vmul.f32 0.2, %v3633_v44  ;;  %vm3649_vm13 = vcmp.gt.f32.partialorder %v3633_v44, 0.0 }
 0xa9d   : > { %v3663_v41 = vmul.f32 0.2, %v3631_v53  ;;  %vm3647_vm12 = vcmp.gt.f32.partialorder %v3631_v53, 0.0 }
 0xa9e   : > { %v3681_v0 = vsel %vm3649_vm13, %v3633_v44, %v3665_v14  ;;  %vm10988_vm13 = vcmp.eq.f32.partialorder %v10987_v11, 0.0  ;;  %v9449_v44 = vld [vmem:[#allocation4 + $0x60] sm:$0xff] }
 0xa9f   : > { %v9290_v25 = vsel %vm1061_vm14, -1e+09, %v3681_v0  ;;  %v3679_v34 = vsel %vm3647_vm12, %v3631_v53, %v3663_v41  ;;  %vm3656_vm12 = vcmp.gt.f32.partialorder %v3640_v33, 0.0  ;;  %v9351_v41 = vld [vmem:[#allocation4] sm:$0xff] }
 0xaa0   : > { %3733 = vmax.xlane.f32.xlu2 %v9290_v25  ;;  %v9295_v42 = vsel %vm1059_vm3, -1e+09, %v3679_v34  ;;  %vm10984_vm3 = vcmp.eq.f32.partialorder %v10983_v52, 0.0  ;;  %v3688_v24 = vsel %vm3656_vm12, %v3640_v33, %v3672_v59  ;;  %v9377_v52 = vld [vmem:[#allocation4 + $0x8] sm:$0xff] }
 0xaa1   : > { %3729 = vmax.xlane.f32.xlu1 %v9295_v42  ;;  %v3581_v62 = vpop.permute.xlu1 %3580  ;;  %v9343_v13 = vsel %vm1068_vm15, -1e+09, %v3688_v24 }
 0xaa2   : > { %v3635_v39 = vadd.f32 %v9255_v18, %v3581_v62  ;;  %v3586_v47 = vpop.permute.xlu0 %3585  ;;  %v10995_v62 = vld [vmem:[#allocation52_spill] sm:$0xff] }
 0xaa3   : > { %v3636_v45 = vadd.f32 %v9255_v18, %v3586_v47 }
 0xaa4   : > { %v3667_v36 = vmul.f32 0.2, %v3635_v39  ;;  %vm3651_vm14 = vcmp.gt.f32.partialorder %v3635_v39, 0.0 }
 0xaa5   : > { %v3668_v4 = vmul.f32 0.2, %v3636_v45  ;;  %vm3652_vm10 = vcmp.gt.f32.partialorder %v3636_v45, 0.0 }
 0xaa6   : > { %v3683_v28 = vsel %vm3651_vm14, %v3635_v39, %v3667_v36  ;;  %vm4029_vm14 = vcmask 31768   ;;  %v10996_v39 = vld [vmem:[#allocation49_spill] sm:$0xff]  ;;  %v10998_v36 = vld [vmem:[#allocation32_spill] sm:$0xff] }
 0xaa7   : > { %v9303_v10 = vsel %vm10984_vm3, -1e+09, %v3683_v28  ;;  %v3684_v31 = vsel %vm3652_vm10, %v3636_v45, %v3668_v4  ;;  %v6295_v47 = vpack.i.bf16 %v10996_v39, %v10995_v62  ;;  %v10997_v45 = vld [vmem:[#allocation36_spill] sm:$0xff]  ;;  %v10999_v4 = vld [vmem:[#allocation34_spill] sm:$0xff]  ;;  %vm4351_vm10 = vcmask 1048320  }
 0xaa8   : > { %3737 = vmax.xlane.f32.xlu0 %v9303_v10  ;;  %v9312_v38 = vsel %vm1064_vm8, -1e+09, %v3684_v31  ;;  %v6310_v22 = vpack.i.bf16 %v10998_v36, %v10997_v45  ;;  %v6320_v28 = vpack.i.bf16 %v11000_v49, %v10999_v4 }
 0xaa9   : > { %3735 = vmax.xlane.f32.xlu1 %v9308_v55  ;;  %3739 = vmax.xlane.f32.xlu2 %v9312_v38  ;;  %v3596_v40 = vpop.permute.xlu1 %3595 }
 0xaaa   : > { %v3638_v54 = vadd.f32 %v9255_v18, %v3596_v40  ;;  %v3601_v15 = vpop.permute.xlu0 %3600 }
 0xaab   : > { %v3639_v56 = vadd.f32 %v9255_v18, %v3601_v15 }
 0xaac   : > { %v3670_v61 = vmul.f32 0.2, %v3638_v54  ;;  %vm3654_vm6 = vcmp.gt.f32.partialorder %v3638_v54, 0.0 }
 0xaad   : > { %v3671_v29 = vmul.f32 0.2, %v3639_v56  ;;  %vm3655_vm8 = vcmp.gt.f32.partialorder %v3639_v56, 0.0 }
 0xaae   : > { %v3686_v27 = vsel %vm3654_vm6, %v3638_v54, %v3670_v61  ;;  %v9401_v61 = vld [vmem:[#allocation4 + $0x30] sm:$0xff] }
 0xaaf   : > { %v9321_v57 = vsel %vm10988_vm13, -1e+09, %v3686_v27  ;;  %v3687_v43 = vsel %vm3655_vm8, %v3639_v56, %v3671_v29  ;;  %v9403_v29 = vld [vmem:[#allocation4 + $0x28] sm:$0xff]  ;;  %v9405_v27 = vld [vmem:[#allocation4 + $0x38] sm:$0xff] }
 0xab0   : > { %3743 = vmax.xlane.f32.xlu0 %v9321_v57  ;;  %v9330_v3 = vsel %vm1067_vm1, -1e+09, %v3687_v43  ;;  %vm10992_vm1 = vcmp.eq.f32.partialorder %v10991_v58, 0.0 }
 0xab1   : > { %3741 = vmax.xlane.f32.xlu1 %v9326_v2  ;;  %3745 = vmax.xlane.f32.xlu2 %v9330_v3  ;;  %v3611_v19 = vpop.permute.xlu1 %3610 }
 0xab2   : > { %v3641_v21 = vadd.f32 %v9255_v18, %v3611_v19  ;;  %v3616_v60 = vpop.permute.xlu0 %3615  ;;  %v9425_v19 = vld [vmem:[#allocation4 + $0x48] sm:$0xff] }
 0xab3   : > { %v3642_v16 = vadd.f32 %v9255_v18, %v3616_v60  ;;  %v9427_v60 = vld [vmem:[#allocation4 + $0x40] sm:$0xff] }
 0xab4   : > { %v3673_v8 = vmul.f32 0.2, %v3641_v21  ;;  %vm3657_vm4 = vcmp.gt.f32.partialorder %v3641_v21, 0.0  ;;  %11002 = vst [vmem:[#allocation86_spill] sm:$0xff] %v9427_v60 }
 0xab5   : > { %v3674_v35 = vmul.f32 0.2, %v3642_v16  ;;  %vm3658_vm0 = vcmp.gt.f32.partialorder %v3642_v16, 0.0 }
 0xab6   : > { %v3689_v5 = vsel %vm3657_vm4, %v3641_v21, %v3673_v8  ;;  %v9429_v8 = vld [vmem:[#allocation4 + $0x50] sm:$0xff] }
 0xab7   : > { %v9338_v12 = vsel %vm10992_vm1, -1e+09, %v3689_v5  ;;  %v3690_v48 = vsel %vm3658_vm0, %v3642_v16, %v3674_v35 }
 0xab8   : > { %3749 = vmax.xlane.f32.xlu0 %v9338_v12  ;;  %v9347_v14 = vsel %vm1070_vm5, -1e+09, %v3690_v48 }
 0xab9   : > { %3747 = vmax.xlane.f32.xlu1 %v9343_v13  ;;  %3751 = vmax.xlane.f32.xlu2 %v9347_v14 }
 0xad1   : > { %3620 = vperm.xlu2 %6282, %v3546_v1   ;;  %v9451_v1 = vld [vmem:[#allocation4 + $0x58] sm:$0xff] }
 0xad2   : > { %11003 = vst [vmem:[#allocation81_spill] sm:$0xff] %v9451_v1 }
 0xaeb   : > { %v3726_v0 = vpop.xlane.xlu0 %3725 }
 0xaec   : > { %v9354_v63 = vmax.f32 %v9351_v41, %v3726_v0 }
 0xaee   : > { %v3773_v34 = vsub.f32 %v9351_v41, %v9354_v63  ;;  %4368 = vst.msk [vmem:[#allocation4] sm:$0xff] %vm4029_vm14, %v9354_v63  ;;  %3823 = vperm.xlu2 %6282, %v9354_v63  }
 0xaf3   : > { %v3732_v9 = vpop.xlane.xlu0 %3731 }
 0xaf4   : > { %v9364_v50 = vmax.f32 %v9361_v17, %v3732_v9  ;;  %v9453_v9 = vld [vmem:[#allocation4 + $0x68] sm:$0xff] }
 0xaf6   : > { %4371 = vst.msk [vmem:[#allocation4 + $0x18] sm:$0xff] %vm4029_vm14, %v9364_v50  ;;  %6296 = vrot.lane.b32.xlu2 %v6295_v47, %s7000_s15 }
 0xafe   : > { %6311 = vrot.lane.b32.xlu2 %v6310_v22, %s7000_s15 }
 0xb06   : > { %6321 = vrot.lane.b32.xlu2 %v6320_v28, %s7000_s15 }
 0xb0b   : > { %v3728_v31 = vpop.xlane.xlu2 %3727 }
 0xb0c   : > { %v9380_v32 = vmax.f32 %v9377_v52, %v3728_v31  ;;  %v9503_v31 = vld [vmem:[#allocation4 + $0x70] sm:$0xff] }
 0xb0d   : > { %11010 = vst [vmem:[#allocation94_spill] sm:$0xff] %v9503_v31 }
 0xb0e   : > { %4369 = vst.msk [vmem:[#allocation4 + $0x8] sm:$0xff] %vm4029_vm14, %v9380_v32 }
 0xb13   : > { %v3734_v51 = vpop.xlane.xlu2 %3733 }
 0xb14   : > { %v9387_v40 = vmax.f32 %v9384_v7, %v3734_v51  ;;  %v3730_v54 = vpop.xlane.xlu1 %3729 }
 0xb15   : > { %v9392_v15 = vmax.f32 %v9389_v20, %v3730_v54  ;;  %v11011_v20 = vld [vmem:[#allocation71_spill] sm:$0xff] }
 0xb16   : > { %4372 = vst.msk [vmem:[#allocation4 + $0x20] sm:$0xff] %vm4029_vm14, %v9387_v40  ;;  %3843 = vperm.xlu2 %6282, %v9387_v40   ;;  %vm11012_vm15 = vcmp.eq.f32.partialorder %v11011_v20, 0.0 }
 0xb17   : > { %4370 = vst.msk [vmem:[#allocation4 + $0x10] sm:$0xff] %vm4029_vm14, %v9392_v15 }
 0xb1b   : > { %v3738_v33 = vpop.xlane.xlu0 %3737 }
 0xb1c   : > { %v3736_v23 = vpop.xlane.xlu1 %3735  ;;  %v3740_v11 = vpop.xlane.xlu2 %3739  ;;  %v9408_v43 = vmax.f32 %v9401_v61, %v3738_v33 }
 0xb1d   : > { %v9411_v26 = vmax.f32 %v9403_v29, %v3736_v23  ;;  %v9414_v6 = vmax.f32 %v9405_v27, %v3740_v11  ;;  %v3547_v11 = vld [vmem:[#allocation3 + $0x78] sm:$0xff] }
 0xb1e   : > { %4374 = vst.msk [vmem:[#allocation4 + $0x30] sm:$0xff] %vm4029_vm14, %v9408_v43 }
 0xb1f   : > { %4373 = vst.msk [vmem:[#allocation4 + $0x28] sm:$0xff] %vm4029_vm14, %v9411_v26  ;;  %3858 = vperm.xlu2 %6282, %v9414_v6  }
 0xb20   : > { %4375 = vst.msk [vmem:[#allocation4 + $0x38] sm:$0xff] %vm4029_vm14, %v9414_v6 }
 0xb23   : > { %v3744_v21 = vpop.xlane.xlu0 %3743 }
 0xb24   : > { %v3742_v16 = vpop.xlane.xlu1 %3741  ;;  %v3746_v35 = vpop.xlane.xlu2 %3745  ;;  %v9432_v24 = vmax.f32 %v9425_v19, %v3744_v21 }
 0xb25   : > { %v9435_v5 = vmax.f32 %v9427_v60, %v3742_v16  ;;  %v9438_v58 = vmax.f32 %v9429_v8, %v3746_v35  ;;  %v11005_v16 = vld [vmem:[#allocation43_spill] sm:$0xff]  ;;  %v11006_v35 = vld [vmem:[#allocation40_spill] sm:$0xff] }
 0xb26   : > { %4377 = vst.msk [vmem:[#allocation4 + $0x48] sm:$0xff] %vm4029_vm14, %v9432_v24 }
 0xb27   : > { %4376 = vst.msk [vmem:[#allocation4 + $0x40] sm:$0xff] %vm4029_vm14, %v9435_v5  ;;  %3873 = vperm.xlu2 %6282, %v9438_v58  }
 0xb28   : > { %4378 = vst.msk [vmem:[#allocation4 + $0x50] sm:$0xff] %vm4029_vm14, %v9438_v58 }
 0xb2b   : > { %v3750_v53 = vpop.xlane.xlu0 %3749 }
 0xb2c   : > { %v3748_v0 = vpop.xlane.xlu1 %3747  ;;  %v3752_v62 = vpop.xlane.xlu2 %3751  ;;  %v9456_v39 = vmax.f32 %v9449_v44, %v3750_v53  ;;  %v6285_v53 = vpack.i.bf16 %v11006_v35, %v11005_v16  ;;  %v3789_v16 = vmul.f32 1.442695, %v3773_v34 }
 0xb2d   : > { %v9459_v47 = vmax.f32 %v9451_v1, %v3748_v0  ;;  %v9462_v45 = vmax.f32 %v9453_v9, %v3752_v62  ;;  %v11007_v0 = vld [vmem:[#allocation39_spill] sm:$0xff]  ;;  %v11008_v62 = vld [vmem:[#allocation42_spill] sm:$0xff] }
 0xb2e   : > { %4380 = vst.msk [vmem:[#allocation4 + $0x60] sm:$0xff] %vm4029_vm14, %v9456_v39  ;;  %v11021_v1 = vld [vmem:[#allocation46_spill] sm:$0xff] }
 0xb2f   : > { %4379 = vst.msk [vmem:[#allocation4 + $0x58] sm:$0xff] %vm4029_vm14, %v9459_v47  ;;  %3888 = vperm.xlu2 %6282, %v9462_v45  }
 0xb30   : > { %4381 = vst.msk [vmem:[#allocation4 + $0x68] sm:$0xff] %vm4029_vm14, %v9462_v45 }
 0xb34   : > { %v3621_v22 = vpop.permute.xlu2 %3620 }
 0xb35   : > { %v3643_v4 = vadd.f32 %v9255_v18, %v3621_v22  ;;  %v11009_v22 = vpack.i.bf16 %v11007_v0, %v11008_v62 }
 0xb37   : > { %v3675_v49 = vmul.f32 0.2, %v3643_v4  ;;  %vm3659_vm5 = vcmp.gt.f32.partialorder %v3643_v4, 0.0 }
 0xb39   : > { %v3691_v28 = vsel %vm3659_vm5, %v3643_v4, %v3675_v49 }
 0xb3a   : > { %v9476_v51 = vsel %vm1071_vm2, -1e+09, %v3691_v28 }
 0xb3b   : > { %3753 = vmax.xlane.f32.xlu1 %v9476_v51 }
 0xb48   : > { %v3824_v54 = vpop.permute.xlu2 %3823 }
 0xb49   : > { %v3901_v33 = vsub.f32 %v9262_v37, %v3824_v54 }
 0xb4b   : > { %v3917_v23 = vmul.f32 1.442695, %v3901_v33 }
 0xb4d   : > { %6517 = vpow2.f32 %v3917_v23 }
 0xb4e   : > { %6519 = vpow2.f32 %v3789_v16 }
 0xb50   : > { %v9494_v37 = vpop.permute.xlu2 %6296 }
 0xb53   : > { %v9480_v21 = vpop.eup %6517 }
 0xb54   : > { %3625 = vperm.xlu1 %6283, %v3547_v11   ;;  %v9519_v0 = vpop.eup %6519 }
 0xb58   : > { %3981 = vadd.xlane.f32.xlu2 %v9480_v21  ;;  %v9497_v4 = vpop.permute.xlu2 %6311 }
 0xb5c   : > { %6286 = vrot.lane.b32.xlu1 %v6285_v53, %s7000_s15 }
 0xb60   : > { %v9499_v49 = vpop.permute.xlu2 %6321 }
 0xb64   : > { %6306 = vrot.lane.b32.xlu1 %v11009_v22, %s7000_s15 }
 0xb6c   : > { %3828 = vperm.xlu1 %6283, %v9380_v32  }
 0xb70   : > { %v9501_v28 = vpop.permute.xlu2 %3843 }
 0xb74   : > { %3838 = vperm.xlu1 %6283, %v9364_v50  }
 0xb79   : > { %v9505_v33 = vpop.permute.xlu2 %3858 }
 0xb7c   : > { %3853 = vperm.xlu1 %6283, %v9408_v43  }
 0xb81   : > { %v9512_v11 = vpop.permute.xlu2 %3873 }
 0xb84   : > { %3868 = vperm.xlu1 %6283, %v9432_v24  }
 0xb89   : > { %v9517_v35 = vpop.permute.xlu2 %3888 }
 0xb8c   : > { %3883 = vperm.xlu1 %6283, %v9456_v39  }
 0xbae   : > { %v3754_v54 = vpop.xlane.xlu1 %3753 }
 0xbaf   : > { %v9508_v23 = vmax.f32 %v9503_v31, %v3754_v54  ;;  %v3949_v54 = vld [vmem:[#allocation5] sm:$0xff] }
 0xbb0   : > { %v3965_v36 = vmul.f32 %v9519_v0, %v3949_v54  ;;  %v11014_v54 = vld [vmem:[#allocation33_spill] sm:$0xff] }
 0xbb1   : > { %4382 = vst.msk [vmem:[#allocation4 + $0x70] sm:$0xff] %vm4029_vm14, %v9508_v23 }
 0xbc6   : > { %v3626_v53 = vpop.permute.xlu1 %3625 }
 0xbc7   : > { %v3644_v62 = vadd.f32 %v9255_v18, %v3626_v53 }
 0xbc9   : > { %v3676_v22 = vmul.f32 0.2, %v3644_v62  ;;  %vm3660_vm2 = vcmp.gt.f32.partialorder %v3644_v62, 0.0 }
 0xbcb   : > { %v3982_v48 = vpop.xlane.xlu2 %3981  ;;  %v3692_v59 = vsel %vm3660_vm2, %v3644_v62, %v3676_v22  ;;  %v11015_v62 = vld [vmem:[#allocation37_spill] sm:$0xff] }
 0xbcc   : > { %v4013_v56 = vadd.f32 %v3982_v48, %v3965_v36  ;;  %v9525_v41 = vsel %vm11012_vm15, -1e+09, %v3692_v59  ;;  %v11016_v48 = vpack.i.bf16 %v11014_v54, %v11015_v62  ;;  %v11017_v22 = vld [vmem:[#allocation45_spill] sm:$0xff] }
 0xbcd   : > { %11013 = vst [vmem:[#allocation89_spill] sm:$0xff] %v9525_v41  ;;  %3755 = vmax.xlane.f32.xlu0 %v9525_v41 }
 0xbce   : > { %4030 = vst.msk [vmem:[#allocation5] sm:$0xff] %vm4029_vm14, %v4013_v56  ;;  %v6287_v63 = vpop.permute.xlu1 %6286  ;;  %v11018_v56 = vld [vmem:[#allocation47_spill] sm:$0xff] }
 0xbcf   : > { %v6288_v34 = vunpack.i.l.bf16 %v6287_v63  ;;  %v6289_v18 = vunpack.i.h.bf16 %v6287_v63  ;;  %v11019_v31 = vpack.i.bf16 %v11017_v22, %v11018_v56  ;;  %v9566_v56 = vld [vmem:[#allocation4 + $0x78] sm:$0xff] }
 0xbd1   : > { %4206 = vmatpush.msrb.mxu0 %v6288_v34 }
 0xbd3   : > { %4207 = vmatpush.msrb.mxu0 %v6289_v18  ;;  %v11020_v18 = vld [vmem:[#allocation50_spill] sm:$0xff] }
 0xbd4   : > { %v6315_v41 = vpack.i.bf16 %v11021_v1, %v11020_v18 }
 0xbd6   : > { %v9529_v16 = vpop.permute.xlu1 %6306 }
 0xbde   : > { %v3829_v53 = vpop.permute.xlu1 %3828 }
 0xbe1   : > { %6291 = vrot.lane.b32.xlu0 %v11016_v48, %s7000_s15 }
 0xbe6   : > { %v3839_v20 = vpop.permute.xlu1 %3838 }
 0xbe7   : > { %v3904_v59 = vsub.f32 %v9268_v46, %v3839_v20 }
 0xbe9   : > { %v3923_v36 = vmul.f32 1.442695, %v3904_v59  ;;  %6301 = vrot.lane.b32.xlu0 %v11019_v31, %s7000_s15 }
 0xbeb   : > { %6521 = vpow2.f32 %v3923_v36  ;;  %v3905_v36 = vsub.f32 %v9290_v25, %v9501_v28 }
 0xbed   : > { %v3925_v22 = vmul.f32 1.442695, %v3905_v36 }
 0xbee   : > { %v3854_v63 = vpop.permute.xlu1 %3853 }
 0xbef   : > { %v3907_v34 = vsub.f32 %v9303_v10, %v3854_v63 }
 0xbf1   : > { %v9543_v60 = vpop.eup %6521  ;;  %v3929_v54 = vmul.f32 1.442695, %v3907_v34  ;;  %6316 = vrot.lane.b32.xlu0 %v6315_v41, %s7000_s15 }
 0xbf2   : > { %3987 = vadd.xlane.f32.xlu2 %v9543_v60 }
 0xbf3   : > { %6523 = vpow2.f32 %v3929_v54 }
 0xbf6   : > { %v3869_v46 = vpop.permute.xlu1 %3868 }
 0xbf7   : > { %v3910_v62 = vsub.f32 %v9321_v57, %v3869_v46 }
 0xbf9   : > { %v9548_v48 = vpop.eup %6523  ;;  %v3935_v31 = vmul.f32 1.442695, %v3910_v62  ;;  %3833 = vperm.xlu0 %6284, %v9392_v15  }
 0xbfa   : > { %3993 = vadd.xlane.f32.xlu2 %v9548_v48 }
 0xbfb   : > { %6525 = vpow2.f32 %v3935_v31  ;;  %v3776_v31 = vsub.f32 %v9361_v17, %v9364_v50  ;;  %v6299_v17 = vunpack.i.h.bf16 %v9494_v37  ;;  %v3779_v50 = vsub.f32 %v9401_v61, %v9408_v43 }
 0xbfc   : > { %v3782_v61 = vsub.f32 %v9425_v19, %v9432_v24 }
 0xbfd   : > { %v3801_v36 = vmul.f32 1.442695, %v3779_v50 }
 0xbfe   : > { %v3884_v10 = vpop.permute.xlu1 %3883 }
 0xbff   : > { %v3913_v1 = vsub.f32 %v9338_v12, %v3884_v10  ;;  %v3902_v12 = vsub.f32 %v9282_v30, %v3829_v53  ;;  %v3908_v30 = vsub.f32 %v9312_v38, %v9505_v33  ;;  %v3911_v53 = vsub.f32 %v9330_v3, %v9512_v11 }
 0xc00   : > { %v3914_v38 = vsub.f32 %v9347_v14, %v9517_v35  ;;  %v6298_v3 = vunpack.i.l.bf16 %v9494_v37  ;;  %v6309_v37 = vunpack.i.h.bf16 %v9529_v16 }
 0xc01   : > { %v9553_v20 = vpop.eup %6525  ;;  %v3941_v41 = vmul.f32 1.442695, %v3913_v1  ;;  %3848 = vperm.xlu0 %6284, %v9411_v26   ;;  %v3919_v59 = vmul.f32 1.442695, %v3902_v12  ;;  %v3931_v25 = vmul.f32 1.442695, %v3908_v30 }
 0xc02   : > { %3999 = vadd.xlane.f32.xlu2 %v9553_v20  ;;  %v3937_v46 = vmul.f32 1.442695, %v3911_v53  ;;  %v3943_v12 = vmul.f32 1.442695, %v3914_v38  ;;  %v6314_v38 = vunpack.i.h.bf16 %v9497_v4 }
 0xc03   : > { %6527 = vpow2.f32 %v3941_v41  ;;  %v3795_v41 = vmul.f32 1.442695, %v3776_v31 }
 0xc04   : > { %6529 = vpow2.f32 %v3919_v59 }
 0xc05   : > { %6531 = vpow2.f32 %v3925_v22  ;;  %v6308_v22 = vunpack.i.l.bf16 %v9529_v16 }
 0xc06   : > { %6533 = vpow2.f32 %v3931_v25  ;;  %v3952_v25 = vld [vmem:[#allocation5 + $0x18] sm:$0xff] }
 0xc07   : > { %6535 = vpow2.f32 %v3937_v46  ;;  %v6313_v46 = vunpack.i.l.bf16 %v9497_v4 }
 0xc08   : > { %6537 = vpow2.f32 %v3795_v41 }
 0xc09   : > { %v9557_v57 = vpop.eup %6527  ;;  %3863 = vperm.xlu0 %6284, %v9435_v5   ;;  %6539 = vpow2.f32 %v3943_v12  ;;  %v3955_v12 = vld [vmem:[#allocation5 + $0x30] sm:$0xff] }
 0xc0a   : > { %4005 = vadd.xlane.f32.xlu2 %v9557_v57  ;;  %v9571_v18 = vpop.eup %6529  ;;  %6541 = vpow2.f32 %v3801_v36 }
 0xc0b   : > { %v9581_v28 = vpop.eup %6531 }
 0xc0c   : > { %v9586_v62 = vpop.eup %6533 }
 0xc0d   : > { %v9594_v11 = vpop.eup %6535 }
 0xc11   : > { %3878 = vperm.xlu0 %6284, %v9459_v47  }
 0xc19   : > { %3893 = vperm.xlu0 %6284, %v9508_v23  }
 0xc40   : > { %v3756_v63 = vpop.xlane.xlu0 %3755 }
 0xc41   : > { %v9569_v34 = vmax.f32 %v9566_v56, %v3756_v63  ;;  %v9601_v63 = vpop.eup %6537 }
 0xc42   : > { %v9603_v30 = vpop.eup %6539  ;;  %v3968_v53 = vmul.f32 %v9601_v63, %v3952_v25 }
 0xc43   : > { %v3788_v54 = vsub.f32 %v9566_v56, %v9569_v34  ;;  %4383 = vst.msk [vmem:[#allocation4 + $0x78] sm:$0xff] %vm4029_vm14, %v9569_v34  ;;  %3983 = vadd.xlane.f32.xlu0 %v9571_v18  ;;  %3898 = vperm.xlu1 %6283, %v9569_v34   ;;  %v9613_v19 = vpop.eup %6541 }
 0xc44   : > { %v3971_v4 = vmul.f32 %v9613_v19, %v3955_v12 }
 0xc4b   : > { %3989 = vadd.xlane.f32.xlu0 %v9581_v28 }
 0xc53   : > { %3995 = vadd.xlane.f32.xlu0 %v9586_v62  ;;  %v6292_v10 = vpop.permute.xlu0 %6291 }
 0xc54   : > { %v6293_v33 = vunpack.i.l.bf16 %v6292_v10  ;;  %v6294_v1 = vunpack.i.h.bf16 %v6292_v10 }
 0xc56   : > { %4208 = vmatpush.msrb.mxu0 %v6293_v33  ;;  %v3807_v33 = vmul.f32 1.442695, %v3782_v61 }
 0xc58   : > { %4209 = vmatpush.msrb.mxu0 %v6294_v1  ;;  %6543 = vpow2.f32 %v3807_v33  ;;  %v3785_v1 = vsub.f32 %v9449_v44, %v9456_v39  ;;  %v3958_v39 = vld [vmem:[#allocation5 + $0x48] sm:$0xff] }
 0xc5a   : > { %4210 = vmatpush.msrb.mxu0 %v6298_v3  ;;  %v3813_v36 = vmul.f32 1.442695, %v3785_v1 }
 0xc5b   : > { %4001 = vadd.xlane.f32.xlu0 %v9594_v11  ;;  %v6302_v14 = vpop.permute.xlu0 %6301 }
 0xc5c   : > { %4211 = vmatpush.msrb.mxu0 %v6299_v17  ;;  %v6303_v35 = vunpack.i.l.bf16 %v6302_v14  ;;  %v6304_v59 = vunpack.i.h.bf16 %v6302_v14  ;;  %v6323_v17 = vunpack.i.l.bf16 %v9499_v49 }
 0xc5e   : > { %4212 = vmatpush.msrb.mxu0 %v6303_v35  ;;  %v9622_v44 = vpop.eup %6543 }
 0xc60   : > { %4213 = vmatpush.msrb.mxu0 %v6304_v59  ;;  %v6324_v59 = vunpack.i.h.bf16 %v9499_v49 }
 0xc62   : > { %4214 = vmatpush.msrb.mxu0 %v6308_v22 }
 0xc63   : > { %4007 = vadd.xlane.f32.xlu0 %v9603_v30  ;;  %v6317_v43 = vpop.permute.xlu0 %6316 }
 0xc64   : > { %4215 = vmatpush.msrb.mxu0 %v6309_v37  ;;  %v6318_v16 = vunpack.i.l.bf16 %v6317_v43  ;;  %v6319_v24 = vunpack.i.h.bf16 %v6317_v43  ;;  %v3974_v37 = vmul.f32 %v9622_v44, %v3958_v39 }
 0xc65   : > { %v3988_v31 = vpop.xlane.xlu2 %3987 }
 0xc66   : > { %v4016_v10 = vadd.f32 %v3988_v31, %v3968_v53  ;;  %4216 = vmatpush.msrb.mxu0 %v6313_v46  ;;  %v3961_v31 = vld [vmem:[#allocation5 + $0x60] sm:$0xff] }
 0xc68   : > { %4033 = vst.msk [vmem:[#allocation5 + $0x18] sm:$0xff] %vm4029_vm14, %v4016_v10  ;;  %4217 = vmatpush.msrb.mxu0 %v6314_v38 }
 0xc6a   : > { %4218 = vmatpush.msrb.mxu0 %v6318_v16 }
 0xc6b   : > { %v3834_v41 = vpop.permute.xlu0 %3833 }
 0xc6c   : > { %v3903_v3 = vsub.f32 %v9295_v42, %v3834_v41  ;;  %4219 = vmatpush.msrb.mxu0 %v6319_v24 }
 0xc6d   : > { %v3994_v50 = vpop.xlane.xlu2 %3993 }
 0xc6e   : > { %v3921_v14 = vmul.f32 1.442695, %v3903_v3  ;;  %v4019_v35 = vadd.f32 %v3994_v50, %v3971_v4  ;;  %4220 = vmatpush.msrb.mxu0 %v6323_v17 }
 0xc70   : > { %6545 = vpow2.f32 %v3921_v14  ;;  %4036 = vst.msk [vmem:[#allocation5 + $0x30] sm:$0xff] %vm4029_vm14, %v4019_v35  ;;  %4221 = vmatpush.msrb.mxu0 %v6324_v59  ;;  %v3774_v14 = vsub.f32 %v9377_v52, %v9380_v32  ;;  %v11026_v59 = vld [vmem:[#allocation86_spill] sm:$0xff] }
 0xc71   : > { %4222 = vmatmul.f32.vlgmr.msrb.gmra.mxu0 %v9480_v21  ;;  %6547 = vpow2.f32 %v3813_v36  ;;  %v11022_v21 = vsub.f32 %v9384_v7, %v9387_v40  ;;  %v11023_v7 = vsub.f32 %v9405_v27, %v9414_v6  ;;  %v3781_v36 = vsub.f32 %v11026_v59, %v9435_v5  ;;  %v3953_v5 = vld [vmem:[#allocation5 + $0x20] sm:$0xff]  ;;  %v3963_v59 = vld [vmem:[#allocation5 + $0x70] sm:$0xff] }
 0xc73   : > { %v3849_v42 = vpop.permute.xlu0 %3848  ;;  %v3803_v40 = vmul.f32 1.442695, %v11023_v7  ;;  %v3805_v39 = vmul.f32 1.442695, %v3781_v36  ;;  %v11030_v7 = vld [vmem:[#allocation91_spill] sm:$0xff] }
 0xc74   : > { %v3906_v22 = vsub.f32 %v9308_v55, %v3849_v42  ;;  %v3797_v55 = vmul.f32 1.442695, %v11022_v21  ;;  %v3950_v42 = vld [vmem:[#allocation5 + $0x8] sm:$0xff] }
 0xc75   : > { %v4000_v61 = vpop.xlane.xlu2 %3999 }
 0xc76   : > { %v6546_v43 = vpop.eup %6545  ;;  %v3927_v25 = vmul.f32 1.442695, %v3906_v22  ;;  %v4022_v49 = vadd.f32 %v4000_v61, %v3974_v37 }
 0xc77   : > { %4064 = vperm.xlu0 %6284, %v9519_v0   ;;  %3985 = vadd.xlane.f32.xlu1 %v6546_v43  ;;  %v9629_v53 = vpop.eup %6547 }
 0xc78   : > { %6549 = vpow2.f32 %v3927_v25  ;;  %4039 = vst.msk [vmem:[#allocation5 + $0x48] sm:$0xff] %vm4029_vm14, %v4022_v49  ;;  %v3977_v38 = vmul.f32 %v9629_v53, %v3961_v31 }
 0xc79   : > { %4225 = vmatmul.f32.gmra.mxu0 %v9571_v18  ;;  %6551 = vpow2.f32 %v3797_v55 }
 0xc7b   : > { %v3864_v46 = vpop.permute.xlu0 %3863 }
 0xc7c   : > { %v3909_v10 = vsub.f32 %v9326_v2, %v3864_v46 }
 0xc7d   : > { %v4006_v33 = vpop.xlane.xlu2 %4005 }
 0xc7e   : > { %v6550_v0 = vpop.eup %6549  ;;  %v3933_v16 = vmul.f32 1.442695, %v3909_v10  ;;  %v4025_v24 = vadd.f32 %v4006_v33, %v3977_v38  ;;  %v11029_v10 = vld [vmem:[#allocation94_spill] sm:$0xff] }
 0xc7f   : > { %4079 = vperm.xlu0 %6284, %v9601_v63   ;;  %3991 = vadd.xlane.f32.xlu1 %v6550_v0  ;;  %v6552_v1 = vpop.eup %6551  ;;  %v11024_v63 = vsub.f32 %v9429_v8, %v9438_v58  ;;  %v3787_v38 = vsub.f32 %v11029_v10, %v9508_v23  ;;  %v3775_v23 = vsub.f32 %v11030_v7, %v9392_v15  ;;  %v3951_v15 = vld [vmem:[#allocation5 + $0x10] sm:$0xff] }
 0xc80   : > { %6553 = vpow2.f32 %v3933_v16  ;;  %4042 = vst.msk [vmem:[#allocation5 + $0x60] sm:$0xff] %vm4029_vm14, %v4025_v24  ;;  %v3969_v49 = vmul.f32 %v6552_v1, %v3953_v5 }
 0xc81   : > { %4228 = vmatmul.f32.gmra.mxu0 %v6546_v43  ;;  %6555 = vpow2.f32 %v3803_v40  ;;  %v3809_v3 = vmul.f32 1.442695, %v11024_v63  ;;  %v3959_v40 = vld [vmem:[#allocation5 + $0x50] sm:$0xff] }
 0xc83   : > { %v3879_v18 = vpop.permute.xlu0 %3878 }
 0xc84   : > { %v3912_v2 = vsub.f32 %v9343_v13, %v3879_v18 }
 0xc86   : > { %v6554_v41 = vpop.eup %6553  ;;  %v3939_v12 = vmul.f32 1.442695, %v3912_v2  ;;  %v3793_v2 = vmul.f32 1.442695, %v3775_v23 }
 0xc87   : > { %4084 = vperm.xlu0 %6284, %v6552_v1   ;;  %3997 = vadd.xlane.f32.xlu1 %v6554_v41  ;;  %v6556_v6 = vpop.eup %6555 }
 0xc88   : > { %6557 = vpow2.f32 %v3939_v12  ;;  %v3962_v12 = vld [vmem:[#allocation5 + $0x68] sm:$0xff] }
 0xc89   : > { %4231 = vmatmul.f32.gmra.mxu0 %v9543_v60  ;;  %6559 = vpow2.f32 %v3809_v3  ;;  %v11025_v60 = vsub.f32 %v9453_v9, %v9462_v45  ;;  %v3778_v9 = vsub.f32 %v9403_v29, %v9411_v26 }
 0xc8b   : > { %v3894_v4 = vpop.permute.xlu0 %3893  ;;  %v3815_v50 = vmul.f32 1.442695, %v11025_v60  ;;  %v3799_v45 = vmul.f32 1.442695, %v3778_v9 }
 0xc8c   : > { %v3915_v27 = vsub.f32 %v9476_v51, %v3894_v4 }
 0xc8e   : > { %v9648_v17 = vpop.eup %6557  ;;  %v3945_v13 = vmul.f32 1.442695, %v3915_v27 }
 0xc8f   : > { %4099 = vperm.xlu0 %6284, %v6556_v6   ;;  %4003 = vadd.xlane.f32.xlu1 %v9648_v17  ;;  %v6560_v8 = vpop.eup %6559 }
 0xc90   : > { %6561 = vpow2.f32 %v3945_v13  ;;  %v3975_v18 = vmul.f32 %v6560_v8, %v3959_v40  ;;  %v3819_v13 = vmul.f32 1.442695, %v3788_v54 }
 0xc91   : > { %4234 = vmatmul.f32.gmra.mxu0 %v9581_v28  ;;  %6563 = vpow2.f32 %v3815_v50  ;;  %v3791_v28 = vmul.f32 1.442695, %v3774_v14 }
 0xc93   : > { %6565 = vpow2.f32 %v3791_v28 }
 0xc94   : > { %6567 = vpow2.f32 %v3799_v45 }
 0xc95   : > { %6569 = vpow2.f32 %v3805_v39 }
 0xc96   : > { %v9655_v58 = vpop.eup %6561 }
 0xc97   : > { %4114 = vperm.xlu0 %6284, %v6560_v8   ;;  %4009 = vadd.xlane.f32.xlu1 %v9655_v58  ;;  %v9658_v51 = vpop.eup %6563 }
 0xc98   : > { %v3978_v63 = vmul.f32 %v9658_v51, %v3962_v12 }
 0xc99   : > { %4237 = vmatmul.f32.gmra.mxu0 %v6550_v0  ;;  %v6566_v35 = vpop.eup %6565 }
 0xc9a   : > { %v3966_v32 = vmul.f32 %v6566_v35, %v3950_v42  ;;  %v9670_v61 = vpop.eup %6567 }
 0xc9b   : > { %v6570_v55 = vpop.eup %6569 }
 0xc9f   : > { %4129 = vperm.xlu0 %6284, %v9658_v51   ;;  %v3957_v51 = vld [vmem:[#allocation5 + $0x40] sm:$0xff] }
 0xca0   : > { %v3973_v56 = vmul.f32 %v6570_v55, %v3957_v51 }
 0xca1   : > { %4240 = vmatmul.f32.gmra.mxu0 %v9548_v48  ;;  %v11027_v48 = vld [vmem:[#allocation89_spill] sm:$0xff] }
 0xca9   : > { %4243 = vmatmul.f32.gmra.mxu0 %v9586_v62  ;;  %v11028_v62 = vld [vmem:[#allocation81_spill] sm:$0xff] }
 0xcaa   : > { %v3784_v43 = vsub.f32 %v11028_v62, %v9459_v47  ;;  %v3956_v47 = vld [vmem:[#allocation5 + $0x38] sm:$0xff] }
 0xcab   : > { %v3972_v33 = vmul.f32 %v6556_v6, %v3956_v47 }
 0xcac   : > { %v3811_v25 = vmul.f32 1.442695, %v3784_v43 }
 0xcb0   : > { %4069 = vperm.xlu1 %6283, %v6566_v35  }
 0xcb1   : > { %4246 = vmatmul.f32.gmra.mxu0 %v6554_v41 }
 0xcb5   : > { %v3899_v52 = vpop.permute.xlu1 %3898 }
 0xcb6   : > { %v3916_v22 = vsub.f32 %v11027_v48, %v3899_v52  ;;  %v3984_v37 = vpop.xlane.xlu0 %3983 }
 0xcb7   : > { %v4014_v29 = vadd.f32 %v3984_v37, %v3966_v32 }
 0xcb8   : > { %v3947_v26 = vmul.f32 1.442695, %v3916_v22  ;;  %4089 = vperm.xlu1 %6283, %v9670_v61  }
 0xcb9   : > { %4031 = vst.msk [vmem:[#allocation5 + $0x8] sm:$0xff] %vm4029_vm14, %v4014_v29  ;;  %4249 = vmatmul.f32.gmra.mxu0 %v9553_v20  ;;  %v3817_v20 = vmul.f32 1.442695, %v3787_v38 }
 0xcba   : > { %6571 = vpow2.f32 %v3947_v26  ;;  %v3964_v26 = vld [vmem:[#allocation5 + $0x78] sm:$0xff] }
 0xcbb   : > { %6573 = vpow2.f32 %v3811_v25 }
 0xcbc   : > { %6575 = vpow2.f32 %v3817_v20 }
 0xcbd   : > { %6577 = vpow2.f32 %v3793_v2 }
 0xcbe   : > { %v3990_v21 = vpop.xlane.xlu0 %3989  ;;  %6579 = vpow2.f32 %v3819_v13 }
 0xcbf   : > { %v4017_v46 = vadd.f32 %v3990_v21, %v3969_v49 }
 0xcc0   : > { %v6572_v31 = vpop.eup %6571  ;;  %4104 = vperm.xlu1 %6283, %v6570_v55  }
 0xcc1   : > { %4034 = vst.msk [vmem:[#allocation5 + $0x20] sm:$0xff] %vm4029_vm14, %v4017_v46  ;;  %4011 = vadd.xlane.f32.xlu2 %v6572_v31  ;;  %4252 = vmatmul.f32.gmra.mxu0 %v9594_v11  ;;  %v6574_v16 = vpop.eup %6573 }
 0xcc2   : > { %v6576_v11 = vpop.eup %6575 }
 0xcc3   : > { %v6578_v27 = vpop.eup %6577  ;;  %v3979_v36 = vmul.f32 %v6576_v11, %v3963_v59  ;;  %v4052_v59 = vld [vmem:[#allocation6 + $0x30] sm:$0xff] }
 0xcc6   : > { %v3996_v0 = vpop.xlane.xlu0 %3995 }
 0xcc7   : > { %v4020_v24 = vadd.f32 %v3996_v0, %v3972_v33 }
 0xcc8   : > { %4119 = vperm.xlu1 %6283, %v6574_v16  }
 0xcc9   : > { %4037 = vst.msk [vmem:[#allocation5 + $0x38] sm:$0xff] %vm4029_vm14, %v4020_v24  ;;  %4255 = vmatmul.f32.gmra.mxu0 %v9648_v17 }
 0xcce   : > { %v4002_v1 = vpop.xlane.xlu0 %4001 }
 0xccf   : > { %v4023_v41 = vadd.f32 %v4002_v1, %v3975_v18  ;;  %v4046_v1 = vld [vmem:[#allocation6] sm:$0xff] }
 0xcd0   : > { %4134 = vperm.xlu1 %6283, %v6576_v11  }
 0xcd1   : > { %4040 = vst.msk [vmem:[#allocation5 + $0x50] sm:$0xff] %vm4029_vm14, %v4023_v41  ;;  %4258 = vmatmul.f32.gmra.mxu0 %v9557_v57  ;;  %v3967_v57 = vmul.f32 %v6578_v27, %v3951_v15 }
 0xcd6   : > { %v4008_v3 = vpop.xlane.xlu0 %4007 }
 0xcd7   : > { %v4026_v4 = vadd.f32 %v4008_v3, %v3978_v63  ;;  %v4048_v63 = vld [vmem:[#allocation6 + $0x10] sm:$0xff] }
 0xcd9   : > { %4043 = vst.msk [vmem:[#allocation5 + $0x68] sm:$0xff] %vm4029_vm14, %v4026_v4  ;;  %4074 = vperm.xlu2 %6282, %v6578_v27   ;;  %4261 = vmatmul.f32.gmra.mxu0 %v9603_v30  ;;  %v3954_v30 = vld [vmem:[#allocation5 + $0x28] sm:$0xff] }
 0xce1   : > { %4094 = vperm.xlu2 %6282, %v9613_v19   ;;  %4264 = vmatmul.f32.gmra.mxu0 %v9655_v58  ;;  %v3970_v19 = vmul.f32 %v9670_v61, %v3954_v30  ;;  %v6580_v58 = vpop.eup %6579  ;;  %v4051_v30 = vld [vmem:[#allocation6 + $0x28] sm:$0xff] }
 0xce2   : > { %v3980_v62 = vmul.f32 %v6580_v58, %v3964_v26 }
 0xce9   : > { %4109 = vperm.xlu2 %6282, %v9622_v44   ;;  %4267 = vmatmul.f32.gmra.mxu0 %v6572_v31  ;;  %v4065_v37 = vpop.permute.xlu0 %4064 }
 0xcea   : > { %v3986_v6 = vpop.xlane.xlu1 %3985  ;;  %v4142_v11 = vmul.f32 %v4065_v37, %v4046_v1  ;;  %v4057_v37 = vld [vmem:[#allocation6 + $0x58] sm:$0xff] }
 0xceb   : > { %v4015_v17 = vadd.f32 %v3986_v6, %v3967_v57  ;;  %v4047_v6 = vld [vmem:[#allocation6 + $0x8] sm:$0xff] }
 0xced   : > { %4032 = vst.msk [vmem:[#allocation5 + $0x10] sm:$0xff] %vm4029_vm14, %v4015_v17 }
 0xcee   : > { %v4223_v60 = vpop.f32.mrf.mxu0 }
 0xcef   : > { %4287 = vrot.lane.b32.xlu0 %v4223_v60, %s6998_s5 }
 0xcf1   : > { %4124 = vperm.xlu2 %6282, %v9629_v53   ;;  %v3960_v53 = vld [vmem:[#allocation5 + $0x58] sm:$0xff]  ;;  %v4080_v29 = vpop.permute.xlu0 %4079 }
 0xcf2   : > { %v3992_v44 = vpop.xlane.xlu1 %3991  ;;  %v3976_v28 = vmul.f32 %v6574_v16, %v3960_v53 }
 0xcf3   : > { %v4018_v50 = vadd.f32 %v3992_v44, %v3970_v19 }
 0xcf5   : > { %4035 = vst.msk [vmem:[#allocation5 + $0x28] sm:$0xff] %vm4029_vm14, %v4018_v50 }
 0xcf6   : > { %v4226_v8 = vpop.f32.mrf.mxu0 }
 0xcf7   : > { %4289 = vrot.lane.b32.xlu1 %v4226_v8, %s6998_s5  ;;  %v4049_v8 = vld [vmem:[#allocation6 + $0x18] sm:$0xff] }
 0xcf9   : > { %4139 = vperm.xlu2 %6282, %v6580_v58   ;;  %v4085_v21 = vpop.permute.xlu0 %4084  ;;  %v4145_v58 = vmul.f32 %v4080_v29, %v4049_v8 }
 0xcfa   : > { %v3998_v34 = vpop.xlane.xlu1 %3997 }
 0xcfb   : > { %v4021_v54 = vadd.f32 %v3998_v34, %v3973_v56  ;;  %v4050_v34 = vld [vmem:[#allocation6 + $0x20] sm:$0xff] }
 0xcfd   : > { %4038 = vst.msk [vmem:[#allocation5 + $0x40] sm:$0xff] %vm4029_vm14, %v4021_v54  ;;  %v4146_v54 = vmul.f32 %v4085_v21, %v4050_v34 }
 0xcfe   : > { %v4229_v14 = vpop.f32.mrf.mxu0 }
 0xd01   : > { %4291 = vrot.lane.b32.xlu2 %v4229_v14, %s6998_s5  ;;  %v4100_v38 = vpop.permute.xlu0 %4099 }
 0xd02   : > { %v4004_v9 = vpop.xlane.xlu1 %4003 }
 0xd03   : > { %v4024_v45 = vadd.f32 %v4004_v9, %v3976_v28  ;;  %v4054_v28 = vld [vmem:[#allocation6 + $0x40] sm:$0xff] }
 0xd05   : > { %4041 = vst.msk [vmem:[#allocation5 + $0x58] sm:$0xff] %vm4029_vm14, %v4024_v45 }
 0xd06   : > { %v4232_v35 = vpop.f32.mrf.mxu0 }
 0xd07   : > { %4293 = vrot.lane.b32.xlu0 %v4232_v35, %s6998_s5 }
 0xd09   : > { %v9718_v16 = vpop.permute.xlu0 %4114 }
 0xd0a   : > { %v4010_v42 = vpop.xlane.xlu1 %4009 }
 0xd0b   : > { %v4027_v39 = vadd.f32 %v4010_v42, %v3979_v36 }
 0xd0d   : > { %4044 = vst.msk [vmem:[#allocation5 + $0x70] sm:$0xff] %vm4029_vm14, %v4027_v39 }
 0xd0e   : > { %v4235_v52 = vpop.f32.mrf.mxu0 }
 0xd0f   : > { %4295 = vrot.lane.b32.xlu1 %v4235_v52, %s6998_s5  ;;  %v4053_v52 = vld [vmem:[#allocation6 + $0x38] sm:$0xff] }
 0xd11   : > { %v9724_v40 = vpop.permute.xlu0 %4129 }
 0xd16   : > { %v4238_v32 = vpop.f32.mrf.mxu0 }
 0xd17   : > { %4297 = vrot.lane.b32.xlu2 %v4238_v32, %s6998_s5  ;;  %v4149_v32 = vmul.f32 %v4100_v38, %v4053_v52 }
 0xd1e   : > { %v4241_v48 = vpop.f32.mrf.mxu0 }
 0xd1f   : > { %4299 = vrot.lane.b32.xlu0 %v4241_v48, %s6998_s5 }
 0xd22   : > { %v4070_v49 = vpop.permute.xlu1 %4069 }
 0xd23   : > { %v4143_v17 = vmul.f32 %v4070_v49, %v4047_v6  ;;  %v4056_v49 = vld [vmem:[#allocation6 + $0x50] sm:$0xff] }
 0xd24   : > { %v4152_v21 = vmul.f32 %v9718_v16, %v4056_v49 }
 0xd26   : > { %v4244_v22 = vpop.f32.mrf.mxu0 }
 0xd27   : > { %4301 = vrot.lane.b32.xlu1 %v4244_v22, %s6998_s5 }
 0xd2a   : > { %v4090_v31 = vpop.permute.xlu1 %4089 }
 0xd2b   : > { %v4147_v19 = vmul.f32 %v4090_v31, %v4051_v30  ;;  %v4060_v31 = vld [vmem:[#allocation6 + $0x70] sm:$0xff] }
 0xd2e   : > { %v4247_v61 = vpop.f32.mrf.mxu0 }
 0xd2f   : > { %4303 = vrot.lane.b32.xlu2 %v4247_v61, %s6998_s5 }
 0xd32   : > { %v4105_v33 = vpop.permute.xlu1 %4104 }
 0xd33   : > { %v4150_v9 = vmul.f32 %v4105_v33, %v4054_v28  ;;  %v4058_v33 = vld [vmem:[#allocation6 + $0x60] sm:$0xff] }
 0xd34   : > { %v4012_v43 = vpop.xlane.xlu2 %4011 }
 0xd35   : > { %v4028_v5 = vadd.f32 %v4012_v43, %v3980_v62  ;;  %v4055_v62 = vld [vmem:[#allocation6 + $0x48] sm:$0xff] }
 0xd36   : > { %v4250_v25 = vpop.f32.mrf.mxu0 }
 0xd37   : > { %4045 = vst.msk [vmem:[#allocation5 + $0x78] sm:$0xff] %vm4029_vm14, %v4028_v5  ;;  %4305 = vrot.lane.b32.xlu0 %v4250_v25, %s6998_s5 }
 0xd3a   : > { %v4120_v23 = vpop.permute.xlu1 %4119 }
 0xd3b   : > { %v4153_v61 = vmul.f32 %v4120_v23, %v4057_v37  ;;  %v4059_v23 = vld [vmem:[#allocation6 + $0x68] sm:$0xff] }
 0xd3c   : > { %v4075_v55 = vpop.permute.xlu2 %4074  ;;  %v4155_v16 = vmul.f32 %v9724_v40, %v4059_v23 }
 0xd3d   : > { %v4144_v4 = vmul.f32 %v4075_v55, %v4048_v63 }
 0xd3e   : > { %v4253_v46 = vpop.f32.mrf.mxu0 }
 0xd3f   : > { %4307 = vrot.lane.b32.xlu1 %v4253_v46, %s6998_s5 }
 0xd42   : > { %v9729_v41 = vpop.permute.xlu1 %4134 }
 0xd44   : > { %v4095_v10 = vpop.permute.xlu2 %4094 }
 0xd45   : > { %v4148_v36 = vmul.f32 %v4095_v10, %v4052_v59  ;;  %v4156_v10 = vmul.f32 %v9729_v41, %v4060_v31 }
 0xd46   : > { %v4256_v47 = vpop.f32.mrf.mxu0 }
 0xd47   : > { %4309 = vrot.lane.b32.xlu2 %v4256_v47, %s6998_s5 }
 0xd4c   : > { %v9716_v20 = vpop.permute.xlu2 %4109 }
 0xd4d   : > { %v4151_v43 = vmul.f32 %v9716_v20, %v4055_v62 }
 0xd4e   : > { %v4259_v0 = vpop.f32.mrf.mxu0 }
 0xd4f   : > { %4311 = vrot.lane.b32.xlu0 %v4259_v0, %s6998_s5 }
 0xd54   : > { %v9721_v24 = vpop.permute.xlu2 %4124 }
 0xd55   : > { %v4154_v20 = vmul.f32 %v9721_v24, %v4058_v33 }
 0xd56   : > { %v4262_v7 = vpop.f32.mrf.mxu0 }
 0xd57   : > { %4313 = vrot.lane.b32.xlu1 %v4262_v7, %s6998_s5 }
 0xd5c   : > { %v9726_v18 = vpop.permute.xlu2 %4139 }
 0xd5e   : > { %v4265_v2 = vpop.f32.mrf.mxu0 }
 0xd5f   : > { %4315 = vrot.lane.b32.xlu2 %v4265_v2, %s6998_s5 }
 0xd61   : > { %v4288_v12 = vpop.permute.xlu0 %4287 }
 0xd62   : > { %v4335_v3 = vadd.f32 %v4288_v12, %v4142_v11  ;;  %v4061_v11 = vld [vmem:[#allocation6 + $0x78] sm:$0xff] }
 0xd63   : > { %v4157_v41 = vmul.f32 %v9726_v18, %v4061_v11 }
 0xd64   : > { %4352 = vst.msk [vmem:[#allocation6] sm:$0xff] %vm4351_vm10, %v4335_v3  ;;  %v4292_v27 = vpop.permute.xlu2 %4291 }
 0xd65   : > { %v4337_v15 = vadd.f32 %v4292_v27, %v4144_v4 }
 0xd66   : > { %v4268_v57 = vpop.f32.mrf.mxu0 }
 0xd67   : > { %4354 = vst.msk [vmem:[#allocation6 + $0x10] sm:$0xff] %vm4351_vm10, %v4337_v15  ;;  %4317 = vrot.lane.b32.xlu0 %v4268_v57, %s6998_s5 }
 0xd69   : > { %v4290_v13 = vpop.permute.xlu1 %4289 }
 0xd6a   : > { %v4336_v60 = vadd.f32 %v4290_v13, %v4143_v17 }
 0xd6c   : > { %4353 = vst.msk [vmem:[#allocation6 + $0x8] sm:$0xff] %vm4351_vm10, %v4336_v60 }
 0xd71   : > { %v4298_v44 = vpop.permute.xlu2 %4297 }
 0xd72   : > { %v4340_v50 = vadd.f32 %v4298_v44, %v4147_v19 }
 0xd74   : > { %4357 = vst.msk [vmem:[#allocation6 + $0x28] sm:$0xff] %vm4351_vm10, %v4340_v50 }
 0xd79   : > { %v4294_v51 = vpop.permute.xlu0 %4293 }
 0xd7a   : > { %v4338_v56 = vadd.f32 %v4294_v51, %v4145_v58 }
 0xd7c   : > { %4355 = vst.msk [vmem:[#allocation6 + $0x18] sm:$0xff] %vm4351_vm10, %v4338_v56 }
 0xd81   : > { %v4296_v14 = vpop.permute.xlu1 %4295 }
 0xd82   : > { %v4339_v53 = vadd.f32 %v4296_v14, %v4146_v54 }
 0xd84   : > { %4356 = vst.msk [vmem:[#allocation6 + $0x20] sm:$0xff] %vm4351_vm10, %v4339_v53 }
 0xd89   : > { %v4304_v45 = vpop.permute.xlu2 %4303 }
 0xd8a   : > { %v4343_v35 = vadd.f32 %v4304_v45, %v4150_v9 }
 0xd8c   : > { %4360 = vst.msk [vmem:[#allocation6 + $0x40] sm:$0xff] %vm4351_vm10, %v4343_v35 }
 0xd91   : > { %v4300_v42 = vpop.permute.xlu0 %4299 }
 0xd92   : > { %v4341_v39 = vadd.f32 %v4300_v42, %v4148_v36 }
 0xd94   : > { %4358 = vst.msk [vmem:[#allocation6 + $0x30] sm:$0xff] %vm4351_vm10, %v4341_v39 }
 0xd99   : > { %v4302_v48 = vpop.permute.xlu1 %4301 }
 0xd9a   : > { %v4342_v22 = vadd.f32 %v4302_v48, %v4149_v32 }
 0xd9c   : > { %4359 = vst.msk [vmem:[#allocation6 + $0x38] sm:$0xff] %vm4351_vm10, %v4342_v22 }
 0xda1   : > { %v4310_v29 = vpop.permute.xlu2 %4309 }
 0xda2   : > { %v4346_v26 = vadd.f32 %v4310_v29, %v4153_v61 }
 0xda4   : > { %4363 = vst.msk [vmem:[#allocation6 + $0x58] sm:$0xff] %vm4351_vm10, %v4346_v26 }
 0xda9   : > { %v4306_v5 = vpop.permute.xlu0 %4305 }
 0xdaa   : > { %v4344_v25 = vadd.f32 %v4306_v5, %v4151_v43 }
 0xdac   : > { %4361 = vst.msk [vmem:[#allocation6 + $0x48] sm:$0xff] %vm4351_vm10, %v4344_v25 }
 0xdb1   : > { %v4308_v55 = vpop.permute.xlu1 %4307 }
 0xdb2   : > { %v4345_v46 = vadd.f32 %v4308_v55, %v4152_v21 }
 0xdb4   : > { %4362 = vst.msk [vmem:[#allocation6 + $0x50] sm:$0xff] %vm4351_vm10, %v4345_v46 }
 0xdb9   : > { %v4316_v38 = vpop.permute.xlu2 %4315 }
 0xdba   : > { %v4349_v47 = vadd.f32 %v4316_v38, %v4156_v10 }
 0xdbc   : > { %4366 = vst.msk [vmem:[#allocation6 + $0x70] sm:$0xff] %vm4351_vm10, %v4349_v47 }
 0xdc1   : > { %v4312_v0 = vpop.permute.xlu0 %4311 }
 0xdc2   : > { %v4347_v7 = vadd.f32 %v4312_v0, %v4154_v20 }
 0xdc4   : > { %4364 = vst.msk [vmem:[#allocation6 + $0x60] sm:$0xff] %vm4351_vm10, %v4347_v7 }
 0xdc9   : > { %v4314_v2 = vpop.permute.xlu1 %4313 }
 0xdca   : > { %v4348_v1 = vadd.f32 %v4314_v2, %v4155_v16 }
 0xdcc   : > { %4365 = vst.msk [vmem:[#allocation6 + $0x68] sm:$0xff] %vm4351_vm10, %v4348_v1 }
 0xdd8   : > { %4387 = sbr.rel (%p5886_p0) target bundleno = 4155 (0x103b), region = 106 }
 0xdd9   : > { %v4318_v12 = vpop.permute.xlu0 %4317 }
 0xdda   : > { %v4350_v63 = vadd.f32 %v4318_v12, %v4157_v41 }
 0xddc   : > { %4367 = vst.msk [vmem:[#allocation6 + $0x78] sm:$0xff] %vm4351_vm10, %v4350_v63 }
 0xddd   : > { %v4392_v24 = vld [vmem:[#allocation5 + $0x20] sm:$0xff]  ;;  %v4390_v3 = vld [vmem:[#allocation5 + $0x10] sm:$0xff]  ;;  %v7003_v27 = vmov 0   ;;  %v4393_v40 = vld [vmem:[#allocation5 + $0x28] sm:$0xff]  ;;  %v7004_v32 = vmov 1   ;;  %v7005_v48 = vmov 2  }
 0xdde   : > { %v4388_v4 = vld [vmem:[#allocation5] sm:$0xff]  ;;  %6583 = vset.pattern.permute.xlu2 %v7003_v27  ;;  %6582 = vset.pattern.permute.xlu1 %v7003_v27  ;;  %6615 = vrcp.f32 %v4392_v24  ;;  %v4391_v15 = vld [vmem:[#allocation5 + $0x18] sm:$0xff]  ;;  %v4389_v18 = vld [vmem:[#allocation5 + $0x8] sm:$0xff]  ;;  %v7006_v22 = vmov 3   ;;  %vm11032_vm7 = vcmask 261120  }
 0xddf   : > { %6617 = vrcp.f32 %v4390_v3  ;;  %6581 = vset.pattern.permute.xlu0 %v7003_v27  ;;  %v4396_v13 = vld [vmem:[#allocation5 + $0x40] sm:$0xff]  ;;  %v4395_v30 = vld [vmem:[#allocation5 + $0x38] sm:$0xff]  ;;  %v4394_v44 = vld [vmem:[#allocation5 + $0x30] sm:$0xff] }
 0xde0   : > { %6619 = vrcp.f32 %v4388_v4  ;;  %v4399_v8 = vld [vmem:[#allocation5 + $0x58] sm:$0xff]  ;;  %v4398_v51 = vld [vmem:[#allocation5 + $0x50] sm:$0xff]  ;;  %v4397_v34 = vld [vmem:[#allocation5 + $0x48] sm:$0xff] }
 0xde1   : > { %6621 = vrcp.f32 %v4393_v40  ;;  %v4402_v14 = vld [vmem:[#allocation5 + $0x70] sm:$0xff]  ;;  %v4401_v28 = vld [vmem:[#allocation5 + $0x68] sm:$0xff]  ;;  %v4400_v45 = vld [vmem:[#allocation5 + $0x60] sm:$0xff] }
 0xde2   : > { %6623 = vrcp.f32 %v4391_v15  ;;  %v4403_v42 = vld [vmem:[#allocation5 + $0x78] sm:$0xff]  ;;  %v9815_v37 = vld [vmem:[#allocation6 + $0x20] sm:$0xff]  ;;  %v9822_v43 = vld [vmem:[#allocation6 + $0x28] sm:$0xff] }
 0xde3   : > { %6625 = vrcp.f32 %v4389_v18  ;;  %v9830_v31 = vld [vmem:[#allocation6 + $0x40] sm:$0xff]  ;;  %v9841_v23 = vld [vmem:[#allocation6 + $0x58] sm:$0xff]  ;;  %v9843_v16 = vld [vmem:[#allocation6 + $0x10] sm:$0xff] }
 0xde4   : > { %v9755_v57 = vpop.eup %6615  ;;  %6627 = vrcp.f32 %v4396_v13  ;;  %v9845_v11 = vld [vmem:[#allocation6] sm:$0xff]  ;;  %vm11033_vm8 = vmmov %vm11032_vm7  ;;  %v9857_v13 = vld [vmem:[#allocation6 + $0x70] sm:$0xff] }
 0xde5   : > { %v9757_v6 = vpop.eup %6617  ;;  %4458 = vperm.xlu2 %6583, %v9755_v57   ;;  %6629 = vrcp.f32 %v4395_v30  ;;  %vm11034_vm12 = vmmov %vm11032_vm7 }
 0xde6   : > { %v9760_v17 = vpop.eup %6619  ;;  %4448 = vperm.xlu1 %6582, %v9757_v6   ;;  %6631 = vrcp.f32 %v4394_v44  ;;  %v9859_v44 = vld [vmem:[#allocation6 + $0x18] sm:$0xff]  ;;  %vm11035_vm14 = vmmov %vm11032_vm7 }
 0xde7   : > { %4438 = vperm.xlu0 %6581, %v9760_v17   ;;  %v9764_v60 = vpop.eup %6621  ;;  %6633 = vrcp.f32 %v4399_v8  ;;  %vm11036_vm5 = vmmov %vm11032_vm7 }
 0xde8   : > { %v9766_v19 = vpop.eup %6623  ;;  %6635 = vrcp.f32 %v4398_v51  ;;  %v9861_v51 = vld [vmem:[#allocation6 + $0x8] sm:$0xff]  ;;  %vm11037_vm2 = vmmov %vm11036_vm5 }
 0xde9   : > { %v9768_v50 = vpop.eup %6625  ;;  %6637 = vrcp.f32 %v4397_v34 }
 0xdea   : > { %v6628_v58 = vpop.eup %6627  ;;  %6639 = vrcp.f32 %v4402_v14 }
 0xdeb   : > { %v9773_v56 = vpop.eup %6629  ;;  %6641 = vrcp.f32 %v4401_v28 }
 0xdec   : > { %v9775_v54 = vpop.eup %6631  ;;  %6643 = vrcp.f32 %v4400_v45 }
 0xded   : > { %4463 = vperm.xlu2 %6583, %v9764_v60   ;;  %v9779_v53 = vpop.eup %6633  ;;  %6645 = vrcp.f32 %v4403_v42 }
 0xdee   : > { %4453 = vperm.xlu1 %6582, %v9766_v19   ;;  %v9781_v9 = vpop.eup %6635 }
 0xdef   : > { %4443 = vperm.xlu0 %6581, %v9768_v50   ;;  %v9783_v35 = vpop.eup %6637 }
 0xdf0   : > { %v9788_v59 = vpop.eup %6639 }
 0xdf1   : > { %v9790_v36 = vpop.eup %6641 }
 0xdf2   : > { %v6644_v39 = vpop.eup %6643 }
 0xdf3   : > { %v9794_v52 = vpop.eup %6645 }
 0xdf5   : > { %4478 = vperm.xlu2 %6583, %v6628_v58  }
 0xdf6   : > { %4473 = vperm.xlu1 %6582, %v9773_v56  }
 0xdf7   : > { %4468 = vperm.xlu0 %6581, %v9775_v54  }
 0xdfd   : > { %4493 = vperm.xlu2 %6583, %v9779_v53  }
 0xdfe   : > { %4488 = vperm.xlu1 %6582, %v9781_v9  }
 0xdff   : > { %4483 = vperm.xlu0 %6581, %v9783_v35  }
 0xe05   : > { %4508 = vperm.xlu2 %6583, %v9788_v59  }
 0xe06   : > { %4503 = vperm.xlu1 %6582, %v9790_v36  }
 0xe07   : > { %4498 = vperm.xlu0 %6581, %v6644_v39  }
 0xe0d   : > { %6585 = vset.pattern.permute.xlu2 %v7004_v32 }
 0xe0e   : > { %6584 = vset.pattern.permute.xlu1 %v7004_v32  ;;  %4699 = vperm.xlu2 %6585, %v9768_v50  }
 0xe0f   : > { %4694 = vperm.xlu1 %6584, %v9760_v17   ;;  %4513 = vperm.xlu0 %6581, %v9794_v52  }
 0xe16   : > { %4714 = vperm.xlu2 %6585, %v9755_v57  }
 0xe17   : > { %4709 = vperm.xlu1 %6584, %v9766_v19   ;;  %6586 = vset.pattern.permute.xlu0 %v7004_v32 }
 0xe18   : > { %4704 = vperm.xlu0 %6586, %v9757_v6  }
 0xe1e   : > { %4724 = vperm.xlu2 %6585, %v9775_v54  }
 0xe1f   : > { %4719 = vperm.xlu1 %6584, %v9764_v60  }
 0xe20   : > { %4729 = vperm.xlu0 %6586, %v9773_v56  }
 0xe26   : > { %4739 = vperm.xlu2 %6585, %v9783_v35  }
 0xe27   : > { %4734 = vperm.xlu1 %6584, %v6628_v58  }
 0xe28   : > { %4744 = vperm.xlu0 %6586, %v9781_v9  }
 0xe2e   : > { %4754 = vperm.xlu2 %6585, %v6644_v39  }
 0xe2f   : > { %4749 = vperm.xlu1 %6584, %v9779_v53  }
 0xe30   : > { %6587 = vset.pattern.permute.xlu0 %v7005_v48 }
 0xe31   : > { %4990 = vperm.xlu0 %6587, %v6628_v58  }
 0xe36   : > { %6589 = vset.pattern.permute.xlu2 %v7006_v22 }
 0xe37   : > { %6588 = vset.pattern.permute.xlu1 %v7005_v48  ;;  %5246 = vperm.xlu2 %6589, %v6628_v58  }
 0xe38   : > { %5010 = vperm.xlu1 %6588, %v6644_v39  }
 0xe39   : > { %4970 = vperm.xlu0 %6587, %v9755_v57  }
 0xe3f   : > { %6591 = vset.pattern.permute.xlu2 %v7005_v48  ;;  %v4459_v61 = vpop.permute.xlu2 %4458 }
 0xe40   : > { %v4520_v29 = vmul.f32 %v4459_v61, %v9815_v37  ;;  %6590 = vset.pattern.permute.xlu1 %v7006_v22  ;;  %4950 = vperm.xlu2 %6591, %v9760_v17  }
 0xe41   : > { %5266 = vperm.xlu1 %6590, %v6644_v39   ;;  %4955 = vperm.xlu0 %6587, %v9768_v50  }
 0xe42   : > { %v4552_v26 = vmin.f32 %v4520_v29, 0.0  ;;  %vm4536_vm3 = vcmp.gt.f32.partialorder %v4520_v29, 0.0 }
 0xe44   : > { %v4572_v62 = vmul.f32 1.442695, %v4552_v26 }
 0xe46   : > { %6647 = vpow2.f32 %v4572_v62 }
 0xe47   : > { %v4464_v5 = vpop.permute.xlu2 %4463 }
 0xe48   : > { %v4521_v25 = vmul.f32 %v4464_v5, %v9822_v43  ;;  %6593 = vset.pattern.permute.xlu2 %v7006_v22 }
 0xe49   : > { %6592 = vset.pattern.permute.xlu1 %v7004_v32  ;;  %5206 = vperm.xlu2 %6593, %v9760_v17  }
 0xe4a   : > { %v4553_v49 = vmin.f32 %v4521_v25, 0.0  ;;  %4759 = vperm.xlu1 %6592, %v9790_v36   ;;  %5000 = vperm.xlu0 %6587, %v9781_v9   ;;  %vm4537_vm6 = vcmp.gt.f32.partialorder %v4521_v25, 0.0 }
 0xe4c   : > { %v6648_v21 = vpop.eup %6647  ;;  %v4574_v55 = vmul.f32 1.442695, %v4553_v49 }
 0xe4d   : > { %v5891_v46 = vadd.f32 -1.0, %v6648_v21 }
 0xe4e   : > { %6649 = vpow2.f32 %v4574_v55  ;;  %v9879_v55 = vld [vmem:[#allocation6 + $0x38] sm:$0xff] }
 0xe4f   : > { %v4616_v10 = vsel %vm4536_vm3, %v4520_v29, %v5891_v46  ;;  %v4479_v38 = vpop.permute.xlu2 %4478 }
 0xe50   : > { %4632 = vst.msk [vmem:[%s7269_s12 + $0x20] sm:$0xff] %vm11032_vm7, %v4616_v10  ;;  %v4524_v47 = vmul.f32 %v4479_v38, %v9830_v31  ;;  %v9881_v38 = vld [vmem:[#allocation6 + $0x30] sm:$0xff] }
 0xe51   : > { %6595 = vset.pattern.permute.xlu2 %v7005_v48 }
 0xe52   : > { %v4556_v33 = vmin.f32 %v4524_v47, 0.0  ;;  %6594 = vset.pattern.permute.xlu1 %v7005_v48  ;;  %5015 = vperm.xlu2 %6595, %v9790_v36   ;;  %vm4540_vm13 = vcmp.gt.f32.partialorder %v4524_v47, 0.0 }
 0xe53   : > { %4995 = vperm.xlu1 %6594, %v9783_v35   ;;  %6602 = vset.pattern.permute.xlu0 %v7006_v22 }
 0xe54   : > { %v6650_v20 = vpop.eup %6649  ;;  %v4580_v0 = vmul.f32 1.442695, %v4556_v33  ;;  %5226 = vperm.xlu0 %6602, %v9755_v57  }
 0xe55   : > { %v5892_v7 = vadd.f32 -1.0, %v6650_v20 }
 0xe56   : > { %6651 = vpow2.f32 %v4580_v0 }
 0xe57   : > { %v4617_v2 = vsel %vm4537_vm6, %v4521_v25, %v5892_v7  ;;  %v4494_v1 = vpop.permute.xlu2 %4493  ;;  %vm11038_vm6 = vmmov %vm11037_vm2 }
 0xe58   : > { %4633 = vst.msk [vmem:[%s7269_s12 + $0x28] sm:$0xff] %vm11033_vm8, %v4617_v2  ;;  %v4527_v41 = vmul.f32 %v4494_v1, %v9841_v23  ;;  %v4449_v12 = vpop.permute.xlu1 %4448  ;;  %vm11039_vm8 = vmmov %vm11037_vm2 }
 0xe59   : > { %v4518_v63 = vmul.f32 %v4449_v12, %v9843_v16  ;;  %v4439_v24 = vpop.permute.xlu0 %4438 }
 0xe5a   : > { %v4559_v3 = vmin.f32 %v4527_v41, 0.0  ;;  %v4516_v4 = vmul.f32 %v4439_v24, %v9845_v11  ;;  %6597 = vset.pattern.permute.xlu2 %v7006_v22  ;;  %vm4543_vm4 = vcmp.gt.f32.partialorder %v4527_v41, 0.0 }
 0xe5b   : > { %v4550_v27 = vmin.f32 %v4518_v63, 0.0  ;;  %6596 = vset.pattern.permute.xlu1 %v7006_v22  ;;  %5271 = vperm.xlu2 %6597, %v9790_v36   ;;  %vm4534_vm1 = vcmp.gt.f32.partialorder %v4518_v63, 0.0 }
 0xe5c   : > { %v6652_v40 = vpop.eup %6651  ;;  %v4586_v15 = vmul.f32 1.442695, %v4559_v3  ;;  %v4548_v18 = vmin.f32 %v4516_v4, 0.0  ;;  %5251 = vperm.xlu1 %6596, %v9783_v35   ;;  %5276 = vperm.xlu0 %6602, %v9788_v59   ;;  %vm4532_vm0 = vcmp.gt.f32.partialorder %v4516_v4, 0.0 }
 0xe5d   : > { %v5895_v57 = vadd.f32 -1.0, %v6652_v40  ;;  %v4568_v17 = vmul.f32 1.442695, %v4550_v27 }
 0xe5e   : > { %6653 = vpow2.f32 %v4586_v15  ;;  %v4564_v30 = vmul.f32 1.442695, %v4548_v18 }
 0xe5f   : > { %v4620_v8 = vsel %vm4540_vm13, %v4524_v47, %v5895_v57  ;;  %6655 = vpow2.f32 %v4568_v17  ;;  %v4509_v58 = vpop.permute.xlu2 %4508  ;;  %vm11040_vm13 = vmmov %vm11037_vm2 }
 0xe60   : > { %4636 = vst.msk [vmem:[%s7269_s12 + $0x40] sm:$0xff] %vm11034_vm12, %v4620_v8  ;;  %6657 = vpow2.f32 %v4564_v30  ;;  %v4530_v34 = vmul.f32 %v4509_v58, %v9857_v13  ;;  %v4454_v14 = vpop.permute.xlu1 %4453  ;;  %v9906_v30 = vld [vmem:[#allocation6 + $0x50] sm:$0xff] }
 0xe61   : > { %v9867_v28 = vmul.f32 %v4454_v14, %v9859_v44  ;;  %v4444_v45 = vpop.permute.xlu0 %4443 }
 0xe62   : > { %v4562_v35 = vmin.f32 %v4530_v34, 0.0  ;;  %v9870_v36 = vmul.f32 %v4444_v45, %v9861_v51  ;;  %vm4546_vm15 = vcmp.gt.f32.partialorder %v4530_v34, 0.0 }
 0xe63   : > { %v4551_v42 = vmin.f32 %v9867_v28, 0.0  ;;  %6599 = vset.pattern.permute.xlu2 %v7004_v32  ;;  %vm4535_vm7 = vcmp.gt.f32.partialorder %v9867_v28, 0.0 }
 0xe64   : > { %v6654_v39 = vpop.eup %6653  ;;  %v4592_v61 = vmul.f32 1.442695, %v4562_v35  ;;  %v4549_v29 = vmin.f32 %v9870_v36, 0.0  ;;  %6598 = vset.pattern.permute.xlu1 %v7005_v48  ;;  %4764 = vperm.xlu2 %6599, %v9788_v59   ;;  %vm4533_vm3 = vcmp.gt.f32.partialorder %v9870_v36, 0.0 }
 0xe65   : > { %v6656_v26 = vpop.eup %6655  ;;  %v5898_v62 = vadd.f32 -1.0, %v6654_v39  ;;  %v4570_v5 = vmul.f32 1.442695, %v4551_v42  ;;  %4975 = vperm.xlu1 %6598, %v9764_v60   ;;  %5236 = vperm.xlu0 %6602, %v9775_v54  }
 0xe66   : > { %v6658_v25 = vpop.eup %6657  ;;  %v5889_v49 = vadd.f32 -1.0, %v6656_v26  ;;  %6659 = vpow2.f32 %v4592_v61  ;;  %v4566_v21 = vmul.f32 1.442695, %v4549_v29 }
 0xe67   : > { %v4623_v46 = vsel %vm4543_vm4, %v4527_v41, %v5898_v62  ;;  %v5887_v10 = vadd.f32 -1.0, %v6658_v25  ;;  %6661 = vpow2.f32 %v4570_v5 }
 0xe68   : > { %4639 = vst.msk [vmem:[%s7269_s12 + $0x58] sm:$0xff] %vm11035_vm14, %v4623_v46  ;;  %v4614_v47 = vsel %vm4534_vm1, %v4518_v63, %v5889_v49  ;;  %6663 = vpow2.f32 %v4566_v21  ;;  %v4474_v33 = vpop.permute.xlu1 %4473  ;;  %v4700_v20 = vpop.permute.xlu2 %4699  ;;  %v9937_v21 = vld [vmem:[#allocation6 + $0x68] sm:$0xff]  ;;  %vm11041_vm1 = vmmov %vm11037_vm2 }
 0xe69   : > { %4630 = vst.msk [vmem:[%s7269_s12 + $0x10] sm:$0xff] %vm11036_vm5, %v4614_v47  ;;  %v4612_v0 = vsel %vm4532_vm0, %v4516_v4, %v5887_v10  ;;  %v9888_v7 = vmul.f32 %v4474_v33, %v9879_v55  ;;  %v9891_v2 = vmul.f32 %v4700_v20, %v9861_v51  ;;  %v4469_v1 = vpop.permute.xlu0 %4468  ;;  %vm11042_vm14 = vmmov %vm11041_vm1 }
 0xe6a   : > { %4628 = vst.msk [vmem:[%s7269_s12] sm:$0xff] %vm11037_vm2, %v4612_v0  ;;  %v9896_v41 = vmul.f32 %v4469_v1, %v9881_v38 }
 0xe6b   : > { %v4555_v12 = vmin.f32 %v9888_v7, 0.0  ;;  %v4805_v63 = vmin.f32 %v9891_v2, 0.0  ;;  %vm4789_vm12 = vcmp.gt.f32.partialorder %v9891_v2, 0.0  ;;  %vm4539_vm4 = vcmp.gt.f32.partialorder %v9888_v7, 0.0 }
 0xe6c   : > { %v6660_v24 = vpop.eup %6659  ;;  %v4554_v3 = vmin.f32 %v9896_v41, 0.0  ;;  %6601 = vset.pattern.permute.xlu2 %v7006_v22  ;;  %vm4538_vm0 = vcmp.gt.f32.partialorder %v9896_v41, 0.0 }
 0xe6d   : > { %v6662_v4 = vpop.eup %6661  ;;  %v5901_v27 = vadd.f32 -1.0, %v6660_v24  ;;  %v4578_v40 = vmul.f32 1.442695, %v4555_v12  ;;  %v4822_v15 = vmul.f32 1.442695, %v4805_v63  ;;  %6600 = vset.pattern.permute.xlu1 %v7006_v22  ;;  %5231 = vperm.xlu2 %6601, %v9764_v60   ;;  %v9910_v60 = vld [vmem:[#allocation6 + $0x48] sm:$0xff] }
 0xe6e   : > { %v6664_v18 = vpop.eup %6663  ;;  %v5890_v57 = vadd.f32 -1.0, %v6662_v4  ;;  %v4576_v17 = vmul.f32 1.442695, %v4554_v3  ;;  %5211 = vperm.xlu1 %6600, %v9768_v50   ;;  %5261 = vperm.xlu0 %6602, %v9779_v53  }
 0xe6f   : > { %v4626_v8 = vsel %vm4546_vm15, %v4530_v34, %v5901_v27  ;;  %v5888_v58 = vadd.f32 -1.0, %v6664_v18  ;;  %6665 = vpow2.f32 %v4578_v40 }
 0xe70   : > { %4642 = vst.msk [vmem:[%s7269_s12 + $0x70] sm:$0xff] %vm11038_vm6, %v4626_v8  ;;  %v4615_v14 = vsel %vm4535_vm7, %v9867_v28, %v5890_v57  ;;  %6667 = vpow2.f32 %v4822_v15  ;;  %v4489_v45 = vpop.permute.xlu1 %4488  ;;  %v4715_v35 = vpop.permute.xlu2 %4714  ;;  %v5443_v57 = vld [vmem:[%s11043_s26 + $0x78] sm:$0xff]  ;;  %vm11046_vm7 = vmmov %vm11041_vm1 }
 0xe71   : > { %4631 = vst.msk [vmem:[%s7269_s12 + $0x18] sm:$0xff] %vm11039_vm8, %v4615_v14  ;;  %v4613_v50 = vsel %vm4533_vm3, %v9870_v36, %v5888_v58  ;;  %6669 = vpow2.f32 %v4576_v17  ;;  %v9921_v34 = vmul.f32 %v4489_v45, %v9906_v30  ;;  %v9924_v42 = vmul.f32 %v4715_v35, %v9815_v37  ;;  %v4484_v39 = vpop.permute.xlu0 %4483  ;;  %v9980_v58 = vld [vmem:[#allocation6 + $0x78] sm:$0xff]  ;;  %5989 = vmatpush.msra.mxu2 %v5443_v57  ;;  %v5442_v35 = vld [vmem:[%s11044_s28 + $0x70] sm:$0xff]  ;;  %vm11045_vm3 = vmmov %vm11041_vm1 }
 0xe72   : > { %4629 = vst.msk [vmem:[%s7269_s12 + $0x8] sm:$0xff] %vm11040_vm13, %v4613_v50  ;;  %v9929_v28 = vmul.f32 %v4484_v39, %v9910_v60  ;;  %5990 = vmatpush.msra.mxu3 %v5443_v57  ;;  %5448 = vmatpush.msra.mxu0 %v5443_v57 }
 0xe73   : > { %v4558_v61 = vmin.f32 %v9921_v34, 0.0  ;;  %v4808_v29 = vmin.f32 %v9924_v42, 0.0  ;;  %vm4792_vm5 = vcmp.gt.f32.partialorder %v9924_v42, 0.0  ;;  %vm4542_vm2 = vcmp.gt.f32.partialorder %v9921_v34, 0.0  ;;  %5992 = vmatpush.msra.mxu2 %v5442_v35  ;;  %5988 = vmatpush.msra.mxu1 %v5443_v57 }
 0xe74   : > { %v4557_v26 = vmin.f32 %v9929_v28, 0.0  ;;  %vm4541_vm15 = vcmp.gt.f32.partialorder %v9929_v28, 0.0  ;;  %5993 = vmatpush.msra.mxu3 %v5442_v35  ;;  %5449 = vmatpush.msra.mxu0 %v5442_v35 }
 0xe75   : > { %v6666_v36 = vpop.eup %6665  ;;  %v4584_v62 = vmul.f32 1.442695, %v4558_v61  ;;  %v4828_v5 = vmul.f32 1.442695, %v4808_v29  ;;  %5256 = vperm.xlu2 %6601, %v9781_v9   ;;  %v9943_v9 = vld [vmem:[#allocation6 + $0x60] sm:$0xff]  ;;  %5991 = vmatpush.msra.mxu1 %v5442_v35 }
 0xe76   : > { %v6668_v25 = vpop.eup %6667  ;;  %v5894_v37 = vadd.f32 -1.0, %v6666_v36  ;;  %v4582_v49 = vmul.f32 1.442695, %v4557_v26  ;;  %6603 = vset.pattern.permute.xlu1 %v7005_v48  ;;  %6610 = vset.pattern.permute.xlu0 %v7005_v48 }
 0xe77   : > { %v6670_v46 = vpop.eup %6669  ;;  %v5904_v10 = vadd.f32 -1.0, %v6668_v25  ;;  %6671 = vpow2.f32 %v4584_v62  ;;  %5020 = vperm.xlu1 %6603, %v9788_v59   ;;  %4985 = vperm.xlu0 %6610, %v9773_v56   ;;  %v5440_v25 = vld [vmem:[%s11044_s28 + $0x60] sm:$0xff] }
 0xe78   : > { %v4619_v47 = vsel %vm4539_vm4, %v9888_v7, %v5894_v37  ;;  %v5893_v33 = vadd.f32 -1.0, %v6670_v46  ;;  %6673 = vpow2.f32 %v4828_v5  ;;  %v4504_v20 = vpop.permute.xlu1 %4503  ;;  %v4725_v0 = vpop.permute.xlu2 %4724  ;;  %vm11048_vm4 = vmmov %vm11041_vm1 }
 0xe79   : > { %4635 = vst.msk [vmem:[%s7269_s12 + $0x38] sm:$0xff] %vm11041_vm1, %v4619_v47  ;;  %v4869_v1 = vsel %vm4789_vm12, %v9891_v2, %v5904_v10  ;;  %6675 = vpow2.f32 %v4582_v49  ;;  %v9953_v59 = vmul.f32 %v4504_v20, %v9937_v21  ;;  %v9956_v12 = vmul.f32 %v4725_v0, %v9881_v38  ;;  %v4499_v63 = vpop.permute.xlu0 %4498  ;;  %v5439_v20 = vld [vmem:[%s11044_s28 + $0x58] sm:$0xff]  ;;  %vm11047_vm12 = vmmov %vm11041_vm1 }
 0xe7a   : > { %4885 = vst.msk [vmem:[%s7269_s12 + $0x8] sm:$0xff] %vm2647_vm11, %v4869_v1  ;;  %v4618_v7 = vsel %vm4538_vm0, %v9896_v41, %v5893_v33  ;;  %v9964_v24 = vmul.f32 %v4499_v63, %v9943_v9 }
 0xe7b   : > { %4634 = vst.msk [vmem:[%s7269_s12 + $0x30] sm:$0xff] %vm11042_vm14, %v4618_v7  ;;  %v4561_v2 = vmin.f32 %v9953_v59, 0.0  ;;  %v4810_v3 = vmin.f32 %v9956_v12, 0.0  ;;  %vm4794_vm6 = vcmp.gt.f32.partialorder %v9956_v12, 0.0  ;;  %vm4545_vm8 = vcmp.gt.f32.partialorder %v9953_v59, 0.0 }
 0xe7c   : > { %v4560_v4 = vmin.f32 %v9964_v24, 0.0  ;;  %vm4544_vm13 = vcmp.gt.f32.partialorder %v9964_v24, 0.0 }
 0xe7d   : > { %v6672_v38 = vpop.eup %6671  ;;  %v4590_v27 = vmul.f32 1.442695, %v4561_v2  ;;  %v4832_v40 = vmul.f32 1.442695, %v4810_v3  ;;  %6604 = vset.pattern.permute.xlu2 %v7005_v48  ;;  %v5438_v3 = vld [vmem:[%s11044_s28 + $0x50] sm:$0xff] }
 0xe7e   : > { %v6674_v15 = vpop.eup %6673  ;;  %v5897_v18 = vadd.f32 -1.0, %v6672_v38  ;;  %v4588_v41 = vmul.f32 1.442695, %v4560_v4  ;;  %4980 = vperm.xlu2 %6604, %v9775_v54  }
 0xe7f   : > { %v6676_v17 = vpop.eup %6675  ;;  %v5907_v8 = vadd.f32 -1.0, %v6674_v15  ;;  %6677 = vpow2.f32 %v4590_v27  ;;  %4960 = vperm.xlu1 %6603, %v9757_v6   ;;  %6612 = vset.pattern.permute.xlu0 %v7006_v22 }
 0xe80   : > { %v4622_v54 = vsel %vm4542_vm2, %v9921_v34, %v5897_v18  ;;  %v5896_v14 = vadd.f32 -1.0, %v6676_v17  ;;  %6679 = vpow2.f32 %v4832_v40  ;;  %v4740_v45 = vpop.permute.xlu2 %4739 }
 0xe81   : > { %4638 = vst.msk [vmem:[%s7269_s12 + $0x50] sm:$0xff] %vm11045_vm3, %v4622_v54  ;;  %v4872_v50 = vsel %vm4792_vm5, %v9924_v42, %v5907_v8  ;;  %6681 = vpow2.f32 %v4588_v41  ;;  %v9992_v39 = vmul.f32 %v4740_v45, %v9910_v60  ;;  %v4695_v34 = vpop.permute.xlu1 %4694  ;;  %v4514_v61 = vpop.permute.xlu0 %4513  ;;  %v5441_v42 = vld [vmem:[%s11044_s28 + $0x68] sm:$0xff]  ;;  %v5435_v54 = vld [vmem:[%s11044_s28 + $0x38] sm:$0xff]  ;;  %vm11049_vm5 = vmmov %vm11045_vm3 }
 0xe82   : > { %4888 = vst.msk [vmem:[%s7269_s12 + $0x20] sm:$0xff] %vm2647_vm11, %v4872_v50  ;;  %v4621_v29 = vsel %vm4541_vm15, %v9929_v28, %v5896_v14  ;;  %v10000_v26 = vmul.f32 %v4695_v34, %v9845_v11  ;;  %v10003_v36 = vmul.f32 %v4514_v61, %v9980_v58  ;;  %5995 = vmatpush.msra.mxu2 %v5441_v42  ;;  %v10073_v61 = vld [vmem:[%s11044_s28 + $0x30] sm:$0xff] }
 0xe83   : > { %4637 = vst.msk [vmem:[%s7269_s12 + $0x48] sm:$0xff] %vm11046_vm7, %v4621_v29  ;;  %v4813_v62 = vmin.f32 %v9992_v39, 0.0  ;;  %5996 = vmatpush.msra.mxu3 %v5441_v42  ;;  %5450 = vmatpush.msra.mxu0 %v5441_v42  ;;  %vm4797_vm0 = vcmp.gt.f32.partialorder %v9992_v39, 0.0 }
 0xe84   : > { %v4804_v28 = vmin.f32 %v10000_v26, 0.0  ;;  %v4563_v5 = vmin.f32 %v10003_v36, 0.0  ;;  %5998 = vmatpush.msra.mxu2 %v5440_v25  ;;  %5994 = vmatpush.msra.mxu1 %v5441_v42  ;;  %vm4547_vm1 = vcmp.gt.f32.partialorder %v10003_v36, 0.0  ;;  %vm4788_vm14 = vcmp.gt.f32.partialorder %v10000_v26, 0.0 }
 0xe85   : > { %v6678_v37 = vpop.eup %6677  ;;  %v4838_v49 = vmul.f32 1.442695, %v4813_v62  ;;  %5999 = vmatpush.msra.mxu3 %v5440_v25  ;;  %5451 = vmatpush.msra.mxu0 %v5440_v25 }
 0xe86   : > { %v6680_v46 = vpop.eup %6679  ;;  %v5900_v10 = vadd.f32 -1.0, %v6678_v37  ;;  %v4820_v47 = vmul.f32 1.442695, %v4804_v28  ;;  %v4594_v33 = vmul.f32 1.442695, %v4563_v5  ;;  %6606 = vset.pattern.permute.xlu2 %v7006_v22  ;;  %6001 = vmatpush.msra.mxu2 %v5439_v20 }
 0xe87   : > { %v6682_v0 = vpop.eup %6681  ;;  %v5909_v1 = vadd.f32 -1.0, %v6680_v46  ;;  %6683 = vpow2.f32 %v4838_v49  ;;  %6605 = vset.pattern.permute.xlu1 %v7004_v32  ;;  %5216 = vperm.xlu2 %6606, %v9757_v6   ;;  %v10110_v46 = vld [vmem:[%s11044_s28 + $0x18] sm:$0xff] }
 0xe88   : > { %v4625_v63 = vsel %vm4545_vm8, %v9953_v59, %v5900_v10  ;;  %v5899_v7 = vadd.f32 -1.0, %v6682_v0  ;;  %6685 = vpow2.f32 %v4820_v47  ;;  %4769 = vperm.xlu1 %6605, %v9794_v52   ;;  %v4755_v2 = vpop.permute.xlu2 %4754  ;;  %6002 = vmatpush.msra.mxu3 %v5439_v20 }
 0xe89   : > { %4641 = vst.msk [vmem:[%s7269_s12 + $0x68] sm:$0xff] %vm11047_vm12, %v4625_v63  ;;  %v4874_v32 = vsel %vm4794_vm6, %v9956_v12, %v5909_v1  ;;  %6687 = vpow2.f32 %v4594_v33  ;;  %v10036_v6 = vmul.f32 %v4755_v2, %v9943_v9  ;;  %v4710_v59 = vpop.permute.xlu1 %4709  ;;  %6004 = vmatpush.msra.mxu2 %v5438_v3  ;;  %v5437_v12 = vld [vmem:[%s11044_s28 + $0x48] sm:$0xff]  ;;  %5997 = vmatpush.msra.mxu1 %v5440_v25  ;;  %v10122_v1 = vld [vmem:[%s11044_s28 + $0x10] sm:$0xff] }
 0xe8a   : > { %4890 = vst.msk [vmem:[%s7269_s12 + $0x30] sm:$0xff] %vm2647_vm11, %v4874_v32  ;;  %v4624_v4 = vsel %vm4544_vm13, %v9964_v24, %v5899_v7  ;;  %v10044_v38 = vmul.f32 %v4710_v59, %v9859_v44  ;;  %v4705_v27 = vpop.permute.xlu0 %4704  ;;  %6005 = vmatpush.msra.mxu3 %v5438_v3  ;;  %5452 = vmatpush.msra.mxu0 %v5439_v20  ;;  %v5436_v44 = vld [vmem:[%s11044_s28 + $0x40] sm:$0xff] }
 0xe8b   : > { %4640 = vst.msk [vmem:[%s7269_s12 + $0x60] sm:$0xff] %vm11048_vm4, %v4624_v4  ;;  %v4816_v40 = vmin.f32 %v10036_v6, 0.0  ;;  %v10053_v15 = vmul.f32 %v4705_v27, %v9843_v16  ;;  %6007 = vmatpush.msra.mxu2 %v5437_v12  ;;  %6000 = vmatpush.msra.mxu1 %v5439_v20  ;;  %vm4800_vm2 = vcmp.gt.f32.partialorder %v10036_v6, 0.0  ;;  %v10145_v4 = vld [vmem:[%s11044_s28 + $0x8] sm:$0xff] }
 0xe8c   : > { %v4807_v24 = vmin.f32 %v10044_v38, 0.0  ;;  %6008 = vmatpush.msra.mxu3 %v5437_v12  ;;  %5453 = vmatpush.msra.mxu0 %v5438_v3  ;;  %vm4791_vm3 = vcmp.gt.f32.partialorder %v10044_v38, 0.0 }
 0xe8d   : > { %v6684_v18 = vpop.eup %6683  ;;  %v4844_v41 = vmul.f32 1.442695, %v4816_v40  ;;  %v4806_v57 = vmin.f32 %v10053_v15, 0.0  ;;  %6010 = vmatpush.msra.mxu2 %v5436_v44  ;;  %6003 = vmatpush.msra.mxu1 %v5438_v3  ;;  %vm4790_vm15 = vcmp.gt.f32.partialorder %v10053_v15, 0.0 }
 0xe8e   : > { %v6686_v17 = vpop.eup %6685  ;;  %v5912_v16 = vadd.f32 -1.0, %v6684_v18  ;;  %v4826_v8 = vmul.f32 1.442695, %v4807_v24  ;;  %6011 = vmatpush.msra.mxu3 %v5436_v44  ;;  %5454 = vmatpush.msra.mxu0 %v5437_v12 }
 0xe8f   : > { %v6688_v14 = vpop.eup %6687  ;;  %v5903_v45 = vadd.f32 -1.0, %v6686_v17  ;;  %6689 = vpow2.f32 %v4844_v41  ;;  %v4824_v35 = vmul.f32 1.442695, %v4806_v57  ;;  %6608 = vset.pattern.permute.xlu2 %v7005_v48  ;;  %6013 = vmatpush.msra.mxu2 %v5435_v54 }
 0xe90   : > { %v4877_v50 = vsel %vm4797_vm0, %v9992_v39, %v5912_v16  ;;  %v5902_v34 = vadd.f32 -1.0, %v6688_v14  ;;  %6691 = vpow2.f32 %v4826_v8  ;;  %6607 = vset.pattern.permute.xlu1 %v7005_v48  ;;  %5025 = vperm.xlu2 %6608, %v9794_v52  }
 0xe91   : > { %4893 = vst.msk [vmem:[%s7269_s12 + $0x48] sm:$0xff] %vm2647_vm11, %v4877_v50  ;;  %v4868_v29 = vsel %vm4788_vm14, %v10000_v26, %v5903_v45  ;;  %6693 = vpow2.f32 %v4824_v35  ;;  %5005 = vperm.xlu1 %6607, %v9779_v53   ;;  %v4720_v39 = vpop.permute.xlu1 %4719  ;;  %v5247_v42 = vpop.permute.xlu2 %5246  ;;  %v10090_v26 = vld [vmem:[%s11044_s28 + $0x28] sm:$0xff]  ;;  %6014 = vmatpush.msra.mxu3 %v5435_v54 }
 0xe92   : > { %4884 = vst.msk [vmem:[%s7269_s12] sm:$0xff] %vm2647_vm11, %v4868_v29  ;;  %v4627_v48 = vsel %vm4547_vm1, %v10003_v36, %v5902_v34  ;;  %v10085_v62 = vmul.f32 %v4720_v39, %v9822_v43  ;;  %v4730_v28 = vpop.permute.xlu0 %4729  ;;  %6016 = vmatpush.msra.mxu2 %v10073_v61  ;;  %6006 = vmatpush.msra.mxu1 %v5437_v12  ;;  %v10102_v43 = vld [vmem:[%s11044_s28 + $0x20] sm:$0xff] }
 0xe93   : > { %4643 = vst.msk [vmem:[%s7269_s12 + $0x78] sm:$0xff] %vm11049_vm5, %v4627_v48  ;;  %v10095_v53 = vmul.f32 %v4730_v28, %v9879_v55  ;;  %5455 = vmatpush.msra.mxu0 %v5436_v44  ;;  %6017 = vmatpush.msra.mxu3 %v10073_v61  ;;  %v10130_v2 = vmul.f32 %v5247_v42, %v9830_v31  ;;  %v10162_v12 = vld [vmem:[%s11044_s28] sm:$0xff] }
 0xe94   : > { %v4809_v36 = vmin.f32 %v10085_v62, 0.0  ;;  %6019 = vmatpush.msra.mxu2 %v10090_v26  ;;  %6009 = vmatpush.msra.mxu1 %v5436_v44  ;;  %vm4793_vm6 = vcmp.gt.f32.partialorder %v10085_v62, 0.0 }
 0xe95   : > { %v6690_v5 = vpop.eup %6689  ;;  %v4811_v25 = vmin.f32 %v10095_v53, 0.0  ;;  %5456 = vmatpush.msra.mxu0 %v5435_v54  ;;  %6020 = vmatpush.msra.mxu3 %v10090_v26  ;;  %v5324_v40 = vmin.f32 %v10130_v2, 0.0  ;;  %vm4795_vm7 = vcmp.gt.f32.partialorder %v10095_v53, 0.0  ;;  %vm5308_vm4 = vcmp.gt.f32.partialorder %v10130_v2, 0.0 }
 0xe96   : > { %v6692_v55 = vpop.eup %6691  ;;  %v5915_v37 = vadd.f32 -1.0, %v6690_v5  ;;  %v4830_v49 = vmul.f32 1.442695, %v4809_v36  ;;  %6022 = vmatpush.msra.mxu2 %v10102_v43  ;;  %6012 = vmatpush.msra.mxu1 %v5435_v54 }
 0xe97   : > { %v6694_v10 = vpop.eup %6693  ;;  %v5906_v47 = vadd.f32 -1.0, %v6692_v55  ;;  %v4834_v33 = vmul.f32 1.442695, %v4811_v25  ;;  %5457 = vmatpush.msra.mxu0 %v10073_v61  ;;  %6023 = vmatpush.msra.mxu3 %v10102_v43  ;;  %v5348_v14 = vmul.f32 1.442695, %v5324_v40 }
 0xe98   : > { %v4880_v20 = vsel %vm4800_vm2, %v10036_v6, %v5915_v37  ;;  %v5905_v0 = vadd.f32 -1.0, %v6694_v10  ;;  %6695 = vpow2.f32 %v4830_v49  ;;  %4965 = vperm.xlu2 %6608, %v9766_v19   ;;  %6025 = vmatpush.msra.mxu2 %v10110_v46 }
 0xe99   : > { %4896 = vst.msk [vmem:[%s7269_s12 + $0x60] sm:$0xff] %vm2647_vm11, %v4880_v20  ;;  %v4871_v63 = vsel %vm4791_vm3, %v10044_v38, %v5906_v47  ;;  %6697 = vpow2.f32 %v4834_v33  ;;  %6609 = vset.pattern.permute.xlu1 %v7006_v22  ;;  %v4735_v7 = vpop.permute.xlu1 %4734  ;;  %5458 = vmatpush.msra.mxu0 %v10090_v26 }
 0xe9a   : > { %4887 = vst.msk [vmem:[%s7269_s12 + $0x18] sm:$0xff] %vm2647_vm11, %v4871_v63  ;;  %v4870_v3 = vsel %vm4790_vm15, %v10053_v15, %v5905_v0  ;;  %v10139_v32 = vmul.f32 %v4735_v7, %v9830_v31  ;;  %5281 = vperm.xlu1 %6609, %v9794_v52   ;;  %v4745_v6 = vpop.permute.xlu0 %4744  ;;  %v4951_v59 = vpop.permute.xlu2 %4950  ;;  %6028 = vmatpush.msra.mxu2 %v10122_v1 }
 0xe9b   : > { %4886 = vst.msk [vmem:[%s7269_s12 + $0x10] sm:$0xff] %vm2647_vm11, %v4870_v3  ;;  %v10151_v38 = vmul.f32 %v4745_v6, %v9906_v30  ;;  %v10154_v27 = vmul.f32 %v4951_v59, %v9845_v11  ;;  %6026 = vmatpush.msra.mxu3 %v10110_v46  ;;  %6015 = vmatpush.msra.mxu1 %v10073_v61 }
 0xe9c   : > { %v4812_v52 = vmin.f32 %v10139_v32, 0.0  ;;  %6031 = vmatpush.msra.mxu2 %v10145_v4  ;;  %5459 = vmatpush.msra.mxu0 %v10102_v43  ;;  %vm4796_vm8 = vcmp.gt.f32.partialorder %v10139_v32, 0.0 }
 0xe9d   : > { %v4814_v15 = vmin.f32 %v10151_v38, 0.0  ;;  %v5060_v24 = vmin.f32 %v10154_v27, 0.0  ;;  %6029 = vmatpush.msra.mxu3 %v10122_v1  ;;  %6018 = vmatpush.msra.mxu1 %v10090_v26  ;;  %vm4798_vm13 = vcmp.gt.f32.partialorder %v10151_v38, 0.0  ;;  %vm5044_vm12 = vcmp.gt.f32.partialorder %v10154_v27, 0.0 }
 0xe9e   : > { %v6696_v44 = vpop.eup %6695  ;;  %v4836_v18 = vmul.f32 1.442695, %v4812_v52  ;;  %6034 = vmatpush.msra.mxu2 %v10162_v12  ;;  %5460 = vmatpush.msra.mxu0 %v10110_v46 }
 0xe9f   : > { %v6698_v41 = vpop.eup %6697  ;;  %v5908_v57 = vadd.f32 -1.0, %v6696_v44  ;;  %v4840_v17 = vmul.f32 1.442695, %v4814_v15  ;;  %v5076_v16 = vmul.f32 1.442695, %v5060_v24  ;;  %6032 = vmatpush.msra.mxu3 %v10145_v4  ;;  %6021 = vmatpush.msra.mxu1 %v10102_v43  ;;  %v10210_v43 = vld [vmem:[#allocation6 + $0x20] sm:$0xff] }
 0xea0   : > { %v5910_v8 = vadd.f32 -1.0, %v6698_v41  ;;  %6699 = vpow2.f32 %v4836_v18  ;;  %6611 = vset.pattern.permute.xlu2 %v7006_v22  ;;  %5461 = vmatpush.msra.mxu0 %v10122_v1 }
 0xea1   : > { %v4873_v54 = vsel %vm4793_vm6, %v10085_v62, %v5908_v57  ;;  %6701 = vpow2.f32 %v4840_v17  ;;  %v4750_v45 = vpop.permute.xlu1 %4749  ;;  %5241 = vperm.xlu2 %6611, %v9773_v56   ;;  %6035 = vmatpush.msra.mxu3 %v10162_v12 }
 0xea2   : > { %4889 = vst.msk [vmem:[%s7269_s12 + $0x28] sm:$0xff] %vm2647_vm11, %v4873_v54  ;;  %v4875_v35 = vsel %vm4795_vm7, %v10095_v53, %v5910_v8  ;;  %v10188_v50 = vmul.f32 %v4750_v45, %v9841_v23  ;;  %5221 = vperm.xlu1 %6609, %v9766_v19   ;;  %6703 = vpow2.f32 %v5076_v16  ;;  %5462 = vmatpush.msra.mxu0 %v10145_v4 }
 0xea3   : > { %4891 = vst.msk [vmem:[%s7269_s12 + $0x38] sm:$0xff] %vm2647_vm11, %v4875_v35  ;;  %v4991_v34 = vpop.permute.xlu0 %4990  ;;  %v5207_v56 = vpop.permute.xlu2 %5206  ;;  %6705 = vpow2.f32 %v5348_v14  ;;  %6024 = vmatpush.msra.mxu1 %v10110_v46 }
 0xea4   : > { %v4815_v61 = vmin.f32 %v10188_v50, 0.0  ;;  %v5036_v29 = vmul.f32 %v4991_v34, %v9830_v31  ;;  %v10199_v23 = vmul.f32 %v5207_v56, %v9845_v11  ;;  %5463 = vmatpush.msra.mxu0 %v10162_v12  ;;  %vm4799_vm0 = vcmp.gt.f32.partialorder %v10188_v50, 0.0 }
 0xea5   : > { %6027 = vmatpush.msra.mxu1 %v10122_v1 }
 0xea6   : > { %v6700_v19 = vpop.eup %6699  ;;  %v4842_v39 = vmul.f32 1.442695, %v4815_v61  ;;  %v5068_v42 = vmin.f32 %v5036_v29, 0.0  ;;  %v5316_v31 = vmin.f32 %v10199_v23, 0.0  ;;  %vm5052_vm1 = vcmp.gt.f32.partialorder %v5036_v29, 0.0 }
 0xea7   : > { %v6702_v48 = vpop.eup %6701  ;;  %v5911_v62 = vadd.f32 -1.0, %v6700_v19  ;;  %6030 = vmatpush.msra.mxu1 %v10145_v4  ;;  %vm5300_vm14 = vcmp.gt.f32.partialorder %v10199_v23, 0.0 }
 0xea8   : > { %v6704_v22 = vpop.eup %6703  ;;  %v5913_v11 = vadd.f32 -1.0, %v6702_v48  ;;  %6707 = vpow2.f32 %v4842_v39  ;;  %v5092_v28 = vmul.f32 1.442695, %v5068_v42  ;;  %v5332_v36 = vmul.f32 1.442695, %v5316_v31 }
 0xea9   : > { %v4876_v26 = vsel %vm4796_vm8, %v10139_v32, %v5911_v62  ;;  %v5919_v53 = vadd.f32 -1.0, %v6704_v22  ;;  %v6706_v55 = vpop.eup %6705  ;;  %6033 = vmatpush.msra.mxu1 %v10162_v12 }
 0xeaa   : > { %4892 = vst.msk [vmem:[%s7269_s12 + $0x40] sm:$0xff] %vm2647_vm11, %v4876_v26  ;;  %v4878_v5 = vsel %vm4798_vm13, %v10151_v38, %v5913_v11  ;;  %6709 = vpow2.f32 %v5092_v28  ;;  %v5011_v25 = vpop.permute.xlu1 %5010  ;;  %v5943_v0 = vadd.f32 -1.0, %v6706_v55 }
 0xeab   : > { %4894 = vst.msk [vmem:[%s7269_s12 + $0x50] sm:$0xff] %vm2647_vm11, %v4878_v5  ;;  %v5124_v37 = vsel %vm5044_vm12, %v10154_v27, %v5919_v53  ;;  %v5040_v49 = vmul.f32 %v5011_v25, %v9943_v9  ;;  %6711 = vpow2.f32 %v5332_v36  ;;  %v4971_v46 = vpop.permute.xlu0 %4970 }
 0xeac   : > { %5140 = vst.msk [vmem:[%s7269_s12] sm:$0xff] %vm3499_vm9, %v5124_v37  ;;  %v5016_v10 = vpop.permute.xlu2 %5015  ;;  %v5032_v47 = vmul.f32 %v4971_v46, %v10210_v43  ;;  %v5388_v27 = vsel %vm5308_vm4, %v10130_v2, %v5943_v0 }
 0xead   : > { %v5072_v33 = vmin.f32 %v5040_v49, 0.0  ;;  %v10229_v38 = vmul.f32 %v5016_v10, %v9937_v21  ;;  %vm5056_vm2 = vcmp.gt.f32.partialorder %v5040_v49, 0.0 }
 0xeae   : > { %v6708_v20 = vpop.eup %6707  ;;  %v5064_v1 = vmin.f32 %v5032_v47, 0.0  ;;  %vm5048_vm5 = vcmp.gt.f32.partialorder %v5032_v47, 0.0 }
 0xeaf   : > { %v5914_v63 = vadd.f32 -1.0, %v6708_v20  ;;  %v5100_v7 = vmul.f32 1.442695, %v5072_v33  ;;  %v5073_v41 = vmin.f32 %v10229_v38, 0.0  ;;  %vm5057_vm7 = vcmp.gt.f32.partialorder %v10229_v38, 0.0 }
 0xeb0   : > { %v6710_v3 = vpop.eup %6709  ;;  %v5084_v32 = vmul.f32 1.442695, %v5064_v1 }
 0xeb1   : > { %v6712_v6 = vpop.eup %6711  ;;  %v4879_v59 = vsel %vm4799_vm0, %v10188_v50, %v5914_v63  ;;  %v5927_v4 = vadd.f32 -1.0, %v6710_v3  ;;  %6713 = vpow2.f32 %v5100_v7  ;;  %v5102_v45 = vmul.f32 1.442695, %v5073_v41 }
 0xeb2   : > { %4895 = vst.msk [vmem:[%s7269_s12 + $0x58] sm:$0xff] %vm2647_vm11, %v4879_v59  ;;  %v5935_v52 = vadd.f32 -1.0, %v6712_v6  ;;  %6715 = vpow2.f32 %v5084_v32 }
 0xeb3   : > { %v5132_v12 = vsel %vm5052_vm1, %v5036_v29, %v5927_v4  ;;  %v5267_v40 = vpop.permute.xlu1 %5266  ;;  %v4956_v15 = vpop.permute.xlu0 %4955 }
 0xeb4   : > { %5148 = vst.msk [vmem:[%s7269_s12 + $0x40] sm:$0xff] %vm3499_vm9, %v5132_v12  ;;  %v5380_v24 = vsel %vm5300_vm14, %v10199_v23, %v5935_v52  ;;  %v5296_v44 = vmul.f32 %v5267_v40, %v9943_v9  ;;  %v5029_v18 = vmul.f32 %v4956_v15, %v9861_v51 }
 0xeb5   : > { %5404 = vst.msk [vmem:[%s7269_s12 + $0x40] sm:$0xff] %vm4351_vm10, %v5388_v27  ;;  %v5272_v2 = vpop.permute.xlu2 %5271 }
 0xeb6   : > { %5396 = vst.msk [vmem:[%s7269_s12] sm:$0xff] %vm4351_vm10, %v5380_v24  ;;  %v5328_v57 = vmin.f32 %v5296_v44, 0.0  ;;  %v10245_v17 = vmul.f32 %v5272_v2, %v9937_v21  ;;  %v5061_v8 = vmin.f32 %v5029_v18, 0.0  ;;  %vm5045_vm15 = vcmp.gt.f32.partialorder %v5029_v18, 0.0 }
 0xeb7   : > { %v6714_v16 = vpop.eup %6713  ;;  %vm5312_vm3 = vcmp.gt.f32.partialorder %v5296_v44, 0.0 }
 0xeb8   : > { %v6716_v54 = vpop.eup %6715  ;;  %v5931_v14 = vadd.f32 -1.0, %v6714_v16  ;;  %v5356_v9 = vmul.f32 1.442695, %v5328_v57  ;;  %v5329_v51 = vmin.f32 %v10245_v17, 0.0  ;;  %v5078_v50 = vmul.f32 1.442695, %v5061_v8 }
 0xeb9   : > { %v5923_v35 = vadd.f32 -1.0, %v6716_v54  ;;  %vm5313_vm6 = vcmp.gt.f32.partialorder %v10245_v17, 0.0 }
 0xeba   : > { %v5136_v34 = vsel %vm5056_vm2, %v5040_v49, %v5931_v14  ;;  %6717 = vpow2.f32 %v5356_v9  ;;  %v5358_v61 = vmul.f32 1.442695, %v5329_v51 }
 0xebb   : > { %5152 = vst.msk [vmem:[%s7269_s12 + $0x60] sm:$0xff] %vm3499_vm9, %v5136_v34  ;;  %v5128_v56 = vsel %vm5048_vm5, %v5032_v47, %v5923_v35  ;;  %6719 = vpow2.f32 %v5078_v50 }
 0xebc   : > { %5144 = vst.msk [vmem:[%s7269_s12 + $0x20] sm:$0xff] %vm3499_vm9, %v5128_v56  ;;  %v4760_v29 = vpop.permute.xlu1 %4759  ;;  %v5420_v23 = vld [vmem:[%s7269_s12 + $0x40] sm:$0xff]  ;;  %v5001_v19 = vpop.permute.xlu0 %5000  ;;  %6721 = vpow2.f32 %v5102_v45 }
 0xebd   : > { %v4785_v39 = vmul.f32 %v4760_v29, %v9937_v21  ;;  %5488 = vmatmul.f32.vlgmr.msra.gmra.mxu2 %v5420_v23  ;;  %v5038_v42 = vmul.f32 %v5001_v19, %v9906_v30  ;;  %v5412_v48 = vld [vmem:[%s7269_s12] sm:$0xff]  ;;  %6723 = vpow2.f32 %v5358_v61 }
 0xebe   : > { %v4765_v62 = vpop.permute.xlu2 %4764  ;;  %5464 = vmatmul.f32.vlgmr.msra.gmra.mxu0 %v5412_v48 }
 0xebf   : > { %v4817_v31 = vmin.f32 %v4785_v39, 0.0  ;;  %v4786_v22 = vmul.f32 %v4765_v62, %v9857_v13  ;;  %v5070_v28 = vmin.f32 %v5038_v42, 0.0  ;;  %vm4801_vm8 = vcmp.gt.f32.partialorder %v4785_v39, 0.0 }
 0xec0   : > { %v6718_v11 = vpop.eup %6717  ;;  %vm5054_vm12 = vcmp.gt.f32.partialorder %v5038_v42, 0.0 }
 0xec1   : > { %v6720_v26 = vpop.eup %6719  ;;  %v5947_v53 = vadd.f32 -1.0, %v6718_v11  ;;  %v4846_v36 = vmul.f32 1.442695, %v4817_v31  ;;  %v4818_v5 = vmin.f32 %v4786_v22, 0.0  ;;  %v5096_v25 = vmul.f32 1.442695, %v5070_v28 }
 0xec2   : > { %v5920_v21 = vadd.f32 -1.0, %v6720_v26  ;;  %v6722_v55 = vpop.eup %6721  ;;  %vm4802_vm13 = vcmp.gt.f32.partialorder %v4786_v22, 0.0 }
 0xec3   : > { %v5392_v37 = vsel %vm5312_vm3, %v5296_v44, %v5947_v53  ;;  %6725 = vpow2.f32 %v4846_v36  ;;  %v4848_v49 = vmul.f32 1.442695, %v4818_v5  ;;  %v6724_v13 = vpop.eup %6723  ;;  %v5932_v47 = vadd.f32 -1.0, %v6722_v55  ;;  %v5202_v36 = vld [vmem:[#allocation6 + $0x70] sm:$0xff] }
 0xec4   : > { %5408 = vst.msk [vmem:[%s7269_s12 + $0x60] sm:$0xff] %vm4351_vm10, %v5392_v37  ;;  %v5125_v46 = vsel %vm5045_vm15, %v5029_v18, %v5920_v21  ;;  %6727 = vpow2.f32 %v5096_v25  ;;  %v5948_v63 = vadd.f32 -1.0, %v6724_v13 }
 0xec5   : > { %5141 = vst.msk [vmem:[%s7269_s12 + $0x8] sm:$0xff] %vm3499_vm9, %v5125_v46  ;;  %6729 = vpow2.f32 %v4848_v49  ;;  %v4996_v10 = vpop.permute.xlu1 %4995  ;;  %v5137_v59 = vsel %vm5057_vm7, %v10229_v38, %v5932_v47  ;;  %v5193_v38 = vld [vmem:[#allocation6 + $0x28] sm:$0xff] }
 0xec6   : > { %v5037_v33 = vmul.f32 %v4996_v10, %v9910_v60  ;;  %v5227_v20 = vpop.permute.xlu0 %5226  ;;  %v5393_v15 = vsel %vm5313_vm6, %v10245_v17, %v5948_v63  ;;  %v5189_v10 = vld [vmem:[#allocation6 + $0x8] sm:$0xff] }
 0xec7   : > { %v5232_v0 = vpop.permute.xlu2 %5231  ;;  %v5288_v1 = vmul.f32 %v5227_v20, %v10210_v43 }
 0xec8   : > { %v5069_v7 = vmin.f32 %v5037_v33, 0.0  ;;  %v10270_v18 = vmul.f32 %v5232_v0, %v5193_v38  ;;  %vm5053_vm0 = vcmp.gt.f32.partialorder %v5037_v33, 0.0 }
 0xec9   : > { %v6726_v3 = vpop.eup %6725  ;;  %v5320_v32 = vmin.f32 %v5288_v1, 0.0  ;;  %vm5304_vm4 = vcmp.gt.f32.partialorder %v5288_v1, 0.0 }
 0xeca   : > { %v6728_v6 = vpop.eup %6727  ;;  %v5916_v4 = vadd.f32 -1.0, %v6726_v3  ;;  %v5094_v27 = vmul.f32 1.442695, %v5069_v7  ;;  %v5321_v14 = vmin.f32 %v10270_v18, 0.0  ;;  %vm5305_vm5 = vcmp.gt.f32.partialorder %v10270_v18, 0.0 }
 0xecb   : > { %v6730_v52 = vpop.eup %6729  ;;  %v5929_v12 = vadd.f32 -1.0, %v6728_v6  ;;  %v5424_v40 = vld [vmem:[%s7269_s12 + $0x60] sm:$0xff]  ;;  %v5340_v43 = vmul.f32 1.442695, %v5320_v32 }
 0xecc   : > { %v4881_v24 = vsel %vm4801_vm8, %v4785_v39, %v5916_v4  ;;  %v5917_v44 = vadd.f32 -1.0, %v6730_v52  ;;  %6731 = vpow2.f32 %v5094_v27  ;;  %5500 = vmatmul.f32.vlgmr.msra.gmra.mxu3 %v5424_v40  ;;  %v5342_v29 = vmul.f32 1.442695, %v5321_v14  ;;  %v5190_v4 = vld [vmem:[#allocation6 + $0x10] sm:$0xff] }
 0xecd   : > { %4897 = vst.msk [vmem:[%s7269_s12 + $0x68] sm:$0xff] %vm2647_vm11, %v4881_v24  ;;  %6733 = vpow2.f32 %v5340_v43  ;;  %v5134_v2 = vsel %vm5054_vm12, %v5038_v42, %v5929_v12 }
 0xece   : > { %5153 = vst.msk [vmem:[%s7269_s12 + $0x68] sm:$0xff] %vm3499_vm9, %v5137_v59  ;;  %v4882_v41 = vsel %vm4802_vm13, %v4786_v22, %v5917_v44  ;;  %v5252_v57 = vpop.permute.xlu1 %5251  ;;  %v5277_v16 = vpop.permute.xlu0 %5276 }
 0xecf   : > { %5409 = vst.msk [vmem:[%s7269_s12 + $0x68] sm:$0xff] %vm4351_vm10, %v5393_v15  ;;  %v5293_v17 = vmul.f32 %v5252_v57, %v9910_v60  ;;  %v5257_v8 = vpop.permute.xlu2 %5256  ;;  %v10288_v46 = vmul.f32 %v5277_v16, %v5202_v36  ;;  %v10303_v57 = vld [vmem:[#allocation6 + $0x38] sm:$0xff] }
 0xed0   : > { %4898 = vst.msk [vmem:[%s7269_s12 + $0x70] sm:$0xff] %vm2647_vm11, %v4882_v41  ;;  %v5294_v54 = vmul.f32 %v5257_v8, %v9906_v30  ;;  %v4938_v30 = vld [vmem:[#allocation6 + $0x30] sm:$0xff] }
 0xed1   : > { %5150 = vst.msk [vmem:[%s7269_s12 + $0x50] sm:$0xff] %vm3499_vm9, %v5134_v2  ;;  %v5325_v9 = vmin.f32 %v5293_v17, 0.0  ;;  %vm5309_vm14 = vcmp.gt.f32.partialorder %v5293_v17, 0.0  ;;  %vm5314_vm6 = vcmp.gt.f32.partialorder %v10288_v46, 0.0 }
 0xed2   : > { %v6732_v51 = vpop.eup %6731  ;;  %v5326_v45 = vmin.f32 %v5294_v54, 0.0  ;;  %vm5310_vm1 = vcmp.gt.f32.partialorder %v5294_v54, 0.0 }
 0xed3   : > { %v6734_v35 = vpop.eup %6733  ;;  %v5928_v50 = vadd.f32 -1.0, %v6732_v51  ;;  %v5350_v34 = vmul.f32 1.442695, %v5325_v9 }
 0xed4   : > { %v5939_v60 = vadd.f32 -1.0, %v6734_v35  ;;  %v5352_v56 = vmul.f32 1.442695, %v5326_v45 }
 0xed5   : > { %v5133_v61 = vsel %vm5053_vm0, %v5037_v33, %v5928_v50  ;;  %6735 = vpow2.f32 %v5350_v34 }
 0xed6   : > { %5149 = vst.msk [vmem:[%s7269_s12 + $0x48] sm:$0xff] %vm3499_vm9, %v5133_v61  ;;  %v5384_v23 = vsel %vm5304_vm4, %v5288_v1, %v5939_v60  ;;  %6737 = vpow2.f32 %v5352_v56  ;;  %v5425_v19 = vld [vmem:[%s7269_s12 + $0x68] sm:$0xff]  ;;  %v5330_v1 = vmin.f32 %v10288_v46, 0.0 }
 0xed7   : > { %5400 = vst.msk [vmem:[%s7269_s12 + $0x20] sm:$0xff] %vm4351_vm10, %v5384_v23  ;;  %v4976_v39 = vpop.permute.xlu1 %4975  ;;  %5503 = vmatmul.f32.gmra.mxu3 %v5425_v19  ;;  %v5237_v42 = vpop.permute.xlu0 %5236  ;;  %6739 = vpow2.f32 %v5342_v29 }
 0xed8   : > { %v5033_v48 = vmul.f32 %v5193_v38, %v4976_v39  ;;  %v4981_v62 = vpop.permute.xlu2 %4980  ;;  %v5290_v31 = vmul.f32 %v5237_v42, %v4938_v30  ;;  %v5360_v12 = vmul.f32 1.442695, %v5330_v1  ;;  %v10320_v39 = vld [vmem:[#allocation6 + $0x18] sm:$0xff] }
 0xed9   : > { %v5034_v22 = vmul.f32 %v4981_v62, %v4938_v30  ;;  %v6807_v1 = vld [vmem:[#allocation6 + $0x78] sm:$0xff] }
 0xeda   : > { %v5065_v11 = vmin.f32 %v5033_v48, 0.0  ;;  %v5322_v28 = vmin.f32 %v5290_v31, 0.0  ;;  %vm5049_vm15 = vcmp.gt.f32.partialorder %v5033_v48, 0.0  ;;  %vm5306_vm3 = vcmp.gt.f32.partialorder %v5290_v31, 0.0 }
 0xedb   : > { %v6736_v26 = vpop.eup %6735  ;;  %v5066_v53 = vmin.f32 %v5034_v22, 0.0  ;;  %vm5050_vm2 = vcmp.gt.f32.partialorder %v5034_v22, 0.0 }
 0xedc   : > { %v6738_v5 = vpop.eup %6737  ;;  %v5944_v21 = vadd.f32 -1.0, %v6736_v26  ;;  %v5086_v25 = vmul.f32 1.442695, %v5065_v11  ;;  %v5344_v55 = vmul.f32 1.442695, %v5322_v28 }
 0xedd   : > { %v5945_v37 = vadd.f32 -1.0, %v6738_v5  ;;  %v5088_v49 = vmul.f32 1.442695, %v5066_v53  ;;  %v6740_v33 = vpop.eup %6739 }
 0xede   : > { %v5389_v13 = vsel %vm5309_vm14, %v5293_v17, %v5944_v21  ;;  %6741 = vpow2.f32 %v5086_v25  ;;  %v5416_v47 = vld [vmem:[%s7269_s12 + $0x20] sm:$0xff]  ;;  %v5940_v32 = vadd.f32 -1.0, %v6740_v33 }
 0xedf   : > { %5405 = vst.msk [vmem:[%s7269_s12 + $0x48] sm:$0xff] %vm4351_vm10, %v5389_v13  ;;  %v5390_v20 = vsel %vm5310_vm1, %v5294_v54, %v5945_v37  ;;  %6743 = vpow2.f32 %v5088_v49  ;;  %5476 = vmatmul.f32.vlgmr.msra.gmra.mxu1 %v5416_v47  ;;  %v5199_v13 = vld [vmem:[#allocation6 + $0x58] sm:$0xff] }
 0xee0   : > { %5406 = vst.msk [vmem:[%s7269_s12 + $0x50] sm:$0xff] %vm4351_vm10, %v5390_v20  ;;  %v5212_v0 = vpop.permute.xlu1 %5211  ;;  %6745 = vpow2.f32 %v5344_v55  ;;  %v10296_v3 = vpop.permute.xlu0 %5261  ;;  %v5385_v15 = vsel %vm5305_vm5, %v10270_v18, %v5940_v32 }
 0xee1   : > { %v5285_v63 = vmul.f32 %v5212_v0, %v5189_v10  ;;  %v5217_v7 = vpop.permute.xlu2 %5216  ;;  %v10336_v0 = vmul.f32 %v10296_v3, %v5199_v13 }
 0xee2   : > { %v10301_v41 = vmul.f32 %v5217_v7, %v5190_v4 }
 0xee3   : > { %v5317_v6 = vmin.f32 %v5285_v63, 0.0  ;;  %vm5301_vm7 = vcmp.gt.f32.partialorder %v5285_v63, 0.0  ;;  %v5327_v3 = vmin.f32 %v10336_v0, 0.0 }
 0xee4   : > { %v6742_v59 = vpop.eup %6741  ;;  %v5318_v51 = vmin.f32 %v10301_v41, 0.0  ;;  %vm5302_vm12 = vcmp.gt.f32.partialorder %v10301_v41, 0.0 }
 0xee5   : > { %v6744_v27 = vpop.eup %6743  ;;  %v5924_v52 = vadd.f32 -1.0, %v6742_v59  ;;  %v5334_v40 = vmul.f32 1.442695, %v5317_v6 }
 0xee6   : > { %v6746_v43 = vpop.eup %6745  ;;  %v5925_v24 = vadd.f32 -1.0, %v6744_v27  ;;  %v5421_v44 = vld [vmem:[%s7269_s12 + $0x48] sm:$0xff]  ;;  %v5336_v29 = vmul.f32 1.442695, %v5318_v51 }
 0xee7   : > { %v5129_v38 = vsel %vm5049_vm15, %v5033_v48, %v5924_v52  ;;  %6747 = vpow2.f32 %v5334_v40  ;;  %v5941_v2 = vadd.f32 -1.0, %v6746_v43  ;;  %5491 = vmatmul.f32.gmra.mxu2 %v5421_v44  ;;  %v5422_v35 = vld [vmem:[%s7269_s12 + $0x50] sm:$0xff] }
 0xee8   : > { %5145 = vst.msk [vmem:[%s7269_s12 + $0x28] sm:$0xff] %vm3499_vm9, %v5129_v38  ;;  %v5130_v16 = vsel %vm5050_vm2, %v5034_v22, %v5925_v24  ;;  %6749 = vpow2.f32 %v5360_v12  ;;  %vm5311_vm2 = vcmp.gt.f32.partialorder %v10336_v0, 0.0 }
 0xee9   : > { %5401 = vst.msk [vmem:[%s7269_s12 + $0x28] sm:$0xff] %vm4351_vm10, %v5385_v15  ;;  %v5386_v18 = vsel %vm5306_vm3, %v5290_v31, %v5941_v2  ;;  %v5021_v17 = vpop.permute.xlu1 %5020  ;;  %v4986_v8 = vpop.permute.xlu0 %4985 }
 0xeea   : > { %5146 = vst.msk [vmem:[%s7269_s12 + $0x30] sm:$0xff] %vm3499_vm9, %v5130_v16  ;;  %v5042_v54 = vmul.f32 %v5202_v36, %v5021_v17  ;;  %v5026_v14 = vpop.permute.xlu2 %5025  ;;  %v5035_v9 = vmul.f32 %v4986_v8, %v10303_v57 }
 0xeeb   : > { %5402 = vst.msk [vmem:[%s7269_s12 + $0x30] sm:$0xff] %vm4351_vm10, %v5386_v18  ;;  %v10318_v19 = vmul.f32 %v5026_v14, %v9980_v58  ;;  %v5354_v18 = vmul.f32 1.442695, %v5327_v3 }
 0xeec   : > { %v5074_v45 = vmin.f32 %v5042_v54, 0.0  ;;  %v5067_v50 = vmin.f32 %v5035_v9, 0.0  ;;  %vm5058_vm8 = vcmp.gt.f32.partialorder %v5042_v54, 0.0  ;;  %vm5051_vm13 = vcmp.gt.f32.partialorder %v5035_v9, 0.0 }
 0xeed   : > { %v6748_v34 = vpop.eup %6747  ;;  %v5075_v58 = vmin.f32 %v10318_v19, 0.0  ;;  %vm5059_vm1 = vcmp.gt.f32.partialorder %v10318_v19, 0.0 }
 0xeee   : > { %v5936_v60 = vadd.f32 -1.0, %v6748_v34  ;;  %v5104_v56 = vmul.f32 1.442695, %v5074_v45  ;;  %v5090_v61 = vmul.f32 1.442695, %v5067_v50  ;;  %v6750_v30 = vpop.eup %6749 }
 0xeef   : > { %5494 = vmatmul.f32.gmra.mxu2 %v5422_v35  ;;  %v5949_v22 = vadd.f32 -1.0, %v6750_v30  ;;  %v5106_v49 = vmul.f32 1.442695, %v5075_v58 }
 0xef0   : > { %v5381_v23 = vsel %vm5301_vm7, %v5285_v63, %v5936_v60  ;;  %6751 = vpow2.f32 %v5104_v56  ;;  %v5417_v42 = vld [vmem:[%s7269_s12 + $0x28] sm:$0xff]  ;;  %v5203_v56 = vld [vmem:[#allocation6 + $0x78] sm:$0xff] }
 0xef1   : > { %5397 = vst.msk [vmem:[%s7269_s12 + $0x8] sm:$0xff] %vm4351_vm10, %v5381_v23  ;;  %v4961_v48 = vpop.permute.xlu1 %4960  ;;  %5479 = vmatmul.f32.gmra.mxu1 %v5417_v42  ;;  %6753 = vpow2.f32 %v5090_v61  ;;  %v5394_v21 = vsel %vm5314_vm6, %v10288_v46, %v5949_v22 }
 0xef2   : > { %v5030_v62 = vmul.f32 %v5190_v4, %v4961_v48  ;;  %v4966_v31 = vpop.permute.xlu2 %4965  ;;  %6755 = vpow2.f32 %v5336_v29  ;;  %v5418_v5 = vld [vmem:[%s7269_s12 + $0x30] sm:$0xff] }
 0xef3   : > { %v5031_v11 = vmul.f32 %v4966_v31, %v10320_v39 }
 0xef4   : > { %v5062_v28 = vmin.f32 %v5030_v62, 0.0  ;;  %vm5046_vm0 = vcmp.gt.f32.partialorder %v5030_v62, 0.0 }
 0xef5   : > { %v5063_v26 = vmin.f32 %v5031_v11, 0.0  ;;  %vm5047_vm4 = vcmp.gt.f32.partialorder %v5031_v11, 0.0 }
 0xef6   : > { %v6752_v53 = vpop.eup %6751  ;;  %v5080_v36 = vmul.f32 1.442695, %v5062_v28 }
 0xef7   : > { %v5933_v25 = vadd.f32 -1.0, %v6752_v53  ;;  %v5082_v55 = vmul.f32 1.442695, %v5063_v26  ;;  %v6754_v37 = vpop.eup %6753 }
 0xef8   : > { %6757 = vpow2.f32 %v5080_v36  ;;  %v5413_v10 = vld [vmem:[%s7269_s12 + $0x8] sm:$0xff]  ;;  %v6756_v47 = vpop.eup %6755  ;;  %v5926_v20 = vadd.f32 -1.0, %v6754_v37 }
 0xef9   : > { %v5138_v33 = vsel %vm5058_vm8, %v5042_v54, %v5933_v25  ;;  %6759 = vpow2.f32 %v5082_v55  ;;  %5467 = vmatmul.f32.gmra.mxu0 %v5413_v10  ;;  %5482 = vmatmul.f32.gmra.mxu1 %v5418_v5  ;;  %v5937_v6 = vadd.f32 -1.0, %v6756_v47  ;;  %v10378_v47 = vld [vmem:[%s11050_s18] ss:$0 sm:$0xff] }
 0xefa   : > { %5154 = vst.msk [vmem:[%s7269_s12 + $0x70] sm:$0xff] %vm3499_vm9, %v5138_v33  ;;  %v4770_v46 = vpop.permute.xlu1 %4769  ;;  %v5131_v7 = vsel %vm5051_vm13, %v5035_v9, %v5926_v20  ;;  %6761 = vpow2.f32 %v5106_v49 }
 0xefb   : > { %5410 = vst.msk [vmem:[%s7269_s12 + $0x70] sm:$0xff] %vm4351_vm10, %v5394_v21  ;;  %v4787_v63 = vmul.f32 %v6807_v1, %v4770_v46  ;;  %v5242_v32 = vpop.permute.xlu2 %5241  ;;  %v5382_v15 = vsel %vm5302_vm12, %v10301_v41, %v5937_v6  ;;  %v10385_v1 = vld [vmem:[%s11051_s3] ss:$0 sm:$0xff] }
 0xefc   : > { %5147 = vst.msk [vmem:[%s7269_s12 + $0x38] sm:$0xff] %vm3499_vm9, %v5131_v7  ;;  %v5291_v59 = vmul.f32 %v5242_v32, %v10303_v57 }
 0xefd   : > { %v4819_v4 = vmin.f32 %v4787_v63, 0.0  ;;  %vm4803_vm5 = vcmp.gt.f32.partialorder %v4787_v63, 0.0 }
 0xefe   : > { %v6758_v27 = vpop.eup %6757  ;;  %v5323_v52 = vmin.f32 %v5291_v59, 0.0  ;;  %vm5307_vm14 = vcmp.gt.f32.partialorder %v5291_v59, 0.0 }
 0xeff   : > { %v6760_v12 = vpop.eup %6759  ;;  %v5921_v40 = vadd.f32 -1.0, %v6758_v27  ;;  %v4850_v43 = vmul.f32 1.442695, %v4819_v4 }
 0xf00   : > { %v5922_v24 = vadd.f32 -1.0, %v6760_v12  ;;  %v5346_v44 = vmul.f32 1.442695, %v5323_v52  ;;  %v6762_v2 = vpop.eup %6761 }
 0xf01   : > { %v5126_v38 = vsel %vm5046_vm0, %v5030_v62, %v5921_v40  ;;  %6763 = vpow2.f32 %v4850_v43  ;;  %v5934_v8 = vadd.f32 -1.0, %v6762_v2 }
 0xf02   : > { %5142 = vst.msk [vmem:[%s7269_s12 + $0x10] sm:$0xff] %vm3499_vm9, %v5126_v38  ;;  %v5127_v57 = vsel %vm5047_vm4, %v5031_v11, %v5922_v24  ;;  %6765 = vpow2.f32 %v5346_v44  ;;  %v5426_v16 = vld [vmem:[%s7269_s12 + $0x70] sm:$0xff] }
 0xf03   : > { %5398 = vst.msk [vmem:[%s7269_s12 + $0x10] sm:$0xff] %vm4351_vm10, %v5382_v15  ;;  %v5006_v17 = vpop.permute.xlu1 %5005  ;;  %5506 = vmatmul.f32.gmra.mxu3 %v5426_v16  ;;  %6767 = vpow2.f32 %v5354_v18  ;;  %v5139_v35 = vsel %vm5059_vm1, %v10318_v19, %v5934_v8 }
 0xf04   : > { %5143 = vst.msk [vmem:[%s7269_s12 + $0x18] sm:$0xff] %vm3499_vm9, %v5127_v57  ;;  %v5039_v41 = vmul.f32 %v5199_v13, %v5006_v17 }
 0xf06   : > { %v5071_v54 = vmin.f32 %v5039_v41, 0.0 }
 0xf07   : > { %v6764_v14 = vpop.eup %6763 }
 0xf08   : > { %v6766_v9 = vpop.eup %6765  ;;  %v5918_v51 = vadd.f32 -1.0, %v6764_v14  ;;  %v5098_v45 = vmul.f32 1.442695, %v5071_v54 }
 0xf09   : > { %v5942_v50 = vadd.f32 -1.0, %v6766_v9  ;;  %v6768_v30 = vpop.eup %6767 }
 0xf0a   : > { %v4883_v34 = vsel %vm4803_vm5, %v4787_v63, %v5918_v51  ;;  %6769 = vpow2.f32 %v5098_v45  ;;  %v5414_v60 = vld [vmem:[%s7269_s12 + $0x10] sm:$0xff]  ;;  %v5946_v48 = vadd.f32 -1.0, %v6768_v30 }
 0xf0b   : > { %4899 = vst.msk [vmem:[%s7269_s12 + $0x78] sm:$0xff] %vm2647_vm11, %v4883_v34  ;;  %v5387_v61 = vsel %vm5307_vm14, %v5291_v59, %v5942_v50  ;;  %5470 = vmatmul.f32.gmra.mxu0 %v5414_v60  ;;  %vm5055_vm11 = vcmp.gt.f32.partialorder %v5039_v41, 0.0 }
 0xf0c   : > { %5155 = vst.msk [vmem:[%s7269_s12 + $0x78] sm:$0xff] %vm3499_vm9, %v5139_v35  ;;  %v5282_v29 = vpop.permute.xlu1 %5281  ;;  %v5391_v11 = vsel %vm5311_vm2, %v10336_v0, %v5946_v48 }
 0xf0d   : > { %5403 = vst.msk [vmem:[%s7269_s12 + $0x38] sm:$0xff] %vm4351_vm10, %v5387_v61  ;;  %v5299_v23 = vmul.f32 %v5282_v29, %v5203_v56 }
 0xf0f   : > { %v5331_v19 = vmin.f32 %v5299_v23, 0.0  ;;  %vm5315_vm15 = vcmp.gt.f32.partialorder %v5299_v23, 0.0 }
 0xf10   : > { %v6770_v42 = vpop.eup %6769 }
 0xf11   : > { %v5930_v62 = vadd.f32 -1.0, %v6770_v42  ;;  %v5362_v31 = vmul.f32 1.442695, %v5331_v19 }
 0xf13   : > { %v5135_v22 = vsel %vm5055_vm11, %v5039_v41, %v5930_v62  ;;  %6771 = vpow2.f32 %v5362_v31 }
 0xf14   : > { %5151 = vst.msk [vmem:[%s7269_s12 + $0x58] sm:$0xff] %vm3499_vm9, %v5135_v22  ;;  %v5222_v58 = vpop.permute.xlu1 %5221  ;;  %v5419_v28 = vld [vmem:[%s7269_s12 + $0x38] sm:$0xff] }
 0xf15   : > { %5407 = vst.msk [vmem:[%s7269_s12 + $0x58] sm:$0xff] %vm4351_vm10, %v5391_v11  ;;  %v5287_v26 = vmul.f32 %v5222_v58, %v10320_v39  ;;  %5485 = vmatmul.f32.gmra.mxu1 %v5419_v28 }
 0xf17   : > { %v5319_v53 = vmin.f32 %v5287_v26, 0.0  ;;  %vm5303_vm9 = vcmp.gt.f32.partialorder %v5287_v26, 0.0 }
 0xf19   : > { %v6772_v36 = vpop.eup %6771  ;;  %v5338_v5 = vmul.f32 1.442695, %v5319_v53 }
 0xf1a   : > { %v5950_v21 = vadd.f32 -1.0, %v6772_v36 }
 0xf1b   : > { %6773 = vpow2.f32 %v5338_v5 }
 0xf1c   : > { %v5395_v25 = vsel %vm5315_vm15, %v5299_v23, %v5950_v21  ;;  %v5423_v55 = vld [vmem:[%s7269_s12 + $0x58] sm:$0xff] }
 0xf1d   : > { %5411 = vst.msk [vmem:[%s7269_s12 + $0x78] sm:$0xff] %vm4351_vm10, %v5395_v25  ;;  %5497 = vmatmul.f32.gmra.mxu2 %v5423_v55 }
 0xf21   : > { %v6774_v37 = vpop.eup %6773 }
 0xf22   : > { %v5938_v49 = vadd.f32 -1.0, %v6774_v37 }
 0xf24   : > { %v5383_v13 = vsel %vm5303_vm9, %v5287_v26, %v5938_v49  ;;  %v5427_v39 = vld [vmem:[%s7269_s12 + $0x78] sm:$0xff] }
 0xf25   : > { %5399 = vst.msk [vmem:[%s7269_s12 + $0x18] sm:$0xff] %vm4351_vm10, %v5383_v13  ;;  %5509 = vmatmul.f32.gmra.mxu3 %v5427_v39  ;;  %vm11052_vm10 = vcmask 7168  }
 0xf26   : > { %vm11053_vm3 = vmmov %vm11052_vm10 }
 0xf27   : > { %vm11054_vm7 = vmmov %vm11053_vm3 }
 0xf28   : > { %vm11055_vm6 = vmmov %vm11053_vm3 }
 0xf29   : > { %vm11056_vm8 = vmmov %vm11053_vm3 }
 0xf2a   : > { %vm11057_vm13 = vmmov %vm11053_vm3 }
 0xf2b   : > { %vm11058_vm12 = vmmov %vm11053_vm3 }
 0xf2c   : > { %v5415_v10 = vld [vmem:[%s7269_s12 + $0x18] sm:$0xff]  ;;  %vm11059_vm4 = vmmov %vm11053_vm3 }
 0xf2d   : > { %5473 = vmatmul.f32.gmra.mxu0 %v5415_v10  ;;  %vm11060_vm0 = vmmov %vm11053_vm3 }
 0xf2e   : > { %vm11061_vm1 = vmmov %vm11060_vm0 }
 0xf2f   : > { %vm11062_vm14 = vmmov %vm11060_vm0 }
 0xf30   : > { %vm11063_vm5 = vmmov %vm11060_vm0 }
 0xf31   : > { %vm11064_vm2 = vmmov %vm11060_vm0 }
 0xf32   : > { %vm11065_vm11 = vmmov %vm11060_vm0 }
 0xf33   : > { %vm11066_vm15 = vmmov %vm11060_vm0 }
 0xf34   : > { %vm11067_vm9 = vmmov %vm11060_vm0 }
 0xf3b   : > { %v5465_v33 = vpop.f32.mrf.mxu0 }
 0xf3c   : > { %v5466_v20 = vadd.f32 %v10378_v47, %v5465_v33 }
 0xf3e   : > { %6775 = vtanh.f32 %v5466_v20 }
 0xf40   : > { %v5489_v46 = vpop.f32.mrf.mxu2 }
 0xf41   : > { %v5490_v0 = vadd.f32 %v10378_v47, %v5489_v46 }
 0xf43   : > { %6777 = vtanh.f32 %v5490_v0 }
 0xf44   : > { %v6776_v63 = vpop.eup %6775 }
 0xf45   : > { %v5533_v7 = vmul.f32 %v6776_v63, %v10385_v1 }
 0xf47   : > { %5549 = vadd.xlane.f32.xlu1 %v5533_v7 }
 0xf49   : > { %v6778_v32 = vpop.eup %6777 }
 0xf4a   : > { %v5541_v6 = vmul.f32 %v6778_v32, %v10385_v1 }
 0xf4c   : > { %5565 = vadd.xlane.f32.xlu2 %v5541_v6 }
 0xf4f   : > { %v5501_v59 = vpop.f32.mrf.mxu3 }
 0xf50   : > { %v5502_v4 = vadd.f32 %v10378_v47, %v5501_v59 }
 0xf52   : > { %6779 = vtanh.f32 %v5502_v4 }
 0xf58   : > { %v6780_v27 = vpop.eup %6779 }
 0xf59   : > { %v5545_v52 = vmul.f32 %v6780_v27, %v10385_v1 }
 0xf5a   : > { %v5504_v23 = vpop.f32.mrf.mxu3 }
 0xf5b   : > { %5573 = vadd.xlane.f32.xlu0 %v5545_v52  ;;  %v5505_v42 = vadd.f32 %v10378_v47, %v5504_v23 }
 0xf5c   : > { %v5477_v12 = vpop.f32.mrf.mxu1 }
 0xf5d   : > { %v5478_v3 = vadd.f32 %v10378_v47, %v5477_v12 }
 0xf5f   : > { %6781 = vtanh.f32 %v5478_v3 }
 0xf65   : > { %v6782_v40 = vpop.eup %6781 }
 0xf66   : > { %v5537_v43 = vmul.f32 %v6782_v40, %v10385_v1 }
 0xf68   : > { %5557 = vadd.xlane.f32.xlu1 %v5537_v43 }
 0xf6a   : > { %v5492_v15 = vpop.f32.mrf.mxu2 }
 0xf6b   : > { %v5493_v24 = vadd.f32 %v10378_v47, %v5492_v15 }
 0xf6d   : > { %6783 = vtanh.f32 %v5493_v24 }
 0xf6e   : > { %v5480_v17 = vpop.f32.mrf.mxu1 }
 0xf6f   : > { %v5481_v8 = vadd.f32 %v10378_v47, %v5480_v17 }
 0xf72   : > { %v5495_v44 = vpop.f32.mrf.mxu2 }
 0xf73   : > { %v6784_v38 = vpop.eup %6783  ;;  %v5496_v2 = vadd.f32 %v10378_v47, %v5495_v44 }
 0xf74   : > { %v5542_v57 = vmul.f32 %v6784_v38, %v10385_v1 }
 0xf75   : > { %6785 = vtanh.f32 %v5496_v2 }
 0xf76   : > { %5567 = vadd.xlane.f32.xlu0 %v5542_v57  ;;  %v5468_v16 = vpop.f32.mrf.mxu0  ;;  %v5483_v34 = vpop.f32.mrf.mxu1 }
 0xf77   : > { %v5469_v18 = vadd.f32 %v10378_v47, %v5468_v16  ;;  %v5484_v60 = vadd.f32 %v10378_v47, %v5483_v34 }
 0xf79   : > { %6787 = vtanh.f32 %v5469_v18 }
 0xf7a   : > { %6789 = vtanh.f32 %v5481_v8 }
 0xf7b   : > { %v6786_v41 = vpop.eup %6785 }
 0xf7c   : > { %v5543_v54 = vmul.f32 %v6786_v41, %v10385_v1 }
 0xf7e   : > { %5569 = vadd.xlane.f32.xlu1 %v5543_v54 }
 0xf7f   : > { %v6788_v14 = vpop.eup %6787 }
 0xf80   : > { %v5534_v9 = vmul.f32 %v6788_v14, %v10385_v1  ;;  %v6790_v51 = vpop.eup %6789 }
 0xf81   : > { %v5538_v35 = vmul.f32 %v6790_v51, %v10385_v1 }
 0xf82   : > { %5551 = vadd.xlane.f32.xlu2 %v5534_v9 }
 0xf86   : > { %v5507_v22 = vpop.f32.mrf.mxu3 }
 0xf87   : > { %v5508_v13 = vadd.f32 %v10378_v47, %v5507_v22 }
 0xf88   : > { %v5471_v45 = vpop.f32.mrf.mxu0 }
 0xf89   : > { %v5472_v50 = vadd.f32 %v10378_v47, %v5471_v45 }
 0xf8a   : > { %5559 = vadd.xlane.f32.xlu2 %v5538_v35 }
 0xf8b   : > { %6791 = vtanh.f32 %v5472_v50 }
 0xf8c   : > { %6793 = vtanh.f32 %v5484_v60 }
 0xf91   : > { %v6792_v56 = vpop.eup %6791 }
 0xf92   : > { %v5486_v61 = vpop.f32.mrf.mxu1  ;;  %v5535_v29 = vmul.f32 %v6792_v56, %v10385_v1  ;;  %v6794_v19 = vpop.eup %6793 }
 0xf93   : > { %v5487_v30 = vadd.f32 %v10378_v47, %v5486_v61  ;;  %v5539_v48 = vmul.f32 %v6794_v19, %v10385_v1 }
 0xf94   : > { %5553 = vadd.xlane.f32.xlu0 %v5535_v29 }
 0xf95   : > { %6795 = vtanh.f32 %v5487_v30 }
 0xf96   : > { %6797 = vtanh.f32 %v5505_v42 }
 0xf9b   : > { %v6796_v62 = vpop.eup %6795 }
 0xf9c   : > { %5561 = vadd.xlane.f32.xlu0 %v5539_v48  ;;  %v5540_v31 = vmul.f32 %v6796_v62, %v10385_v1  ;;  %v6798_v11 = vpop.eup %6797 }
 0xf9d   : > { %v5546_v58 = vmul.f32 %v6798_v11, %v10385_v1 }
 0xf9e   : > { %5563 = vadd.xlane.f32.xlu1 %v5540_v31 }
 0xfa0   : > { %v5498_v5 = vpop.f32.mrf.mxu2 }
 0xfa1   : > { %v5499_v21 = vadd.f32 %v10378_v47, %v5498_v5 }
 0xfa6   : > { %5575 = vadd.xlane.f32.xlu1 %v5546_v58 }
 0xfa8   : > { %v5510_v28 = vpop.f32.mrf.mxu3 }
 0xfa9   : > { %v5511_v26 = vadd.f32 %v10378_v47, %v5510_v28 }
 0xfaa   : > { %v5474_v53 = vpop.f32.mrf.mxu0 }
 0xfab   : > { %6799 = vtanh.f32 %v5511_v26  ;;  %v5475_v36 = vadd.f32 %v10378_v47, %v5474_v53 }
 0xfad   : > { %6801 = vtanh.f32 %v5475_v36 }
 0xfae   : > { %6803 = vtanh.f32 %v5499_v21 }
 0xfaf   : > { %6805 = vtanh.f32 %v5508_v13 }
 0xfb1   : > { %v6800_v25 = vpop.eup %6799 }
 0xfb2   : > { %v5548_v55 = vmul.f32 %v6800_v25, %v10385_v1 }
 0xfb3   : > { %v6802_v37 = vpop.eup %6801 }
 0xfb4   : > { %5579 = vadd.xlane.f32.xlu0 %v5548_v55  ;;  %v5536_v49 = vmul.f32 %v6802_v37, %v10385_v1  ;;  %v6804_v39 = vpop.eup %6803 }
 0xfb5   : > { %v5544_v33 = vmul.f32 %v6804_v39, %v10385_v1  ;;  %v6806_v46 = vpop.eup %6805 }
 0xfb6   : > { %5555 = vadd.xlane.f32.xlu2 %v5536_v49  ;;  %v5547_v0 = vmul.f32 %v6806_v46, %v10385_v1 }
 0xfba   : > { %v5550_v10 = vpop.xlane.xlu1 %5549 }
 0xfbb   : > { %5581 = vst.msk [vmem:[%s7265_s16] sm:$0xff] %vm11052_vm10, %v5550_v10 }
 0xfbe   : > { %5571 = vadd.xlane.f32.xlu2 %v5544_v33 }
 0xfbf   : > { %v5566_v20 = vpop.xlane.xlu2 %5565 }
 0xfc0   : > { %5589 = vst.msk [vmem:[%s7265_s16 + $0x40] sm:$0xff] %vm11053_vm3, %v5566_v20 }
 0xfc6   : > { %5577 = vadd.xlane.f32.xlu2 %v5547_v0 }
 0xfce   : > { %v5574_v47 = vpop.xlane.xlu0 %5573 }
 0xfcf   : > { %5593 = vst.msk [vmem:[%s7265_s16 + $0x60] sm:$0xff] %vm11054_vm7, %v5574_v47 }
 0xfdb   : > { %v5558_v63 = vpop.xlane.xlu1 %5557 }
 0xfdc   : > { %5585 = vst.msk [vmem:[%s7265_s16 + $0x20] sm:$0xff] %vm11055_vm6, %v5558_v63 }
 0xfe9   : > { %v5568_v7 = vpop.xlane.xlu0 %5567 }
 0xfea   : > { %5590 = vst.msk [vmem:[%s7265_s16 + $0x48] sm:$0xff] %vm11056_vm8, %v5568_v7 }
 0xff1   : > { %v5570_v32 = vpop.xlane.xlu1 %5569 }
 0xff2   : > { %5591 = vst.msk [vmem:[%s7265_s16 + $0x50] sm:$0xff] %vm11057_vm13, %v5570_v32 }
 0xff5   : > { %v5552_v6 = vpop.xlane.xlu2 %5551 }
 0xff6   : > { %5582 = vst.msk [vmem:[%s7265_s16 + $0x8] sm:$0xff] %vm11058_vm12, %v5552_v6 }
 0xffd   : > { %v5560_v1 = vpop.xlane.xlu2 %5559 }
 0xffe   : > { %5586 = vst.msk [vmem:[%s7265_s16 + $0x28] sm:$0xff] %vm11059_vm4, %v5560_v1 }
0x1007   : > { %v5554_v59 = vpop.xlane.xlu0 %5553 }
0x1008   : > { %5583 = vst.msk [vmem:[%s7265_s16 + $0x10] sm:$0xff] %vm11060_vm0, %v5554_v59 }
0x100f   : > { %v5562_v4 = vpop.xlane.xlu0 %5561 }
0x1010   : > { %5587 = vst.msk [vmem:[%s7265_s16 + $0x30] sm:$0xff] %vm11061_vm1, %v5562_v4 }
0x1011   : > { %v5564_v27 = vpop.xlane.xlu1 %5563 }
0x1012   : > { %5588 = vst.msk [vmem:[%s7265_s16 + $0x38] sm:$0xff] %vm11062_vm14, %v5564_v27 }
0x1019   : > { %v5576_v52 = vpop.xlane.xlu1 %5575 }
0x101a   : > { %5594 = vst.msk [vmem:[%s7265_s16 + $0x68] sm:$0xff] %vm11063_vm5, %v5576_v52 }
0x1027   : > { %v5580_v12 = vpop.xlane.xlu0 %5579 }
0x1028   : > { %5596 = vst.msk [vmem:[%s7265_s16 + $0x78] sm:$0xff] %vm11064_vm2, %v5580_v12 }
0x1029   : > { %v5556_v3 = vpop.xlane.xlu2 %5555 }
0x102a   : > { %5584 = vst.msk [vmem:[%s7265_s16 + $0x18] sm:$0xff] %vm11065_vm11, %v5556_v3 }
0x1031   : > { %v5572_v40 = vpop.xlane.xlu2 %5571 }
0x1032   : > { %5592 = vst.msk [vmem:[%s7265_s16 + $0x58] sm:$0xff] %vm11066_vm15, %v5572_v40 }
0x1039   : > { %v5578_v43 = vpop.xlane.xlu2 %5577 }
0x103a   : > { %5595 = vst.msk [vmem:[%s7265_s16 + $0x70] sm:$0xff] %vm11067_vm9, %v5578_v43 }
0x103b PF: > { %s11068_s1 = sld [smem:[#allocation20_spill]]  ;;  %s5621_s5 = sshll.u32 %s7269_s12, 4  ;;  %s5622_s5 = int_to_ptr.vmem [resolvable:$true] %s5621_s5 }
0x103c   : > { %s11069_s24 = sld [smem:[#allocation122_spill]]  ;;  %s11071_s30 = sand.u32 1, %s6938_s14  }
0x103d   : > { %s5598_s22 = scalar_lea.sflag [#allocation9], %s11071_s30 }
0x1041   : > { %s5953_s20 = sshll.u32 %s11068_s1, 5 }
0x1042   : > { %s5618_s21 = sadd.s32 %s5953_s20, %s7235_s9  ;;  %s11070_s29 = smov %s11069_s24 }
0x1043   : > { %s5954_s15 = sshll.u32 %s5618_s21, 3  ;;  %s6856_s12 = scalar_lea.hbm %s11070_s29, 768 }
0x1044   : > { %s5620_s25 = scalar_lea.hbm %s11069_s24, %s5954_s15 }
0x1045   : > { %s5623_s26 = sshll.u32 %s5620_s25, 4  ;;  %s5624_s26 = int_to_ptr.hbm [resolvable:$true] %s5623_s26 }
0x1046   : > { %s6850_s16 = sshra.s32 %s5624_s26, 4  ;;  %s6851_s16 = int_to_ptr.hbm [resolvable:$true] %s6850_s16 }
0x1047   : > { %s6852_s8 = scalar_lea.hbm %s6851_s16, 128  ;;  %p6857_p8 = scmp.lt.s32.totalorder %s6851_s16, %s11070_s29 }
0x1048   : > { %p6853_p1 = scmp.ne.s32.totalorder %s6851_s16, %s6852_s8  ;;  %p6858_p6 = scmp.lt.s32.totalorder %s6856_s12, %s6852_s8 }
0x104a   : > { %p6854_p2 = pnand %p6853_p1, %p7186_p3  ;;  %p6859_p9 = por %p6858_p6, %p6857_p8 }
0x104c   : > { %p6855_p4 = pneg %p6854_p2 }
0x104e   : > { %p6860_p10 = pnand %p6859_p9, %p6855_p4 }
0x1050   : > { %6863 = shalt.err (!%p6860_p10)
}
0x1051   : > { %s7007_s11 = smov 128   ;;  %s7008_s23 = smov 8  }
0x1052   : > { %6038 = dma.vmem_to_hbm [thread:$0]  (%p7186_p3), %s5622_s5, 2048, %s5624_s26, %s5598_s22, %s7007_s11, %s7007_s11, %s7008_s23  }
0x1053 PF: > { %p6044_p11 = scmp.ge.s32.totalorder %s6990_s27, 2  ;;  %s5642_s10 = sand.u32 1, %s6934_s13  }
0x1054   : > { %s5643_s6 = scalar_lea.sflag [#allocation9], %s5642_s10 }
0x1055   : > { %p6041_p12 = pnand %p6044_p11, %p7200_p5 }
0x1057   : > { %p6042_p7 = pneg %p6041_p12 }
0x1059   : > { %6929 = dma.done.wait (%p6042_p7), %s5643_s6, 2048  }
0x105a   : > { %6931 = vsyncadd (%p6042_p7), %s5643_s6, 4294965248  ;;  %s27_s27 = sadd.s32 1, %s6990_s27   ;;  %s11074_s0 = sld [smem:[#allocation14_spill]] }
0x105b   : > { %p10472_p13 = scmp.ge.s32.totalorder %s27_s27, 14   ;;  %s11075_s15 = sld [smem:[#allocation28_spill]] }
0x105c   : > { %s11076_s16 = sld [smem:[#allocation15_spill]]  ;;  %s11087_s13 = smov %s6938_s14 }
0x105d   : > { %s11077_s17 = sld [smem:[#allocation29_spill]] }
0x105e   : > { %s11078_s18 = sld [smem:[#allocation16_spill]] }
0x105f   : > { %s11079_s19 = sld [smem:[#allocation17_spill]] }
0x1060   : > { %s11080_s20 = sld [smem:[#allocation27_spill]]  ;;  %s11088_s14 = smov %s11074_s0 }
0x1061   : > { %s11081_s21 = sld [smem:[#allocation21_spill]] }
0x1062   : > { %s11082_s22 = sld [smem:[#allocation22_spill]]  ;;  %26 = sbr.rel (!%p10472_p13) target bundleno = 23 (0x17), region = 179 }
0x1063   : > { %s11083_s23 = sld [smem:[#allocation23_spill]] }
0x1064   : > { %s11084_s24 = sld [smem:[#allocation24_spill]] }
0x1065   : > { %s11085_s25 = sld [smem:[#allocation25_spill]] }
0x1066   : > { %s11086_s26 = sld [smem:[#allocation26_spill]] }
0x1067   :  { %5661 = vsyncpa [#allocation8], 1 }
0x1068   :  { %5663 = vsyncpa [#allocation8 + $0x1], 1 }
0x1069   :  { %5664 = vsyncpa [#allocation9], 1 }
0x106a   :  { %5666 = vsyncpa [#allocation9 + $0x1], 1 }

</bundles_post_ra>
